<compile_context>
chip_gen: v5e
topology: v5e:2x2
jax: 0.10.0
libtpu: 0.0.40
codegen_flags: <defaults>
</compile_context>

<pallas_src>
import functools

import jax
import jax.numpy as jnp
from jax.experimental import pallas as pl
from jax.experimental.pallas import tpu as pltpu

EMB_SIZE = 300
E_HIDDEN_DIM = 512
LN_EPS = 1e-6
LANE = 128
EMB_PAD = ((EMB_SIZE + LANE - 1) // LANE) * LANE  # 384 = 3 * 128


# ---------------------------------------------------------------------------
# Kernel
# ---------------------------------------------------------------------------

def _encoder_kernel(len_ref,                        # scalar prefetch: (B,) int32
                    x_ref, g0_ref, b0_ref,          # input + encoder LN
                    wqkv_ref, wfc_ref, g1_ref, beta1_ref,   # MHA
                    w1_ref, fb1_ref, w2_ref, fb2_ref, g2_ref, beta2_ref,  # FFN
                    o_ref, *, n_layers, n_head, key_dim, value_dim, emb_dim,
                    batch_chunk, seq_len):
    chunk = pl.program_id(0)
    M = batch_chunk * seq_len
    EP = x_ref.shape[-1]
    qdim = n_head * key_dim

    # Lane-validity mask for LayerNorm over the zero-padded embedding dim.
    lane_ok = (jax.lax.broadcasted_iota(jnp.int32, (M, EP), 1) < emb_dim
               ).astype(jnp.float32)

    def layernorm(z, gamma, beta):
        # Centered two-pass with lane masking (padded lanes contribute nothing
        # to mean/var; gamma/beta are zero on padded lanes -> output stays 0).
        inv_n = jnp.float32(1.0 / emb_dim)
        mean = jnp.sum(z, axis=-1, keepdims=True) * inv_n
        d = (z - mean) * lane_ok
        var = jnp.sum(d * d, axis=-1, keepdims=True) * inv_n
        return d * jax.lax.rsqrt(var + jnp.float32(LN_EPS)) * gamma + beta

    # Block-diagonal (per batch element) + key-length attention mask for the
    # whole chunk, built from prefetched lengths.  No integer div/mod.
    rows = jax.lax.broadcasted_iota(jnp.int32, (M, M), 0)
    cols = jax.lax.broadcasted_iota(jnp.int32, (M, M), 1)
    valid = jnp.zeros((M, M), dtype=jnp.bool_)
    for b in range(batch_chunk):
        lb = len_ref[chunk * batch_chunk + b]
        blk = ((rows >= b * seq_len) & (rows < (b + 1) * seq_len)
               & (cols >= b * seq_len) & (cols < b * seq_len + lb))
        valid = valid | blk
    neg_fill = jnp.float32(-1e7)   # matches torch masked_fill(-10000000.0)
    # TODO(synk): a zero-length row makes softmax degenerate (same as the
    # PyTorch reference); not guarded here.

    # Encoder-level LayerNorm (dropout is identity at inference).
    h = layernorm(x_ref[...].reshape(M, EP), g0_ref[...], b0_ref[...])

    for layer in range(n_layers):
        # ------------------------ multi-head self-attention -----------------
        resid = h
        hb = h.astype(jnp.bfloat16)
        # One fused N=384 matmul for Q|K|V (temperature pre-folded into wq).
        qkv = jnp.dot(hb, wqkv_ref[layer], preferred_element_type=jnp.float32)
        q = qkv[:, :qdim]                 # 128-lane-aligned slices (free)
        k = qkv[:, qdim:2 * qdim]
        v = qkv[:, 2 * qdim:2 * qdim + n_head * value_dim]

        attn_out = jnp.zeros((M, EP), jnp.float32)
        for hh in range(n_head):
            qh = q[:, hh * key_dim:(hh + 1) * key_dim].astype(jnp.bfloat16)
            kh = k[:, hh * key_dim:(hh + 1) * key_dim].astype(jnp.bfloat16)
            vh = v[:, hh * value_dim:(hh + 1) * value_dim].astype(jnp.bfloat16)
            # (M, M) chunk-wide scores; block-diagonal mask keeps batches apart.
            s = jax.lax.dot_general(qh, kh, (((1,), (1,)), ((), ())),
                                    preferred_element_type=jnp.float32)
            s = jnp.where(valid, s, neg_fill)
            m = jnp.max(s, axis=-1, keepdims=True)
            e = jnp.exp(s - m)
            p = e * pl.reciprocal(jnp.sum(e, axis=-1, keepdims=True),
                                  approx=True)               # EUP, ~free slot
            ctx = jnp.dot(p.astype(jnp.bfloat16), vh,
                          preferred_element_type=jnp.float32)
            # Accumulate the fc projection per head (no lane-concat of heads).
            attn_out = attn_out + jnp.dot(
                ctx.astype(jnp.bfloat16), wfc_ref[layer * n_head + hh],
                preferred_element_type=jnp.float32)

        h = layernorm(attn_out + resid, g1_ref[layer], beta1_ref[layer])

        # ------------------------ position-wise feed-forward ----------------
        resid = h
        hb = h.astype(jnp.bfloat16)
        f = jnp.dot(hb, w1_ref[layer],
                    preferred_element_type=jnp.float32) + fb1_ref[layer]
        f = jnp.maximum(f, 0.0)
        f = jnp.dot(f.astype(jnp.bfloat16), w2_ref[layer],
                    preferred_element_type=jnp.float32) + fb2_ref[layer]
        h = layernorm(f + resid, g2_ref[layer], beta2_ref[layer])

    o_ref[...] = h.reshape(batch_chunk, seq_len, EP)


# ---------------------------------------------------------------------------
# Wrapper
# ---------------------------------------------------------------------------

def _full_spec(shape):
    zeros = (0,) * len(shape)
    return pl.BlockSpec(shape, lambda c, lens, _z=zeros: _z)


def encoder_forward(packed, x, lengths, n_layers, n_head, key_dim, value_dim):
    """x: (B, S, EMB_SIZE) f32; lengths: (B,) int32 (#valid key positions)."""
    B, S, E = x.shape
    EP = packed["g0"].shape[-1]
    x_p = jnp.pad(x, ((0, 0), (0, 0), (0, EP - E)))

    # 2 parallel grid steps keeps both v7x TensorCores busy; batch elements in
    # each chunk are folded into the matmul M dimension.
    num_chunks = 2 if (B >= 2 and B % 2 == 0) else 1
    b_chunk = B // num_chunks

    kern = functools.partial(_encoder_kernel, n_layers=n_layers, n_head=n_head,
                             key_dim=key_dim, value_dim=value_dim, emb_dim=E,
                             batch_chunk=b_chunk, seq_len=S)

    act_spec = pl.BlockSpec((b_chunk, S, EP), lambda c, lens: (c, 0, 0))

    # Scoped-VMEM limit sized to the (double-buffered) stacked bf16 weights.
    weight_bytes = sum(int(v.size) * v.dtype.itemsize for v in packed.values())
    vmem_limit = min(64 << 20, max(32 << 20, 2 * weight_bytes + (8 << 20)))

    out = pl.pallas_call(
        kern,
        out_shape=jax.ShapeDtypeStruct((B, S, EP), jnp.float32),
        grid_spec=pltpu.PrefetchScalarGridSpec(
            num_scalar_prefetch=1,
            grid=(num_chunks,),
            in_specs=[
                act_spec,
                _full_spec(packed["g0"].shape), _full_spec(packed["b0"].shape),
                _full_spec(packed["wqkv"].shape), _full_spec(packed["wfc"].shape),
                _full_spec(packed["g1"].shape), _full_spec(packed["beta1"].shape),
                _full_spec(packed["w1"].shape), _full_spec(packed["fb1"].shape),
                _full_spec(packed["w2"].shape), _full_spec(packed["fb2"].shape),
                _full_spec(packed["g2"].shape), _full_spec(packed["beta2"].shape),
            ],
            out_specs=act_spec,
        ),
        compiler_params=pltpu.CompilerParams(
            dimension_semantics=("parallel",),
            vmem_limit_bytes=vmem_limit),
    )(lengths, x_p,
      packed["g0"], packed["b0"],
      packed["wqkv"], packed["wfc"],
      packed["g1"], packed["beta1"],
      packed["w1"], packed["fb1"], packed["w2"], packed["fb2"],
      packed["g2"], packed["beta2"])

    return (out[..., :E],)


# ---------------------------------------------------------------------------
# Parameters (deterministic synthetic, torch-Linear-like layouts)
# ---------------------------------------------------------------------------

def init_encoder_params(key, n_layers, n_head, key_dim, value_dim):
    params = {"ln0_g": jnp.ones((1, EMB_SIZE), jnp.float32),
              "ln0_b": jnp.zeros((1, EMB_SIZE), jnp.float32),
              "layers": []}
    for _ in range(n_layers):
        key, *ks = jax.random.split(key, 7)
        lp = {
            "wq": jax.random.normal(ks[0], (EMB_SIZE, n_head * key_dim), jnp.float32) * 0.02,
            "wk": jax.random.normal(ks[1], (EMB_SIZE, n_head * key_dim), jnp.float32) * 0.02,
            "wv": jax.random.normal(ks[2], (EMB_SIZE, n_head * value_dim), jnp.float32) * 0.02,
            "wfc": jax.random.normal(ks[3], (n_head * value_dim, EMB_SIZE), jnp.float32) * 0.02,
            "ln1_g": jnp.ones((1, EMB_SIZE), jnp.float32),
            "ln1_b": jnp.zeros((1, EMB_SIZE), jnp.float32),
            "w1": jax.random.normal(ks[4], (EMB_SIZE, E_HIDDEN_DIM), jnp.float32) * 0.02,
            "b1": jnp.zeros((1, E_HIDDEN_DIM), jnp.float32),
            "w2": jax.random.normal(ks[5], (E_HIDDEN_DIM, EMB_SIZE), jnp.float32) * 0.02,
            "b2": jnp.zeros((1, EMB_SIZE), jnp.float32),
            "ln2_g": jnp.ones((1, EMB_SIZE), jnp.float32),
            "ln2_b": jnp.zeros((1, EMB_SIZE), jnp.float32),
        }
        params["layers"].append(lp)
    return params


def pack_params(params, n_head, key_dim, value_dim):
    """Pad E -> EMB_PAD, fuse Q|K|V, fold the softmax temperature into wq,
    pre-split wfc per head, stack per-layer weights, pre-cast matmul weights
    to bf16."""
    pad_in = lambda w: jnp.pad(w, ((0, EMB_PAD - w.shape[0]), (0, 0)))   # rows = E
    pad_out = lambda w: jnp.pad(w, ((0, 0), (0, EMB_PAD - w.shape[1])))  # cols = E
    pad_vec = lambda v: jnp.pad(v, ((0, 0), (0, EMB_PAD - v.shape[1])))
    L = params["layers"]
    inv_temp = 1.0 / (key_dim ** 0.5)

    def qkv_of(lp):                      # (EMB_PAD, 3*H*Dk), temp folded into wq
        return pad_in(jnp.concatenate([lp["wq"] * inv_temp, lp["wk"], lp["wv"]],
                                      axis=1))

    def fc_heads(lp):                    # (H, Dv, EMB_PAD)
        return pad_out(lp["wfc"]).reshape(n_head, value_dim, EMB_PAD)

    return {
        "g0": pad_vec(params["ln0_g"]), "b0": pad_vec(params["ln0_b"]),
        "wqkv": jnp.stack([qkv_of(lp) for lp in L]).astype(jnp.bfloat16),
        "wfc": jnp.concatenate([fc_heads(lp) for lp in L], axis=0).astype(jnp.bfloat16),
        "g1": jnp.stack([pad_vec(lp["ln1_g"]) for lp in L]),
        "beta1": jnp.stack([pad_vec(lp["ln1_b"]) for lp in L]),
        "w1": jnp.stack([pad_in(lp["w1"]) for lp in L]).astype(jnp.bfloat16),
        "fb1": jnp.stack([lp["b1"] for lp in L]),
        "w2": jnp.stack([pad_out(lp["w2"]) for lp in L]).astype(jnp.bfloat16),
        "fb2": jnp.stack([pad_vec(lp["b2"]) for lp in L]),
        "g2": jnp.stack([pad_vec(lp["ln2_g"]) for lp in L]),
        "beta2": jnp.stack([pad_vec(lp["ln2_b"]) for lp in L]),
    }


# ---------------------------------------------------------------------------
# Pure-JAX f32 reference (same math as the PyTorch module, dropout = identity)
# ---------------------------------------------------------------------------

def encoder_reference(params, x, lengths, n_head, key_dim, value_dim):
    B, S, _ = x.shape
    j = jnp.arange(S)[None, None, :]
    mask = jnp.broadcast_to(j < lengths[:, None, None], (B, S, S))

    def ln(z, g, b):
        mean = jnp.mean(z, -1, keepdims=True)
        var = jnp.mean((z - mean) ** 2, -1, keepdims=True)
        return (z - mean) / jnp.sqrt(var + LN_EPS) * g + b

    h = ln(x, params["ln0_g"], params["ln0_b"])
    for lp in params["layers"]:
        resid = h
        q = (h @ lp["wq"]).reshape(B, S, n_head, key_dim).transpose(0, 2, 1, 3)
        k = (h @ lp["wk"]).reshape(B, S, n_head, key_dim).transpose(0, 2, 1, 3)
        v = (h @ lp["wv"]).reshape(B, S, n_head, value_dim).transpose(0, 2, 1, 3)
        s = jnp.einsum("bhid,bhjd->bhij", q / (key_dim ** 0.5), k)
        s = jnp.where(mask[:, None, :, :], s, -1e7)
        p = jax.nn.softmax(s, axis=-1)
        o = jnp.einsum("bhij,bhjd->bhid", p, v)
        o = o.transpose(0, 2, 1, 3).reshape(B, S, n_head * value_dim)
        h = ln(o @ lp["wfc"] + resid, lp["ln1_g"], lp["ln1_b"])
        resid = h
        f = jnp.maximum(h @ lp["w1"] + lp["b1"], 0.0)
        h = ln(f @ lp["w2"] + lp["b2"] + resid, lp["ln2_g"], lp["ln2_b"])
    return h


# ---------------------------------------------------------------------------

if __name__ == "__main__":
    n_layers, n_head, key_dim, value_dim = 2, 4, 32, 32
    B, S = 4, 8

    key = jax.random.PRNGKey(0)
    k_x, k_p = jax.random.split(key)
    x = jax.random.normal(k_x, (B, S, EMB_SIZE), jnp.float32)
    # Valid key positions per batch (replaces the dense (B,S,S) mask).
    lengths = jnp.array([8, 6, 7, 5], jnp.int32)

    params = init_encoder_params(k_p, n_layers, n_head, key_dim, value_dim)
    packed = pack_params(params, n_head, key_dim, value_dim)

    (out,) = encoder_forward(packed, x, lengths, n_layers, n_head, key_dim, value_dim)
    jax.block_until_ready(out)
    assert out.shape == (B, S, EMB_SIZE)

    # Loose check vs. f32 reference (kernel uses bf16 MXU inputs + approx recip).
    ref = encoder_reference(params, x, lengths, n_head, key_dim, value_dim)
    max_err = float(jnp.max(jnp.abs(out - ref)))
    assert max_err < 0.1, f"max abs err too large: {max_err}"

    print("KERNEL_OK")
</pallas_src>

<mosaic_0001>
module attributes {stable_mosaic.version = 11 : i64} {
  func.func @_encoder_kernel(%arg0: i32, %arg1: memref<4xi32, #tpu.memory_space<smem>>, %arg2: memref<2x8x384xf32, #tpu.memory_space<vmem>>, %arg3: memref<1x384xf32, #tpu.memory_space<vmem>>, %arg4: memref<1x384xf32, #tpu.memory_space<vmem>>, %arg5: memref<2x384x384xbf16, #tpu.memory_space<vmem>>, %arg6: memref<8x32x384xbf16, #tpu.memory_space<vmem>>, %arg7: memref<2x1x384xf32, #tpu.memory_space<vmem>>, %arg8: memref<2x1x384xf32, #tpu.memory_space<vmem>>, %arg9: memref<2x384x512xbf16, #tpu.memory_space<vmem>>, %arg10: memref<2x1x512xf32, #tpu.memory_space<vmem>>, %arg11: memref<2x512x384xbf16, #tpu.memory_space<vmem>>, %arg12: memref<2x1x384xf32, #tpu.memory_space<vmem>>, %arg13: memref<2x1x384xf32, #tpu.memory_space<vmem>>, %arg14: memref<2x1x384xf32, #tpu.memory_space<vmem>>, %arg15: memref<2x8x384xf32, #tpu.memory_space<vmem>>) attributes {dimension_semantics = [#tpu.dimension_semantics<parallel>], iteration_bounds = array<i64: 2>, scalar_prefetch = 1 : i64, scratch_operands = 0 : i64, tpu.core_type = #tpu.core_type<tc>, window_params = [{transform_indices = @transform_0, window_bounds = array<i64: 2, 8, 384>}, {pipeline_mode = #tpu.pipeline_mode<synchronous>, transform_indices = @transform_1, window_bounds = array<i64: 1, 384>}, {pipeline_mode = #tpu.pipeline_mode<synchronous>, transform_indices = @transform_2, window_bounds = array<i64: 1, 384>}, {pipeline_mode = #tpu.pipeline_mode<synchronous>, transform_indices = @transform_3, window_bounds = array<i64: 2, 384, 384>}, {pipeline_mode = #tpu.pipeline_mode<synchronous>, transform_indices = @transform_4, window_bounds = array<i64: 8, 32, 384>}, {pipeline_mode = #tpu.pipeline_mode<synchronous>, transform_indices = @transform_5, window_bounds = array<i64: 2, 1, 384>}, {pipeline_mode = #tpu.pipeline_mode<synchronous>, transform_indices = @transform_6, window_bounds = array<i64: 2, 1, 384>}, {pipeline_mode = #tpu.pipeline_mode<synchronous>, transform_indices = @transform_7, window_bounds = array<i64: 2, 384, 512>}, {pipeline_mode = #tpu.pipeline_mode<synchronous>, transform_indices = @transform_8, window_bounds = array<i64: 2, 1, 512>}, {pipeline_mode = #tpu.pipeline_mode<synchronous>, transform_indices = @transform_9, window_bounds = array<i64: 2, 512, 384>}, {pipeline_mode = #tpu.pipeline_mode<synchronous>, transform_indices = @transform_10, window_bounds = array<i64: 2, 1, 384>}, {pipeline_mode = #tpu.pipeline_mode<synchronous>, transform_indices = @transform_11, window_bounds = array<i64: 2, 1, 384>}, {pipeline_mode = #tpu.pipeline_mode<synchronous>, transform_indices = @transform_12, window_bounds = array<i64: 2, 1, 384>}, {transform_indices = @transform_13, window_bounds = array<i64: 2, 8, 384>}]} {
    %0 = tpu.iota {dimensions = array<i32: 1>} : vector<16x384xi32>
    %c300_i32 = arith.constant 300 : i32
    %1 = vector.broadcast %c300_i32 : i32 to vector<16x384xi32>
    %2 = arith.cmpi slt, %0, %1 : vector<16x384xi32>
    %3 = arith.extui %2 : vector<16x384xi1> to vector<16x384xi32>
    %4 = arith.sitofp %3 : vector<16x384xi32> to vector<16x384xf32>
    %5 = tpu.iota {dimensions = array<i32: 0>} : vector<16x16xi32>
    %6 = tpu.iota {dimensions = array<i32: 1>} : vector<16x16xi32>
    %false = arith.constant false
    %7 = vector.broadcast %false : i1 to vector<16x16xi1>
    %c2_i32 = arith.constant 2 : i32
    %8 = arith.muli %arg0, %c2_i32 : i32
    %c0_i32 = arith.constant 0 : i32
    %9 = arith.addi %8, %c0_i32 : i32
    %10 = arith.index_cast %9 : i32 to index
    %11 = memref.load %arg1[%10] : memref<4xi32, #tpu.memory_space<smem>>
    %c0_i32_0 = arith.constant 0 : i32
    %12 = vector.broadcast %c0_i32_0 : i32 to vector<16x16xi32>
    %13 = arith.cmpi sge, %5, %12 : vector<16x16xi32>
    %c8_i32 = arith.constant 8 : i32
    %14 = vector.broadcast %c8_i32 : i32 to vector<16x16xi32>
    %15 = arith.cmpi slt, %5, %14 : vector<16x16xi32>
    %16 = arith.andi %13, %15 : vector<16x16xi1>
    %c0_i32_1 = arith.constant 0 : i32
    %17 = vector.broadcast %c0_i32_1 : i32 to vector<16x16xi32>
    %18 = arith.cmpi sge, %6, %17 : vector<16x16xi32>
    %19 = arith.andi %16, %18 : vector<16x16xi1>
    %c0_i32_2 = arith.constant 0 : i32
    %20 = arith.addi %c0_i32_2, %11 : i32
    %21 = vector.broadcast %20 : i32 to vector<16x16xi32>
    %22 = arith.cmpi slt, %6, %21 : vector<16x16xi32>
    %23 = arith.andi %19, %22 : vector<16x16xi1>
    %24 = arith.ori %7, %23 : vector<16x16xi1>
    %c2_i32_3 = arith.constant 2 : i32
    %25 = arith.muli %arg0, %c2_i32_3 : i32
    %c1_i32 = arith.constant 1 : i32
    %26 = arith.addi %25, %c1_i32 : i32
    %27 = arith.index_cast %26 : i32 to index
    %28 = memref.load %arg1[%27] : memref<4xi32, #tpu.memory_space<smem>>
    %c8_i32_4 = arith.constant 8 : i32
    %29 = vector.broadcast %c8_i32_4 : i32 to vector<16x16xi32>
    %30 = arith.cmpi sge, %5, %29 : vector<16x16xi32>
    %c16_i32 = arith.constant 16 : i32
    %31 = vector.broadcast %c16_i32 : i32 to vector<16x16xi32>
    %32 = arith.cmpi slt, %5, %31 : vector<16x16xi32>
    %33 = arith.andi %30, %32 : vector<16x16xi1>
    %c8_i32_5 = arith.constant 8 : i32
    %34 = vector.broadcast %c8_i32_5 : i32 to vector<16x16xi32>
    %35 = arith.cmpi sge, %6, %34 : vector<16x16xi32>
    %36 = arith.andi %33, %35 : vector<16x16xi1>
    %c8_i32_6 = arith.constant 8 : i32
    %37 = arith.addi %c8_i32_6, %28 : i32
    %38 = vector.broadcast %37 : i32 to vector<16x16xi32>
    %39 = arith.cmpi slt, %6, %38 : vector<16x16xi32>
    %40 = arith.andi %36, %39 : vector<16x16xi1>
    %41 = arith.ori %24, %40 : vector<16x16xi1>
    %c0 = arith.constant 0 : index
    %c0_7 = arith.constant 0 : index
    %c0_8 = arith.constant 0 : index
    %42 = vector.load %arg2[%c0, %c0_7, %c0_8] : memref<2x8x384xf32, #tpu.memory_space<vmem>>, vector<2x8x384xf32>
    %43 = vector.shape_cast %42 : vector<2x8x384xf32> to vector<16x384xf32>
    %c0_9 = arith.constant 0 : index
    %c0_10 = arith.constant 0 : index
    %44 = vector.load %arg3[%c0_9, %c0_10] : memref<1x384xf32, #tpu.memory_space<vmem>>, vector<1x384xf32>
    %c0_11 = arith.constant 0 : index
    %c0_12 = arith.constant 0 : index
    %45 = vector.load %arg4[%c0_11, %c0_12] : memref<1x384xf32, #tpu.memory_space<vmem>>, vector<1x384xf32>
    %cst = arith.constant dense<0.000000e+00> : vector<16xf32>
    %46 = vector.multi_reduction <add>, %43, %cst [1] : vector<16x384xf32> to vector<16xf32>
    %47 = vector.shape_cast %46 : vector<16xf32> to vector<16x1xf32>
    %cst_13 = arith.constant 0.00333333341 : f32
    %48 = vector.broadcast %cst_13 : f32 to vector<16x1xf32>
    %49 = arith.mulf %47, %48 : vector<16x1xf32>
    %50 = vector.broadcast %49 : vector<16x1xf32> to vector<16x384xf32>
    %51 = arith.subf %43, %50 : vector<16x384xf32>
    %52 = arith.mulf %51, %4 : vector<16x384xf32>
    %53 = arith.mulf %52, %52 : vector<16x384xf32>
    %cst_14 = arith.constant dense<0.000000e+00> : vector<16xf32>
    %54 = vector.multi_reduction <add>, %53, %cst_14 [1] : vector<16x384xf32> to vector<16xf32>
    %55 = vector.shape_cast %54 : vector<16xf32> to vector<16x1xf32>
    %cst_15 = arith.constant 0.00333333341 : f32
    %56 = vector.broadcast %cst_15 : f32 to vector<16x1xf32>
    %57 = arith.mulf %55, %56 : vector<16x1xf32>
    %cst_16 = arith.constant 9.99999997E-7 : f32
    %58 = vector.broadcast %cst_16 : f32 to vector<16x1xf32>
    %59 = arith.addf %57, %58 : vector<16x1xf32>
    %60 = math.rsqrt %59 : vector<16x1xf32>
    %61 = vector.broadcast %60 : vector<16x1xf32> to vector<16x384xf32>
    %62 = arith.mulf %52, %61 : vector<16x384xf32>
    %63 = vector.broadcast %44 : vector<1x384xf32> to vector<16x384xf32>
    %64 = arith.mulf %62, %63 : vector<16x384xf32>
    %65 = vector.broadcast %45 : vector<1x384xf32> to vector<16x384xf32>
    %66 = arith.addf %64, %65 : vector<16x384xf32>
    %67 = arith.truncf %66 : vector<16x384xf32> to vector<16x384xbf16>
    %c0_17 = arith.constant 0 : index
    %c0_18 = arith.constant 0 : index
    %c0_19 = arith.constant 0 : index
    %68 = vector.load %arg5[%c0_17, %c0_18, %c0_19] : memref<2x384x384xbf16, #tpu.memory_space<vmem>>, vector<1x384x384xbf16>
    %69 = vector.shape_cast %68 : vector<1x384x384xbf16> to vector<384x384xbf16>
    %cst_20 = arith.constant dense<0.000000e+00> : vector<16x384xf32>
    %70 = tpu.matmul %67, %69, %cst_20 {dimension_numbers = #tpu.dot_dimension_numbers<[1], [0], [0], [1], [0, 0, 1, 1], [], []>} : vector<16x384xbf16>, vector<384x384xbf16>, vector<16x384xf32> -> vector<16x384xf32>
    %71 = vector.extract_strided_slice %70 {offsets = [0, 0], sizes = [16, 128], strides = [1, 1]} : vector<16x384xf32> to vector<16x128xf32>
    %72 = vector.extract_strided_slice %70 {offsets = [0, 128], sizes = [16, 128], strides = [1, 1]} : vector<16x384xf32> to vector<16x128xf32>
    %73 = vector.extract_strided_slice %70 {offsets = [0, 256], sizes = [16, 128], strides = [1, 1]} : vector<16x384xf32> to vector<16x128xf32>
    %cst_21 = arith.constant 0.000000e+00 : f32
    %74 = vector.broadcast %cst_21 : f32 to vector<16x384xf32>
    %75 = vector.extract_strided_slice %71 {offsets = [0, 0], sizes = [16, 32], strides = [1, 1]} : vector<16x128xf32> to vector<16x32xf32>
    %76 = arith.truncf %75 : vector<16x32xf32> to vector<16x32xbf16>
    %77 = vector.extract_strided_slice %72 {offsets = [0, 0], sizes = [16, 32], strides = [1, 1]} : vector<16x128xf32> to vector<16x32xf32>
    %78 = arith.truncf %77 : vector<16x32xf32> to vector<16x32xbf16>
    %79 = vector.extract_strided_slice %73 {offsets = [0, 0], sizes = [16, 32], strides = [1, 1]} : vector<16x128xf32> to vector<16x32xf32>
    %80 = arith.truncf %79 : vector<16x32xf32> to vector<16x32xbf16>
    %cst_22 = arith.constant dense<0.000000e+00> : vector<16x16xf32>
    %81 = tpu.matmul %76, %78, %cst_22 {dimension_numbers = #tpu.dot_dimension_numbers<[1], [1], [0], [0], [0, 0, 1, 0], [], []>} : vector<16x32xbf16>, vector<16x32xbf16>, vector<16x16xf32> -> vector<16x16xf32>
    %cst_23 = arith.constant -1.000000e+07 : f32
    %82 = vector.broadcast %cst_23 : f32 to vector<16x16xf32>
    %83 = arith.select %41, %81, %82 : vector<16x16xi1>, vector<16x16xf32>
    %cst_24 = arith.constant dense<0xFF800000> : vector<16xf32>
    %84 = vector.multi_reduction <maximumf>, %83, %cst_24 [1] : vector<16x16xf32> to vector<16xf32>
    %85 = vector.shape_cast %84 : vector<16xf32> to vector<16x1xf32>
    %86 = vector.broadcast %85 : vector<16x1xf32> to vector<16x16xf32>
    %87 = arith.subf %83, %86 : vector<16x16xf32>
    %88 = math.exp %87 : vector<16x16xf32>
    %cst_25 = arith.constant dense<0.000000e+00> : vector<16xf32>
    %89 = vector.multi_reduction <add>, %88, %cst_25 [1] : vector<16x16xf32> to vector<16xf32>
    %90 = vector.shape_cast %89 : vector<16xf32> to vector<16x1xf32>
    %91 = tpu.reciprocal %90 {approx = true} : vector<16x1xf32> -> vector<16x1xf32>
    %92 = vector.broadcast %91 : vector<16x1xf32> to vector<16x16xf32>
    %93 = arith.mulf %88, %92 : vector<16x16xf32>
    %94 = arith.truncf %93 : vector<16x16xf32> to vector<16x16xbf16>
    %cst_26 = arith.constant dense<0.000000e+00> : vector<16x32xf32>
    %95 = tpu.matmul %94, %80, %cst_26 {dimension_numbers = #tpu.dot_dimension_numbers<[1], [0], [0], [1], [0, 0, 1, 1], [], []>} : vector<16x16xbf16>, vector<16x32xbf16>, vector<16x32xf32> -> vector<16x32xf32>
    %96 = arith.truncf %95 : vector<16x32xf32> to vector<16x32xbf16>
    %c0_27 = arith.constant 0 : index
    %c0_28 = arith.constant 0 : index
    %c0_29 = arith.constant 0 : index
    %97 = vector.load %arg6[%c0_27, %c0_28, %c0_29] : memref<8x32x384xbf16, #tpu.memory_space<vmem>>, vector<1x32x384xbf16>
    %98 = vector.shape_cast %97 : vector<1x32x384xbf16> to vector<32x384xbf16>
    %cst_30 = arith.constant dense<0.000000e+00> : vector<16x384xf32>
    %99 = tpu.matmul %96, %98, %cst_30 {dimension_numbers = #tpu.dot_dimension_numbers<[1], [0], [0], [1], [0, 0, 1, 1], [], []>} : vector<16x32xbf16>, vector<32x384xbf16>, vector<16x384xf32> -> vector<16x384xf32>
    %100 = arith.addf %74, %99 : vector<16x384xf32>
    %101 = vector.extract_strided_slice %71 {offsets = [0, 32], sizes = [16, 32], strides = [1, 1]} : vector<16x128xf32> to vector<16x32xf32>
    %102 = arith.truncf %101 : vector<16x32xf32> to vector<16x32xbf16>
    %103 = vector.extract_strided_slice %72 {offsets = [0, 32], sizes = [16, 32], strides = [1, 1]} : vector<16x128xf32> to vector<16x32xf32>
    %104 = arith.truncf %103 : vector<16x32xf32> to vector<16x32xbf16>
    %105 = vector.extract_strided_slice %73 {offsets = [0, 32], sizes = [16, 32], strides = [1, 1]} : vector<16x128xf32> to vector<16x32xf32>
    %106 = arith.truncf %105 : vector<16x32xf32> to vector<16x32xbf16>
    %cst_31 = arith.constant dense<0.000000e+00> : vector<16x16xf32>
    %107 = tpu.matmul %102, %104, %cst_31 {dimension_numbers = #tpu.dot_dimension_numbers<[1], [1], [0], [0], [0, 0, 1, 0], [], []>} : vector<16x32xbf16>, vector<16x32xbf16>, vector<16x16xf32> -> vector<16x16xf32>
    %cst_32 = arith.constant -1.000000e+07 : f32
    %108 = vector.broadcast %cst_32 : f32 to vector<16x16xf32>
    %109 = arith.select %41, %107, %108 : vector<16x16xi1>, vector<16x16xf32>
    %cst_33 = arith.constant dense<0xFF800000> : vector<16xf32>
    %110 = vector.multi_reduction <maximumf>, %109, %cst_33 [1] : vector<16x16xf32> to vector<16xf32>
    %111 = vector.shape_cast %110 : vector<16xf32> to vector<16x1xf32>
    %112 = vector.broadcast %111 : vector<16x1xf32> to vector<16x16xf32>
    %113 = arith.subf %109, %112 : vector<16x16xf32>
    %114 = math.exp %113 : vector<16x16xf32>
    %cst_34 = arith.constant dense<0.000000e+00> : vector<16xf32>
    %115 = vector.multi_reduction <add>, %114, %cst_34 [1] : vector<16x16xf32> to vector<16xf32>
    %116 = vector.shape_cast %115 : vector<16xf32> to vector<16x1xf32>
    %117 = tpu.reciprocal %116 {approx = true} : vector<16x1xf32> -> vector<16x1xf32>
    %118 = vector.broadcast %117 : vector<16x1xf32> to vector<16x16xf32>
    %119 = arith.mulf %114, %118 : vector<16x16xf32>
    %120 = arith.truncf %119 : vector<16x16xf32> to vector<16x16xbf16>
    %cst_35 = arith.constant dense<0.000000e+00> : vector<16x32xf32>
    %121 = tpu.matmul %120, %106, %cst_35 {dimension_numbers = #tpu.dot_dimension_numbers<[1], [0], [0], [1], [0, 0, 1, 1], [], []>} : vector<16x16xbf16>, vector<16x32xbf16>, vector<16x32xf32> -> vector<16x32xf32>
    %122 = arith.truncf %121 : vector<16x32xf32> to vector<16x32xbf16>
    %c1 = arith.constant 1 : index
    %c0_36 = arith.constant 0 : index
    %c0_37 = arith.constant 0 : index
    %123 = vector.load %arg6[%c1, %c0_36, %c0_37] : memref<8x32x384xbf16, #tpu.memory_space<vmem>>, vector<1x32x384xbf16>
    %124 = vector.shape_cast %123 : vector<1x32x384xbf16> to vector<32x384xbf16>
    %cst_38 = arith.constant dense<0.000000e+00> : vector<16x384xf32>
    %125 = tpu.matmul %122, %124, %cst_38 {dimension_numbers = #tpu.dot_dimension_numbers<[1], [0], [0], [1], [0, 0, 1, 1], [], []>} : vector<16x32xbf16>, vector<32x384xbf16>, vector<16x384xf32> -> vector<16x384xf32>
    %126 = arith.addf %100, %125 : vector<16x384xf32>
    %127 = vector.extract_strided_slice %71 {offsets = [0, 64], sizes = [16, 32], strides = [1, 1]} : vector<16x128xf32> to vector<16x32xf32>
    %128 = arith.truncf %127 : vector<16x32xf32> to vector<16x32xbf16>
    %129 = vector.extract_strided_slice %72 {offsets = [0, 64], sizes = [16, 32], strides = [1, 1]} : vector<16x128xf32> to vector<16x32xf32>
    %130 = arith.truncf %129 : vector<16x32xf32> to vector<16x32xbf16>
    %131 = vector.extract_strided_slice %73 {offsets = [0, 64], sizes = [16, 32], strides = [1, 1]} : vector<16x128xf32> to vector<16x32xf32>
    %132 = arith.truncf %131 : vector<16x32xf32> to vector<16x32xbf16>
    %cst_39 = arith.constant dense<0.000000e+00> : vector<16x16xf32>
    %133 = tpu.matmul %128, %130, %cst_39 {dimension_numbers = #tpu.dot_dimension_numbers<[1], [1], [0], [0], [0, 0, 1, 0], [], []>} : vector<16x32xbf16>, vector<16x32xbf16>, vector<16x16xf32> -> vector<16x16xf32>
    %cst_40 = arith.constant -1.000000e+07 : f32
    %134 = vector.broadcast %cst_40 : f32 to vector<16x16xf32>
    %135 = arith.select %41, %133, %134 : vector<16x16xi1>, vector<16x16xf32>
    %cst_41 = arith.constant dense<0xFF800000> : vector<16xf32>
    %136 = vector.multi_reduction <maximumf>, %135, %cst_41 [1] : vector<16x16xf32> to vector<16xf32>
    %137 = vector.shape_cast %136 : vector<16xf32> to vector<16x1xf32>
    %138 = vector.broadcast %137 : vector<16x1xf32> to vector<16x16xf32>
    %139 = arith.subf %135, %138 : vector<16x16xf32>
    %140 = math.exp %139 : vector<16x16xf32>
    %cst_42 = arith.constant dense<0.000000e+00> : vector<16xf32>
    %141 = vector.multi_reduction <add>, %140, %cst_42 [1] : vector<16x16xf32> to vector<16xf32>
    %142 = vector.shape_cast %141 : vector<16xf32> to vector<16x1xf32>
    %143 = tpu.reciprocal %142 {approx = true} : vector<16x1xf32> -> vector<16x1xf32>
    %144 = vector.broadcast %143 : vector<16x1xf32> to vector<16x16xf32>
    %145 = arith.mulf %140, %144 : vector<16x16xf32>
    %146 = arith.truncf %145 : vector<16x16xf32> to vector<16x16xbf16>
    %cst_43 = arith.constant dense<0.000000e+00> : vector<16x32xf32>
    %147 = tpu.matmul %146, %132, %cst_43 {dimension_numbers = #tpu.dot_dimension_numbers<[1], [0], [0], [1], [0, 0, 1, 1], [], []>} : vector<16x16xbf16>, vector<16x32xbf16>, vector<16x32xf32> -> vector<16x32xf32>
    %148 = arith.truncf %147 : vector<16x32xf32> to vector<16x32xbf16>
    %c2 = arith.constant 2 : index
    %c0_44 = arith.constant 0 : index
    %c0_45 = arith.constant 0 : index
    %149 = vector.load %arg6[%c2, %c0_44, %c0_45] : memref<8x32x384xbf16, #tpu.memory_space<vmem>>, vector<1x32x384xbf16>
    %150 = vector.shape_cast %149 : vector<1x32x384xbf16> to vector<32x384xbf16>
    %cst_46 = arith.constant dense<0.000000e+00> : vector<16x384xf32>
    %151 = tpu.matmul %148, %150, %cst_46 {dimension_numbers = #tpu.dot_dimension_numbers<[1], [0], [0], [1], [0, 0, 1, 1], [], []>} : vector<16x32xbf16>, vector<32x384xbf16>, vector<16x384xf32> -> vector<16x384xf32>
    %152 = arith.addf %126, %151 : vector<16x384xf32>
    %153 = vector.extract_strided_slice %71 {offsets = [0, 96], sizes = [16, 32], strides = [1, 1]} : vector<16x128xf32> to vector<16x32xf32>
    %154 = arith.truncf %153 : vector<16x32xf32> to vector<16x32xbf16>
    %155 = vector.extract_strided_slice %72 {offsets = [0, 96], sizes = [16, 32], strides = [1, 1]} : vector<16x128xf32> to vector<16x32xf32>
    %156 = arith.truncf %155 : vector<16x32xf32> to vector<16x32xbf16>
    %157 = vector.extract_strided_slice %73 {offsets = [0, 96], sizes = [16, 32], strides = [1, 1]} : vector<16x128xf32> to vector<16x32xf32>
    %158 = arith.truncf %157 : vector<16x32xf32> to vector<16x32xbf16>
    %cst_47 = arith.constant dense<0.000000e+00> : vector<16x16xf32>
    %159 = tpu.matmul %154, %156, %cst_47 {dimension_numbers = #tpu.dot_dimension_numbers<[1], [1], [0], [0], [0, 0, 1, 0], [], []>} : vector<16x32xbf16>, vector<16x32xbf16>, vector<16x16xf32> -> vector<16x16xf32>
    %cst_48 = arith.constant -1.000000e+07 : f32
    %160 = vector.broadcast %cst_48 : f32 to vector<16x16xf32>
    %161 = arith.select %41, %159, %160 : vector<16x16xi1>, vector<16x16xf32>
    %cst_49 = arith.constant dense<0xFF800000> : vector<16xf32>
    %162 = vector.multi_reduction <maximumf>, %161, %cst_49 [1] : vector<16x16xf32> to vector<16xf32>
    %163 = vector.shape_cast %162 : vector<16xf32> to vector<16x1xf32>
    %164 = vector.broadcast %163 : vector<16x1xf32> to vector<16x16xf32>
    %165 = arith.subf %161, %164 : vector<16x16xf32>
    %166 = math.exp %165 : vector<16x16xf32>
    %cst_50 = arith.constant dense<0.000000e+00> : vector<16xf32>
    %167 = vector.multi_reduction <add>, %166, %cst_50 [1] : vector<16x16xf32> to vector<16xf32>
    %168 = vector.shape_cast %167 : vector<16xf32> to vector<16x1xf32>
    %169 = tpu.reciprocal %168 {approx = true} : vector<16x1xf32> -> vector<16x1xf32>
    %170 = vector.broadcast %169 : vector<16x1xf32> to vector<16x16xf32>
    %171 = arith.mulf %166, %170 : vector<16x16xf32>
    %172 = arith.truncf %171 : vector<16x16xf32> to vector<16x16xbf16>
    %cst_51 = arith.constant dense<0.000000e+00> : vector<16x32xf32>
    %173 = tpu.matmul %172, %158, %cst_51 {dimension_numbers = #tpu.dot_dimension_numbers<[1], [0], [0], [1], [0, 0, 1, 1], [], []>} : vector<16x16xbf16>, vector<16x32xbf16>, vector<16x32xf32> -> vector<16x32xf32>
    %174 = arith.truncf %173 : vector<16x32xf32> to vector<16x32xbf16>
    %c3 = arith.constant 3 : index
    %c0_52 = arith.constant 0 : index
    %c0_53 = arith.constant 0 : index
    %175 = vector.load %arg6[%c3, %c0_52, %c0_53] : memref<8x32x384xbf16, #tpu.memory_space<vmem>>, vector<1x32x384xbf16>
    %176 = vector.shape_cast %175 : vector<1x32x384xbf16> to vector<32x384xbf16>
    %cst_54 = arith.constant dense<0.000000e+00> : vector<16x384xf32>
    %177 = tpu.matmul %174, %176, %cst_54 {dimension_numbers = #tpu.dot_dimension_numbers<[1], [0], [0], [1], [0, 0, 1, 1], [], []>} : vector<16x32xbf16>, vector<32x384xbf16>, vector<16x384xf32> -> vector<16x384xf32>
    %178 = arith.addf %152, %177 : vector<16x384xf32>
    %179 = arith.addf %178, %66 : vector<16x384xf32>
    %c0_55 = arith.constant 0 : index
    %c0_56 = arith.constant 0 : index
    %c0_57 = arith.constant 0 : index
    %180 = vector.load %arg7[%c0_55, %c0_56, %c0_57] : memref<2x1x384xf32, #tpu.memory_space<vmem>>, vector<1x1x384xf32>
    %181 = vector.shape_cast %180 : vector<1x1x384xf32> to vector<1x384xf32>
    %c0_58 = arith.constant 0 : index
    %c0_59 = arith.constant 0 : index
    %c0_60 = arith.constant 0 : index
    %182 = vector.load %arg8[%c0_58, %c0_59, %c0_60] : memref<2x1x384xf32, #tpu.memory_space<vmem>>, vector<1x1x384xf32>
    %183 = vector.shape_cast %182 : vector<1x1x384xf32> to vector<1x384xf32>
    %cst_61 = arith.constant dense<0.000000e+00> : vector<16xf32>
    %184 = vector.multi_reduction <add>, %179, %cst_61 [1] : vector<16x384xf32> to vector<16xf32>
    %185 = vector.shape_cast %184 : vector<16xf32> to vector<16x1xf32>
    %cst_62 = arith.constant 0.00333333341 : f32
    %186 = vector.broadcast %cst_62 : f32 to vector<16x1xf32>
    %187 = arith.mulf %185, %186 : vector<16x1xf32>
    %188 = vector.broadcast %187 : vector<16x1xf32> to vector<16x384xf32>
    %189 = arith.subf %179, %188 : vector<16x384xf32>
    %190 = arith.mulf %189, %4 : vector<16x384xf32>
    %191 = arith.mulf %190, %190 : vector<16x384xf32>
    %cst_63 = arith.constant dense<0.000000e+00> : vector<16xf32>
    %192 = vector.multi_reduction <add>, %191, %cst_63 [1] : vector<16x384xf32> to vector<16xf32>
    %193 = vector.shape_cast %192 : vector<16xf32> to vector<16x1xf32>
    %cst_64 = arith.constant 0.00333333341 : f32
    %194 = vector.broadcast %cst_64 : f32 to vector<16x1xf32>
    %195 = arith.mulf %193, %194 : vector<16x1xf32>
    %cst_65 = arith.constant 9.99999997E-7 : f32
    %196 = vector.broadcast %cst_65 : f32 to vector<16x1xf32>
    %197 = arith.addf %195, %196 : vector<16x1xf32>
    %198 = math.rsqrt %197 : vector<16x1xf32>
    %199 = vector.broadcast %198 : vector<16x1xf32> to vector<16x384xf32>
    %200 = arith.mulf %190, %199 : vector<16x384xf32>
    %201 = vector.broadcast %181 : vector<1x384xf32> to vector<16x384xf32>
    %202 = arith.mulf %200, %201 : vector<16x384xf32>
    %203 = vector.broadcast %183 : vector<1x384xf32> to vector<16x384xf32>
    %204 = arith.addf %202, %203 : vector<16x384xf32>
    %205 = arith.truncf %204 : vector<16x384xf32> to vector<16x384xbf16>
    %c0_66 = arith.constant 0 : index
    %c0_67 = arith.constant 0 : index
    %c0_68 = arith.constant 0 : index
    %206 = vector.load %arg9[%c0_66, %c0_67, %c0_68] : memref<2x384x512xbf16, #tpu.memory_space<vmem>>, vector<1x384x512xbf16>
    %207 = vector.shape_cast %206 : vector<1x384x512xbf16> to vector<384x512xbf16>
    %cst_69 = arith.constant dense<0.000000e+00> : vector<16x512xf32>
    %208 = tpu.matmul %205, %207, %cst_69 {dimension_numbers = #tpu.dot_dimension_numbers<[1], [0], [0], [1], [0, 0, 1, 1], [], []>} : vector<16x384xbf16>, vector<384x512xbf16>, vector<16x512xf32> -> vector<16x512xf32>
    %c0_70 = arith.constant 0 : index
    %c0_71 = arith.constant 0 : index
    %c0_72 = arith.constant 0 : index
    %209 = vector.load %arg10[%c0_70, %c0_71, %c0_72] : memref<2x1x512xf32, #tpu.memory_space<vmem>>, vector<1x1x512xf32>
    %210 = vector.shape_cast %209 : vector<1x1x512xf32> to vector<1x512xf32>
    %211 = vector.broadcast %210 : vector<1x512xf32> to vector<16x512xf32>
    %212 = arith.addf %208, %211 : vector<16x512xf32>
    %cst_73 = arith.constant 0.000000e+00 : f32
    %213 = vector.broadcast %cst_73 : f32 to vector<16x512xf32>
    %214 = arith.maximumf %212, %213 : vector<16x512xf32>
    %215 = arith.truncf %214 : vector<16x512xf32> to vector<16x512xbf16>
    %c0_74 = arith.constant 0 : index
    %c0_75 = arith.constant 0 : index
    %c0_76 = arith.constant 0 : index
    %216 = vector.load %arg11[%c0_74, %c0_75, %c0_76] : memref<2x512x384xbf16, #tpu.memory_space<vmem>>, vector<1x512x384xbf16>
    %217 = vector.shape_cast %216 : vector<1x512x384xbf16> to vector<512x384xbf16>
    %cst_77 = arith.constant dense<0.000000e+00> : vector<16x384xf32>
    %218 = tpu.matmul %215, %217, %cst_77 {dimension_numbers = #tpu.dot_dimension_numbers<[1], [0], [0], [1], [0, 0, 1, 1], [], []>} : vector<16x512xbf16>, vector<512x384xbf16>, vector<16x384xf32> -> vector<16x384xf32>
    %c0_78 = arith.constant 0 : index
    %c0_79 = arith.constant 0 : index
    %c0_80 = arith.constant 0 : index
    %219 = vector.load %arg12[%c0_78, %c0_79, %c0_80] : memref<2x1x384xf32, #tpu.memory_space<vmem>>, vector<1x1x384xf32>
    %220 = vector.shape_cast %219 : vector<1x1x384xf32> to vector<1x384xf32>
    %221 = vector.broadcast %220 : vector<1x384xf32> to vector<16x384xf32>
    %222 = arith.addf %218, %221 : vector<16x384xf32>
    %223 = arith.addf %222, %204 : vector<16x384xf32>
    %c0_81 = arith.constant 0 : index
    %c0_82 = arith.constant 0 : index
    %c0_83 = arith.constant 0 : index
    %224 = vector.load %arg13[%c0_81, %c0_82, %c0_83] : memref<2x1x384xf32, #tpu.memory_space<vmem>>, vector<1x1x384xf32>
    %225 = vector.shape_cast %224 : vector<1x1x384xf32> to vector<1x384xf32>
    %c0_84 = arith.constant 0 : index
    %c0_85 = arith.constant 0 : index
    %c0_86 = arith.constant 0 : index
    %226 = vector.load %arg14[%c0_84, %c0_85, %c0_86] : memref<2x1x384xf32, #tpu.memory_space<vmem>>, vector<1x1x384xf32>
    %227 = vector.shape_cast %226 : vector<1x1x384xf32> to vector<1x384xf32>
    %cst_87 = arith.constant dense<0.000000e+00> : vector<16xf32>
    %228 = vector.multi_reduction <add>, %223, %cst_87 [1] : vector<16x384xf32> to vector<16xf32>
    %229 = vector.shape_cast %228 : vector<16xf32> to vector<16x1xf32>
    %cst_88 = arith.constant 0.00333333341 : f32
    %230 = vector.broadcast %cst_88 : f32 to vector<16x1xf32>
    %231 = arith.mulf %229, %230 : vector<16x1xf32>
    %232 = vector.broadcast %231 : vector<16x1xf32> to vector<16x384xf32>
    %233 = arith.subf %223, %232 : vector<16x384xf32>
    %234 = arith.mulf %233, %4 : vector<16x384xf32>
    %235 = arith.mulf %234, %234 : vector<16x384xf32>
    %cst_89 = arith.constant dense<0.000000e+00> : vector<16xf32>
    %236 = vector.multi_reduction <add>, %235, %cst_89 [1] : vector<16x384xf32> to vector<16xf32>
    %237 = vector.shape_cast %236 : vector<16xf32> to vector<16x1xf32>
    %cst_90 = arith.constant 0.00333333341 : f32
    %238 = vector.broadcast %cst_90 : f32 to vector<16x1xf32>
    %239 = arith.mulf %237, %238 : vector<16x1xf32>
    %cst_91 = arith.constant 9.99999997E-7 : f32
    %240 = vector.broadcast %cst_91 : f32 to vector<16x1xf32>
    %241 = arith.addf %239, %240 : vector<16x1xf32>
    %242 = math.rsqrt %241 : vector<16x1xf32>
    %243 = vector.broadcast %242 : vector<16x1xf32> to vector<16x384xf32>
    %244 = arith.mulf %234, %243 : vector<16x384xf32>
    %245 = vector.broadcast %225 : vector<1x384xf32> to vector<16x384xf32>
    %246 = arith.mulf %244, %245 : vector<16x384xf32>
    %247 = vector.broadcast %227 : vector<1x384xf32> to vector<16x384xf32>
    %248 = arith.addf %246, %247 : vector<16x384xf32>
    %249 = arith.truncf %248 : vector<16x384xf32> to vector<16x384xbf16>
    %c1_92 = arith.constant 1 : index
    %c0_93 = arith.constant 0 : index
    %c0_94 = arith.constant 0 : index
    %250 = vector.load %arg5[%c1_92, %c0_93, %c0_94] : memref<2x384x384xbf16, #tpu.memory_space<vmem>>, vector<1x384x384xbf16>
    %251 = vector.shape_cast %250 : vector<1x384x384xbf16> to vector<384x384xbf16>
    %cst_95 = arith.constant dense<0.000000e+00> : vector<16x384xf32>
    %252 = tpu.matmul %249, %251, %cst_95 {dimension_numbers = #tpu.dot_dimension_numbers<[1], [0], [0], [1], [0, 0, 1, 1], [], []>} : vector<16x384xbf16>, vector<384x384xbf16>, vector<16x384xf32> -> vector<16x384xf32>
    %253 = vector.extract_strided_slice %252 {offsets = [0, 0], sizes = [16, 128], strides = [1, 1]} : vector<16x384xf32> to vector<16x128xf32>
    %254 = vector.extract_strided_slice %252 {offsets = [0, 128], sizes = [16, 128], strides = [1, 1]} : vector<16x384xf32> to vector<16x128xf32>
    %255 = vector.extract_strided_slice %252 {offsets = [0, 256], sizes = [16, 128], strides = [1, 1]} : vector<16x384xf32> to vector<16x128xf32>
    %cst_96 = arith.constant 0.000000e+00 : f32
    %256 = vector.broadcast %cst_96 : f32 to vector<16x384xf32>
    %257 = vector.extract_strided_slice %253 {offsets = [0, 0], sizes = [16, 32], strides = [1, 1]} : vector<16x128xf32> to vector<16x32xf32>
    %258 = arith.truncf %257 : vector<16x32xf32> to vector<16x32xbf16>
    %259 = vector.extract_strided_slice %254 {offsets = [0, 0], sizes = [16, 32], strides = [1, 1]} : vector<16x128xf32> to vector<16x32xf32>
    %260 = arith.truncf %259 : vector<16x32xf32> to vector<16x32xbf16>
    %261 = vector.extract_strided_slice %255 {offsets = [0, 0], sizes = [16, 32], strides = [1, 1]} : vector<16x128xf32> to vector<16x32xf32>
    %262 = arith.truncf %261 : vector<16x32xf32> to vector<16x32xbf16>
    %cst_97 = arith.constant dense<0.000000e+00> : vector<16x16xf32>
    %263 = tpu.matmul %258, %260, %cst_97 {dimension_numbers = #tpu.dot_dimension_numbers<[1], [1], [0], [0], [0, 0, 1, 0], [], []>} : vector<16x32xbf16>, vector<16x32xbf16>, vector<16x16xf32> -> vector<16x16xf32>
    %cst_98 = arith.constant -1.000000e+07 : f32
    %264 = vector.broadcast %cst_98 : f32 to vector<16x16xf32>
    %265 = arith.select %41, %263, %264 : vector<16x16xi1>, vector<16x16xf32>
    %cst_99 = arith.constant dense<0xFF800000> : vector<16xf32>
    %266 = vector.multi_reduction <maximumf>, %265, %cst_99 [1] : vector<16x16xf32> to vector<16xf32>
    %267 = vector.shape_cast %266 : vector<16xf32> to vector<16x1xf32>
    %268 = vector.broadcast %267 : vector<16x1xf32> to vector<16x16xf32>
    %269 = arith.subf %265, %268 : vector<16x16xf32>
    %270 = math.exp %269 : vector<16x16xf32>
    %cst_100 = arith.constant dense<0.000000e+00> : vector<16xf32>
    %271 = vector.multi_reduction <add>, %270, %cst_100 [1] : vector<16x16xf32> to vector<16xf32>
    %272 = vector.shape_cast %271 : vector<16xf32> to vector<16x1xf32>
    %273 = tpu.reciprocal %272 {approx = true} : vector<16x1xf32> -> vector<16x1xf32>
    %274 = vector.broadcast %273 : vector<16x1xf32> to vector<16x16xf32>
    %275 = arith.mulf %270, %274 : vector<16x16xf32>
    %276 = arith.truncf %275 : vector<16x16xf32> to vector<16x16xbf16>
    %cst_101 = arith.constant dense<0.000000e+00> : vector<16x32xf32>
    %277 = tpu.matmul %276, %262, %cst_101 {dimension_numbers = #tpu.dot_dimension_numbers<[1], [0], [0], [1], [0, 0, 1, 1], [], []>} : vector<16x16xbf16>, vector<16x32xbf16>, vector<16x32xf32> -> vector<16x32xf32>
    %278 = arith.truncf %277 : vector<16x32xf32> to vector<16x32xbf16>
    %c4 = arith.constant 4 : index
    %c0_102 = arith.constant 0 : index
    %c0_103 = arith.constant 0 : index
    %279 = vector.load %arg6[%c4, %c0_102, %c0_103] : memref<8x32x384xbf16, #tpu.memory_space<vmem>>, vector<1x32x384xbf16>
    %280 = vector.shape_cast %279 : vector<1x32x384xbf16> to vector<32x384xbf16>
    %cst_104 = arith.constant dense<0.000000e+00> : vector<16x384xf32>
    %281 = tpu.matmul %278, %280, %cst_104 {dimension_numbers = #tpu.dot_dimension_numbers<[1], [0], [0], [1], [0, 0, 1, 1], [], []>} : vector<16x32xbf16>, vector<32x384xbf16>, vector<16x384xf32> -> vector<16x384xf32>
    %282 = arith.addf %256, %281 : vector<16x384xf32>
    %283 = vector.extract_strided_slice %253 {offsets = [0, 32], sizes = [16, 32], strides = [1, 1]} : vector<16x128xf32> to vector<16x32xf32>
    %284 = arith.truncf %283 : vector<16x32xf32> to vector<16x32xbf16>
    %285 = vector.extract_strided_slice %254 {offsets = [0, 32], sizes = [16, 32], strides = [1, 1]} : vector<16x128xf32> to vector<16x32xf32>
    %286 = arith.truncf %285 : vector<16x32xf32> to vector<16x32xbf16>
    %287 = vector.extract_strided_slice %255 {offsets = [0, 32], sizes = [16, 32], strides = [1, 1]} : vector<16x128xf32> to vector<16x32xf32>
    %288 = arith.truncf %287 : vector<16x32xf32> to vector<16x32xbf16>
    %cst_105 = arith.constant dense<0.000000e+00> : vector<16x16xf32>
    %289 = tpu.matmul %284, %286, %cst_105 {dimension_numbers = #tpu.dot_dimension_numbers<[1], [1], [0], [0], [0, 0, 1, 0], [], []>} : vector<16x32xbf16>, vector<16x32xbf16>, vector<16x16xf32> -> vector<16x16xf32>
    %cst_106 = arith.constant -1.000000e+07 : f32
    %290 = vector.broadcast %cst_106 : f32 to vector<16x16xf32>
    %291 = arith.select %41, %289, %290 : vector<16x16xi1>, vector<16x16xf32>
    %cst_107 = arith.constant dense<0xFF800000> : vector<16xf32>
    %292 = vector.multi_reduction <maximumf>, %291, %cst_107 [1] : vector<16x16xf32> to vector<16xf32>
    %293 = vector.shape_cast %292 : vector<16xf32> to vector<16x1xf32>
    %294 = vector.broadcast %293 : vector<16x1xf32> to vector<16x16xf32>
    %295 = arith.subf %291, %294 : vector<16x16xf32>
    %296 = math.exp %295 : vector<16x16xf32>
    %cst_108 = arith.constant dense<0.000000e+00> : vector<16xf32>
    %297 = vector.multi_reduction <add>, %296, %cst_108 [1] : vector<16x16xf32> to vector<16xf32>
    %298 = vector.shape_cast %297 : vector<16xf32> to vector<16x1xf32>
    %299 = tpu.reciprocal %298 {approx = true} : vector<16x1xf32> -> vector<16x1xf32>
    %300 = vector.broadcast %299 : vector<16x1xf32> to vector<16x16xf32>
    %301 = arith.mulf %296, %300 : vector<16x16xf32>
    %302 = arith.truncf %301 : vector<16x16xf32> to vector<16x16xbf16>
    %cst_109 = arith.constant dense<0.000000e+00> : vector<16x32xf32>
    %303 = tpu.matmul %302, %288, %cst_109 {dimension_numbers = #tpu.dot_dimension_numbers<[1], [0], [0], [1], [0, 0, 1, 1], [], []>} : vector<16x16xbf16>, vector<16x32xbf16>, vector<16x32xf32> -> vector<16x32xf32>
    %304 = arith.truncf %303 : vector<16x32xf32> to vector<16x32xbf16>
    %c5 = arith.constant 5 : index
    %c0_110 = arith.constant 0 : index
    %c0_111 = arith.constant 0 : index
    %305 = vector.load %arg6[%c5, %c0_110, %c0_111] : memref<8x32x384xbf16, #tpu.memory_space<vmem>>, vector<1x32x384xbf16>
    %306 = vector.shape_cast %305 : vector<1x32x384xbf16> to vector<32x384xbf16>
    %cst_112 = arith.constant dense<0.000000e+00> : vector<16x384xf32>
    %307 = tpu.matmul %304, %306, %cst_112 {dimension_numbers = #tpu.dot_dimension_numbers<[1], [0], [0], [1], [0, 0, 1, 1], [], []>} : vector<16x32xbf16>, vector<32x384xbf16>, vector<16x384xf32> -> vector<16x384xf32>
    %308 = arith.addf %282, %307 : vector<16x384xf32>
    %309 = vector.extract_strided_slice %253 {offsets = [0, 64], sizes = [16, 32], strides = [1, 1]} : vector<16x128xf32> to vector<16x32xf32>
    %310 = arith.truncf %309 : vector<16x32xf32> to vector<16x32xbf16>
    %311 = vector.extract_strided_slice %254 {offsets = [0, 64], sizes = [16, 32], strides = [1, 1]} : vector<16x128xf32> to vector<16x32xf32>
    %312 = arith.truncf %311 : vector<16x32xf32> to vector<16x32xbf16>
    %313 = vector.extract_strided_slice %255 {offsets = [0, 64], sizes = [16, 32], strides = [1, 1]} : vector<16x128xf32> to vector<16x32xf32>
    %314 = arith.truncf %313 : vector<16x32xf32> to vector<16x32xbf16>
    %cst_113 = arith.constant dense<0.000000e+00> : vector<16x16xf32>
    %315 = tpu.matmul %310, %312, %cst_113 {dimension_numbers = #tpu.dot_dimension_numbers<[1], [1], [0], [0], [0, 0, 1, 0], [], []>} : vector<16x32xbf16>, vector<16x32xbf16>, vector<16x16xf32> -> vector<16x16xf32>
    %cst_114 = arith.constant -1.000000e+07 : f32
    %316 = vector.broadcast %cst_114 : f32 to vector<16x16xf32>
    %317 = arith.select %41, %315, %316 : vector<16x16xi1>, vector<16x16xf32>
    %cst_115 = arith.constant dense<0xFF800000> : vector<16xf32>
    %318 = vector.multi_reduction <maximumf>, %317, %cst_115 [1] : vector<16x16xf32> to vector<16xf32>
    %319 = vector.shape_cast %318 : vector<16xf32> to vector<16x1xf32>
    %320 = vector.broadcast %319 : vector<16x1xf32> to vector<16x16xf32>
    %321 = arith.subf %317, %320 : vector<16x16xf32>
    %322 = math.exp %321 : vector<16x16xf32>
    %cst_116 = arith.constant dense<0.000000e+00> : vector<16xf32>
    %323 = vector.multi_reduction <add>, %322, %cst_116 [1] : vector<16x16xf32> to vector<16xf32>
    %324 = vector.shape_cast %323 : vector<16xf32> to vector<16x1xf32>
    %325 = tpu.reciprocal %324 {approx = true} : vector<16x1xf32> -> vector<16x1xf32>
    %326 = vector.broadcast %325 : vector<16x1xf32> to vector<16x16xf32>
    %327 = arith.mulf %322, %326 : vector<16x16xf32>
    %328 = arith.truncf %327 : vector<16x16xf32> to vector<16x16xbf16>
    %cst_117 = arith.constant dense<0.000000e+00> : vector<16x32xf32>
    %329 = tpu.matmul %328, %314, %cst_117 {dimension_numbers = #tpu.dot_dimension_numbers<[1], [0], [0], [1], [0, 0, 1, 1], [], []>} : vector<16x16xbf16>, vector<16x32xbf16>, vector<16x32xf32> -> vector<16x32xf32>
    %330 = arith.truncf %329 : vector<16x32xf32> to vector<16x32xbf16>
    %c6 = arith.constant 6 : index
    %c0_118 = arith.constant 0 : index
    %c0_119 = arith.constant 0 : index
    %331 = vector.load %arg6[%c6, %c0_118, %c0_119] : memref<8x32x384xbf16, #tpu.memory_space<vmem>>, vector<1x32x384xbf16>
    %332 = vector.shape_cast %331 : vector<1x32x384xbf16> to vector<32x384xbf16>
    %cst_120 = arith.constant dense<0.000000e+00> : vector<16x384xf32>
    %333 = tpu.matmul %330, %332, %cst_120 {dimension_numbers = #tpu.dot_dimension_numbers<[1], [0], [0], [1], [0, 0, 1, 1], [], []>} : vector<16x32xbf16>, vector<32x384xbf16>, vector<16x384xf32> -> vector<16x384xf32>
    %334 = arith.addf %308, %333 : vector<16x384xf32>
    %335 = vector.extract_strided_slice %253 {offsets = [0, 96], sizes = [16, 32], strides = [1, 1]} : vector<16x128xf32> to vector<16x32xf32>
    %336 = arith.truncf %335 : vector<16x32xf32> to vector<16x32xbf16>
    %337 = vector.extract_strided_slice %254 {offsets = [0, 96], sizes = [16, 32], strides = [1, 1]} : vector<16x128xf32> to vector<16x32xf32>
    %338 = arith.truncf %337 : vector<16x32xf32> to vector<16x32xbf16>
    %339 = vector.extract_strided_slice %255 {offsets = [0, 96], sizes = [16, 32], strides = [1, 1]} : vector<16x128xf32> to vector<16x32xf32>
    %340 = arith.truncf %339 : vector<16x32xf32> to vector<16x32xbf16>
    %cst_121 = arith.constant dense<0.000000e+00> : vector<16x16xf32>
    %341 = tpu.matmul %336, %338, %cst_121 {dimension_numbers = #tpu.dot_dimension_numbers<[1], [1], [0], [0], [0, 0, 1, 0], [], []>} : vector<16x32xbf16>, vector<16x32xbf16>, vector<16x16xf32> -> vector<16x16xf32>
    %cst_122 = arith.constant -1.000000e+07 : f32
    %342 = vector.broadcast %cst_122 : f32 to vector<16x16xf32>
    %343 = arith.select %41, %341, %342 : vector<16x16xi1>, vector<16x16xf32>
    %cst_123 = arith.constant dense<0xFF800000> : vector<16xf32>
    %344 = vector.multi_reduction <maximumf>, %343, %cst_123 [1] : vector<16x16xf32> to vector<16xf32>
    %345 = vector.shape_cast %344 : vector<16xf32> to vector<16x1xf32>
    %346 = vector.broadcast %345 : vector<16x1xf32> to vector<16x16xf32>
    %347 = arith.subf %343, %346 : vector<16x16xf32>
    %348 = math.exp %347 : vector<16x16xf32>
    %cst_124 = arith.constant dense<0.000000e+00> : vector<16xf32>
    %349 = vector.multi_reduction <add>, %348, %cst_124 [1] : vector<16x16xf32> to vector<16xf32>
    %350 = vector.shape_cast %349 : vector<16xf32> to vector<16x1xf32>
    %351 = tpu.reciprocal %350 {approx = true} : vector<16x1xf32> -> vector<16x1xf32>
    %352 = vector.broadcast %351 : vector<16x1xf32> to vector<16x16xf32>
    %353 = arith.mulf %348, %352 : vector<16x16xf32>
    %354 = arith.truncf %353 : vector<16x16xf32> to vector<16x16xbf16>
    %cst_125 = arith.constant dense<0.000000e+00> : vector<16x32xf32>
    %355 = tpu.matmul %354, %340, %cst_125 {dimension_numbers = #tpu.dot_dimension_numbers<[1], [0], [0], [1], [0, 0, 1, 1], [], []>} : vector<16x16xbf16>, vector<16x32xbf16>, vector<16x32xf32> -> vector<16x32xf32>
    %356 = arith.truncf %355 : vector<16x32xf32> to vector<16x32xbf16>
    %c7 = arith.constant 7 : index
    %c0_126 = arith.constant 0 : index
    %c0_127 = arith.constant 0 : index
    %357 = vector.load %arg6[%c7, %c0_126, %c0_127] : memref<8x32x384xbf16, #tpu.memory_space<vmem>>, vector<1x32x384xbf16>
    %358 = vector.shape_cast %357 : vector<1x32x384xbf16> to vector<32x384xbf16>
    %cst_128 = arith.constant dense<0.000000e+00> : vector<16x384xf32>
    %359 = tpu.matmul %356, %358, %cst_128 {dimension_numbers = #tpu.dot_dimension_numbers<[1], [0], [0], [1], [0, 0, 1, 1], [], []>} : vector<16x32xbf16>, vector<32x384xbf16>, vector<16x384xf32> -> vector<16x384xf32>
    %360 = arith.addf %334, %359 : vector<16x384xf32>
    %361 = arith.addf %360, %248 : vector<16x384xf32>
    %c1_129 = arith.constant 1 : index
    %c0_130 = arith.constant 0 : index
    %c0_131 = arith.constant 0 : index
    %362 = vector.load %arg7[%c1_129, %c0_130, %c0_131] : memref<2x1x384xf32, #tpu.memory_space<vmem>>, vector<1x1x384xf32>
    %363 = vector.shape_cast %362 : vector<1x1x384xf32> to vector<1x384xf32>
    %c1_132 = arith.constant 1 : index
    %c0_133 = arith.constant 0 : index
    %c0_134 = arith.constant 0 : index
    %364 = vector.load %arg8[%c1_132, %c0_133, %c0_134] : memref<2x1x384xf32, #tpu.memory_space<vmem>>, vector<1x1x384xf32>
    %365 = vector.shape_cast %364 : vector<1x1x384xf32> to vector<1x384xf32>
    %cst_135 = arith.constant dense<0.000000e+00> : vector<16xf32>
    %366 = vector.multi_reduction <add>, %361, %cst_135 [1] : vector<16x384xf32> to vector<16xf32>
    %367 = vector.shape_cast %366 : vector<16xf32> to vector<16x1xf32>
    %cst_136 = arith.constant 0.00333333341 : f32
    %368 = vector.broadcast %cst_136 : f32 to vector<16x1xf32>
    %369 = arith.mulf %367, %368 : vector<16x1xf32>
    %370 = vector.broadcast %369 : vector<16x1xf32> to vector<16x384xf32>
    %371 = arith.subf %361, %370 : vector<16x384xf32>
    %372 = arith.mulf %371, %4 : vector<16x384xf32>
    %373 = arith.mulf %372, %372 : vector<16x384xf32>
    %cst_137 = arith.constant dense<0.000000e+00> : vector<16xf32>
    %374 = vector.multi_reduction <add>, %373, %cst_137 [1] : vector<16x384xf32> to vector<16xf32>
    %375 = vector.shape_cast %374 : vector<16xf32> to vector<16x1xf32>
    %cst_138 = arith.constant 0.00333333341 : f32
    %376 = vector.broadcast %cst_138 : f32 to vector<16x1xf32>
    %377 = arith.mulf %375, %376 : vector<16x1xf32>
    %cst_139 = arith.constant 9.99999997E-7 : f32
    %378 = vector.broadcast %cst_139 : f32 to vector<16x1xf32>
    %379 = arith.addf %377, %378 : vector<16x1xf32>
    %380 = math.rsqrt %379 : vector<16x1xf32>
    %381 = vector.broadcast %380 : vector<16x1xf32> to vector<16x384xf32>
    %382 = arith.mulf %372, %381 : vector<16x384xf32>
    %383 = vector.broadcast %363 : vector<1x384xf32> to vector<16x384xf32>
    %384 = arith.mulf %382, %383 : vector<16x384xf32>
    %385 = vector.broadcast %365 : vector<1x384xf32> to vector<16x384xf32>
    %386 = arith.addf %384, %385 : vector<16x384xf32>
    %387 = arith.truncf %386 : vector<16x384xf32> to vector<16x384xbf16>
    %c1_140 = arith.constant 1 : index
    %c0_141 = arith.constant 0 : index
    %c0_142 = arith.constant 0 : index
    %388 = vector.load %arg9[%c1_140, %c0_141, %c0_142] : memref<2x384x512xbf16, #tpu.memory_space<vmem>>, vector<1x384x512xbf16>
    %389 = vector.shape_cast %388 : vector<1x384x512xbf16> to vector<384x512xbf16>
    %cst_143 = arith.constant dense<0.000000e+00> : vector<16x512xf32>
    %390 = tpu.matmul %387, %389, %cst_143 {dimension_numbers = #tpu.dot_dimension_numbers<[1], [0], [0], [1], [0, 0, 1, 1], [], []>} : vector<16x384xbf16>, vector<384x512xbf16>, vector<16x512xf32> -> vector<16x512xf32>
    %c1_144 = arith.constant 1 : index
    %c0_145 = arith.constant 0 : index
    %c0_146 = arith.constant 0 : index
    %391 = vector.load %arg10[%c1_144, %c0_145, %c0_146] : memref<2x1x512xf32, #tpu.memory_space<vmem>>, vector<1x1x512xf32>
    %392 = vector.shape_cast %391 : vector<1x1x512xf32> to vector<1x512xf32>
    %393 = vector.broadcast %392 : vector<1x512xf32> to vector<16x512xf32>
    %394 = arith.addf %390, %393 : vector<16x512xf32>
    %cst_147 = arith.constant 0.000000e+00 : f32
    %395 = vector.broadcast %cst_147 : f32 to vector<16x512xf32>
    %396 = arith.maximumf %394, %395 : vector<16x512xf32>
    %397 = arith.truncf %396 : vector<16x512xf32> to vector<16x512xbf16>
    %c1_148 = arith.constant 1 : index
    %c0_149 = arith.constant 0 : index
    %c0_150 = arith.constant 0 : index
    %398 = vector.load %arg11[%c1_148, %c0_149, %c0_150] : memref<2x512x384xbf16, #tpu.memory_space<vmem>>, vector<1x512x384xbf16>
    %399 = vector.shape_cast %398 : vector<1x512x384xbf16> to vector<512x384xbf16>
    %cst_151 = arith.constant dense<0.000000e+00> : vector<16x384xf32>
    %400 = tpu.matmul %397, %399, %cst_151 {dimension_numbers = #tpu.dot_dimension_numbers<[1], [0], [0], [1], [0, 0, 1, 1], [], []>} : vector<16x512xbf16>, vector<512x384xbf16>, vector<16x384xf32> -> vector<16x384xf32>
    %c1_152 = arith.constant 1 : index
    %c0_153 = arith.constant 0 : index
    %c0_154 = arith.constant 0 : index
    %401 = vector.load %arg12[%c1_152, %c0_153, %c0_154] : memref<2x1x384xf32, #tpu.memory_space<vmem>>, vector<1x1x384xf32>
    %402 = vector.shape_cast %401 : vector<1x1x384xf32> to vector<1x384xf32>
    %403 = vector.broadcast %402 : vector<1x384xf32> to vector<16x384xf32>
    %404 = arith.addf %400, %403 : vector<16x384xf32>
    %405 = arith.addf %404, %386 : vector<16x384xf32>
    %c1_155 = arith.constant 1 : index
    %c0_156 = arith.constant 0 : index
    %c0_157 = arith.constant 0 : index
    %406 = vector.load %arg13[%c1_155, %c0_156, %c0_157] : memref<2x1x384xf32, #tpu.memory_space<vmem>>, vector<1x1x384xf32>
    %407 = vector.shape_cast %406 : vector<1x1x384xf32> to vector<1x384xf32>
    %c1_158 = arith.constant 1 : index
    %c0_159 = arith.constant 0 : index
    %c0_160 = arith.constant 0 : index
    %408 = vector.load %arg14[%c1_158, %c0_159, %c0_160] : memref<2x1x384xf32, #tpu.memory_space<vmem>>, vector<1x1x384xf32>
    %409 = vector.shape_cast %408 : vector<1x1x384xf32> to vector<1x384xf32>
    %cst_161 = arith.constant dense<0.000000e+00> : vector<16xf32>
    %410 = vector.multi_reduction <add>, %405, %cst_161 [1] : vector<16x384xf32> to vector<16xf32>
    %411 = vector.shape_cast %410 : vector<16xf32> to vector<16x1xf32>
    %cst_162 = arith.constant 0.00333333341 : f32
    %412 = vector.broadcast %cst_162 : f32 to vector<16x1xf32>
    %413 = arith.mulf %411, %412 : vector<16x1xf32>
    %414 = vector.broadcast %413 : vector<16x1xf32> to vector<16x384xf32>
    %415 = arith.subf %405, %414 : vector<16x384xf32>
    %416 = arith.mulf %415, %4 : vector<16x384xf32>
    %417 = arith.mulf %416, %416 : vector<16x384xf32>
    %cst_163 = arith.constant dense<0.000000e+00> : vector<16xf32>
    %418 = vector.multi_reduction <add>, %417, %cst_163 [1] : vector<16x384xf32> to vector<16xf32>
    %419 = vector.shape_cast %418 : vector<16xf32> to vector<16x1xf32>
    %cst_164 = arith.constant 0.00333333341 : f32
    %420 = vector.broadcast %cst_164 : f32 to vector<16x1xf32>
    %421 = arith.mulf %419, %420 : vector<16x1xf32>
    %cst_165 = arith.constant 9.99999997E-7 : f32
    %422 = vector.broadcast %cst_165 : f32 to vector<16x1xf32>
    %423 = arith.addf %421, %422 : vector<16x1xf32>
    %424 = math.rsqrt %423 : vector<16x1xf32>
    %425 = vector.broadcast %424 : vector<16x1xf32> to vector<16x384xf32>
    %426 = arith.mulf %416, %425 : vector<16x384xf32>
    %427 = vector.broadcast %407 : vector<1x384xf32> to vector<16x384xf32>
    %428 = arith.mulf %426, %427 : vector<16x384xf32>
    %429 = vector.broadcast %409 : vector<1x384xf32> to vector<16x384xf32>
    %430 = arith.addf %428, %429 : vector<16x384xf32>
    %431 = vector.shape_cast %430 : vector<16x384xf32> to vector<2x8x384xf32>
    %c0_166 = arith.constant 0 : index
    %c0_167 = arith.constant 0 : index
    %c0_168 = arith.constant 0 : index
    %432 = vector.load %arg15[%c0_166, %c0_167, %c0_168] : memref<2x8x384xf32, #tpu.memory_space<vmem>>, vector<2x8x384xf32>
    tpu.vector_store %arg15[%c0_166, %c0_167, %c0_168], %431 {strides = array<i32>} : memref<2x8x384xf32, #tpu.memory_space<vmem>>, vector<2x8x384xf32>,
    return
  }
  func.func @transform_0(%arg0: i32, %arg1: memref<4xi32, #tpu.memory_space<smem>>) -> (i32, i32, i32) {
    %c0_i32 = arith.constant 0 : i32
    %c0_i32_0 = arith.constant 0 : i32
    %c0_i32_1 = arith.constant 0 : i32
    return %arg0, %c0_i32, %c0_i32_0 : i32, i32, i32
  }
  func.func @transform_1(%arg0: i32, %arg1: memref<4xi32, #tpu.memory_space<smem>>) -> (i32, i32) {
    %c0_i32 = arith.constant 0 : i32
    %c0_i32_0 = arith.constant 0 : i32
    %c0_i32_1 = arith.constant 0 : i32
    return %c0_i32, %c0_i32_0 : i32, i32
  }
  func.func @transform_2(%arg0: i32, %arg1: memref<4xi32, #tpu.memory_space<smem>>) -> (i32, i32) {
    %c0_i32 = arith.constant 0 : i32
    %c0_i32_0 = arith.constant 0 : i32
    %c0_i32_1 = arith.constant 0 : i32
    return %c0_i32, %c0_i32_0 : i32, i32
  }
  func.func @transform_3(%arg0: i32, %arg1: memref<4xi32, #tpu.memory_space<smem>>) -> (i32, i32, i32) {
    %c0_i32 = arith.constant 0 : i32
    %c0_i32_0 = arith.constant 0 : i32
    %c0_i32_1 = arith.constant 0 : i32
    %c0_i32_2 = arith.constant 0 : i32
    return %c0_i32, %c0_i32_0, %c0_i32_1 : i32, i32, i32
  }
  func.func @transform_4(%arg0: i32, %arg1: memref<4xi32, #tpu.memory_space<smem>>) -> (i32, i32, i32) {
    %c0_i32 = arith.constant 0 : i32
    %c0_i32_0 = arith.constant 0 : i32
    %c0_i32_1 = arith.constant 0 : i32
    %c0_i32_2 = arith.constant 0 : i32
    return %c0_i32, %c0_i32_0, %c0_i32_1 : i32, i32, i32
  }
  func.func @transform_5(%arg0: i32, %arg1: memref<4xi32, #tpu.memory_space<smem>>) -> (i32, i32, i32) {
    %c0_i32 = arith.constant 0 : i32
    %c0_i32_0 = arith.constant 0 : i32
    %c0_i32_1 = arith.constant 0 : i32
    %c0_i32_2 = arith.constant 0 : i32
    return %c0_i32, %c0_i32_0, %c0_i32_1 : i32, i32, i32
  }
  func.func @transform_6(%arg0: i32, %arg1: memref<4xi32, #tpu.memory_space<smem>>) -> (i32, i32, i32) {
    %c0_i32 = arith.constant 0 : i32
    %c0_i32_0 = arith.constant 0 : i32
    %c0_i32_1 = arith.constant 0 : i32
    %c0_i32_2 = arith.constant 0 : i32
    return %c0_i32, %c0_i32_0, %c0_i32_1 : i32, i32, i32
  }
  func.func @transform_7(%arg0: i32, %arg1: memref<4xi32, #tpu.memory_space<smem>>) -> (i32, i32, i32) {
    %c0_i32 = arith.constant 0 : i32
    %c0_i32_0 = arith.constant 0 : i32
    %c0_i32_1 = arith.constant 0 : i32
    %c0_i32_2 = arith.constant 0 : i32
    return %c0_i32, %c0_i32_0, %c0_i32_1 : i32, i32, i32
  }
  func.func @transform_8(%arg0: i32, %arg1: memref<4xi32, #tpu.memory_space<smem>>) -> (i32, i32, i32) {
    %c0_i32 = arith.constant 0 : i32
    %c0_i32_0 = arith.constant 0 : i32
    %c0_i32_1 = arith.constant 0 : i32
    %c0_i32_2 = arith.constant 0 : i32
    return %c0_i32, %c0_i32_0, %c0_i32_1 : i32, i32, i32
  }
  func.func @transform_9(%arg0: i32, %arg1: memref<4xi32, #tpu.memory_space<smem>>) -> (i32, i32, i32) {
    %c0_i32 = arith.constant 0 : i32
    %c0_i32_0 = arith.constant 0 : i32
    %c0_i32_1 = arith.constant 0 : i32
    %c0_i32_2 = arith.constant 0 : i32
    return %c0_i32, %c0_i32_0, %c0_i32_1 : i32, i32, i32
  }
  func.func @transform_10(%arg0: i32, %arg1: memref<4xi32, #tpu.memory_space<smem>>) -> (i32, i32, i32) {
    %c0_i32 = arith.constant 0 : i32
    %c0_i32_0 = arith.constant 0 : i32
    %c0_i32_1 = arith.constant 0 : i32
    %c0_i32_2 = arith.constant 0 : i32
    return %c0_i32, %c0_i32_0, %c0_i32_1 : i32, i32, i32
  }
  func.func @transform_11(%arg0: i32, %arg1: memref<4xi32, #tpu.memory_space<smem>>) -> (i32, i32, i32) {
    %c0_i32 = arith.constant 0 : i32
    %c0_i32_0 = arith.constant 0 : i32
    %c0_i32_1 = arith.constant 0 : i32
    %c0_i32_2 = arith.constant 0 : i32
    return %c0_i32, %c0_i32_0, %c0_i32_1 : i32, i32, i32
  }
  func.func @transform_12(%arg0: i32, %arg1: memref<4xi32, #tpu.memory_space<smem>>) -> (i32, i32, i32) {
    %c0_i32 = arith.constant 0 : i32
    %c0_i32_0 = arith.constant 0 : i32
    %c0_i32_1 = arith.constant 0 : i32
    %c0_i32_2 = arith.constant 0 : i32
    return %c0_i32, %c0_i32_0, %c0_i32_1 : i32, i32, i32
  }
  func.func @transform_13(%arg0: i32, %arg1: memref<4xi32, #tpu.memory_space<smem>>) -> (i32, i32, i32) {
    %c0_i32 = arith.constant 0 : i32
    %c0_i32_0 = arith.constant 0 : i32
    %c0_i32_1 = arith.constant 0 : i32
    return %arg0, %c0_i32, %c0_i32_0 : i32, i32, i32
  }
}

</mosaic_0001>

<bundles_post_ra>
// kernel: tpu_custom_call.1
= control target key start
LH: loop header
LB: loop body
LE: loop exit
PB: predicated region body
PF: predicated region fallthrough
CT: control target
= control target key end

     0   :  { %s10753_s16 = smov [#allocation3]   ;;  %s11756_s0 = inlined_call_operand.hbm [shape: s32[4], index: 0, kind: input, shape index: {}]   ;;  %s11757_s1 = inlined_call_operand.hbm [shape: f32[4,8,384], index: 1, kind: input, shape index: {}]   ;;  %s11758_s2 = inlined_call_operand.hbm [shape: f32[1,384], index: 2, kind: input, shape index: {}]   ;;  %s11759_s3 = inlined_call_operand.hbm [shape: f32[1,384], index: 3, kind: input, shape index: {}]   ;;  %s11760_s4 = inlined_call_operand.hbm [shape: bf16[2,384,384], index: 4, kind: input, shape index: {}]   ;;  %s11761_s5 = inlined_call_operand.hbm [shape: bf16[8,32,384], index: 5, kind: input, shape index: {}]   ;;  %s11762_s6 = inlined_call_operand.hbm [shape: f32[2,1,384], index: 6, kind: input, shape index: {}]   ;;  %s11763_s7 = inlined_call_operand.hbm [shape: f32[2,1,384], index: 7, kind: input, shape index: {}]   ;;  %s11764_s8 = inlined_call_operand.hbm [shape: bf16[2,384,512], index: 8, kind: input, shape index: {}]   ;;  %s11765_s9 = inlined_call_operand.vmem [shape: f32[2,1,512], index: 9, kind: input, shape index: {}]   ;;  %s11766_s10 = inlined_call_operand.hbm [shape: bf16[2,512,384], index: 10, kind: input, shape index: {}]   ;;  %s11767_s11 = inlined_call_operand.hbm [shape: f32[2,1,384], index: 11, kind: input, shape index: {}]   ;;  %s11768_s12 = inlined_call_operand.hbm [shape: f32[2,1,384], index: 12, kind: input, shape index: {}]   ;;  %s11769_s13 = inlined_call_operand.hbm [shape: f32[2,1,384], index: 13, kind: input, shape index: {}]   ;;  %s11770_s14 = inlined_call_operand.hbm [shape: f32[4,8,384], index: 14, kind: output, shape index: {}]  }
   0x1   :  { %11779 = sst [smem:[#allocation34_spill]] %s11758_s2  ;;  %s20_s15 = sshll.u32 %s11756_s0, 4  ;;  %s21_s15 = int_to_ptr.hbm [resolvable:$true] %s20_s15 }
   0x2   :  { %11780 = sst [smem:[#allocation35_spill]] %s11759_s3 }
   0x3   :  { %11781 = sst [smem:[#allocation36_spill]] %s11760_s4 }
   0x4   :  { %11782 = sst [smem:[#allocation37_spill]] %s11761_s5 }
   0x5   :  { %11783 = sst [smem:[#allocation38_spill]] %s11762_s6 }
   0x6   :  { %11784 = sst [smem:[#allocation39_spill]] %s11763_s7 }
   0x7   :  { %11785 = sst [smem:[#allocation40_spill]] %s11764_s8 }
   0x8   :  { %11786 = sst [smem:[#allocation41_spill]] %s11765_s9 }
   0x9   :  { %11787 = sst [smem:[#allocation42_spill]] %s11766_s10 }
   0xa   :  { %11788 = sst [smem:[#allocation43_spill]] %s11770_s14 }
   0xb   :  { %23 = dma.hbm_to_smem %s21_s15, 16, %s10753_s16, [#allocation2] }
   0xc   :  { %10703 = dma.done.wait [#allocation2], 16 }
   0xd   :  { %10704 = vsyncadd [#allocation2], 4294967280 }
   0xe   :  { %26 = sfence }
   0xf   :  { %27 = vsyncpa [#allocation5], 0 }
  0x10   :  { %29 = vsyncpa [#allocation5 + $0x1], 0 }
  0x11   :  { %30 = vsyncpa [#allocation8], 0 }
  0x12   :  { %31 = vsyncpa [#allocation11], 0 }
  0x13   :  { %32 = vsyncpa [#allocation14], 0 }
  0x14   :  { %33 = vsyncpa [#allocation17], 0 }
  0x15   :  { %34 = vsyncpa [#allocation20], 0 }
  0x16   :  { %35 = vsyncpa [#allocation23], 0 }
  0x17   :  { %36 = vsyncpa [#allocation6], 0 }
  0x18   :  { %38 = vsyncpa [#allocation6 + $0x1], 0  ;;  %s10857_s17 = smov 0   ;;  %s10859_s18 = smov 0  }
  0x19   :  { %s10861_s0 = smov 0   ;;  %s10863_s19 = smov 0  }
  0x1a LB: > { %s11789_s2 = sld [smem:[#allocation34_spill]]  ;;  %s10881_s23 = sadd.s32 4294967295, %s10751_s19   ;;  %s10751_s19 = sphi %s10863_s19, %s11816_s19   ;;  %s10747_s0 = sphi %s10861_s0, %s11815_s0   ;;  %s10743_s18 = sphi %s10859_s18, %s11814_s18   ;;  %s10739_s17 = sphi %s10857_s17, %s11813_s17  }
  0x1b   : > { %p7071_p0 = scmp.ge.s32.totalorder %s10751_s19, 1  ;;  %p65_p1 = scmp.eq.s32.totalorder %s10881_s23, 0 }
  0x1c   : > { %p353_p2 = scmp.lt.s32.totalorder %s10751_s19, 3  ;;  %s10754_s25 = smov [#allocation7]  }
  0x1d   : > { %s367_s26 = sshll.u32 %s10754_s25, 4  ;;  %s11791_s4 = sld [smem:[#allocation36_spill]]  ;;  %s368_s26 = int_to_ptr.vmem [resolvable:$true] %s367_s26 }
  0x1e   : > { %p10886_p3 = pnand %p7071_p0, %p353_p2  ;;  %s10755_s15 = smov [#allocation10]  }
  0x1f   : > { %s390_s16 = sshll.u32 %s10755_s15, 4  ;;  %s11773_s20 = smov 192   ;;  %s391_s16 = int_to_ptr.vmem [resolvable:$true] %s390_s16 }
  0x20   : > { %s365_s22 = sshll.u32 %s11789_s2, 4  ;;  %p10079_p5 = pneg %p10886_p3  ;;  %s366_s22 = int_to_ptr.hbm [resolvable:$true] %s365_s22 }
  0x21   : > { %s11775_s21 = smov 12   ;;  %s11793_s6 = sld [smem:[#allocation38_spill]] }
  0x22   : > { %p10898_p6 = pnand %p10079_p5, %p65_p1  ;;  %s10758_s2 = smov [#allocation13]  }
  0x23   : > { %s388_s29 = sshll.u32 %s11791_s4, 4  ;;  %s418_s4 = sshll.u32 %s10758_s2, 4  ;;  %s389_s29 = int_to_ptr.hbm [resolvable:$true] %s388_s29  ;;  %s419_s4 = int_to_ptr.vmem [resolvable:$true] %s418_s4 }
  0x24   : > { %10082 = dma.hbm_to_vmem [thread:$0]  (!%p10898_p6), %s366_s22, 48, %s368_s26, [#allocation8]  }
  0x25   : > { %10088 = dma.hbm_to_vmem [thread:$0]  (!%p10898_p6), %s389_s29, 18432, %s391_s16, [#allocation11], %s11773_s20, %s11773_s20, %s11775_s21  }
  0x26   : > { %s11794_s8 = sld [smem:[#allocation40_spill]]  ;;  %s11777_s26 = smov 48  }
  0x27   : > { %s416_s28 = sshll.u32 %s11793_s6, 4  ;;  %s10760_s9 = smov 3   ;;  %s417_s28 = int_to_ptr.hbm [resolvable:$true] %s416_s28 }
  0x28   : > { %10094 = dma.hbm_to_vmem [thread:$0]  (!%p10898_p6), %s417_s28, 96, %s419_s4, [#allocation14], %s11777_s26, %s11777_s26, %s10760_s9  }
  0x29   : > { %s10761_s29 = smov [#allocation16]   ;;  %s10762_s25 = smov 256  }
  0x2a   : > { %s446_s16 = sshll.u32 %s10761_s29, 4  ;;  %s10763_s2 = smov 16   ;;  %s447_s16 = int_to_ptr.vmem [resolvable:$true] %s446_s16 }
  0x2b   : > { %s475_s15 = sshll.u32 %s11767_s11, 4  ;;  %s10764_s20 = smov [#allocation19]   ;;  %s476_s15 = int_to_ptr.hbm [resolvable:$true] %s475_s15 }
  0x2c   : > { %s444_s22 = sshll.u32 %s11794_s8, 4  ;;  %s477_s21 = sshll.u32 %s10764_s20, 4  ;;  %s445_s22 = int_to_ptr.hbm [resolvable:$true] %s444_s22  ;;  %s478_s21 = int_to_ptr.vmem [resolvable:$true] %s477_s21 }
  0x2d   : > { %10100 = dma.hbm_to_vmem [thread:$0]  (!%p10898_p6), %s445_s22, 24576, %s447_s16, [#allocation17], %s10762_s25, %s10762_s25, %s10763_s2  }
  0x2e   : > { %s11795_s3 = sld [smem:[#allocation35_spill]]  ;;  %s10765_s22 = smov [#allocation9]  }
  0x2f   : > { %10106 = dma.hbm_to_vmem [thread:$0]  (!%p10898_p6), %s476_s15, 96, %s478_s21, [#allocation20], %s11777_s26, %s11777_s26, %s10760_s9  }
  0x30   : > { %s379_s29 = sshll.u32 %s10765_s22, 4  ;;  %s11796_s5 = sld [smem:[#allocation37_spill]]  ;;  %s380_s29 = int_to_ptr.vmem [resolvable:$true] %s379_s29 }
  0x31   : > { %s11797_s7 = sld [smem:[#allocation39_spill]]  ;;  %s10766_s14 = smov [#allocation12]  }
  0x32   : > { %s404_s4 = sshll.u32 %s10766_s14, 4  ;;  %s11798_s21 = smov 12   ;;  %s405_s4 = int_to_ptr.vmem [resolvable:$true] %s404_s4 }
  0x33   : > { %s11799_s15 = smov 192   ;;  %s10767_s22 = smov [#allocation15]  }
  0x34   : > { %s377_s28 = sshll.u32 %s11795_s3, 4  ;;  %s432_s16 = sshll.u32 %s10767_s22, 4  ;;  %s378_s28 = int_to_ptr.hbm [resolvable:$true] %s377_s28  ;;  %s433_s16 = int_to_ptr.vmem [resolvable:$true] %s432_s16 }
  0x35   : > { %10085 = dma.hbm_to_vmem [thread:$0]  (!%p10898_p6), %s378_s28, 48, %s380_s29, [#allocation8]  }
  0x36   : > { %s402_s2 = sshll.u32 %s11796_s5, 4  ;;  %s11800_s10 = sld [smem:[#allocation42_spill]]  ;;  %s403_s2 = int_to_ptr.hbm [resolvable:$true] %s402_s2 }
  0x37   : > { %s430_s27 = sshll.u32 %s11797_s7, 4  ;;  %s11801_s29 = smov 48   ;;  %s431_s27 = int_to_ptr.hbm [resolvable:$true] %s430_s27 }
  0x38   : > { %10091 = dma.hbm_to_vmem [thread:$0]  (!%p10898_p6), %s403_s2, 6144, %s405_s4, [#allocation11], %s11799_s15, %s11799_s15, %s11798_s21  }
  0x39   : > { %10097 = dma.hbm_to_vmem [thread:$0]  (!%p10898_p6), %s431_s27, 96, %s433_s16, [#allocation14], %s11801_s29, %s11801_s29, %s10760_s9  }
  0x3a   : > { %s489_s14 = sshll.u32 %s11768_s12, 4  ;;  %s10768_s2 = smov [#allocation18]   ;;  %s490_s14 = int_to_ptr.hbm [resolvable:$true] %s489_s14 }
  0x3b   : > { %s463_s4 = sshll.u32 %s10768_s2, 4  ;;  %s10769_s26 = smov [#allocation21]   ;;  %s464_s4 = int_to_ptr.vmem [resolvable:$true] %s463_s4 }
  0x3c   : > { %s461_s28 = sshll.u32 %s11800_s10, 4  ;;  %s491_s27 = sshll.u32 %s10769_s26, 4  ;;  %s462_s28 = int_to_ptr.hbm [resolvable:$true] %s461_s28  ;;  %s492_s27 = int_to_ptr.vmem [resolvable:$true] %s491_s27 }
  0x3d   : > { %10103 = dma.hbm_to_vmem [thread:$0]  (!%p10898_p6), %s462_s28, 24576, %s464_s4, [#allocation17], %s11799_s15, %s11799_s15, %s11798_s21  }
  0x3e   : > { %s503_s25 = sshll.u32 %s11769_s13, 4  ;;  %s10770_s21 = smov [#allocation22]   ;;  %s504_s25 = int_to_ptr.hbm [resolvable:$true] %s503_s25 }
  0x3f   : > { %10109 = dma.hbm_to_vmem [thread:$0]  (!%p10898_p6), %s490_s14, 96, %s492_s27, [#allocation20], %s11801_s29, %s11801_s29, %s10760_s9  }
  0x40   : > { %s505_s15 = sshll.u32 %s10770_s21, 4  ;;  %s7070_s28 = sadd.s32 4294967294, %s10751_s19   ;;  %s506_s15 = int_to_ptr.vmem [resolvable:$true] %s505_s15 }
  0x41   : > { %10112 = dma.hbm_to_vmem [thread:$0]  (!%p10898_p6), %s504_s25, 96, %s506_s15, [#allocation23], %s11801_s29, %s11801_s29, %s10760_s9  }
  0x42   : > { %s10977_s20 = sadd.s32 1, %s10751_s19   ;;  %s51_s6 = sadd.s32 1, %s10747_s0 }
  0x43   : > { %s48_s2 = ssub.s32 %s10751_s19, %s10977_s20  ;;  %p58_p7 = scmp.ne.s32.totalorder %s10747_s0, %s10743_s18 }
  0x44   : > { %p49_p8 = scmp.eq.s32.totalorder %s48_s2, 0  ;;  %p59_p9 = scmp.eq.s32.totalorder %s10751_s19, 0 }
  0x45   : > { %p64_p10 = scmp.ne.s32.totalorder %s10743_s18, %s10739_s17  ;;  %p340_p11 = scmp.eq.s32.totalorder %s10881_s23, 1 }
  0x46   : > { %s10989_s14 = scalar_select %p49_p8, %s10747_s0, %s51_s6  }
  0x47   : > { %p60_p12 = por %p59_p9, %p58_p7  ;;  %p10993_p13 = por %p65_p1, %p64_p10 }
  0x48   : > { %p10997_p0 = por %p340_p11, %p58_p7  ;;  %p346_p2 = scmp.eq.s32.totalorder %s7070_s28, 1 }
  0x49   : > { %p10132_p5 = scmp.lt.s32.totalorder %s10751_s19, 2  ;;  %s519_s29 = sand.u32 1, %s10747_s0  }
  0x4a   : > { %p11003_p6 = por %p346_p2, %p64_p10  ;;  %s10027_s26 = smul.u32 48, %s519_s29 }
  0x4b   : > { %p11007_p8 = pnand %p10132_p5, %p60_p12  ;;  %s10028_s22 = smul.u32 48, %s10751_s19 }
  0x4c   : > { %s523_s15 = scalar_lea.vmem [#allocation4], %s10027_s26  ;;  %s520_s2 = scalar_lea.sflag [#allocation5], %s519_s29 }
  0x4d   : > { %s529_s21 = scalar_lea.hbm %s11757_s1, %s10028_s22  ;;  %s532_s6 = sshll.u32 %s523_s15, 4  ;;  %s533_s6 = int_to_ptr.vmem [resolvable:$true] %s532_s6 }
  0x4e   : > { %s530_s28 = sshll.u32 %s529_s21, 4  ;;  %p10633_p9 = pneg %p11007_p8  ;;  %s531_s28 = int_to_ptr.hbm [resolvable:$true] %s530_s28 }
  0x4f   : > { %s10629_s3 = sshra.s32 %s531_s28, 4  ;;  %s10636_s10 = scalar_lea.hbm %s11757_s1, 96  ;;  %s10630_s3 = int_to_ptr.hbm [resolvable:$true] %s10629_s3 }
  0x50   : > { %s10631_s5 = scalar_lea.hbm %s10630_s3, 48  ;;  %p10637_p12 = scmp.lt.s32.totalorder %s10630_s3, %s11757_s1 }
  0x51   : > { %p10632_p7 = scmp.ne.s32.totalorder %s10630_s3, %s10631_s5  ;;  %p10638_p2 = scmp.lt.s32.totalorder %s10636_s10, %s10631_s5 }
  0x53   : > { %p10634_p10 = pnand %p10633_p9, %p10632_p7  ;;  %p10639_p5 = por %p10638_p2, %p10637_p12 }
  0x55   : > { %p10635_p11 = pneg %p10634_p10 }
  0x57   : > { %p10640_p4 = pnand %p10639_p5, %p10635_p11 }
  0x59   : > { %10643 = shalt.err (!%p10640_p4)
}
  0x5a   : > { %s10771_s29 = smov 384   ;;  %s10772_s26 = smov 24  }
  0x5b   : > { %10116 = dma.hbm_to_vmem [thread:$0]  (!%p11007_p8), %s531_s28, 768, %s533_s6, %s520_s2, %s10771_s29, %s10771_s29, %s10772_s26  }
  0x5c   : > { %544 = sbr.rel (%p10886_p3) target bundleno = 6015 (0x177f), region = 72  ;;  %s11028_s7 = sand.u32 (!%p10886_p3), 1, %s10743_s18  }
  0x5d   : > { %s10029_s3 = smul.u32 (!%p10886_p3), 48, %s11028_s7  ;;  %s547_s5 = scalar_lea.sflag (!%p10886_p3), [#allocation5], %s11028_s7 }
  0x5f   : > { %s550_s8 = scalar_lea.vmem (!%p10886_p3), [#allocation4], %s10029_s3 }
  0x61   : > { %10706 = dma.done.wait (%p10993_p13), %s547_s5, 768  }
  0x62   : > { %10708 = vsyncadd (%p10993_p13), %s547_s5, 4294966528 }
  0x63   : > { %10710 = dma.done.wait (%p65_p1), [#allocation8], 96  }
  0x64   : > { %10712 = vsyncadd (%p65_p1), [#allocation8], 4294967200 }
  0x65   : > { %10714 = dma.done.wait (%p65_p1), [#allocation11], 24576  }
  0x66   : > { %10716 = vsyncadd (%p65_p1), [#allocation11], 4294942720 }
  0x67   : > { %10718 = dma.done.wait (%p65_p1), [#allocation14], 192  }
  0x68   : > { %10720 = vsyncadd (%p65_p1), [#allocation14], 4294967104 }
  0x69   : > { %10722 = dma.done.wait (%p65_p1), [#allocation17], 49152  }
  0x6a   : > { %10724 = vsyncadd (%p65_p1), [#allocation17], 4294918144 }
  0x6b   : > { %10726 = dma.done.wait (%p65_p1), [#allocation20], 192  }
  0x6c   : > { %10728 = vsyncadd (%p65_p1), [#allocation20], 4294967104 }
  0x6d   : > { %10730 = dma.done.wait (%p65_p1), [#allocation23], 96  }
  0x6e   : > { %10732 = vsyncadd (%p65_p1), [#allocation23], 4294967200  ;;  %v11062_v0 = vld [vmem:[%s550_s8] sm:$0xff]  ;;  %v11064_v1 = vld [vmem:[%s550_s8 + $0x8] sm:$0xff]  ;;  %v652_v10 = vlaneseq  ;;  %v10773_v47 = vmov 0.0   ;;  %vm1413_vm7 = vcmask 261120  }
  0x6f   : > { %v11066_v2 = vld [vmem:[%s550_s8 + $0x10] sm:$0xff]  ;;  %v709_v3 = vadd.f32 %v11064_v1, %v11062_v0  ;;  %v11070_v4 = vld [vmem:[%s550_s8 + $0x18] sm:$0xff]  ;;  %v11072_v5 = vld [vmem:[%s550_s8 + $0x20] sm:$0xff]  ;;  %s10774_s10 = smov 96   ;;  %s7100_s24 = sshll.u32 %s10881_s23, 1  ;;  %vm1436_vm9 = vcmask 130048  }
  0x70   : > { %v713_v7 = vadd.f32 %v11072_v5, %v11070_v4  ;;  %v11077_v8 = vld [vmem:[%s550_s8 + $0x28] sm:$0xff]  ;;  %v7187_v11 = vld [vmem:[#allocation10 + $0xa8] sm:$0xf]  ;;  %v9470_v15 = vld [vmem:[#allocation10 + $0x98] sm:$0xf0]  ;;  %v11080_v16 = vand.u32 127, %v652_v10 }
  0x71   : > { %v710_v6 = vadd.f32 %v709_v3, %v11066_v2  ;;  %v9473_v12 = vld [vmem:[#allocation10 + $0xb0] sm:$0xf0]  ;;  %v7175_v13 = vld [vmem:[#allocation10 + $0x90] sm:$0xf]  ;;  %v7163_v17 = vld [vmem:[#allocation10 + $0x78] sm:$0xf] }
  0x72   : > { %v714_v9 = vadd.f32 %v713_v7, %v11077_v8  ;;  %v7188_v14 = vor.u32 %v9473_v12, %v7187_v11  ;;  %v7283_v18 = vld [vmem:[#allocation10 + $0x168] sm:$0xf]  ;;  %v7176_v19 = vor.u32 %v9470_v15, %v7175_v13  ;;  %v9497_v20 = vld [vmem:[#allocation10 + $0x170] sm:$0xf0]  ;;  %v9467_v23 = vld [vmem:[#allocation10 + $0x80] sm:$0xf0] }
  0x73   : > { %711 = vadd.xlane.f32.xlu0 %v710_v6  ;;  %v7379_v21 = vld [vmem:[#allocation10 + $0x228] sm:$0xf]  ;;  %v9521_v22 = vld [vmem:[#allocation10 + $0x230] sm:$0xf0]  ;;  %v7284_v24 = vor.u32 %v9497_v20, %v7283_v18  ;;  %v9472_v26 = vld [vmem:[#allocation10 + $0xac] sm:$0xf]  ;;  %v7164_v35 = vor.u32 %v9467_v23, %v7163_v17 }
  0x74   : > { %1284 = vmatpush.bf16.msra.mxu0 %v7188_v14  ;;  %v7380_v25 = vor.u32 %v9521_v22, %v7379_v21  ;;  %v7189_v27 = vld [vmem:[#allocation10 + $0xb4] sm:$0xf0]  ;;  %v7271_v29 = vld [vmem:[#allocation10 + $0x150] sm:$0xf]  ;;  %v9494_v30 = vld [vmem:[#allocation10 + $0x158] sm:$0xf0] }
  0x75   : > { %v7192_v28 = vor.u32 %v9472_v26, %v7189_v27  ;;  %1298 = vmatpush.bf16.msra.mxu1 %v7284_v24  ;;  %v7272_v31 = vor.u32 %v9494_v30, %v7271_v29  ;;  %v7367_v32 = vld [vmem:[#allocation10 + $0x210] sm:$0xf]  ;;  %v9518_v33 = vld [vmem:[#allocation10 + $0x218] sm:$0xf0]  ;;  %v9469_v34 = vld [vmem:[#allocation10 + $0x94] sm:$0xf] }
  0x76   : > { %1312 = vmatpush.bf16.msra.mxu2 %v7380_v25  ;;  %v7368_v36 = vor.u32 %v9518_v33, %v7367_v32  ;;  %v7177_v37 = vld [vmem:[#allocation10 + $0x9c] sm:$0xf0]  ;;  %v655_v38 = vadd.s32 256, %v11080_v16  ;;  %v9464_v40 = vld [vmem:[#allocation10 + $0x68] sm:$0xf0]  ;;  %s683_s30 = sadd.s32 1, %s7100_s24 }
  0x77   : > { %1326 = vmatpush.bf16.msra.mxu3 %v7192_v28  ;;  %v7151_v39 = vld [vmem:[#allocation10 + $0x60] sm:$0xf]  ;;  %v7180_v41 = vor.u32 %v9469_v34, %v7177_v37  ;;  %v7139_v43 = vld [vmem:[#allocation10 + $0x48] sm:$0xf]  ;;  %v9461_v44 = vld [vmem:[#allocation10 + $0x50] sm:$0xf0] }
  0x78   : > { %1285 = vmatpush.bf16.msra.mxu0 %v7176_v19  ;;  %v7152_v42 = vor.u32 %v9464_v40, %v7151_v39  ;;  %vm658_vm0 = vcmp.lt.s32.totalorder %v655_v38, 300  ;;  %v7140_v49 = vor.u32 %v9461_v44, %v7139_v43  ;;  %v9458_v7 = vld [vmem:[#allocation10 + $0x38] sm:$0xf0]  ;;  %v9491_v10 = vld [vmem:[#allocation10 + $0x140] sm:$0xf0]  ;;  %s669_s27 = sld [smem:[#allocation3 + %s7100_s24]] }
  0x79   : > { %1299 = vmatpush.bf16.msra.mxu1 %v7272_v31  ;;  %v11083_v48 = vsel %vm658_vm0, 1.0, %v10773_v47  ;;  %v7355_v11 = vld [vmem:[#allocation10 + $0x1f8] sm:$0xf]  ;;  %v9515_v13 = vld [vmem:[#allocation10 + $0x200] sm:$0xf0]  ;;  %s684_s25 = sld [smem:[#allocation3 + %s683_s30]] }
  0x7a   : > { %1313 = vmatpush.bf16.msra.mxu2 %v7368_v36  ;;  %v9466_v14 = vld [vmem:[#allocation10 + $0x7c] sm:$0xf]  ;;  %v7165_v15 = vld [vmem:[#allocation10 + $0x84] sm:$0xf0]  ;;  %v7356_v17 = vor.u32 %v9515_v13, %v7355_v11  ;;  %v7115_v19 = vld [vmem:[#allocation10 + $0x18] sm:$0xf] }
  0x7b   : > { %715 = vadd.xlane.f32.xlu0 %v714_v9  ;;  %1327 = vmatpush.bf16.msra.mxu3 %v7180_v41  ;;  %v7168_v18 = vor.u32 %v9466_v14, %v7165_v15  ;;  %v9455_v20 = vld [vmem:[#allocation10 + $0x20] sm:$0xf0]  ;;  %v7247_v22 = vld [vmem:[#allocation10 + $0x120] sm:$0xf]  ;;  %v9488_v23 = vld [vmem:[#allocation10 + $0x128] sm:$0xf0] }
  0x7c   : > { %1286 = vmatpush.bf16.msra.mxu0 %v7164_v35  ;;  %v7116_v21 = vor.u32 %v9455_v20, %v7115_v19  ;;  %v7343_v24 = vld [vmem:[#allocation10 + $0x1e0] sm:$0xf]  ;;  %v7248_v25 = vor.u32 %v9488_v23, %v7247_v22  ;;  %v9512_v26 = vld [vmem:[#allocation10 + $0x1e8] sm:$0xf0]  ;;  %v9463_v27 = vld [vmem:[#allocation10 + $0x64] sm:$0xf] }
  0x7d   : > { %v7153_v28 = vld [vmem:[#allocation10 + $0x6c] sm:$0xf0]  ;;  %v7344_v29 = vor.u32 %v9512_v26, %v7343_v24  ;;  %v7103_v31 = vld [vmem:[#allocation10] sm:$0xf]  ;;  %v9452_v32 = vld [vmem:[#allocation10 + $0x8] sm:$0xf0] }
  0x7e   : > { %1314 = vmatpush.bf16.msra.mxu2 %v7356_v17  ;;  %v7156_v30 = vor.u32 %v9463_v27, %v7153_v28  ;;  %v7104_v33 = vor.u32 %v9452_v32, %v7103_v31  ;;  %v7235_v34 = vld [vmem:[#allocation10 + $0x108] sm:$0xf]  ;;  %v9485_v35 = vld [vmem:[#allocation10 + $0x110] sm:$0xf0]  ;;  %v9460_v39 = vld [vmem:[#allocation10 + $0x4c] sm:$0xf] }
  0x7f   : > { %1328 = vmatpush.bf16.msra.mxu3 %v7168_v18  ;;  %v7331_v36 = vld [vmem:[#allocation10 + $0x1c8] sm:$0xf]  ;;  %v7236_v37 = vor.u32 %v9485_v35, %v7235_v34  ;;  %v9509_v38 = vld [vmem:[#allocation10 + $0x1d0] sm:$0xf0]  ;;  %v7141_v40 = vld [vmem:[#allocation10 + $0x54] sm:$0xf0] }
  0x80   : > { %1287 = vmatpush.bf16.msra.mxu0 %v7152_v42  ;;  %v7332_v41 = vor.u32 %v9509_v38, %v7331_v36  ;;  %v7144_v42 = vor.u32 %v9460_v39, %v7141_v40  ;;  %v9496_v43 = vld [vmem:[#allocation10 + $0x16c] sm:$0xf]  ;;  %v7285_v44 = vld [vmem:[#allocation10 + $0x174] sm:$0xf0]  ;;  %v9482_v47 = vld [vmem:[#allocation10 + $0xf8] sm:$0xf0] }
  0x81   : > { %v7261_v11 = vld [vmem:[#allocation10 + $0x144] sm:$0xf0]  ;;  %v7199_v13 = vld [vmem:[#allocation10 + $0xc0] sm:$0xf]  ;;  %v9476_v14 = vld [vmem:[#allocation10 + $0xc8] sm:$0xf0] }
  0x82   : > { %1315 = vmatpush.bf16.msra.mxu2 %v7344_v29  ;;  %v7295_v15 = vld [vmem:[#allocation10 + $0x180] sm:$0xf]  ;;  %v7200_v17 = vor.u32 %v9476_v14, %v7199_v13  ;;  %v9500_v18 = vld [vmem:[#allocation10 + $0x188] sm:$0xf0]  ;;  %v9451_v19 = vld [vmem:[#allocation10 + $0x4] sm:$0xf] }
  0x83   : > { %1329 = vmatpush.bf16.msra.mxu3 %v7156_v30  ;;  %v7105_v20 = vld [vmem:[#allocation10 + $0xc] sm:$0xf0]  ;;  %v9487_v23 = vld [vmem:[#allocation10 + $0x124] sm:$0xf]  ;;  %v7381_v27 = vld [vmem:[#allocation10 + $0x234] sm:$0xf0] }
  0x84   : > { %1288 = vmatpush.bf16.msra.mxu0 %v7140_v49  ;;  %v7319_v49 = vld [vmem:[#allocation10 + $0x1b0] sm:$0xf]  ;;  %v7108_v22 = vor.u32 %v9451_v19, %v7105_v20  ;;  %v9474_v29 = vld [vmem:[#allocation10 + $0xb8] sm:$0xf0]  ;;  %v9484_v34 = vld [vmem:[#allocation10 + $0x10c] sm:$0xf] }
  0x85   : > { %v7249_v24 = vld [vmem:[#allocation10 + $0x12c] sm:$0xf0]  ;;  %v7237_v36 = vld [vmem:[#allocation10 + $0x114] sm:$0xf0]  ;;  %v7369_v38 = vld [vmem:[#allocation10 + $0x21c] sm:$0xf0] }
  0x86   : > { %1316 = vmatpush.bf16.msra.mxu2 %v7332_v41  ;;  %v7252_v26 = vor.u32 %v9487_v23, %v7249_v24  ;;  %v7195_v28 = vld [vmem:[#allocation10 + $0xb0] sm:$0xf]  ;;  %v7240_v39 = vor.u32 %v9484_v34, %v7237_v36  ;;  %v7183_v41 = vld [vmem:[#allocation10 + $0x98] sm:$0xf]  ;;  %v9459_v36 = vld [vmem:[#allocation10 + $0x40] sm:$0xf0] }
  0x87   : > { %1330 = vmatpush.bf16.msra.mxu3 %v7144_v42  ;;  %v7196_v31 = vor.u32 %v9474_v29, %v7195_v28  ;;  %v7291_v32 = vld [vmem:[#allocation10 + $0x170] sm:$0xf]  ;;  %v9471_v42 = vld [vmem:[#allocation10 + $0xa0] sm:$0xf0]  ;;  %s694_s21 = sadd.s32 8, %s684_s25  ;;  %vm691_vm10 = vcmp.ge.s32.totalorder %v11080_v16, 8 }
  0x88   : > { %v7201_v19 = vld [vmem:[#allocation10 + $0xcc] sm:$0xf0]  ;;  %s10775_s15 = smov 64   ;;  %s10776_s6 = smov 32  }
  0x89   : > { %v7147_v23 = vld [vmem:[#allocation10 + $0x50] sm:$0xf]  ;;  %s11810_s16 = sld [smem:[#allocation41_spill]]  ;;  %s10030_s26 = smul.u32 48, %s10881_s23 }
  0x8a   : > { %s648_s5 = scalar_lea.vmem [#allocation24], %s10029_s3  ;;  %s11811_s24 = sld [smem:[#allocation43_spill]] }
  0x8b   : > { %s6889_s23 = sshll.u32 %s648_s5, 4  ;;  %s6876_s3 = scalar_lea.sflag [#allocation6], %s11028_s7  ;;  %s6890_s23 = int_to_ptr.vmem [resolvable:$true] %s6889_s23 }
  0x90   : > { %s6888_s30 = scalar_lea.hbm %s11811_s24, %s10030_s26  ;;  %s10679_s28 = scalar_lea.hbm %s11811_s24, 96 }
  0xe6   : > { %v712_v45 = vpop.xlane.xlu0 %711 }
  0xe7   : > { %v717_v46 = vmul.f32 0.0033333334, %v712_v45  ;;  %v7288_v45 = vor.u32 %v9496_v43, %v7285_v44  ;;  %v7279_v43 = vld [vmem:[#allocation10 + $0x158] sm:$0xf]  ;;  %v7184_v44 = vor.u32 %v9471_v42, %v7183_v41  ;;  %v9483_v41 = vld [vmem:[#allocation10 + $0x100] sm:$0xf0] }
  0xe9   : > { %v11086_v50 = vsub.f32 %v11062_v0, %v717_v46  ;;  %v11089_v51 = vsub.f32 %v11064_v1, %v717_v46  ;;  %v721_v52 = vsub.f32 %v11066_v2, %v717_v46  ;;  %v7223_v46 = vld [vmem:[#allocation10 + $0xf0] sm:$0xf] }
  0xeb   : > { %v11093_v53 = vmul.f32 %v11083_v48, %v721_v52  ;;  %v731_v54 = vmul.f32 %v11086_v50, %v11086_v50  ;;  %v732_v55 = vmul.f32 %v11089_v51, %v11089_v51  ;;  %v7224_v52 = vor.u32 %v9482_v47, %v7223_v46  ;;  %v9481_v47 = vld [vmem:[#allocation10 + $0xf4] sm:$0xf] }
  0xed   : > { %v733_v56 = vmul.f32 %v11093_v53, %v11093_v53  ;;  %v737_v57 = vadd.f32 %v732_v55, %v731_v54  ;;  %v9506_v54 = vld [vmem:[#allocation10 + $0x1b8] sm:$0xf0]  ;;  %v9457_v55 = vld [vmem:[#allocation10 + $0x34] sm:$0xf] }
  0xee   : > { %v716_v58 = vpop.xlane.xlu0 %715 }
  0xef   : > { %v718_v59 = vmul.f32 0.0033333334, %v716_v58  ;;  %v738_v60 = vadd.f32 %v737_v57, %v733_v56  ;;  %v7129_v56 = vld [vmem:[#allocation10 + $0x3c] sm:$0xf0]  ;;  %v7320_v57 = vor.u32 %v9506_v54, %v7319_v49  ;;  %v9514_v54 = vld [vmem:[#allocation10 + $0x1fc] sm:$0xf] }
  0xf0   : > { %v7132_v58 = vor.u32 %v9457_v55, %v7129_v56  ;;  %v7225_v49 = vld [vmem:[#allocation10 + $0xfc] sm:$0xf0]  ;;  %v7357_v55 = vld [vmem:[#allocation10 + $0x204] sm:$0xf0] }
  0xf1   : > { %v11102_v61 = vsub.f32 %v11070_v4, %v718_v59  ;;  %v11105_v62 = vsub.f32 %v11072_v5, %v718_v59  ;;  %v724_v63 = vsub.f32 %v11077_v8, %v718_v59  ;;  %739 = vadd.xlane.f32.xlu1 %v738_v60  ;;  %v7127_v5 = vld [vmem:[#allocation10 + $0x30] sm:$0xf]  ;;  %v7259_v8 = vld [vmem:[#allocation10 + $0x138] sm:$0xf]  ;;  %v9493_v59 = vld [vmem:[#allocation10 + $0x154] sm:$0xf]  ;;  %1317 = vmatpush.bf16.msra.mxu2 %v7320_v57 }
  0xf2   : > { %v7128_v9 = vor.u32 %v9458_v7, %v7127_v5  ;;  %v7260_v12 = vor.u32 %v9491_v10, %v7259_v8  ;;  %v7273_v60 = vld [vmem:[#allocation10 + $0x15c] sm:$0xf0]  ;;  %1331 = vmatpush.bf16.msra.mxu3 %v7132_v58  ;;  %v9454_v5 = vld [vmem:[#allocation10 + $0x1c] sm:$0xf]  ;;  %v7117_v7 = vld [vmem:[#allocation10 + $0x24] sm:$0xf0]  ;;  %v7360_v57 = vor.u32 %v9514_v54, %v7357_v55 }
  0xf3   : > { %v11109_v0 = vmul.f32 %v11083_v48, %v724_v63  ;;  %v734_v1 = vmul.f32 %v11102_v61, %v11102_v61  ;;  %v735_v2 = vmul.f32 %v11105_v62, %v11105_v62  ;;  %v7276_v63 = vor.u32 %v9493_v59, %v7273_v60  ;;  %v9490_v10 = vld [vmem:[#allocation10 + $0x13c] sm:$0xf]  ;;  %v7171_v56 = vld [vmem:[#allocation10 + $0x80] sm:$0xf]  ;;  %v9468_v58 = vld [vmem:[#allocation10 + $0x88] sm:$0xf0] }
  0xf4   : > { %1289 = vmatpush.bf16.msra.mxu0 %v7128_v9  ;;  %1300 = vmatpush.bf16.msra.mxu1 %v7260_v12  ;;  %v7120_v8 = vor.u32 %v9454_v5, %v7117_v7  ;;  %v7264_v12 = vor.u32 %v9490_v10, %v7261_v11  ;;  %v7267_v59 = vld [vmem:[#allocation10 + $0x140] sm:$0xf]  ;;  %v9492_v60 = vld [vmem:[#allocation10 + $0x148] sm:$0xf0]  ;;  %v7345_v5 = vld [vmem:[#allocation10 + $0x1ec] sm:$0xf0] }
  0xf5   : > { %v736_v3 = vmul.f32 %v11109_v0, %v11109_v0  ;;  %v741_v4 = vadd.f32 %v735_v2, %v734_v1  ;;  %v7211_v1 = vld [vmem:[#allocation10 + $0xd8] sm:$0xf]  ;;  %v9479_v2 = vld [vmem:[#allocation10 + $0xe0] sm:$0xf0]  ;;  %v7159_v7 = vld [vmem:[#allocation10 + $0x68] sm:$0xf] }
  0xf6   : > { %1332 = vmatpush.bf16.msra.mxu3 %v7120_v8  ;;  %v7255_v11 = vld [vmem:[#allocation10 + $0x128] sm:$0xf]  ;;  %v7219_v54 = vld [vmem:[#allocation10 + $0xe0] sm:$0xf] }
  0xf7   : > { %v742_v6 = vadd.f32 %v741_v4, %v736_v3  ;;  %v7307_v3 = vld [vmem:[#allocation10 + $0x198] sm:$0xf]  ;;  %v7212_v4 = vor.u32 %v9479_v2, %v7211_v1  ;;  %v7268_v1 = vor.u32 %v9492_v60, %v7267_v59  ;;  %v9478_v2 = vld [vmem:[#allocation10 + $0xdc] sm:$0xf]  ;;  %v9499_v59 = vld [vmem:[#allocation10 + $0x184] sm:$0xf] }
  0xf8   : > { %1290 = vmatpush.bf16.msra.mxu0 %v7116_v21  ;;  %1301 = vmatpush.bf16.msra.mxu1 %v7248_v25  ;;  %v7296_v21 = vor.u32 %v9500_v18, %v7295_v15  ;;  %v9520_v25 = vld [vmem:[#allocation10 + $0x22c] sm:$0xf]  ;;  %v9475_v18 = vld [vmem:[#allocation10 + $0xc4] sm:$0xf]  ;;  %v7297_v60 = vld [vmem:[#allocation10 + $0x18c] sm:$0xf0] }
  0xf9   : > { %743 = vadd.xlane.f32.xlu1 %v742_v6  ;;  %v9503_v6 = vld [vmem:[#allocation10 + $0x1a0] sm:$0xf0]  ;;  %v7384_v30 = vor.u32 %v9520_v25, %v7381_v27  ;;  %v7204_v20 = vor.u32 %v9475_v18, %v7201_v19  ;;  %v9462_v25 = vld [vmem:[#allocation10 + $0x58] sm:$0xf0] }
  0xfa   : > { %v7308_v9 = vor.u32 %v9503_v6, %v7307_v3  ;;  %1333 = vmatpush.bf16.msra.mxu3 %v7108_v22  ;;  %v7213_v3 = vld [vmem:[#allocation10 + $0xe4] sm:$0xf0]  ;;  %v7333_v22 = vld [vmem:[#allocation10 + $0x1d4] sm:$0xf0]  ;;  %v9486_v27 = vld [vmem:[#allocation10 + $0x118] sm:$0xf0]  ;;  %v7148_v29 = vor.u32 %v9462_v25, %v7147_v23 }
  0xfb   : > { %v7216_v10 = vor.u32 %v9478_v2, %v7213_v3  ;;  %v7300_v2 = vor.u32 %v9499_v59, %v7297_v60  ;;  %v9453_v3 = vld [vmem:[#allocation10 + $0x10] sm:$0xf0]  ;;  %v7327_v60 = vld [vmem:[#allocation10 + $0x1b8] sm:$0xf] }
  0xfc   : > { %1291 = vmatpush.bf16.msra.mxu0 %v7104_v33  ;;  %1302 = vmatpush.bf16.msra.mxu1 %v7236_v37  ;;  %v9498_v33 = vld [vmem:[#allocation10 + $0x178] sm:$0xf0]  ;;  %v9517_v37 = vld [vmem:[#allocation10 + $0x214] sm:$0xf] }
  0xfd   : > { %1318 = vmatpush.bf16.msra.mxu2 %v7308_v9  ;;  %v7292_v35 = vor.u32 %v9498_v33, %v7291_v32  ;;  %v7372_v40 = vor.u32 %v9517_v37, %v7369_v38  ;;  %v9465_v9 = vld [vmem:[#allocation10 + $0x70] sm:$0xf0]  ;;  %v7321_v33 = vld [vmem:[#allocation10 + $0x1bc] sm:$0xf0]  ;;  %v7231_v37 = vld [vmem:[#allocation10 + $0xf8] sm:$0xf] }
  0xfe   : > { %v7160_v14 = vor.u32 %v9465_v9, %v7159_v7  ;;  %v9505_v32 = vld [vmem:[#allocation10 + $0x1b4] sm:$0xf] }
  0xff   : > { %1382 = vmatpush.bf16.msrb.mxu3 %v7292_v35  ;;  %v7324_v34 = vor.u32 %v9505_v32, %v7321_v33  ;;  %v7135_v35 = vld [vmem:[#allocation10 + $0x38] sm:$0xf]  ;;  %v9477_v7 = vld [vmem:[#allocation10 + $0xd0] sm:$0xf0] }
 0x100   : > { %1340 = vmatpush.bf16.msrb.mxu0 %v7288_v45  ;;  %1303 = vmatpush.bf16.msra.mxu1 %v7224_v52  ;;  %v9495_v45 = vld [vmem:[#allocation10 + $0x160] sm:$0xf0]  ;;  %v7228_v52 = vor.u32 %v9481_v47, %v7225_v49  ;;  %v7123_v49 = vld [vmem:[#allocation10 + $0x20] sm:$0xf] }
 0x101   : > { %1319 = vmatpush.bf16.msra.mxu2 %v7296_v21  ;;  %v7280_v46 = vor.u32 %v9495_v45, %v7279_v43  ;;  %v9508_v21 = vld [vmem:[#allocation10 + $0x1cc] sm:$0xf]  ;;  %v7232_v43 = vor.u32 %v9483_v41, %v7231_v37  ;;  %v7309_v45 = vld [vmem:[#allocation10 + $0x1a4] sm:$0xf0]  ;;  %v7387_v37 = vld [vmem:[#allocation10 + $0x230] sm:$0xf] }
 0x102   : > { %v7336_v24 = vor.u32 %v9508_v21, %v7333_v22 }
 0x103   : > { %1383 = vmatpush.bf16.msrb.mxu3 %v7280_v46 }
 0x104   : > { %1341 = vmatpush.bf16.msrb.mxu0 %v7276_v63  ;;  %1304 = vmatpush.bf16.msra.mxu1 %v7212_v4  ;;  %v7172_v63 = vor.u32 %v9468_v58, %v7171_v56  ;;  %v9511_v4 = vld [vmem:[#allocation10 + $0x1e4] sm:$0xf]  ;;  %v9480_v56 = vld [vmem:[#allocation10 + $0xe8] sm:$0xf0] }
 0x105   : > { %1368 = vmatpush.bf16.msrb.mxu2 %v7196_v31  ;;  %v7348_v13 = vor.u32 %v9511_v4, %v7345_v5  ;;  %v7220_v58 = vor.u32 %v9480_v56, %v7219_v54  ;;  %v7207_v4 = vld [vmem:[#allocation10 + $0xc8] sm:$0xf] }
 0x106   : > { %v7351_v54 = vld [vmem:[#allocation10 + $0x1e8] sm:$0xf] }
 0x107   : > { %1384 = vmatpush.bf16.msrb.mxu3 %v7268_v1 }
 0x108   : > { %1342 = vmatpush.bf16.msrb.mxu0 %v7264_v12  ;;  %1305 = vmatpush.bf16.msra.mxu1 %v7200_v17  ;;  %v9489_v12 = vld [vmem:[#allocation10 + $0x130] sm:$0xf0] }
 0x109   : > { %1369 = vmatpush.bf16.msrb.mxu2 %v7184_v44  ;;  %v7256_v17 = vor.u32 %v9489_v12, %v7255_v11  ;;  %v9502_v44 = vld [vmem:[#allocation10 + $0x19c] sm:$0xf]  ;;  %v707_v12 = vld [vmem:[#allocation7] sm:$0x7] }
 0x10a   : > { %v7312_v47 = vor.u32 %v9502_v44, %v7309_v45  ;;  %v777_v18 = vperm.slane %v707_v12, 1  ;;  %v7375_v44 = vld [vmem:[#allocation10 + $0x218] sm:$0xf]  ;;  %v9519_v45 = vld [vmem:[#allocation10 + $0x220] sm:$0xf0] }
 0x10b   : > { %1385 = vmatpush.bf16.msrb.mxu3 %v7256_v17  ;;  %v776_v17 = vperm.slane %v707_v12, 0 }
 0x10c   : > { %1343 = vmatpush.bf16.msrb.mxu0 %v7252_v26  ;;  %1354 = vmatpush.bf16.msrb.mxu1 %v7384_v30  ;;  %v7243_v26 = vld [vmem:[#allocation10 + $0x110] sm:$0xf] }
 0x10d   : > { %1370 = vmatpush.bf16.msrb.mxu2 %v7172_v63  ;;  %v7244_v30 = vor.u32 %v9486_v27, %v7243_v26  ;;  %v7111_v63 = vld [vmem:[#allocation10 + $0x8] sm:$0xf] }
 0x10e   : > { %v7112_v5 = vor.u32 %v9453_v3, %v7111_v63  ;;  %v9507_v63 = vld [vmem:[#allocation10 + $0x1c0] sm:$0xf0]  ;;  %v9504_v3 = vld [vmem:[#allocation10 + $0x1a8] sm:$0xf0] }
 0x10f   : > { %1386 = vmatpush.bf16.msrb.mxu3 %v7244_v30 }
 0x110   : > { %1344 = vmatpush.bf16.msrb.mxu0 %v7240_v39  ;;  %1355 = vmatpush.bf16.msrb.mxu1 %v7372_v40  ;;  %v7136_v40 = vor.u32 %v9459_v36, %v7135_v35 }
 0x111   : > { %1371 = vmatpush.bf16.msrb.mxu2 %v7160_v14 }
 0x113   : > { %1387 = vmatpush.bf16.msrb.mxu3 %v7232_v43 }
 0x114   : > { %1345 = vmatpush.bf16.msrb.mxu0 %v7228_v52  ;;  %1356 = vmatpush.bf16.msrb.mxu1 %v7360_v57  ;;  %v9456_v52 = vld [vmem:[#allocation10 + $0x28] sm:$0xf0] }
 0x115   : > { %1372 = vmatpush.bf16.msrb.mxu2 %v7148_v29  ;;  %v7124_v55 = vor.u32 %v9456_v52, %v7123_v49  ;;  %v9516_v49 = vld [vmem:[#allocation10 + $0x208] sm:$0xf0] }
 0x117   : > { %1388 = vmatpush.bf16.msrb.mxu3 %v7220_v58  ;;  %v9510_v58 = vld [vmem:[#allocation10 + $0x1d8] sm:$0xf0] }
 0x118   : > { %1346 = vmatpush.bf16.msrb.mxu0 %v7216_v10  ;;  %1357 = vmatpush.bf16.msrb.mxu1 %v7348_v13  ;;  %v7208_v10 = vor.u32 %v9477_v7, %v7207_v4 }
 0x119   : > { %1373 = vmatpush.bf16.msrb.mxu2 %v7136_v40 }
 0x11b   : > { %1389 = vmatpush.bf16.msrb.mxu3 %v7208_v10 }
 0x11c   : > { %1347 = vmatpush.bf16.msrb.mxu0 %v7204_v20  ;;  %1358 = vmatpush.bf16.msrb.mxu1 %v7336_v24  ;;  %v708_v20 = vld [vmem:[#allocation9] sm:$0x7] }
 0x11d   : > { %1374 = vmatpush.bf16.msrb.mxu2 %v7124_v55  ;;  %v789_v25 = vperm.slane %v708_v20, 0  ;;  %v790_v26 = vperm.slane %v708_v20, 1  ;;  %v791_v30 = vperm.slane %v708_v20, 2  ;;  %v9513_v55 = vld [vmem:[#allocation10 + $0x1f0] sm:$0xf0] }
 0x11e   : > { %v7352_v56 = vor.u32 %v9513_v55, %v7351_v54  ;;  %v695_v55 = vstv %s694_s21 }
 0x11f   : > { %vm696_vm11 = vcmp.lt.s32.totalorder %v11080_v16, %v695_v55 }
 0x120   : > { %1359 = vmatpush.bf16.msrb.mxu1 %v7324_v34  ;;  %vm11174_vm12 = vmand %vm691_vm10, %vm696_vm11 }
 0x121   : > { %1375 = vmatpush.bf16.msrb.mxu2 %v7112_v5  ;;  %v9501_v5 = vld [vmem:[#allocation10 + $0x190] sm:$0xf0] }
 0x124   : > { %1360 = vmatpush.bf16.msrb.mxu1 %v7312_v47  ;;  %v7363_v47 = vld [vmem:[#allocation10 + $0x200] sm:$0xf] }
 0x125   : > { %v7364_v52 = vor.u32 %v9516_v49, %v7363_v47 }
 0x128   : > { %1361 = vmatpush.bf16.msrb.mxu1 %v7300_v2  ;;  %v7315_v2 = vld [vmem:[#allocation10 + $0x1a0] sm:$0xf] }
 0x129   : > { %v7316_v4 = vor.u32 %v9504_v3, %v7315_v2 }
 0x164   : > { %v740_v6 = vpop.xlane.xlu1 %739 }
 0x165   : > { %v745_v8 = vmul.f32 0.0033333334, %v740_v6 }
 0x167   : > { %v11117_v15 = vadd.f32 1e-06, %v745_v8 }
 0x169   : > { %10203 = vrsqrt.f32 %v11117_v15  ;;  %vm755_vm2 = vweird.f32 %v11117_v15 }
 0x16c   : > { %v744_v28 = vpop.xlane.xlu1 %743 }
 0x16d   : > { %v746_v31 = vmul.f32 0.0033333334, %v744_v28 }
 0x16f   : > { %v10204_v38 = vpop.eup %10203  ;;  %v748_v39 = vadd.f32 1e-06, %v746_v31 }
 0x170   : > { %v750_v42 = vmul.f32 %v10204_v38, %v11117_v15  ;;  %vm756_vm1 = vweird.f32 %v10204_v38  ;;  %v778_v15 = vperm.slane %v707_v12, 2 }
 0x171   : > { %10205 = vrsqrt.f32 %v748_v39  ;;  %vm757_vm3 = vmor %vm755_vm2, %vm756_vm1  ;;  %vm765_vm5 = vweird.f32 %v748_v39 }
 0x172   : > { %v751_v46 = vmul.f32 %v10204_v38, %v750_v42 }
 0x174   : > { %v752_v57 = vmul.f32 0.5, %v751_v46  ;;  %v7376_v46 = vor.u32 %v9519_v45, %v7375_v44 }
 0x176   : > { %v753_v1 = vsub.f32 1.5, %v752_v57  ;;  %v7339_v57 = vld [vmem:[#allocation10 + $0x1d0] sm:$0xf] }
 0x177   : > { %v10206_v6 = vpop.eup %10205  ;;  %v7340_v59 = vor.u32 %v9510_v58, %v7339_v57 }
 0x178   : > { %v754_v9 = vmul.f32 %v10204_v38, %v753_v1  ;;  %v760_v8 = vmul.f32 %v10206_v6, %v748_v39  ;;  %vm766_vm4 = vweird.f32 %v10206_v6  ;;  %v7328_v1 = vor.u32 %v9507_v63, %v7327_v60 }
 0x179   : > { %vm767_vm6 = vmor %vm765_vm5, %vm766_vm4 }
 0x17a   : > { %v761_v11 = vmul.f32 %v10206_v6, %v760_v8  ;;  %v758_v13 = vsel %vm757_vm3, %v10204_v38, %v754_v9  ;;  %v9522_v38 = vld [vmem:[#allocation10 + $0x238] sm:$0xf0] }
 0x17b   : > { %v769_v21 = vmul.f32 %v758_v13, %v11086_v50  ;;  %v770_v22 = vmul.f32 %v758_v13, %v11089_v51  ;;  %v771_v23 = vmul.f32 %v758_v13, %v11093_v53  ;;  %v7388_v43 = vor.u32 %v9522_v38, %v7387_v37 }
 0x17c   : > { %v762_v14 = vmul.f32 0.5, %v761_v11 }
 0x17d   : > { %v782_v28 = vmul.f32 %v776_v17, %v769_v21  ;;  %v783_v29 = vmul.f32 %v777_v18, %v770_v22  ;;  %v784_v33 = vmul.f32 %v778_v15, %v771_v23 }
 0x17e   : > { %v763_v19 = vsub.f32 1.5, %v762_v14 }
 0x17f   : > { %v11128_v35 = vadd.f32 %v789_v25, %v782_v28  ;;  %v11130_v36 = vadd.f32 %v790_v26, %v783_v29  ;;  %v11136_v41 = vadd.f32 %v791_v30, %v784_v33 }
 0x180   : > { %v764_v24 = vmul.f32 %v10206_v6, %v763_v19 }
 0x182   : > { %v768_v27 = vsel %vm767_vm6, %v10206_v6, %v764_v24  ;;  %v7303_v6 = vld [vmem:[#allocation10 + $0x188] sm:$0xf] }
 0x183   : > { %v772_v31 = vmul.f32 %v768_v27, %v11102_v61  ;;  %v773_v32 = vmul.f32 %v768_v27, %v11105_v62  ;;  %v774_v50 = vmul.f32 %v768_v27, %v11109_v0  ;;  %v7304_v7 = vor.u32 %v9501_v5, %v7303_v6 }
 0x185   : > { %v785_v51 = vmul.f32 %v776_v17, %v772_v31  ;;  %v786_v34 = vmul.f32 %v777_v18, %v773_v32  ;;  %v787_v53 = vmul.f32 %v778_v15, %v774_v50 }
 0x187   : > { %v11132_v39 = vadd.f32 %v789_v25, %v785_v51  ;;  %v11134_v40 = vadd.f32 %v790_v26, %v786_v34  ;;  %v11138_v61 = vadd.f32 %v791_v30, %v787_v53 }
 0x189   : > { %v801_v62 = vpack.c.bf16 %v11132_v39, %v11128_v35  ;;  %v802_v0 = vpack.c.bf16 %v11134_v40, %v11130_v36  ;;  %v803_v42 = vpack.c.bf16 %v11138_v61, %v11136_v41 }
 0x18b   : > { %1292 = vmatmul.bf16.vlgmr.msra.gmra.mxu0 %v801_v62  ;;  %1306 = vmatmul.bf16.vlgmr.msra.gmra.mxu1 %v802_v0 }
 0x18c   : > { %1320 = vmatmul.bf16.vlgmr.msra.gmra.mxu2 %v803_v42  ;;  %1334 = vmatmul.bf16.vlgmr.msra.gmra.mxu3 %v801_v62 }
 0x18d   : > { %1396 = vmatpush.bf16.msra.mxu0 %v7388_v43 }
 0x191   : > { %1397 = vmatpush.bf16.msra.mxu0 %v7376_v46  ;;  %v679_v46 = vstv %s669_s27  ;;  %s6891_s27 = sshll.u32 %s6888_s30, 4  ;;  %s6892_s27 = int_to_ptr.hbm [resolvable:$true] %s6891_s27 }
 0x192   : > { %vm11165_vm8 = vcmp.lt.s32.totalorder %v11080_v16, %v679_v46  ;;  %s10673_s25 = sshra.s32 %s6892_s27, 4  ;;  %s10674_s25 = int_to_ptr.hbm [resolvable:$true] %s10673_s25 }
 0x193   : > { %s10675_s21 = scalar_lea.hbm %s10674_s25, 48  ;;  %p10680_p13 = scmp.lt.s32.totalorder %s10674_s25, %s11811_s24 }
 0x194   : > { %p10676_p1 = scmp.ne.s32.totalorder %s10674_s25, %s10675_s21  ;;  %p10681_p8 = scmp.lt.s32.totalorder %s10679_s28, %s10675_s21 }
 0x195   : > { %1398 = vmatpush.bf16.msra.mxu0 %v7364_v52 }
 0x196   : > { %p10677_p3 = pnand %p10676_p1, %p10997_p0  ;;  %p10682_p7 = por %p10681_p8, %p10680_p13 }
 0x198   : > { %p10678_p4 = pneg %p10677_p3 }
 0x199   : > { %1399 = vmatpush.bf16.msra.mxu0 %v7352_v56 }
 0x19a   : > { %p10683_p9 = pnand %p10682_p7, %p10678_p4 }
 0x19b   : > { %1348 = vmatmul.bf16.vlgmr.msrb.gmra.mxu0 %v802_v0  ;;  %1362 = vmatmul.bf16.vlgmr.msrb.gmra.mxu1 %v803_v42 }
 0x19c   : > { %1376 = vmatmul.bf16.vlgmr.msrb.gmra.mxu2 %v801_v62  ;;  %1390 = vmatmul.bf16.vlgmr.msrb.gmra.mxu3 %v802_v0 }
 0x19d   : > { %1400 = vmatpush.bf16.msra.mxu0 %v7340_v59 }
 0x1a1   : > { %1401 = vmatpush.bf16.msra.mxu0 %v7328_v1 }
 0x1a5   : > { %1402 = vmatpush.bf16.msra.mxu0 %v7316_v4 }
 0x1a9   : > { %1403 = vmatpush.bf16.msra.mxu0 %v7304_v7 }
 0x1ac   : > { %1404 = vmatmul.bf16.vlgmr.msra.gmra.mxu0 %v803_v42 }
 0x208   : > { %v1293_v9 = vpop.f32.mrf.mxu0  ;;  %v1307_v8 = vpop.f32.mrf.mxu1 }
 0x209   : > { %v1308_v30 = vadd.f32 %v1307_v8, %v1293_v9 }
 0x20f   : > { %v1321_v10 = vpop.f32.mrf.mxu2  ;;  %v1335_v11 = vpop.f32.mrf.mxu3 }
 0x210   : > { %v1295_v12 = vpop.f32.mrf.mxu0  ;;  %v1309_v13 = vpop.f32.mrf.mxu1  ;;  %v1322_v50 = vadd.f32 %v1321_v10, %v1308_v30 }
 0x211   : > { %v1310_v28 = vadd.f32 %v1309_v13, %v1295_v12 }
 0x217   : > { %v1323_v18 = vpop.f32.mrf.mxu2  ;;  %v1337_v19 = vpop.f32.mrf.mxu3 }
 0x218   : > { %v1349_v14 = vpop.f32.mrf.mxu0  ;;  %v1363_v17 = vpop.f32.mrf.mxu1  ;;  %v1324_v31 = vadd.f32 %v1323_v18, %v1310_v28  ;;  %v9534_v18 = vld [vmem:[#allocation12 + $0x58] sm:$0xf0] }
 0x219   : > { %v1350_v20 = vadd.f32 %v1349_v14, %v1335_v11 }
 0x21a   : > { %v11152_v33 = vpack.c.bf16 %v1324_v31, %v1322_v50 }
 0x21b   : > { %v1364_v15 = vadd.f32 %v1363_v17, %v1350_v20  ;;  %v7415_v17 = vld [vmem:[#allocation12 + $0x50] sm:$0xf]  ;;  %v7403_v20 = vld [vmem:[#allocation12 + $0x38] sm:$0xf] }
 0x21f   : > { %v1377_v24 = vpop.f32.mrf.mxu2  ;;  %v1391_v25 = vpop.f32.mrf.mxu3 }
 0x220   : > { %v1351_v21 = vpop.f32.mrf.mxu0  ;;  %v1365_v23 = vpop.f32.mrf.mxu1  ;;  %v1392_v53 = vadd.f32 %v1391_v25, %v1377_v24 }
 0x221   : > { %v1352_v22 = vadd.f32 %v1351_v21, %v1337_v19  ;;  %v7416_v19 = vor.u32 %v9534_v18, %v7415_v17  ;;  %v9531_v21 = vld [vmem:[#allocation12 + $0x40] sm:$0xf0] }
 0x223   : > { %v1366_v26 = vadd.f32 %v1365_v23, %v1352_v22  ;;  %1637 = vmatpush.bf16.msrb.mxu0 %v7416_v19  ;;  %v7404_v22 = vor.u32 %v9531_v21, %v7403_v20  ;;  %v7434_v20 = vld [vmem:[#allocation12 + $0x18] sm:$0xf]  ;;  %v9527_v21 = vld [vmem:[#allocation12 + $0x20] sm:$0xf0] }
 0x225   : > { %v11146_v27 = vpack.c.bf16 %v1366_v26, %v1364_v15 }
 0x227   : > { %1490 = vrot.lane.b32.xlu2 %v11146_v27, %s10774_s10  ;;  %v1418_v29 = vsel %vm1413_vm7, %v11146_v27, 0  ;;  %v1379_v51 = vpop.f32.mrf.mxu2  ;;  %v1393_v34 = vpop.f32.mrf.mxu3  ;;  %1638 = vmatpush.bf16.msrb.mxu0 %v7404_v22  ;;  %v9526_v22 = vld [vmem:[#allocation12 + $0x1c] sm:$0xf] }
 0x228   : > { %1427 = vmatpush.bf16.xpose.msra.mxu1 %v1418_v29  ;;  %v1394_v37 = vadd.f32 %v1393_v34, %v1379_v51 }
 0x229   : > { %v1405_v32 = vpop.f32.mrf.mxu0 }
 0x22a   : > { %v1406_v62 = vadd.f32 %v1405_v32, %v1392_v53 }
 0x22f   : > { %1487 = vrot.lane.b32.xlu2 %v11152_v33, %s10774_s10  ;;  %7389 = vmatmul.msk.bf16.vlgmr.msra.gmra.mxu1 %vm1413_vm7, %v11152_v33 }
 0x231   : > { %v1407_v38 = vpop.f32.mrf.mxu0 }
 0x232   : > { %v1408_v0 = vadd.f32 %v1407_v38, %v1394_v37 }
 0x234   : > { %v11158_v42 = vpack.c.bf16 %v1408_v0, %v1406_v62 }
 0x236   : > { %1470 = vmatpush.bf16.msra.mxu2 %v11158_v42 }
 0x281   : > { %v1491_v43 = vpop.permute.xlu2 %1490 }
 0x282   : > { %v1496_v44 = vsel %vm1413_vm7, %v1491_v43, 0 }
 0x283   : > { %1505 = vmatpush.bf16.xpose.msra.mxu3 %v1496_v44  ;;  %v9532_v44 = vld [vmem:[#allocation12 + $0x4c] sm:$0xf] }
 0x289   : > { %v1488_v45 = vpop.permute.xlu2 %1487 }
 0x28a   : > { %7391 = vmatmul.msk.bf16.vlgmr.msra.gmra.mxu3 %vm1413_vm7, %v1488_v45  ;;  %v7409_v45 = vld [vmem:[#allocation12 + $0x54] sm:$0xf0] }
 0x28b   : > { %v7412_v46 = vor.u32 %v9532_v44, %v7409_v45 }
 0x28d   : > { %1623 = vmatpush.bf16.msrb.mxu3 %v7412_v46 }
 0x2ac   : > { %v1429_v60 = vpop.f32.mrf.mxu1 }
 0x2ad   : > { %v1434_v13 = vsel %vm11165_vm8, %v1429_v60, -10000000.0  ;;  %v9533_v60 = vld [vmem:[#allocation12 + $0x50] sm:$0xf0] }
 0x2ae   : > { %v1437_v14 = vsel %vm1436_vm9, %v1434_v13, -inf }
 0x2b4   : > { %v1431_v16 = vpop.f32.mrf.mxu1 }
 0x2b5   : > { %v1435_v63 = vsel %vm11174_vm12, %v1431_v16, -10000000.0  ;;  %v7395_v16 = vld [vmem:[#allocation12 + $0x30] sm:$0xf] }
 0x2b6   : > { %v1440_v1 = vsel %vm1436_vm9, %v1435_v63, -inf }
 0x30d   : > { %v1507_v49 = vpop.f32.mrf.mxu3 }
 0x30e   : > { %v1512_v52 = vsel %vm11165_vm8, %v1507_v49, -10000000.0  ;;  %v9529_v49 = vld [vmem:[#allocation12 + $0x34] sm:$0xf] }
 0x30f   : > { %v1514_v54 = vsel %vm1436_vm9, %v1512_v52, -inf }
 0x310   : > { %1515 = vmax.xlane.f32.xlu0 %v1514_v54 }
 0x315   : > { %v1509_v56 = vpop.f32.mrf.mxu3 }
 0x316   : > { %v1513_v58 = vsel %vm11174_vm12, %v1509_v56, -10000000.0 }
 0x317   : > { %v1517_v59 = vsel %vm1436_vm9, %v1513_v58, -inf }
 0x318   : > { %1518 = vmax.xlane.f32.xlu1 %v1517_v59  ;;  %v7407_v59 = vld [vmem:[#allocation12 + $0x48] sm:$0xf] }
 0x331   : > { %1538 = vrot.lane.b32.xlu1 %v11158_v42, %s10774_s10 }
 0x339   : > { %1722 = vrot.lane.b32.xlu1 %v11152_v33, %s10775_s15 }
 0x363   : > { %1441 = vmax.xlane.f32.xlu1 %v1440_v1  ;;  %v9530_v1 = vld [vmem:[#allocation12 + $0x38] sm:$0xf0] }
 0x37c   : > { %1886 = vrot.lane.b32.xlu1 %v11146_v27, %s10776_s6 }
 0x383   : > { %v1516_v2 = vpop.xlane.xlu0 %1515 }
 0x384   : > { %v1520_v3 = vsub.f32 %v1512_v52, %v1516_v2  ;;  %v7397_v52 = vld [vmem:[#allocation12 + $0x3c] sm:$0xf0]  ;;  %v7396_v2 = vor.u32 %v9530_v1, %v7395_v16 }
 0x385   : > { %v7400_v54 = vor.u32 %v9529_v49, %v7397_v52 }
 0x386   : > { %v1522_v4 = vmul.f32 1.442695, %v1520_v3 }
 0x387   : > { %1624 = vmatpush.bf16.msrb.mxu3 %v7400_v54 }
 0x388   : > { %10207 = vpow2.f32 %v1522_v4 }
 0x38b   : > { %v1519_v6 = vpop.xlane.xlu1 %1518 }
 0x38c   : > { %v1521_v5 = vsub.f32 %v1513_v58, %v1519_v6 }
 0x38e   : > { %v10208_v7 = vpop.eup %10207  ;;  %v1524_v9 = vmul.f32 1.442695, %v1521_v5 }
 0x38f   : > { %v1526_v8 = vsel %vm1436_vm9, %v10208_v7, 0.0 }
 0x390   : > { %10209 = vpow2.f32 %v1524_v9  ;;  %1527 = vadd.xlane.f32.xlu2 %v1526_v8 }
 0x396   : > { %v10210_v10 = vpop.eup %10209 }
 0x397   : > { %v1529_v11 = vsel %vm1436_vm9, %v10210_v10, 0.0 }
 0x398   : > { %1530 = vadd.xlane.f32.xlu0 %v1529_v11 }
 0x3a3   : > { %v1539_v12 = vpop.permute.xlu1 %1538 }
 0x3a4   : > { %1551 = vmatpush.bf16.msrb.mxu1 %v1539_v12 }
 0x3ab   : > { %v1723_v31 = vpop.permute.xlu1 %1722 }
 0x3ac   : > { %1724 = vrot.lane.b32.xlu0 %v11146_v27, %s10775_s15 }
 0x3d6   : > { %1438 = vmax.xlane.f32.xlu0 %v1437_v14  ;;  %v1442_v32 = vpop.xlane.xlu1 %1441 }
 0x3d7   : > { %v1444_v34 = vsub.f32 %v1435_v63, %v1442_v32  ;;  %v7408_v63 = vor.u32 %v9533_v60, %v7407_v59  ;;  %v7424_v32 = vld [vmem:[#allocation12 + $0xc] sm:$0xf0] }
 0x3d9   : > { %v1447_v37 = vmul.f32 1.442695, %v1444_v34  ;;  %1609 = vmatpush.bf16.msrb.mxu2 %v7408_v63 }
 0x3dd   : > { %1610 = vmatpush.bf16.msrb.mxu2 %v7396_v2 }
 0x3ee   : > { %v1887_v59 = vpop.permute.xlu1 %1886 }
 0x3ef   : > { %v1892_v63 = vsel %vm1413_vm7, %v1887_v59, 0 }
 0x403   : > { %v1528_v23 = vpop.xlane.xlu2 %1527 }
 0x404   : > { %10211 = vrcp.f32 %v1528_v23  ;;  %v7435_v23 = vor.u32 %v9527_v21, %v7434_v20  ;;  %v9536_v20 = vld [vmem:[#allocation12 + $0x68] sm:$0xf0]  ;;  %v9535_v21 = vld [vmem:[#allocation12 + $0x64] sm:$0xf] }
 0x406   : > { %1686 = vmatpush.bf16.msra.mxu1 %v7435_v23  ;;  %v7453_v23 = vld [vmem:[#allocation12 + $0x6c] sm:$0xf0] }
 0x40a   : > { %v10212_v24 = vpop.eup %10211 }
 0x40b   : > { %v1531_v15 = vpop.xlane.xlu0 %1530  ;;  %v1534_v26 = vmul.f32 %v10212_v24, %v10208_v7  ;;  %v7442_v24 = vld [vmem:[#allocation12 + $0x20] sm:$0xf] }
 0x40c   : > { %10213 = vrcp.f32 %v1531_v15  ;;  %v7436_v15 = vld [vmem:[#allocation12 + $0x24] sm:$0xf0] }
 0x412   : > { %v10214_v25 = vpop.eup %10213 }
 0x413   : > { %v1535_v27 = vmul.f32 %v10214_v25, %v10210_v10  ;;  %v9528_v25 = vld [vmem:[#allocation12 + $0x28] sm:$0xf0] }
 0x415   : > { %v1536_v28 = vpack.c.bf16 %v1535_v27, %v1534_v26  ;;  %v7439_v26 = vor.u32 %v9526_v22, %v7436_v15  ;;  %v7443_v27 = vor.u32 %v9528_v25, %v7442_v24  ;;  %v7459_v15 = vld [vmem:[#allocation12 + $0x68] sm:$0xf]  ;;  %v9537_v24 = vld [vmem:[#allocation12 + $0x70] sm:$0xf0]  ;;  %v7456_v25 = vor.u32 %v9535_v21, %v7453_v23  ;;  %v9542_v21 = vld [vmem:[#allocation12 + $0x98] sm:$0xf0] }
 0x417   : > { %7392 = vmatmul.msk.bf16.vlgmr.msrb.gmra.mxu1 %vm1436_vm9, %v1536_v28  ;;  %1714 = vmatpush.bf16.msra.mxu3 %v7443_v27  ;;  %v7422_v28 = vld [vmem:[#allocation12] sm:$0xf] }
 0x41e   : > { %v1725_v29 = vpop.permute.xlu0 %1724 }
 0x41f   : > { %v1730_v30 = vsel %vm1413_vm7, %v1725_v29, 0  ;;  %v9524_v29 = vld [vmem:[#allocation12 + $0x8] sm:$0xf0] }
 0x420   : > { %1739 = vmatpush.bf16.xpose.msra.mxu0 %v1730_v30  ;;  %v9523_v30 = vld [vmem:[#allocation12 + $0x4] sm:$0xf] }
 0x421   : > { %v7427_v34 = vor.u32 %v9523_v30, %v7424_v32 }
 0x449   : > { %v1439_v50 = vpop.xlane.xlu0 %1438 }
 0x44a   : > { %v1443_v51 = vsub.f32 %v1434_v13, %v1439_v50  ;;  %v7430_v50 = vld [vmem:[#allocation12 + $0x8] sm:$0xf] }
 0x44c   : > { %v1445_v53 = vmul.f32 1.442695, %v1443_v51  ;;  %v9525_v51 = vld [vmem:[#allocation12 + $0x10] sm:$0xf0] }
 0x44e   : > { %10215 = vpow2.f32 %v1445_v53  ;;  %v7431_v53 = vor.u32 %v9525_v51, %v7430_v50 }
 0x44f   : > { %10217 = vpow2.f32 %v1447_v37 }
 0x450   : > { %1715 = vmatpush.bf16.msra.mxu3 %v7431_v53 }
 0x454   : > { %v10216_v38 = vpop.eup %10215 }
 0x455   : > { %v1449_v62 = vsel %vm1436_vm9, %v10216_v38, 0.0  ;;  %v10218_v0 = vpop.eup %10217 }
 0x456   : > { %1450 = vadd.xlane.f32.xlu2 %v1449_v62  ;;  %v1452_v43 = vsel %vm1436_vm9, %v10218_v0, 0.0 }
 0x45e   : > { %1453 = vadd.xlane.f32.xlu2 %v1452_v43 }
 0x494   : > { %v1553_v55 = vpop.f32.mrf.mxu1 }
 0x49c   : > { %v1555_v56 = vpop.f32.mrf.mxu1 }
 0x49d   : > { %v1558_v58 = vpack.c.bf16 %v1555_v56, %v1553_v55 }
 0x49f   : > { %7418 = vmatmul.msk.bf16.vlgmr.msrb.gmra.mxu3 %vm1413_vm7, %v1558_v58  ;;  %7419 = vmatmul.msk.bf16.vlgmr.msrb.gmra.mxu0 %vm1413_vm7, %v1558_v58 }
 0x4af   : > { %7447 = vmatmul.msk.bf16.vlgmr.msra.gmra.mxu0 %vm1413_vm7, %v1723_v31  ;;  %v7423_v31 = vor.u32 %v9524_v29, %v7422_v28 }
 0x4b1   : > { %1687 = vmatpush.bf16.msra.mxu1 %v7423_v31 }
 0x4c9   : > { %v1451_v3 = vpop.xlane.xlu2 %1450 }
 0x4ca   : > { %10219 = vrcp.f32 %v1451_v3 }
 0x4d0   : > { %v10220_v6 = vpop.eup %10219 }
 0x4d1   : > { %v1454_v4 = vpop.xlane.xlu2 %1453  ;;  %v1457_v7 = vmul.f32 %v10220_v6, %v10216_v38 }
 0x4d2   : > { %10221 = vrcp.f32 %v1454_v4 }
 0x4d8   : > { %v10222_v5 = vpop.eup %10221 }
 0x4d9   : > { %v1458_v9 = vmul.f32 %v10222_v5, %v10218_v0 }
 0x4db   : > { %v1459_v8 = vpack.c.bf16 %v1458_v9, %v1457_v7  ;;  %v9539_v7 = vld [vmem:[#allocation12 + $0x80] sm:$0xf0]  ;;  %v9538_v9 = vld [vmem:[#allocation12 + $0x7c] sm:$0xf] }
 0x4dd   : > { %7390 = vmatmul.msk.bf16.vlgmr.msra.gmra.mxu2 %vm1436_vm9, %v1459_v8 }
 0x4de   : > { %1700 = vmatpush.bf16.msra.mxu2 %v7439_v26  ;;  %v7460_v26 = vor.u32 %v9537_v24, %v7459_v15  ;;  %v7482_v15 = vld [vmem:[#allocation12 + $0x9c] sm:$0xf0]  ;;  %v7488_v24 = vld [vmem:[#allocation12 + $0x98] sm:$0xf] }
 0x4e2   : > { %1701 = vmatpush.bf16.msra.mxu2 %v7427_v34 }
 0x4ed   : > { %7417 = vmatmul.msk.bf16.vlgmr.msrb.gmra.mxu2 %vm1413_vm7, %v1558_v58 }
 0x51c   : > { %v11206_v10 = vpop.f32.mrf.mxu0 }
 0x524   : > { %v11208_v11 = vpop.f32.mrf.mxu0 }
 0x52c   : > { %v1741_v12 = vpop.f32.mrf.mxu0 }
 0x52d   : > { %v1746_v13 = vsel %vm11165_vm8, %v1741_v12, -10000000.0  ;;  %v7465_v12 = vld [vmem:[#allocation12 + $0x84] sm:$0xf0] }
 0x52e   : > { %v1748_v14 = vsel %vm1436_vm9, %v1746_v13, -inf }
 0x52f   : > { %1749 = vmax.xlane.f32.xlu2 %v1748_v14  ;;  %v9540_v14 = vld [vmem:[#allocation12 + $0x88] sm:$0xf0] }
 0x534   : > { %v1743_v17 = vpop.f32.mrf.mxu0 }
 0x535   : > { %v1747_v18 = vsel %vm11174_vm12, %v1743_v17, -10000000.0  ;;  %v7468_v17 = vor.u32 %v9538_v9, %v7465_v12  ;;  %v9545_v9 = vld [vmem:[#allocation12 + $0xb0] sm:$0xf0] }
 0x536   : > { %v1751_v19 = vsel %vm1436_vm9, %v1747_v18, -inf }
 0x537   : > { %1752 = vmax.xlane.f32.xlu2 %v1751_v19  ;;  %1856 = vmatpush.bf16.msrb.mxu3 %v7468_v17  ;;  %v7451_v19 = vld [vmem:[#allocation12 + $0x60] sm:$0xf]  ;;  %v9546_v17 = vld [vmem:[#allocation12 + $0xb8] sm:$0xf0] }
 0x538   : > { %v7452_v22 = vor.u32 %v9536_v20, %v7451_v19  ;;  %v7480_v20 = vld [vmem:[#allocation12 + $0x90] sm:$0xf] }
 0x539   : > { %v7481_v23 = vor.u32 %v9542_v21, %v7480_v20  ;;  %v7875_v20 = vld [vmem:[#allocation16 + $0x2e0] sm:$0xf] }
 0x53b   : > { %1857 = vmatpush.bf16.msrb.mxu3 %v7456_v25  ;;  %v9543_v25 = vld [vmem:[#allocation12 + $0xa0] sm:$0xf0] }
 0x560   : > { %v1472_v37 = vpop.f32.mrf.mxu2 }
 0x568   : > { %v1474_v38 = vpop.f32.mrf.mxu2 }
 0x569   : > { %v1477_v62 = vpack.c.bf16 %v1474_v38, %v1472_v37 }
 0x56b   : > { %7444 = vmatmul.msk.bf16.vlgmr.msra.gmra.mxu1 %vm1413_vm7, %v1477_v62  ;;  %7445 = vmatmul.msk.bf16.vlgmr.msra.gmra.mxu2 %vm1413_vm7, %v1477_v62 }
 0x56c   : > { %7446 = vmatmul.msk.bf16.vlgmr.msra.gmra.mxu3 %vm1413_vm7, %v1477_v62 }
 0x570   : > { %v1612_v38 = vpop.f32.mrf.mxu2 }
 0x578   : > { %v11241_v62 = vpop.f32.mrf.mxu2 }
 0x5a2   : > { %v1750_v0 = vpop.xlane.xlu2 %1749 }
 0x5a3   : > { %v1754_v43 = vsub.f32 %v1746_v13, %v1750_v0  ;;  %v7471_v13 = vld [vmem:[#allocation12 + $0x80] sm:$0xf] }
 0x5a5   : > { %v1756_v44 = vmul.f32 1.442695, %v1754_v43 }
 0x5a7   : > { %10223 = vpow2.f32 %v1756_v44 }
 0x5aa   : > { %v1753_v45 = vpop.xlane.xlu2 %1752 }
 0x5ab   : > { %v1755_v46 = vsub.f32 %v1747_v18, %v1753_v45  ;;  %v7472_v18 = vor.u32 %v9540_v14, %v7471_v13  ;;  %v7494_v13 = vld [vmem:[#allocation12 + $0xb4] sm:$0xf0]  ;;  %v7500_v14 = vld [vmem:[#allocation12 + $0xb0] sm:$0xf] }
 0x5ac   : > { %v7501_v19 = vor.u32 %v9546_v17, %v7500_v14  ;;  %v9577_v14 = vld [vmem:[#allocation16 + $0xec] sm:$0xf0]  ;;  %v7747_v17 = vld [vmem:[#allocation16 + $0x1e0] sm:$0xf] }
 0x5ad   : > { %v10224_v49 = vpop.eup %10223  ;;  %v1758_v52 = vmul.f32 1.442695, %v1755_v46  ;;  %1870 = vmatpush.bf16.msrb.mxu0 %v7472_v18 }
 0x5ae   : > { %v1760_v54 = vsel %vm1436_vm9, %v10224_v49, 0.0 }
 0x5af   : > { %10225 = vpow2.f32 %v1758_v52  ;;  %1761 = vadd.xlane.f32.xlu2 %v1760_v54 }
 0x5b1   : > { %1871 = vmatpush.bf16.msrb.mxu0 %v7460_v26 }
 0x5b5   : > { %v10226_v55 = vpop.eup %10225 }
 0x5b6   : > { %v1763_v56 = vsel %vm1436_vm9, %v10226_v55, 0.0 }
 0x5b7   : > { %1764 = vadd.xlane.f32.xlu0 %v1763_v56 }
 0x5c7   : > { %1771 = vrot.lane.b32.xlu2 %v11158_v42, %s10775_s15 }
 0x5cb   : > { %1884 = vrot.lane.b32.xlu0 %v11152_v33, %s10776_s6  ;;  %v7463_v33 = vld [vmem:[#allocation12 + $0x78] sm:$0xf] }
 0x5cc   : > { %v7464_v8 = vor.u32 %v9539_v7, %v7463_v33  ;;  %v7492_v7 = vld [vmem:[#allocation12 + $0xa8] sm:$0xf] }
 0x5cd   : > { %v7493_v12 = vor.u32 %v9545_v9, %v7492_v7 }
 0x5ce   : > { %1842 = vmatpush.bf16.msrb.mxu2 %v7464_v8  ;;  %v9544_v8 = vld [vmem:[#allocation12 + $0xac] sm:$0xf] }
 0x5cf   : > { %v7497_v18 = vor.u32 %v9544_v8, %v7494_v13  ;;  %2004 = vmatpush.bf16.msra.mxu3 %v7493_v12  ;;  %v7619_v13 = vld [vmem:[#allocation16 + $0xe0] sm:$0xf] }
 0x5d1   : > { %2018 = vmatpush.bf16.msra.mxu0 %v7497_v18  ;;  %v7620_v18 = vor.u32 %v9577_v14, %v7619_v13  ;;  %v9559_v14 = vld [vmem:[#allocation16 + $0x64] sm:$0xf] }
 0x5d2   : > { %1843 = vmatpush.bf16.msrb.mxu2 %v7452_v22  ;;  %v9541_v22 = vld [vmem:[#allocation12 + $0x94] sm:$0xf] }
 0x5d3   : > { %v7485_v26 = vor.u32 %v9541_v22, %v7482_v15  ;;  %2005 = vmatpush.bf16.msra.mxu3 %v7481_v23  ;;  %v7621_v23 = vld [vmem:[#allocation16 + $0xf0] sm:$0xf0]  ;;  %v7603_v15 = vld [vmem:[#allocation16 + $0xc0] sm:$0xf] }
 0x5d5   : > { %2019 = vmatpush.bf16.msra.mxu0 %v7485_v26  ;;  %v9605_v26 = vld [vmem:[#allocation16 + $0x1cc] sm:$0xf0] }
 0x5e8   : > { %v1689_v27 = vpop.f32.mrf.mxu1 }
 0x5ee   : > { %v11243_v0 = vpop.f32.mrf.mxu2 }
 0x5f0   : > { %v11228_v28 = vpop.f32.mrf.mxu1 }
 0x5f6   : > { %v11245_v43 = vpop.f32.mrf.mxu2 }
 0x622   : > { %v1762_v58 = vpop.xlane.xlu2 %1761 }
 0x623   : > { %10227 = vrcp.f32 %v1762_v58 }
 0x629   : > { %v10228_v1 = vpop.eup %10227 }
 0x62a   : > { %v1765_v60 = vpop.xlane.xlu0 %1764  ;;  %v1772_v16 = vpop.permute.xlu2 %1771  ;;  %v1768_v3 = vmul.f32 %v10228_v1, %v10224_v49  ;;  %v1690_v49 = vadd.f32 %v1689_v27, %v1612_v38  ;;  %v7489_v27 = vor.u32 %v9543_v25, %v7488_v24  ;;  %v9573_v24 = vld [vmem:[#allocation16 + $0xcc] sm:$0xf0]  ;;  %v7731_v25 = vld [vmem:[#allocation16 + $0x1c0] sm:$0xf] }
 0x62b   : > { %10229 = vrcp.f32 %v1765_v60  ;;  %1784 = vmatpush.bf16.msrb.mxu1 %v1772_v16 }
 0x62f   : > { %1901 = vmatpush.bf16.xpose.msra.mxu1 %v1892_v63 }
 0x631   : > { %v10230_v2 = vpop.eup %10229 }
 0x632   : > { %v1769_v4 = vmul.f32 %v10230_v2, %v10226_v55 }
 0x634   : > { %v1770_v6 = vpack.c.bf16 %v1769_v4, %v1768_v3 }
 0x636   : > { %7448 = vmatmul.msk.bf16.vlgmr.msrb.gmra.mxu1 %vm1436_vm9, %v1770_v6 }
 0x637   : > { %2032 = vmatpush.bf16.msrb.mxu1 %v7501_v19  ;;  %v9609_v19 = vld [vmem:[#allocation16 + $0x1ec] sm:$0xf0] }
 0x638   : > { %v7748_v21 = vor.u32 %v9609_v19, %v7747_v17  ;;  %v7557_v17 = vld [vmem:[#allocation16 + $0x70] sm:$0xf0] }
 0x63b   : > { %2033 = vmatpush.bf16.msrb.mxu1 %v7489_v27  ;;  %v7604_v27 = vor.u32 %v9573_v24, %v7603_v15 }
 0x63d   : > { %v1885_v5 = vpop.permute.xlu0 %1884 }
 0x646   : > { %7476 = vmatmul.msk.bf16.vlgmr.msra.gmra.mxu1 %vm1413_vm7, %v1885_v5 }
 0x6b3   : > { %v1786_v29 = vpop.f32.mrf.mxu1 }
 0x6bb   : > { %v1788_v30 = vpop.f32.mrf.mxu1 }
 0x6bc   : > { %v1791_v31 = vpack.c.bf16 %v1788_v30, %v1786_v29 }
 0x6be   : > { %7473 = vmatmul.msk.bf16.vlgmr.msrb.gmra.mxu2 %vm1413_vm7, %v1791_v31  ;;  %7474 = vmatmul.msk.bf16.vlgmr.msrb.gmra.mxu3 %vm1413_vm7, %v1791_v31 }
 0x6bf   : > { %7475 = vmatmul.msk.bf16.vlgmr.msrb.gmra.mxu0 %vm1413_vm7, %v1791_v31  ;;  %2749 = vmatpush.bf16.msrb.mxu3 %v7748_v21 }
 0x6c3   : > { %v1903_v32 = vpop.f32.mrf.mxu1 }
 0x6c4   : > { %v1908_v50 = vsel %vm11165_vm8, %v1903_v32, -10000000.0 }
 0x6c5   : > { %v1910_v51 = vsel %vm1436_vm9, %v1908_v50, -inf }
 0x6c6   : > { %1911 = vmax.xlane.f32.xlu2 %v1910_v51 }
 0x6cb   : > { %v1905_v34 = vpop.f32.mrf.mxu1 }
 0x6cc   : > { %v1909_v53 = vsel %vm11174_vm12, %v1905_v34, -10000000.0 }
 0x6cd   : > { %v1913_v37 = vsel %vm1436_vm9, %v1909_v53, -inf }
 0x6ce   : > { %1914 = vmax.xlane.f32.xlu0 %v1913_v37 }
 0x6e2   : > { %1933 = vrot.lane.b32.xlu0 %v11158_v42, %s10776_s6 }
 0x739   : > { %v1912_v44 = vpop.xlane.xlu2 %1911 }
 0x73a   : > { %v1916_v45 = vsub.f32 %v1908_v50, %v1912_v44  ;;  %v1626_v50 = vpop.f32.mrf.mxu3 }
 0x73c   : > { %v1918_v46 = vmul.f32 1.442695, %v1916_v45  ;;  %v1873_v37 = vpop.f32.mrf.mxu0 }
 0x73e   : > { %10231 = vpow2.f32 %v1918_v46 }
 0x741   : > { %v1915_v52 = vpop.xlane.xlu0 %1914  ;;  %v1845_v54 = vpop.f32.mrf.mxu2 }
 0x742   : > { %v1917_v55 = vsub.f32 %v1909_v53, %v1915_v52  ;;  %v11247_v56 = vadd.f32 %v1845_v54, %v1690_v49  ;;  %v1628_v51 = vpop.f32.mrf.mxu3  ;;  %v1704_v49 = vadd.f32 %v11243_v0, %v1626_v50  ;;  %v1692_v0 = vadd.f32 %v11228_v28, %v11241_v62 }
 0x744   : > { %v10232_v58 = vpop.eup %10231  ;;  %v1920_v59 = vmul.f32 1.442695, %v1917_v55  ;;  %v1875_v44 = vpop.f32.mrf.mxu0 }
 0x745   : > { %v1922_v42 = vsel %vm1436_vm9, %v10232_v58, 0.0 }
 0x746   : > { %10233 = vpow2.f32 %v1920_v59  ;;  %1923 = vadd.xlane.f32.xlu1 %v1922_v42 }
 0x749   : > { %v1847_v29 = vpop.f32.mrf.mxu2 }
 0x74a   : > { %v1717_v34 = vpop.f32.mrf.mxu3 }
 0x74b   : > { %v1718_v54 = vadd.f32 %v1717_v34, %v11206_v10  ;;  %v7587_v34 = vld [vmem:[#allocation16 + $0xa0] sm:$0xf] }
 0x74c   : > { %v10234_v60 = vpop.eup %10233 }
 0x74d   : > { %v1925_v16 = vsel %vm1436_vm9, %v10234_v60, 0.0 }
 0x74e   : > { %1926 = vadd.xlane.f32.xlu2 %v1925_v16 }
 0x752   : > { %v1719_v53 = vpop.f32.mrf.mxu3 }
 0x753   : > { %v1720_v10 = vadd.f32 %v1719_v53, %v11208_v11  ;;  %v9569_v53 = vld [vmem:[#allocation16 + $0xac] sm:$0xf0] }
 0x754   : > { %v1934_v63 = vpop.permute.xlu0 %1933 }
 0x755   : > { %1946 = vmatpush.bf16.msra.mxu2 %v1934_v63  ;;  %v1706_v63 = vadd.f32 %v11245_v43, %v1628_v51  ;;  %v7605_v51 = vld [vmem:[#allocation16 + $0xd0] sm:$0xf0] }
 0x759   : > { %2735 = vmatpush.bf16.msrb.mxu2 %v7620_v18 }
 0x75a   : > { %v1859_v38 = vpop.f32.mrf.mxu3 }
 0x75b   : > { %v1879_v55 = vadd.f32 %v1859_v38, %v1704_v49  ;;  %v7715_v38 = vld [vmem:[#allocation16 + $0x1a0] sm:$0xf]  ;;  %v9633_v49 = vld [vmem:[#allocation16 + $0x2ac] sm:$0xf0] }
 0x75d   : > { %2736 = vmatpush.bf16.msrb.mxu2 %v7604_v27 }
 0x762   : > { %v1861_v45 = vpop.f32.mrf.mxu3 }
 0x7b9   : > { %v1924_v1 = vpop.xlane.xlu1 %1923 }
 0x7ba   : > { %10235 = vrcp.f32 %v1924_v1 }
 0x7c0   : > { %v10236_v3 = vpop.eup %10235 }
 0x7c1   : > { %v1927_v2 = vpop.xlane.xlu2 %1926  ;;  %v1930_v6 = vmul.f32 %v10236_v3, %v10232_v58  ;;  %v1880_v58 = vadd.f32 %v1873_v37, %v1718_v54  ;;  %v7589_v54 = vld [vmem:[#allocation16 + $0xb0] sm:$0xf0] }
 0x7c2   : > { %10237 = vrcp.f32 %v1927_v2 }
 0x7c8   : > { %v10238_v4 = vpop.eup %10237 }
 0x7c9   : > { %v1931_v5 = vmul.f32 %v10238_v4, %v10234_v60  ;;  %v1882_v4 = vadd.f32 %v1861_v45, %v1706_v63  ;;  %v7843_v45 = vld [vmem:[#allocation16 + $0x2a0] sm:$0xf]  ;;  %v9597_v63 = vld [vmem:[#allocation16 + $0x18c] sm:$0xf0] }
 0x7cb   : > { %v1932_v33 = vpack.c.bf16 %v1931_v5, %v1930_v6  ;;  %v1883_v5 = vadd.f32 %v1875_v44, %v1720_v10  ;;  %v9601_v44 = vld [vmem:[#allocation16 + $0x1ac] sm:$0xf0]  ;;  %v9563_v10 = vld [vmem:[#allocation16 + $0x84] sm:$0xf] }
 0x7cd   : > { %7477 = vmatmul.msk.bf16.vlgmr.msra.gmra.mxu2 %vm1436_vm9, %v1932_v33 }
 0x850   : > { %v1948_v30 = vpop.f32.mrf.mxu2 }
 0x858   : > { %v1950_v31 = vpop.f32.mrf.mxu2 }
 0x859   : > { %v1953_v32 = vpack.c.bf16 %v1950_v31, %v1948_v30  ;;  %v7859_v30 = vld [vmem:[#allocation16 + $0x2c0] sm:$0xf]  ;;  %v9637_v31 = vld [vmem:[#allocation16 + $0x2cc] sm:$0xf0] }
 0x85a   : > { %v7860_v50 = vor.u32 %v9637_v31, %v7859_v30 }
 0x85b   : > { %7502 = vmatmul.msk.bf16.vlgmr.msra.gmra.mxu3 %vm1413_vm7, %v1953_v32  ;;  %7503 = vmatmul.msk.bf16.vlgmr.msra.gmra.mxu0 %vm1413_vm7, %v1953_v32 }
 0x85c   : > { %7504 = vmatmul.msk.bf16.vlgmr.msrb.gmra.mxu1 %vm1413_vm7, %v1953_v32  ;;  %v9571_v32 = vld [vmem:[#allocation16 + $0xc4] sm:$0xf] }
 0x85d   : > { %v7608_v37 = vor.u32 %v9571_v32, %v7605_v51 }
 0x8d8   : > { %v2021_v46 = vpop.f32.mrf.mxu0 }
 0x8d9   : > { %v2035_v52 = vpop.f32.mrf.mxu1  ;;  %v2041_v59 = vadd.f32 %v2021_v46, %v1879_v55  ;;  %v7588_v46 = vor.u32 %v9569_v53, %v7587_v34  ;;  %v7716_v55 = vor.u32 %v9601_v44, %v7715_v38  ;;  %v9557_v34 = vld [vmem:[#allocation16 + $0x4c] sm:$0xf0]  ;;  %v7667_v53 = vld [vmem:[#allocation16 + $0x140] sm:$0xf] }
 0x8da   : > { %v2042_v60 = vadd.f32 %v2035_v52, %v1880_v58  ;;  %v9567_v52 = vld [vmem:[#allocation16 + $0xa4] sm:$0xf]  ;;  %v7844_v58 = vor.u32 %v9633_v49, %v7843_v45  ;;  %v7795_v38 = vld [vmem:[#allocation16 + $0x240] sm:$0xf]  ;;  %v9621_v44 = vld [vmem:[#allocation16 + $0x24c] sm:$0xf0] }
 0x8db   : > { %v11260_v1 = vadd.f32 %v2041_v59, %v11130_v36  ;;  %v1881_v36 = vadd.f32 %v1847_v29, %v1692_v0  ;;  %v7732_v29 = vor.u32 %v9605_v26, %v7731_v25  ;;  %v7571_v59 = vld [vmem:[#allocation16 + $0x80] sm:$0xf]  ;;  %2737 = vmatpush.bf16.msrb.mxu2 %v7588_v46  ;;  %v7796_v46 = vor.u32 %v9621_v44, %v7795_v38  ;;  %v9555_v49 = vld [vmem:[#allocation16 + $0x44] sm:$0xf]  ;;  %v7717_v44 = vld [vmem:[#allocation16 + $0x1b0] sm:$0xf0] }
 0x8dc   : > { %v11269_v6 = vadd.f32 %v2042_v60, %v11136_v41  ;;  %v7699_v60 = vld [vmem:[#allocation16 + $0x180] sm:$0xf]  ;;  %v9599_v38 = vld [vmem:[#allocation16 + $0x1a4] sm:$0xf] }
 0x8dd   : > { %2750 = vmatpush.bf16.msrb.mxu3 %v7732_v29  ;;  %v7827_v0 = vld [vmem:[#allocation16 + $0x280] sm:$0xf] }
 0x8de   : > { %v2007_v42 = vpop.f32.mrf.mxu3 }
 0x8df   : > { %v2040_v16 = vadd.f32 %v2007_v42, %v11247_v56  ;;  %v9565_v42 = vld [vmem:[#allocation16 + $0x8c] sm:$0xf0] }
 0x8e0   : > { %v2023_v3 = vpop.f32.mrf.mxu0 }
 0x8e1   : > { %v11263_v2 = vadd.f32 %v2040_v16, %v11128_v35  ;;  %v2037_v43 = vpop.f32.mrf.mxu1  ;;  %v2044_v33 = vadd.f32 %v2023_v3, %v1882_v4  ;;  %v7592_v16 = vor.u32 %v9567_v52, %v7589_v54  ;;  %v9629_v3 = vld [vmem:[#allocation16 + $0x28c] sm:$0xf0]  ;;  %v7573_v4 = vld [vmem:[#allocation16 + $0x90] sm:$0xf0]  ;;  %2751 = vmatpush.bf16.msrb.mxu3 %v7716_v55  ;;  %v7523_v55 = vld [vmem:[#allocation16 + $0x20] sm:$0xf] }
 0x8e2   : > { %v2045_v9 = vadd.f32 %v2037_v43, %v1883_v5  ;;  %v7555_v43 = vld [vmem:[#allocation16 + $0x60] sm:$0xf]  ;;  %v9561_v5 = vld [vmem:[#allocation16 + $0x6c] sm:$0xf0]  ;;  %v7541_v52 = vld [vmem:[#allocation16 + $0x50] sm:$0xf0] }
 0x8e3   : > { %v2054_v56 = vadd.f32 %v11260_v1, %v11263_v2  ;;  %v11275_v28 = vadd.f32 %v2044_v33, %v11134_v40  ;;  %v9641_v40 = vld [vmem:[#allocation16 + $0x2ec] sm:$0xf0]  ;;  %v7700_v33 = vor.u32 %v9597_v63, %v7699_v60  ;;  %v7556_v18 = vor.u32 %v9561_v5, %v7555_v43  ;;  %v7507_v43 = vld [vmem:[#allocation16] sm:$0xf] }
 0x8e4   : > { %v11281_v41 = vadd.f32 %v2045_v9, %v11138_v61  ;;  %v7876_v22 = vor.u32 %v9641_v40, %v7875_v20  ;;  %v7811_v9 = vld [vmem:[#allocation16 + $0x260] sm:$0xf]  ;;  %v7544_v54 = vor.u32 %v9555_v49, %v7541_v52  ;;  %v9585_v60 = vld [vmem:[#allocation16 + $0x12c] sm:$0xf0]  ;;  %v7845_v49 = vld [vmem:[#allocation16 + $0x2b0] sm:$0xf0] }
 0x8e5   : > { %v2055_v35 = vadd.f32 %v2054_v56, %v11269_v6  ;;  %v7572_v56 = vor.u32 %v9565_v42, %v7571_v59  ;;  %2752 = vmatpush.bf16.msrb.mxu3 %v7700_v33  ;;  %v7651_v59 = vld [vmem:[#allocation16 + $0x120] sm:$0xf]  ;;  %v9617_v63 = vld [vmem:[#allocation16 + $0x22c] sm:$0xf0]  ;;  %v7595_v52 = vld [vmem:[#allocation16 + $0xa8] sm:$0xf] }
 0x8e6   : > { %v2009_v7 = vpop.f32.mrf.mxu3  ;;  %2763 = vmatpush.bf16.msrb.mxu0 %v7876_v22  ;;  %v9549_v5 = vld [vmem:[#allocation16 + $0xc] sm:$0xf0] }
 0x8e7   : > { %v2043_v8 = vadd.f32 %v2009_v7, %v1881_v36  ;;  %2056 = vadd.xlane.f32.xlu1 %v2055_v35  ;;  %v7683_v36 = vld [vmem:[#allocation16 + $0x160] sm:$0xf]  ;;  %v7828_v35 = vor.u32 %v9629_v3, %v7827_v0  ;;  %v9593_v7 = vld [vmem:[#allocation16 + $0x16c] sm:$0xf0]  ;;  %2738 = vmatpush.bf16.msrb.mxu2 %v7572_v56  ;;  %v7652_v0 = vor.u32 %v9585_v60, %v7651_v59  ;;  %v7723_v59 = vld [vmem:[#allocation16 + $0x1a8] sm:$0xf] }
 0x8e8   : > { %v7684_v19 = vor.u32 %v9593_v7, %v7683_v36  ;;  %v7635_v36 = vld [vmem:[#allocation16 + $0x100] sm:$0xf]  ;;  %v7508_v33 = vor.u32 %v9549_v5, %v7507_v43 }
 0x8e9   : > { %v11278_v11 = vadd.f32 %v2043_v8, %v11132_v39  ;;  %v9575_v39 = vld [vmem:[#allocation16 + $0xe4] sm:$0xf]  ;;  %v9625_v8 = vld [vmem:[#allocation16 + $0x26c] sm:$0xf0]  ;;  %v7763_v7 = vld [vmem:[#allocation16 + $0x200] sm:$0xf] }
 0x8ea   : > { %v7624_v61 = vor.u32 %v9575_v39, %v7621_v23  ;;  %2764 = vmatpush.bf16.msrb.mxu0 %v7860_v50  ;;  %v7812_v20 = vor.u32 %v9625_v8, %v7811_v9  ;;  %v7560_v39 = vor.u32 %v9559_v14, %v7557_v17  ;;  %2753 = vmatpush.bf16.msrb.mxu3 %v7684_v19  ;;  %v9613_v9 = vld [vmem:[#allocation16 + $0x20c] sm:$0xf0]  ;;  %v9607_v14 = vld [vmem:[#allocation16 + $0x1e4] sm:$0xf] }
 0x8eb   : > { %v2058_v62 = vadd.f32 %v11275_v28, %v11278_v11  ;;  %2739 = vmatpush.bf16.msrb.mxu2 %v7556_v18  ;;  %v7749_v18 = vld [vmem:[#allocation16 + $0x1f0] sm:$0xf0]  ;;  %v9639_v19 = vld [vmem:[#allocation16 + $0x2e4] sm:$0xf] }
 0x8ec   : > { %2777 = vmatpush.bf16.msra.mxu1 %v7624_v61 }
 0x8ed   : > { %v2059_v12 = vadd.f32 %v2058_v62, %v11281_v41 }
 0x8ee   : > { %2765 = vmatpush.bf16.msrb.mxu0 %v7844_v58  ;;  %v9553_v58 = vld [vmem:[#allocation16 + $0x2c] sm:$0xf0] }
 0x8ef   : > { %2060 = vadd.xlane.f32.xlu2 %v2059_v12  ;;  %v7576_v12 = vor.u32 %v9563_v10, %v7573_v4  ;;  %v7524_v42 = vor.u32 %v9553_v58, %v7523_v55  ;;  %v9551_v10 = vld [vmem:[#allocation16 + $0x24] sm:$0xf]  ;;  %v7525_v4 = vld [vmem:[#allocation16 + $0x30] sm:$0xf0] }
 0x8f0   : > { %2778 = vmatpush.bf16.msra.mxu1 %v7608_v37  ;;  %v9589_v37 = vld [vmem:[#allocation16 + $0x14c] sm:$0xf0]  ;;  %v7528_v56 = vor.u32 %v9551_v10, %v7525_v4  ;;  %v7829_v10 = vld [vmem:[#allocation16 + $0x290] sm:$0xf0]  ;;  %v7579_v4 = vld [vmem:[#allocation16 + $0x88] sm:$0xf] }
 0x8f1   : > { %v7668_v45 = vor.u32 %v9589_v37, %v7667_v53  ;;  %v9606_v53 = vld [vmem:[#allocation16 + $0x1d4] sm:$0xf0] }
 0x8f2   : > { %2766 = vmatpush.bf16.msrb.mxu0 %v7828_v35  ;;  %v9581_v35 = vld [vmem:[#allocation16 + $0x10c] sm:$0xf0] }
 0x8f3   : > { %2754 = vmatpush.bf16.msrb.mxu3 %v7668_v45  ;;  %v7636_v8 = vor.u32 %v9581_v35, %v7635_v36  ;;  %v9631_v45 = vld [vmem:[#allocation16 + $0x2a4] sm:$0xf]  ;;  %v7707_v36 = vld [vmem:[#allocation16 + $0x188] sm:$0xf] }
 0x8f4   : > { %2779 = vmatpush.bf16.msra.mxu1 %v7592_v16  ;;  %v7779_v16 = vld [vmem:[#allocation16 + $0x220] sm:$0xf]  ;;  %v7848_v55 = vor.u32 %v9631_v45, %v7845_v49  ;;  %v9586_v49 = vld [vmem:[#allocation16 + $0x134] sm:$0xf0] }
 0x8f5   : > { %v7780_v3 = vor.u32 %v9617_v63, %v7779_v16  ;;  %v9595_v16 = vld [vmem:[#allocation16 + $0x184] sm:$0xf]  ;;  %v7701_v63 = vld [vmem:[#allocation16 + $0x190] sm:$0xf0] }
 0x8f6   : > { %2767 = vmatpush.bf16.msrb.mxu0 %v7812_v20  ;;  %v7877_v20 = vld [vmem:[#allocation16 + $0x2f0] sm:$0xf0] }
 0x8f7   : > { %2755 = vmatpush.bf16.msrb.mxu3 %v7652_v0  ;;  %v9627_v0 = vld [vmem:[#allocation16 + $0x284] sm:$0xf] }
 0x8f8   : > { %2780 = vmatpush.bf16.msra.mxu1 %v7576_v12  ;;  %v9547_v12 = vld [vmem:[#allocation16 + $0x4] sm:$0xf]  ;;  %v7832_v43 = vor.u32 %v9627_v0, %v7829_v10  ;;  %v9550_v0 = vld [vmem:[#allocation16 + $0x14] sm:$0xf0] }
 0x8fa   : > { %2768 = vmatpush.bf16.msrb.mxu0 %v7796_v46  ;;  %v7720_v46 = vor.u32 %v9599_v38, %v7717_v44  ;;  %v9554_v38 = vld [vmem:[#allocation16 + $0x34] sm:$0xf0] }
 0x8fb   : > { %2756 = vmatpush.bf16.msrb.mxu3 %v7636_v8  ;;  %v9623_v8 = vld [vmem:[#allocation16 + $0x264] sm:$0xf] }
 0x8fc   : > { %2781 = vmatpush.bf16.msra.mxu1 %v7560_v39  ;;  %v7880_v39 = vor.u32 %v9639_v19, %v7877_v20  ;;  %v7691_v19 = vld [vmem:[#allocation16 + $0x168] sm:$0xf]  ;;  %v9594_v20 = vld [vmem:[#allocation16 + $0x174] sm:$0xf0] }
 0x8fe   : > { %2769 = vmatpush.bf16.msrb.mxu0 %v7780_v3  ;;  %v7704_v3 = vor.u32 %v9595_v16, %v7701_v63  ;;  %v7765_v16 = vld [vmem:[#allocation16 + $0x210] sm:$0xf0]  ;;  %v7515_v63 = vld [vmem:[#allocation16 + $0x8] sm:$0xf] }
 0x8ff   : > { %2805 = vmatpush.bf16.msra.mxu3 %v7880_v39  ;;  %v9587_v39 = vld [vmem:[#allocation16 + $0x144] sm:$0xf]  ;;  %v7516_v10 = vor.u32 %v9550_v0, %v7515_v63 }
 0x900   : > { %2782 = vmatpush.bf16.msra.mxu1 %v7544_v54  ;;  %v9570_v54 = vld [vmem:[#allocation16 + $0xb4] sm:$0xf0] }
 0x901   : > { %v7596_v58 = vor.u32 %v9570_v54, %v7595_v52 }
 0x904   : > { %2783 = vmatpush.bf16.msra.mxu1 %v7528_v56  ;;  %v9566_v56 = vld [vmem:[#allocation16 + $0x94] sm:$0xf0] }
 0x905   : > { %v7580_v5 = vor.u32 %v9566_v56, %v7579_v4  ;;  %v7643_v4 = vld [vmem:[#allocation16 + $0x108] sm:$0xf]  ;;  %v9582_v56 = vld [vmem:[#allocation16 + $0x114] sm:$0xf0] }
 0x95a   : > { %v2057_v62 = vpop.xlane.xlu1 %2056 }
 0x95b   : > { %v2062_v13 = vmul.f32 0.0033333334, %v2057_v62  ;;  %v7764_v62 = vor.u32 %v9613_v9, %v7763_v7  ;;  %v9591_v7 = vld [vmem:[#allocation16 + $0x164] sm:$0xf]  ;;  %v7685_v9 = vld [vmem:[#allocation16 + $0x170] sm:$0xf0] }
 0x95d   : > { %v11287_v40 = vsub.f32 %v11263_v2, %v2062_v13  ;;  %v11290_v21 = vsub.f32 %v11260_v1, %v2062_v13  ;;  %v2066_v22 = vsub.f32 %v11269_v6, %v2062_v13  ;;  %v7509_v13 = vld [vmem:[#allocation16 + $0x10] sm:$0xf0]  ;;  %2770 = vmatpush.bf16.msrb.mxu0 %v7764_v62  ;;  %v7688_v62 = vor.u32 %v9591_v7, %v7685_v9 }
 0x95e   : > { %v7512_v17 = vor.u32 %v9547_v12, %v7509_v13  ;;  %v7813_v12 = vld [vmem:[#allocation16 + $0x270] sm:$0xf0]  ;;  %v7563_v13 = vld [vmem:[#allocation16 + $0x68] sm:$0xf] }
 0x95f   : > { %v11294_v23 = vmul.f32 %v11083_v48, %v2066_v22  ;;  %v2076_v15 = vmul.f32 %v11287_v40, %v11287_v40  ;;  %v2077_v61 = vmul.f32 %v11290_v21, %v11290_v21  ;;  %v7752_v22 = vor.u32 %v9607_v14, %v7749_v18  ;;  %v9562_v14 = vld [vmem:[#allocation16 + $0x74] sm:$0xf0] }
 0x960   : > { %2784 = vmatpush.bf16.msra.mxu1 %v7512_v17  ;;  %v7816_v17 = vor.u32 %v9623_v8, %v7813_v12  ;;  %v7564_v18 = vor.u32 %v9562_v14, %v7563_v13 }
 0x961   : > { %v2078_v1 = vmul.f32 %v11294_v23, %v11294_v23  ;;  %v2082_v2 = vadd.f32 %v2077_v61, %v2076_v15  ;;  %v7627_v15 = vld [vmem:[#allocation16 + $0xe8] sm:$0xf]  ;;  %v9578_v61 = vld [vmem:[#allocation16 + $0xf4] sm:$0xf0] }
 0x962   : > { %v2061_v6 = vpop.xlane.xlu2 %2060 }
 0x963   : > { %v2063_v24 = vmul.f32 0.0033333334, %v2061_v6  ;;  %v2083_v25 = vadd.f32 %v2082_v2, %v2078_v1  ;;  %v7755_v1 = vld [vmem:[#allocation16 + $0x1e8] sm:$0xf]  ;;  %v7628_v2 = vor.u32 %v9578_v61, %v7627_v15  ;;  %v9610_v6 = vld [vmem:[#allocation16 + $0x1f4] sm:$0xf0] }
 0x964   : > { %v7669_v15 = vld [vmem:[#allocation16 + $0x150] sm:$0xf0]  ;;  %v9619_v61 = vld [vmem:[#allocation16 + $0x244] sm:$0xf] }
 0x965   : > { %v11303_v26 = vsub.f32 %v11278_v11, %v2063_v24  ;;  %v11306_v27 = vsub.f32 %v11275_v28, %v2063_v24  ;;  %v2069_v29 = vsub.f32 %v11281_v41, %v2063_v24  ;;  %2084 = vadd.xlane.f32.xlu1 %v2083_v25  ;;  %v7539_v28 = vld [vmem:[#allocation16 + $0x40] sm:$0xf]  ;;  %v9603_v24 = vld [vmem:[#allocation16 + $0x1c4] sm:$0xf]  ;;  %v7733_v25 = vld [vmem:[#allocation16 + $0x1d0] sm:$0xf0]  ;;  %2819 = vmatpush.bf16.msra.mxu0 %v7628_v2 }
 0x966   : > { %v7540_v41 = vor.u32 %v9557_v34, %v7539_v28  ;;  %v9574_v28 = vld [vmem:[#allocation16 + $0xd4] sm:$0xf0]  ;;  %v7739_v34 = vld [vmem:[#allocation16 + $0x1c8] sm:$0xf]  ;;  %v7797_v2 = vld [vmem:[#allocation16 + $0x250] sm:$0xf0] }
 0x967   : > { %v11310_v30 = vmul.f32 %v11083_v48, %v2069_v29  ;;  %v2079_v31 = vmul.f32 %v11303_v26, %v11303_v26  ;;  %v2080_v32 = vmul.f32 %v11306_v27, %v11306_v27  ;;  %v7756_v29 = vor.u32 %v9610_v6, %v7755_v1  ;;  %v7547_v6 = vld [vmem:[#allocation16 + $0x48] sm:$0xf] }
 0x968   : > { %2740 = vmatpush.bf16.msrb.mxu2 %v7540_v41  ;;  %v7740_v37 = vor.u32 %v9606_v53, %v7739_v34  ;;  %v7672_v1 = vor.u32 %v9587_v39, %v7669_v15  ;;  %v9615_v34 = vld [vmem:[#allocation16 + $0x224] sm:$0xf]  ;;  %v7781_v53 = vld [vmem:[#allocation16 + $0x230] sm:$0xf0] }
 0x969   : > { %v2081_v50 = vmul.f32 %v11310_v30, %v11310_v30  ;;  %v2086_v11 = vadd.f32 %v2080_v32, %v2079_v31  ;;  %v7736_v31 = vor.u32 %v9603_v24, %v7733_v25  ;;  %v9635_v32 = vld [vmem:[#allocation16 + $0x2c4] sm:$0xf]  ;;  %2833 = vmatpush.bf16.msrb.mxu1 %v7756_v29  ;;  %v9558_v24 = vld [vmem:[#allocation16 + $0x54] sm:$0xf0]  ;;  %v7800_v25 = vor.u32 %v9619_v61, %v7797_v2 }
 0x96a   : > { %v7548_v29 = vor.u32 %v9558_v24, %v7547_v6  ;;  %v7784_v45 = vor.u32 %v9615_v34, %v7781_v53  ;;  %v2053_v2 = vld [vmem:[#allocation15] sm:$0x7] }
 0x96b   : > { %v2087_v51 = vadd.f32 %v2086_v11, %v2081_v50  ;;  %v7861_v50 = vld [vmem:[#allocation16 + $0x2d0] sm:$0xf0]  ;;  %v7611_v11 = vld [vmem:[#allocation16 + $0xc8] sm:$0xf] }
 0x96c   : > { %2741 = vmatpush.bf16.msrb.mxu2 %v7524_v42  ;;  %v7612_v41 = vor.u32 %v9574_v28, %v7611_v11  ;;  %v9602_v42 = vld [vmem:[#allocation16 + $0x1b4] sm:$0xf0]  ;;  %v7653_v28 = vld [vmem:[#allocation16 + $0x130] sm:$0xf0] }
 0x96d   : > { %2088 = vadd.xlane.f32.xlu2 %v2087_v51  ;;  %v7864_v51 = vor.u32 %v9635_v32, %v7861_v50  ;;  %2834 = vmatpush.bf16.msrb.mxu1 %v7740_v37  ;;  %v7724_v60 = vor.u32 %v9602_v42, %v7723_v59  ;;  %v9590_v32 = vld [vmem:[#allocation16 + $0x154] sm:$0xf0]  ;;  %v9583_v50 = vld [vmem:[#allocation16 + $0x124] sm:$0xf]  ;;  %v7531_v37 = vld [vmem:[#allocation16 + $0x28] sm:$0xf] }
 0x96e   : > { %2820 = vmatpush.bf16.msra.mxu0 %v7612_v41  ;;  %v7656_v44 = vor.u32 %v9583_v50, %v7653_v28  ;;  %v7532_v54 = vor.u32 %v9554_v38, %v7531_v37  ;;  %v7637_v59 = vld [vmem:[#allocation16 + $0x110] sm:$0xf0]  ;;  %v9611_v42 = vld [vmem:[#allocation16 + $0x204] sm:$0xf]  ;;  %v7883_v37 = vld [vmem:[#allocation16 + $0x2e8] sm:$0xf] }
 0x96f   : > { %2806 = vmatpush.bf16.msra.mxu3 %v7864_v51  ;;  %v9642_v38 = vld [vmem:[#allocation16 + $0x2f4] sm:$0xf0] }
 0x970   : > { %2742 = vmatpush.bf16.msrb.mxu2 %v7508_v33  ;;  %v9598_v33 = vld [vmem:[#allocation16 + $0x194] sm:$0xf0] }
 0x971   : > { %2835 = vmatpush.bf16.msrb.mxu1 %v7724_v60  ;;  %v7708_v35 = vor.u32 %v9598_v33, %v7707_v36 }
 0x972   : > { %2821 = vmatpush.bf16.msra.mxu0 %v7596_v58  ;;  %v9579_v58 = vld [vmem:[#allocation16 + $0x104] sm:$0xf] }
 0x973   : > { %2807 = vmatpush.bf16.msra.mxu3 %v7848_v55  ;;  %v7640_v60 = vor.u32 %v9579_v58, %v7637_v59  ;;  %v9640_v58 = vld [vmem:[#allocation16 + $0x2ec] sm:$0xf]  ;;  %v7885_v59 = vld [vmem:[#allocation16 + $0x2f8] sm:$0xf0] }
 0x974   : > { %2791 = vmatpush.bf16.msra.mxu2 %v7752_v22  ;;  %v7692_v22 = vor.u32 %v9594_v20, %v7691_v19 }
 0x975   : > { %2836 = vmatpush.bf16.msrb.mxu1 %v7708_v35 }
 0x976   : > { %2822 = vmatpush.bf16.msra.mxu0 %v7580_v5  ;;  %v7644_v5 = vor.u32 %v9582_v56, %v7643_v4  ;;  %v7888_v56 = vor.u32 %v9640_v58, %v7885_v59  ;;  %v7803_v58 = vld [vmem:[#allocation16 + $0x248] sm:$0xf]  ;;  %v9622_v59 = vld [vmem:[#allocation16 + $0x254] sm:$0xf0] }
 0x977   : > { %2808 = vmatpush.bf16.msra.mxu3 %v7832_v43 }
 0x978   : > { %2792 = vmatpush.bf16.msra.mxu2 %v7736_v31  ;;  %v7675_v31 = vld [vmem:[#allocation16 + $0x148] sm:$0xf] }
 0x979   : > { %2837 = vmatpush.bf16.msrb.mxu1 %v7692_v22  ;;  %v7676_v51 = vor.u32 %v9590_v32, %v7675_v31  ;;  %v2135_v31 = vperm.slane %v2053_v2, 1 }
 0x97a   : > { %2823 = vmatpush.bf16.msra.mxu0 %v7564_v18  ;;  %v2052_v18 = vld [vmem:[#allocation13] sm:$0x7] }
 0x97b   : > { %2809 = vmatpush.bf16.msra.mxu3 %v7816_v17  ;;  %v2121_v22 = vperm.slane %v2052_v18, 0  ;;  %v2122_v39 = vperm.slane %v2052_v18, 1  ;;  %v2123_v24 = vperm.slane %v2052_v18, 2  ;;  %v7597_v18 = vld [vmem:[#allocation16 + $0xb8] sm:$0xf0] }
 0x97c   : > { %2793 = vmatpush.bf16.msra.mxu2 %v7720_v46  ;;  %v7659_v46 = vld [vmem:[#allocation16 + $0x128] sm:$0xf] }
 0x97d   : > { %2838 = vmatpush.bf16.msrb.mxu1 %v7676_v51  ;;  %v7660_v55 = vor.u32 %v9586_v49, %v7659_v46  ;;  %v2136_v51 = vperm.slane %v2053_v2, 2  ;;  %v9576_v46 = vld [vmem:[#allocation16 + $0xec] sm:$0xf]  ;;  %v7629_v49 = vld [vmem:[#allocation16 + $0xf8] sm:$0xf0] }
 0x97e   : > { %2824 = vmatpush.bf16.msra.mxu0 %v7548_v29  ;;  %v2134_v29 = vperm.slane %v2053_v2, 0  ;;  %v7632_v0 = vor.u32 %v9576_v46, %v7629_v49  ;;  %v9630_v2 = vld [vmem:[#allocation16 + $0x294] sm:$0xf0]  ;;  %v9624_v46 = vld [vmem:[#allocation16 + $0x26c] sm:$0xf] }
 0x97f   : > { %2810 = vmatpush.bf16.msra.mxu3 %v7800_v25  ;;  %v7821_v49 = vld [vmem:[#allocation16 + $0x278] sm:$0xf0] }
 0x980   : > { %2794 = vmatpush.bf16.msra.mxu2 %v7704_v3  ;;  %v7768_v3 = vor.u32 %v9611_v42, %v7765_v16  ;;  %v7884_v42 = vor.u32 %v9642_v38, %v7883_v37  ;;  %v9592_v37 = vld [vmem:[#allocation16 + $0x16c] sm:$0xf]  ;;  %v7693_v38 = vld [vmem:[#allocation16 + $0x178] sm:$0xf0] }
 0x981   : > { %2839 = vmatpush.bf16.msrb.mxu1 %v7660_v55  ;;  %v7757_v55 = vld [vmem:[#allocation16 + $0x1f8] sm:$0xf0] }
 0x982   : > { %2825 = vmatpush.bf16.msra.mxu0 %v7532_v54 }
 0x983   : > { %2811 = vmatpush.bf16.msra.mxu3 %v7784_v45 }
 0x984   : > { %2795 = vmatpush.bf16.msra.mxu2 %v7688_v62 }
 0x985   : > { %2840 = vmatpush.bf16.msrb.mxu1 %v7644_v5  ;;  %v7613_v5 = vld [vmem:[#allocation16 + $0xd8] sm:$0xf0] }
 0x986   : > { %2826 = vmatpush.bf16.msra.mxu0 %v7516_v10  ;;  %v9638_v10 = vld [vmem:[#allocation16 + $0x2d4] sm:$0xf0] }
 0x987   : > { %2812 = vmatpush.bf16.msra.mxu3 %v7768_v3  ;;  %v7867_v3 = vld [vmem:[#allocation16 + $0x2c8] sm:$0xf] }
 0x988   : > { %2796 = vmatpush.bf16.msra.mxu2 %v7672_v1 }
 0x98c   : > { %2797 = vmatpush.bf16.msra.mxu2 %v7656_v44 }
 0x990   : > { %2798 = vmatpush.bf16.msra.mxu2 %v7640_v60 }
 0x9d8   : > { %v2085_v11 = vpop.xlane.xlu1 %2084 }
 0x9d9   : > { %v2090_v41 = vmul.f32 0.0033333334, %v2085_v11 }
 0x9db   : > { %v2092_v52 = vadd.f32 1e-06, %v2090_v41 }
 0x9dd   : > { %10239 = vrsqrt.f32 %v2092_v52  ;;  %vm2100_vm14 = vweird.f32 %v2092_v52 }
 0x9e0   : > { %v2089_v43 = vpop.xlane.xlu2 %2088 }
 0x9e1   : > { %v2091_v36 = vmul.f32 0.0033333334, %v2089_v43  ;;  %v9572_v43 = vld [vmem:[#allocation16 + $0xcc] sm:$0xf] }
 0x9e3   : > { %v10240_v33 = vpop.eup %10239  ;;  %v2093_v35 = vadd.f32 1e-06, %v2091_v36  ;;  %v9604_v36 = vld [vmem:[#allocation16 + $0x1cc] sm:$0xf] }
 0x9e4   : > { %v2095_v7 = vmul.f32 %v10240_v33, %v2092_v52  ;;  %vm2101_vm13 = vweird.f32 %v10240_v33  ;;  %v9608_v52 = vld [vmem:[#allocation16 + $0x1ec] sm:$0xf] }
 0x9e5   : > { %10241 = vrsqrt.f32 %v2093_v35  ;;  %vm2102_vm15 = vmor %vm2100_vm14, %vm2101_vm13  ;;  %vm2110_vm1 = vweird.f32 %v2093_v35  ;;  %v7760_v4 = vor.u32 %v9608_v52, %v7757_v55 }
 0x9e6   : > { %v2096_v9 = vmul.f32 %v10240_v33, %v2095_v7  ;;  %v7869_v7 = vld [vmem:[#allocation16 + $0x2d8] sm:$0xf0] }
 0x9e8   : > { %v2097_v8 = vmul.f32 0.5, %v2096_v9  ;;  %v7868_v9 = vor.u32 %v9638_v10, %v7867_v3  ;;  %v9556_v3 = vld [vmem:[#allocation16 + $0x4c] sm:$0xf]  ;;  %v7549_v10 = vld [vmem:[#allocation16 + $0x58] sm:$0xf0] }
 0x9ea   : > { %v2098_v62 = vsub.f32 1.5, %v2097_v8  ;;  %v7616_v8 = vor.u32 %v9572_v43, %v7613_v5  ;;  %v9620_v43 = vld [vmem:[#allocation16 + $0x24c] sm:$0xf]  ;;  %v7805_v5 = vld [vmem:[#allocation16 + $0x258] sm:$0xf0] }
 0x9eb   : > { %v10242_v12 = vpop.eup %10241 }
 0x9ec   : > { %v2099_v13 = vmul.f32 %v10240_v33, %v2098_v62  ;;  %v2105_v14 = vmul.f32 %v10242_v12, %v2093_v35  ;;  %vm2111_vm0 = vweird.f32 %v10242_v12  ;;  %v9636_v35 = vld [vmem:[#allocation16 + $0x2cc] sm:$0xf]  ;;  %v7851_v62 = vld [vmem:[#allocation16 + $0x2a8] sm:$0xf] }
 0x9ed   : > { %vm2112_vm2 = vmor %vm2110_vm1, %vm2111_vm0 }
 0x9ee   : > { %v2106_v17 = vmul.f32 %v10242_v12, %v2105_v14  ;;  %v2103_v19 = vsel %vm2102_vm15, %v10240_v33, %v2099_v13  ;;  %v7741_v33 = vld [vmem:[#allocation16 + $0x1d8] sm:$0xf0]  ;;  %v7872_v14 = vor.u32 %v9636_v35, %v7869_v7  ;;  %v7787_v35 = vld [vmem:[#allocation16 + $0x228] sm:$0xf]  ;;  %v9618_v7 = vld [vmem:[#allocation16 + $0x234] sm:$0xf0] }
 0x9ef   : > { %v2114_v15 = vmul.f32 %v2103_v19, %v11287_v40  ;;  %v2115_v61 = vmul.f32 %v2103_v19, %v11290_v21  ;;  %v2116_v6 = vmul.f32 %v2103_v19, %v11294_v23  ;;  %v7744_v13 = vor.u32 %v9604_v36, %v7741_v33  ;;  %v9600_v19 = vld [vmem:[#allocation16 + $0x1ac] sm:$0xf] }
 0x9f0   : > { %v2107_v20 = vmul.f32 0.5, %v2106_v17  ;;  %v9568_v17 = vld [vmem:[#allocation16 + $0xac] sm:$0xf]  ;;  %v7804_v36 = vor.u32 %v9622_v59, %v7803_v58  ;;  %v7552_v33 = vor.u32 %v9556_v3, %v7549_v10  ;;  %v7951_v58 = vld [vmem:[#allocation18 + $0x78] sm:$0xf] }
 0x9f1   : > { %v2127_v50 = vmul.f32 %v2121_v22, %v2114_v15  ;;  %v2128_v11 = vmul.f32 %v2122_v39, %v2115_v61  ;;  %v2129_v34 = vmul.f32 %v2123_v24, %v2116_v6  ;;  %v7600_v61 = vor.u32 %v9568_v17, %v7597_v18  ;;  %v9616_v17 = vld [vmem:[#allocation16 + $0x22c] sm:$0xf]  ;;  %v7789_v18 = vld [vmem:[#allocation16 + $0x238] sm:$0xf0]  ;;  %v9683_v3 = vld [vmem:[#allocation18 + $0x140] sm:$0xf0] }
 0x9f2   : > { %v2108_v1 = vsub.f32 1.5, %v2107_v20  ;;  %v7725_v20 = vld [vmem:[#allocation16 + $0x1b8] sm:$0xf0] }
 0x9f3   : > { %v11324_v44 = vadd.f32 %v2134_v29, %v2127_v50  ;;  %v11326_v45 = vadd.f32 %v2135_v31, %v2128_v11  ;;  %v7728_v6 = vor.u32 %v9600_v19, %v7725_v20  ;;  %v9628_v50 = vld [vmem:[#allocation16 + $0x28c] sm:$0xf]  ;;  %v7837_v11 = vld [vmem:[#allocation16 + $0x298] sm:$0xf0]  ;;  %v7788_v19 = vor.u32 %v9618_v7, %v7787_v35  ;;  %v7927_v35 = vld [vmem:[#allocation18 + $0x48] sm:$0xf] }
 0x9f4   : > { %v2109_v25 = vmul.f32 %v10242_v12, %v2108_v1  ;;  %v7835_v1 = vld [vmem:[#allocation16 + $0x288] sm:$0xf]  ;;  %v9653_v7 = vld [vmem:[#allocation18 + $0x50] sm:$0xf0] }
 0x9f6   : > { %v2113_v32 = vsel %vm2112_vm2, %v10242_v12, %v2109_v25  ;;  %v9634_v12 = vld [vmem:[#allocation16 + $0x2b4] sm:$0xf0]  ;;  %v9564_v25 = vld [vmem:[#allocation16 + $0x8c] sm:$0xf] }
 0x9f7   : > { %v2117_v28 = vmul.f32 %v2113_v32, %v11303_v26  ;;  %v2118_v40 = vmul.f32 %v2113_v32, %v11306_v27  ;;  %v2119_v21 = vmul.f32 %v2113_v32, %v11310_v30  ;;  %v11332_v27 = vadd.f32 %v2136_v51, %v2129_v34  ;;  %v7709_v32 = vld [vmem:[#allocation16 + $0x198] sm:$0xf0] }
 0x9f8   : > { %v7852_v15 = vor.u32 %v9634_v12, %v7851_v62  ;;  %v9552_v62 = vld [vmem:[#allocation16 + $0x2c] sm:$0xf]  ;;  %v7533_v12 = vld [vmem:[#allocation16 + $0x38] sm:$0xf0] }
 0x9f9   : > { %v2130_v53 = vmul.f32 %v2121_v22, %v2117_v28  ;;  %v2131_v41 = vmul.f32 %v2122_v39, %v2118_v40  ;;  %v2132_v23 = vmul.f32 %v2123_v24, %v2119_v21  ;;  %v9632_v22 = vld [vmem:[#allocation16 + $0x2ac] sm:$0xf]  ;;  %v7853_v39 = vld [vmem:[#allocation16 + $0x2b8] sm:$0xf0]  ;;  %v7819_v40 = vld [vmem:[#allocation16 + $0x268] sm:$0xf]  ;;  %v7536_v20 = vor.u32 %v9552_v62, %v7533_v12 }
 0x9fa   : > { %v7856_v24 = vor.u32 %v9632_v22, %v7853_v39  ;;  %v9626_v21 = vld [vmem:[#allocation16 + $0x274] sm:$0xf0]  ;;  %v7771_v22 = vld [vmem:[#allocation16 + $0x208] sm:$0xf]  ;;  %v7915_v62 = vld [vmem:[#allocation18 + $0x30] sm:$0xf] }
 0x9fb   : > { %v11328_v54 = vadd.f32 %v2134_v29, %v2130_v53  ;;  %v11330_v26 = vadd.f32 %v2135_v31, %v2131_v41  ;;  %v11334_v30 = vadd.f32 %v2136_v51, %v2132_v23  ;;  %v7581_v29 = vld [vmem:[#allocation16 + $0x98] sm:$0xf0]  ;;  %v9596_v31 = vld [vmem:[#allocation16 + $0x18c] sm:$0xf]  ;;  %v7836_v51 = vor.u32 %v9630_v2, %v7835_v1  ;;  %v9614_v39 = vld [vmem:[#allocation16 + $0x214] sm:$0xf0] }
 0x9fc   : > { %v7584_v28 = vor.u32 %v9564_v25, %v7581_v29  ;;  %v7712_v34 = vor.u32 %v9596_v31, %v7709_v32  ;;  %v7840_v53 = vor.u32 %v9628_v50, %v7837_v11  ;;  %v9560_v41 = vld [vmem:[#allocation16 + $0x6c] sm:$0xf]  ;;  %v7565_v23 = vld [vmem:[#allocation16 + $0x78] sm:$0xf0]  ;;  %v7820_v52 = vor.u32 %v9626_v21, %v7819_v40  ;;  %v7975_v31 = vld [vmem:[#allocation18 + $0xa8] sm:$0xf] }
 0x9fd   : > { %v11338_v60 = vpack.c.bf16 %v11328_v54, %v11324_v44  ;;  %v11342_v16 = vpack.c.bf16 %v11330_v26, %v11326_v45  ;;  %v11346_v63 = vpack.c.bf16 %v11334_v30, %v11332_v27  ;;  %v7568_v55 = vor.u32 %v9560_v41, %v7565_v23  ;;  %v7517_v2 = vld [vmem:[#allocation16 + $0x18] sm:$0xf0]  ;;  %v9612_v25 = vld [vmem:[#allocation16 + $0x20c] sm:$0xf]  ;;  %v9665_v32 = vld [vmem:[#allocation18 + $0xb0] sm:$0xf0] }
 0x9fe   : > { %v7792_v1 = vor.u32 %v9616_v17, %v7789_v18  ;;  %v7773_v29 = vld [vmem:[#allocation16 + $0x218] sm:$0xf0]  ;;  %v8071_v50 = vld [vmem:[#allocation18 + $0x168] sm:$0xf]  ;;  %v9689_v11 = vld [vmem:[#allocation18 + $0x170] sm:$0xf0] }
 0x9ff   : > { %2743 = vmatmul.bf16.vlgmr.msrb.gmra.mxu2 %v11338_v60  ;;  %2757 = vmatmul.bf16.vlgmr.msrb.gmra.mxu3 %v11342_v16  ;;  %v7776_v21 = vor.u32 %v9612_v25, %v7773_v29  ;;  %v8072_v41 = vor.u32 %v9689_v11, %v8071_v50  ;;  %v8167_v23 = vld [vmem:[#allocation18 + $0x228] sm:$0xf]  ;;  %v9650_v12 = vld [vmem:[#allocation18 + $0x38] sm:$0xf0]  ;;  %v9647_v17 = vld [vmem:[#allocation18 + $0x20] sm:$0xf0] }
 0xa00   : > { %2771 = vmatmul.bf16.vlgmr.msrb.gmra.mxu0 %v11346_v63  ;;  %2785 = vmatmul.bf16.vlgmr.msra.gmra.mxu1 %v11338_v60  ;;  %v9737_v25 = vld [vmem:[#allocation18 + $0x2f0] sm:$0xf0]  ;;  %v8011_v50 = vld [vmem:[#allocation18 + $0xf0] sm:$0xf] }
 0xa01   : > { %2847 = vmatpush.bf16.msrb.mxu2 %v7884_v42  ;;  %2861 = vmatpush.bf16.msrb.mxu3 %v7632_v0  ;;  %v7696_v42 = vor.u32 %v9592_v37, %v7693_v38  ;;  %v7824_v0 = vor.u32 %v9624_v46, %v7821_v49  ;;  %v9713_v37 = vld [vmem:[#allocation18 + $0x230] sm:$0xf0]  ;;  %v9662_v38 = vld [vmem:[#allocation18 + $0x98] sm:$0xf0]  ;;  %v8059_v46 = vld [vmem:[#allocation18 + $0x150] sm:$0xf] }
 0xa02   : > { %2875 = vmatpush.bf16.msrb.mxu0 %v7760_v4  ;;  %2889 = vmatpush.bf16.msra.mxu1 %v7888_v56  ;;  %v9588_v4 = vld [vmem:[#allocation16 + $0x14c] sm:$0xf]  ;;  %v7677_v56 = vld [vmem:[#allocation16 + $0x158] sm:$0xf0]  ;;  %v9661_v29 = vld [vmem:[#allocation18 + $0x94] sm:$0xf] }
 0xa03   : > { %v9686_v49 = vld [vmem:[#allocation18 + $0x158] sm:$0xf0] }
 0xa04   : > { %v8060_v59 = vor.u32 %v9686_v49, %v8059_v46  ;;  %v7999_v49 = vld [vmem:[#allocation18 + $0xd8] sm:$0xf] }
 0xa05   : > { %2848 = vmatpush.bf16.msrb.mxu2 %v7868_v9  ;;  %2862 = vmatpush.bf16.msrb.mxu3 %v7616_v8  ;;  %v7680_v9 = vor.u32 %v9588_v4, %v7677_v56  ;;  %v7808_v8 = vor.u32 %v9620_v43, %v7805_v5  ;;  %v7939_v4 = vld [vmem:[#allocation18 + $0x60] sm:$0xf]  ;;  %v9656_v43 = vld [vmem:[#allocation18 + $0x68] sm:$0xf0] }
 0xa06   : > { %2876 = vmatpush.bf16.msrb.mxu0 %v7744_v13  ;;  %2890 = vmatpush.bf16.msra.mxu1 %v7872_v14  ;;  %v9584_v13 = vld [vmem:[#allocation16 + $0x12c] sm:$0xf]  ;;  %v7661_v14 = vld [vmem:[#allocation16 + $0x138] sm:$0xf0]  ;;  %v8035_v5 = vld [vmem:[#allocation18 + $0x120] sm:$0xf] }
 0xa09   : > { %2849 = vmatpush.bf16.msrb.mxu2 %v7852_v15  ;;  %2863 = vmatpush.bf16.msrb.mxu3 %v7600_v61  ;;  %v9548_v15 = vld [vmem:[#allocation16 + $0xc] sm:$0xf]  ;;  %v7664_v61 = vor.u32 %v9584_v13, %v7661_v14  ;;  %v7916_v13 = vor.u32 %v9650_v12, %v7915_v62  ;;  %v7903_v14 = vld [vmem:[#allocation18 + $0x18] sm:$0xf] }
 0xa0a   : > { %2877 = vmatpush.bf16.msrb.mxu0 %v7728_v6  ;;  %2891 = vmatpush.bf16.msra.mxu1 %v7856_v24  ;;  %v9580_v6 = vld [vmem:[#allocation16 + $0x10c] sm:$0xf]  ;;  %v7645_v24 = vld [vmem:[#allocation16 + $0x118] sm:$0xf0]  ;;  %v7904_v18 = vor.u32 %v9647_v17, %v7903_v14 }
 0xa0b   : > { %v7648_v40 = vor.u32 %v9580_v6, %v7645_v24  ;;  %v8263_v6 = vld [vmem:[#allocation18 + $0x2e8] sm:$0xf]  ;;  %v9728_v62 = vld [vmem:[#allocation18 + $0x2a8] sm:$0xf0] }
 0xa0c   : > { %v9652_v12 = vld [vmem:[#allocation18 + $0x4c] sm:$0xf] }
 0xa0d   : > { %2850 = vmatpush.bf16.msrb.mxu2 %v7836_v51  ;;  %2864 = vmatpush.bf16.msrb.mxu3 %v7584_v28  ;;  %v7772_v51 = vor.u32 %v9614_v39, %v7771_v22  ;;  %v7520_v28 = vor.u32 %v9548_v15, %v7517_v2  ;;  %v9664_v22 = vld [vmem:[#allocation18 + $0xac] sm:$0xf]  ;;  %v7977_v39 = vld [vmem:[#allocation18 + $0xb4] sm:$0xf0]  ;;  %v9710_v2 = vld [vmem:[#allocation18 + $0x218] sm:$0xf0] }
 0xa0e   : > { %2878 = vmatpush.bf16.msrb.mxu0 %v7712_v34  ;;  %2892 = vmatpush.bf16.msra.mxu1 %v7840_v53  ;;  %v7976_v34 = vor.u32 %v9665_v32, %v7975_v31  ;;  %v7963_v53 = vld [vmem:[#allocation18 + $0x90] sm:$0xf]  ;;  %v8264_v31 = vor.u32 %v9737_v25, %v8263_v6  ;;  %v7965_v32 = vld [vmem:[#allocation18 + $0x9c] sm:$0xf0] }
 0xa0f   : > { %2799 = vmatmul.bf16.vlgmr.msra.gmra.mxu2 %v11342_v16  ;;  %2813 = vmatmul.bf16.vlgmr.msra.gmra.mxu3 %v11346_v63  ;;  %v7968_v11 = vor.u32 %v9661_v29, %v7965_v32  ;;  %v7917_v6 = vld [vmem:[#allocation18 + $0x3c] sm:$0xf0]  ;;  %v9682_v29 = vld [vmem:[#allocation18 + $0x13c] sm:$0xf] }
 0xa10   : > { %2827 = vmatmul.bf16.vlgmr.msra.gmra.mxu0 %v11338_v60  ;;  %2841 = vmatmul.bf16.vlgmr.msrb.gmra.mxu1 %v11342_v16 }
 0xa11   : > { %2851 = vmatpush.bf16.msrb.mxu2 %v7820_v52  ;;  %2865 = vmatpush.bf16.msrb.mxu3 %v7568_v55  ;;  %v8168_v52 = vor.u32 %v9713_v37, %v8167_v23  ;;  %v7964_v55 = vor.u32 %v9662_v38, %v7963_v53  ;;  %v8251_v53 = vld [vmem:[#allocation18 + $0x2d0] sm:$0xf]  ;;  %v9658_v23 = vld [vmem:[#allocation18 + $0x7c] sm:$0xf]  ;;  %v7953_v38 = vld [vmem:[#allocation18 + $0x84] sm:$0xf0] }
 0xa12   : > { %2879 = vmatpush.bf16.msrb.mxu0 %v7696_v42  ;;  %2893 = vmatpush.bf16.msra.mxu1 %v7824_v0  ;;  %v9659_v42 = vld [vmem:[#allocation18 + $0x80] sm:$0xf0]  ;;  %v8047_v0 = vld [vmem:[#allocation18 + $0x138] sm:$0xf]  ;;  %v7956_v46 = vor.u32 %v9658_v23, %v7953_v38 }
 0xa13   : > { %v7952_v10 = vor.u32 %v9659_v42, %v7951_v58  ;;  %v8048_v56 = vor.u32 %v9683_v3, %v8047_v0  ;;  %v8131_v58 = vld [vmem:[#allocation18 + $0x1e0] sm:$0xf]  ;;  %v8239_v42 = vld [vmem:[#allocation18 + $0x2b8] sm:$0xf]  ;;  %v9731_v3 = vld [vmem:[#allocation18 + $0x2c0] sm:$0xf0] }
 0xa14   : > { %v9679_v23 = vld [vmem:[#allocation18 + $0x124] sm:$0xf] }
 0xa15   : > { %2852 = vmatpush.bf16.msrb.mxu2 %v7804_v36  ;;  %2866 = vmatpush.bf16.msrb.mxu3 %v7552_v33  ;;  %v9680_v36 = vld [vmem:[#allocation18 + $0x128] sm:$0xf0]  ;;  %v7940_v33 = vor.u32 %v9656_v43, %v7939_v4  ;;  %v7941_v4 = vld [vmem:[#allocation18 + $0x6c] sm:$0xf0] }
 0xa16   : > { %2880 = vmatpush.bf16.msrb.mxu0 %v7680_v9  ;;  %2894 = vmatpush.bf16.msra.mxu1 %v7808_v8  ;;  %v8023_v9 = vld [vmem:[#allocation18 + $0x108] sm:$0xf]  ;;  %v9677_v8 = vld [vmem:[#allocation18 + $0x110] sm:$0xf0] }
 0xa19   : > { %2853 = vmatpush.bf16.msrb.mxu2 %v7788_v19  ;;  %2867 = vmatpush.bf16.msrb.mxu3 %v7536_v20  ;;  %v7891_v19 = vld [vmem:[#allocation18] sm:$0xf]  ;;  %v9644_v20 = vld [vmem:[#allocation18 + $0x8] sm:$0xf0] }
 0xa1a   : > { %2881 = vmatpush.bf16.msrb.mxu0 %v7664_v61  ;;  %2895 = vmatpush.bf16.msra.mxu1 %v7792_v1  ;;  %v7892_v15 = vor.u32 %v9644_v20, %v7891_v19  ;;  %v7980_v61 = vor.u32 %v9664_v22, %v7977_v39  ;;  %v8155_v1 = vld [vmem:[#allocation18 + $0x210] sm:$0xf]  ;;  %v8061_v19 = vld [vmem:[#allocation18 + $0x15c] sm:$0xf0]  ;;  %v9698_v39 = vld [vmem:[#allocation18 + $0x1b8] sm:$0xf0] }
 0xa1b   : > { %v8156_v24 = vor.u32 %v9710_v2, %v8155_v1  ;;  %v8107_v22 = vld [vmem:[#allocation18 + $0x1b0] sm:$0xf]  ;;  %v9725_v1 = vld [vmem:[#allocation18 + $0x290] sm:$0xf0] }
 0xa1c   : > { %v9649_v2 = vld [vmem:[#allocation18 + $0x34] sm:$0xf] }
 0xa1d   : > { %2854 = vmatpush.bf16.msrb.mxu2 %v7772_v51  ;;  %2868 = vmatpush.bf16.msrb.mxu3 %v7520_v28  ;;  %v9674_v51 = vld [vmem:[#allocation18 + $0xf8] sm:$0xf0]  ;;  %v8143_v28 = vld [vmem:[#allocation18 + $0x1f8] sm:$0xf]  ;;  %v7920_v25 = vor.u32 %v9649_v2, %v7917_v6  ;;  %v8001_v2 = vld [vmem:[#allocation18 + $0xe4] sm:$0xf0] }
 0xa1e   : > { %2882 = vmatpush.bf16.msrb.mxu0 %v7648_v40  ;;  %2896 = vmatpush.bf16.msra.mxu1 %v7776_v21  ;;  %v9707_v40 = vld [vmem:[#allocation18 + $0x200] sm:$0xf0]  ;;  %v8012_v21 = vor.u32 %v9674_v51, %v8011_v50  ;;  %v8095_v50 = vld [vmem:[#allocation18 + $0x198] sm:$0xf]  ;;  %v8203_v51 = vld [vmem:[#allocation18 + $0x270] sm:$0xf] }
 0xa1f   : > { %v11365_v6 = vld [vmem:[%s11810_s16] sm:$0xf] }
 0xa20   : > { %2855 = vmatmul.bf16.vlgmr.msrb.gmra.mxu2 %v11346_v63  ;;  %2869 = vmatmul.bf16.vlgmr.msrb.gmra.mxu3 %v11338_v60  ;;  %v8036_v60 = vor.u32 %v9680_v36, %v8035_v5  ;;  %v7987_v5 = vld [vmem:[#allocation18 + $0xc0] sm:$0xf]  ;;  %v9668_v36 = vld [vmem:[#allocation18 + $0xc8] sm:$0xf0] }
 0xa21   : > { %3563 = vmatpush.bf16.msra.mxu2 %v7976_v34  ;;  %3577 = vmatpush.bf16.msra.mxu3 %v8072_v41  ;;  %v8144_v34 = vor.u32 %v9707_v40, %v8143_v28  ;;  %v9734_v41 = vld [vmem:[#allocation18 + $0x2d8] sm:$0xf0] }
 0xa22   : > { %2883 = vmatmul.bf16.vlgmr.msrb.gmra.mxu0 %v11342_v16  ;;  %2897 = vmatmul.bf16.vlgmr.msra.gmra.mxu1 %v11346_v63  ;;  %v7928_v16 = vor.u32 %v9653_v7, %v7927_v35  ;;  %v8024_v63 = vor.u32 %v9677_v8, %v8023_v9  ;;  %v8252_v37 = vor.u32 %v9734_v41, %v8251_v53  ;;  %v9688_v35 = vld [vmem:[#allocation18 + $0x16c] sm:$0xf]  ;;  %v8119_v9 = vld [vmem:[#allocation18 + $0x1c8] sm:$0xf]  ;;  %v9701_v8 = vld [vmem:[#allocation18 + $0x1d0] sm:$0xf0] }
 0xa23   : > { %3591 = vmatpush.bf16.msra.mxu0 %v8168_v52  ;;  %3605 = vmatpush.bf16.msrb.mxu1 %v8264_v31  ;;  %v9671_v52 = vld [vmem:[#allocation18 + $0xe0] sm:$0xf0]  ;;  %v8049_v31 = vld [vmem:[#allocation18 + $0x144] sm:$0xf0]  ;;  %v9722_v40 = vld [vmem:[#allocation18 + $0x278] sm:$0xf0] }
 0xa24   : > { %v8052_v32 = vor.u32 %v9682_v29, %v8049_v31  ;;  %v8204_v53 = vor.u32 %v9722_v40, %v8203_v51  ;;  %v8133_v29 = vld [vmem:[#allocation18 + $0x1ec] sm:$0xf0]  ;;  %v9730_v31 = vld [vmem:[#allocation18 + $0x2bc] sm:$0xf] }
 0xa25   : > { %3564 = vmatpush.bf16.msra.mxu2 %v7964_v55  ;;  %3578 = vmatpush.bf16.msra.mxu3 %v8060_v59  ;;  %v8000_v55 = vor.u32 %v9671_v52, %v7999_v49  ;;  %v9704_v59 = vld [vmem:[#allocation18 + $0x1e8] sm:$0xf0]  ;;  %v8191_v52 = vld [vmem:[#allocation18 + $0x258] sm:$0xf] }
 0xa26   : > { %v8132_v0 = vor.u32 %v9704_v59, %v8131_v58  ;;  %v9692_v49 = vld [vmem:[#allocation18 + $0x188] sm:$0xf0]  ;;  %v9719_v58 = vld [vmem:[#allocation18 + $0x260] sm:$0xf0] }
 0xa27   : > { %3592 = vmatpush.bf16.msra.mxu0 %v8156_v24  ;;  %3606 = vmatpush.bf16.msrb.mxu1 %v8252_v37  ;;  %v8037_v37 = vld [vmem:[#allocation18 + $0x12c] sm:$0xf0]  ;;  %v9643_v59 = vld [vmem:[#allocation18 + $0x4] sm:$0xf] }
 0xa28   : > { %v8040_v38 = vor.u32 %v9679_v23, %v8037_v37  ;;  %v8121_v23 = vld [vmem:[#allocation18 + $0x1d4] sm:$0xf0]  ;;  %v9727_v37 = vld [vmem:[#allocation18 + $0x2a4] sm:$0xf] }
 0xa29   : > { %3565 = vmatpush.bf16.msra.mxu2 %v7952_v10  ;;  %3579 = vmatpush.bf16.msra.mxu3 %v8048_v56  ;;  %v9655_v10 = vld [vmem:[#allocation18 + $0x64] sm:$0xf]  ;;  %v8240_v56 = vor.u32 %v9731_v3, %v8239_v42  ;;  %v7893_v42 = vld [vmem:[#allocation18 + $0xc] sm:$0xf0] }
 0xa2a   : > { %v7944_v43 = vor.u32 %v9655_v10, %v7941_v4  ;;  %v7896_v3 = vor.u32 %v9643_v59, %v7893_v42  ;;  %v9712_v10 = vld [vmem:[#allocation18 + $0x22c] sm:$0xf]  ;;  %v8169_v4 = vld [vmem:[#allocation18 + $0x234] sm:$0xf0]  ;;  %v9697_v59 = vld [vmem:[#allocation18 + $0x1b4] sm:$0xf] }
 0xa2b   : > { %3593 = vmatpush.bf16.msra.mxu0 %v8144_v34  ;;  %3607 = vmatpush.bf16.msrb.mxu1 %v8240_v56  ;;  %v7905_v34 = vld [vmem:[#allocation18 + $0x24] sm:$0xf0]  ;;  %v8172_v56 = vor.u32 %v9712_v10, %v8169_v4  ;;  %v8109_v42 = vld [vmem:[#allocation18 + $0x1bc] sm:$0xf0]  ;;  %v8217_v4 = vld [vmem:[#allocation18 + $0x294] sm:$0xf0] }
 0xa2c   : > { %v8112_v10 = vor.u32 %v9697_v59, %v8109_v42 }
 0xa2d   : > { %3566 = vmatpush.bf16.msra.mxu2 %v7940_v33  ;;  %3580 = vmatpush.bf16.msra.mxu3 %v8036_v60  ;;  %v7988_v33 = vor.u32 %v9668_v36, %v7987_v5  ;;  %v8073_v60 = vld [vmem:[#allocation18 + $0x174] sm:$0xf0] }
 0xa2e   : > { %v8076_v7 = vor.u32 %v9688_v35, %v8073_v60  ;;  %v8025_v5 = vld [vmem:[#allocation18 + $0x114] sm:$0xf0]  ;;  %v9716_v35 = vld [vmem:[#allocation18 + $0x248] sm:$0xf0] }
 0xa2f   : > { %3594 = vmatpush.bf16.msra.mxu0 %v8132_v0  ;;  %v8192_v0 = vor.u32 %v9719_v58, %v8191_v52  ;;  %v8229_v52 = vld [vmem:[#allocation18 + $0x2ac] sm:$0xf0] }
 0xa31   : > { %3567 = vmatpush.bf16.msra.mxu2 %v7928_v16  ;;  %3581 = vmatpush.bf16.msra.mxu3 %v8024_v63  ;;  %v8227_v16 = vld [vmem:[#allocation18 + $0x2a0] sm:$0xf]  ;;  %v8120_v63 = vor.u32 %v9701_v8, %v8119_v9  ;;  %v9736_v8 = vld [vmem:[#allocation18 + $0x2ec] sm:$0xf] }
 0xa32   : > { %v8228_v14 = vor.u32 %v9728_v62, %v8227_v16  ;;  %v8157_v9 = vld [vmem:[#allocation18 + $0x21c] sm:$0xf0] }
 0xa33   : > { %3595 = vmatpush.bf16.msra.mxu0 %v8120_v63  ;;  %v8265_v63 = vld [vmem:[#allocation18 + $0x2f4] sm:$0xf0] }
 0xa34   : > { %3608 = vmatpush.bf16.msrb.mxu1 %v8228_v14  ;;  %v8268_v62 = vor.u32 %v9736_v8, %v8265_v63 }
 0xa35   : > { %3568 = vmatpush.bf16.msra.mxu2 %v7916_v13  ;;  %3582 = vmatpush.bf16.msra.mxu3 %v8012_v21  ;;  %v7929_v13 = vld [vmem:[#allocation18 + $0x54] sm:$0xf0]  ;;  %v9646_v21 = vld [vmem:[#allocation18 + $0x1c] sm:$0xf] }
 0xa36   : > { %v7932_v17 = vor.u32 %v9652_v12, %v7929_v13  ;;  %v7908_v41 = vor.u32 %v9646_v21, %v7905_v34  ;;  %v9673_v12 = vld [vmem:[#allocation18 + $0xf4] sm:$0xf]  ;;  %v8013_v13 = vld [vmem:[#allocation18 + $0xfc] sm:$0xf0]  ;;  %v9667_v21 = vld [vmem:[#allocation18 + $0xc4] sm:$0xf] }
 0xa37   : > { %v8016_v14 = vor.u32 %v9673_v12, %v8013_v13  ;;  %v7989_v34 = vld [vmem:[#allocation18 + $0xcc] sm:$0xf0] }
 0xa38   : > { %v7983_v13 = vld [vmem:[#allocation18 + $0xb0] sm:$0xf] }
 0xa39   : > { %3569 = vmatpush.bf16.msra.mxu2 %v7904_v18  ;;  %3583 = vmatpush.bf16.msra.mxu3 %v8000_v55  ;;  %v9685_v18 = vld [vmem:[#allocation18 + $0x154] sm:$0xf] }
 0xa3a   : > { %v8064_v20 = vor.u32 %v9685_v18, %v8061_v19  ;;  %v8145_v18 = vld [vmem:[#allocation18 + $0x204] sm:$0xf0]  ;;  %v9733_v19 = vld [vmem:[#allocation18 + $0x2d4] sm:$0xf] }
 0xa3d   : > { %3570 = vmatpush.bf16.msra.mxu2 %v7892_v15  ;;  %3584 = vmatpush.bf16.msra.mxu3 %v7988_v33  ;;  %v8215_v15 = vld [vmem:[#allocation18 + $0x288] sm:$0xf]  ;;  %v8179_v33 = vld [vmem:[#allocation18 + $0x240] sm:$0xf] }
 0xa3e   : > { %v8216_v24 = vor.u32 %v9725_v1, %v8215_v15  ;;  %v8180_v60 = vor.u32 %v9716_v35, %v8179_v33  ;;  %v8253_v15 = vld [vmem:[#allocation18 + $0x2dc] sm:$0xf0]  ;;  %v9670_v1 = vld [vmem:[#allocation18 + $0xdc] sm:$0xf]  ;;  %v8097_v35 = vld [vmem:[#allocation18 + $0x1a4] sm:$0xf0] }
 0xa3f   : > { %v9694_v33 = vld [vmem:[#allocation18 + $0x19c] sm:$0xf] }
 0xa40   : > { %3609 = vmatpush.bf16.msrb.mxu1 %v8216_v24  ;;  %v8004_v24 = vor.u32 %v9670_v1, %v8001_v2  ;;  %v8100_v8 = vor.u32 %v9694_v33, %v8097_v35  ;;  %v8193_v2 = vld [vmem:[#allocation18 + $0x264] sm:$0xf0]  ;;  %v9654_v33 = vld [vmem:[#allocation18 + $0x58] sm:$0xf0] }
 0xa41   : > { %3619 = vmatpush.bf16.msrb.mxu2 %v7980_v61  ;;  %3633 = vmatpush.bf16.msrb.mxu3 %v8076_v7  ;;  %v8108_v61 = vor.u32 %v9698_v39, %v8107_v22  ;;  %v9709_v7 = vld [vmem:[#allocation18 + $0x214] sm:$0xf] }
 0xa42   : > { %v8160_v16 = vor.u32 %v9709_v7, %v8157_v9 }
 0xa43   : > { %3596 = vmatpush.bf16.msra.mxu0 %v8108_v61  ;;  %v8256_v61 = vor.u32 %v9733_v19, %v8253_v15  ;;  %v9718_v19 = vld [vmem:[#allocation18 + $0x25c] sm:$0xf] }
 0xa44   : > { %3610 = vmatpush.bf16.msrb.mxu1 %v8204_v53  ;;  %v7992_v53 = vor.u32 %v9667_v21, %v7989_v34 }
 0xa45   : > { %3620 = vmatpush.bf16.msrb.mxu2 %v7968_v11  ;;  %3634 = vmatpush.bf16.msrb.mxu3 %v8064_v20  ;;  %v9695_v11 = vld [vmem:[#allocation18 + $0x1a0] sm:$0xf0] }
 0xa46   : > { %v8096_v28 = vor.u32 %v9695_v11, %v8095_v50  ;;  %v8241_v11 = vld [vmem:[#allocation18 + $0x2c4] sm:$0xf0] }
 0xa47   : > { %v8244_v40 = vor.u32 %v9730_v31, %v8241_v11  ;;  %v8196_v31 = vor.u32 %v9718_v19, %v8193_v2  ;;  %v9663_v11 = vld [vmem:[#allocation18 + $0xa0] sm:$0xf0] }
 0xa48   : > { %3597 = vmatpush.bf16.msra.mxu0 %v8096_v28  ;;  %3611 = vmatpush.bf16.msrb.mxu1 %v8192_v0  ;;  %v9724_v0 = vld [vmem:[#allocation18 + $0x28c] sm:$0xf] }
 0xa49   : > { %3621 = vmatpush.bf16.msrb.mxu2 %v7956_v46  ;;  %3635 = vmatpush.bf16.msrb.mxu3 %v8052_v32  ;;  %v8083_v46 = vld [vmem:[#allocation18 + $0x180] sm:$0xf]  ;;  %v2247_v32 = vperm.slane %v11365_v6, 0 }
 0xa4a   : > { %v8084_v55 = vor.u32 %v9692_v49, %v8083_v46 }
 0xa4c   : > { %3598 = vmatpush.bf16.msra.mxu0 %v8084_v55  ;;  %3612 = vmatpush.bf16.msrb.mxu1 %v8180_v60  ;;  %v8232_v55 = vor.u32 %v9727_v37, %v8229_v52  ;;  %v9721_v60 = vld [vmem:[#allocation18 + $0x274] sm:$0xf] }
 0xa4d   : > { %3622 = vmatpush.bf16.msrb.mxu2 %v7944_v43  ;;  %3636 = vmatpush.bf16.msrb.mxu3 %v8040_v38  ;;  %v9676_v43 = vld [vmem:[#allocation18 + $0x10c] sm:$0xf] }
 0xa4e   : > { %v8028_v36 = vor.u32 %v9676_v43, %v8025_v5  ;;  %v8220_v5 = vor.u32 %v9724_v0, %v8217_v4  ;;  %v7947_v0 = vld [vmem:[#allocation18 + $0x68] sm:$0xf]  ;;  %v9690_v4 = vld [vmem:[#allocation18 + $0x178] sm:$0xf0] }
 0xa50   : > { %3647 = vmatpush.bf16.msrb.mxu0 %v8172_v56  ;;  %3661 = vmatpush.bf16.msra.mxu1 %v8268_v62 }
 0xa51   : > { %3623 = vmatpush.bf16.msrb.mxu2 %v7932_v17  ;;  %3637 = vmatpush.bf16.msrb.mxu3 %v8028_v36  ;;  %v9706_v17 = vld [vmem:[#allocation18 + $0x1fc] sm:$0xf] }
 0xa52   : > { %v8148_v39 = vor.u32 %v9706_v17, %v8145_v18  ;;  %v9691_v17 = vld [vmem:[#allocation18 + $0x184] sm:$0xf]  ;;  %v8085_v18 = vld [vmem:[#allocation18 + $0x18c] sm:$0xf0] }
 0xa54   : > { %3648 = vmatpush.bf16.msrb.mxu0 %v8160_v16  ;;  %3662 = vmatpush.bf16.msra.mxu1 %v8256_v61  ;;  %v8205_v16 = vld [vmem:[#allocation18 + $0x27c] sm:$0xf0] }
 0xa55   : > { %3624 = vmatpush.bf16.msrb.mxu2 %v7920_v25  ;;  %3638 = vmatpush.bf16.msrb.mxu3 %v8016_v14  ;;  %v9703_v25 = vld [vmem:[#allocation18 + $0x1e4] sm:$0xf]  ;;  %v8208_v62 = vor.u32 %v9721_v60, %v8205_v16  ;;  %v9666_v14 = vld [vmem:[#allocation18 + $0xb8] sm:$0xf0]  ;;  %v2250_v16 = vperm.slane %v11365_v6, 3 }
 0xa56   : > { %v8136_v50 = vor.u32 %v9703_v25, %v8133_v29  ;;  %v7984_v29 = vor.u32 %v9666_v14, %v7983_v13  ;;  %v7923_v14 = vld [vmem:[#allocation18 + $0x38] sm:$0xf] }
 0xa58   : > { %3649 = vmatpush.bf16.msrb.mxu0 %v8148_v39  ;;  %3663 = vmatpush.bf16.msra.mxu1 %v8244_v40  ;;  %v2248_v39 = vperm.slane %v11365_v6, 1 }
 0xa59   : > { %3625 = vmatpush.bf16.msrb.mxu2 %v7908_v41  ;;  %3639 = vmatpush.bf16.msrb.mxu3 %v8004_v24  ;;  %v9700_v41 = vld [vmem:[#allocation18 + $0x1cc] sm:$0xf] }
 0xa5a   : > { %v8124_v49 = vor.u32 %v9700_v41, %v8121_v23  ;;  %v7959_v41 = vld [vmem:[#allocation18 + $0x80] sm:$0xf]  ;;  %v9660_v23 = vld [vmem:[#allocation18 + $0x88] sm:$0xf0] }
 0xa5b   : > { %v7960_v52 = vor.u32 %v9660_v23, %v7959_v41 }
 0xa5c   : > { %3650 = vmatpush.bf16.msrb.mxu0 %v8136_v50  ;;  %3664 = vmatpush.bf16.msra.mxu1 %v8232_v55  ;;  %v7971_v50 = vld [vmem:[#allocation18 + $0x98] sm:$0xf] }
 0xa5d   : > { %3626 = vmatpush.bf16.msrb.mxu2 %v7896_v3  ;;  %3640 = vmatpush.bf16.msrb.mxu3 %v7992_v53  ;;  %v7972_v34 = vor.u32 %v9663_v11, %v7971_v50  ;;  %v8043_v50 = vld [vmem:[#allocation18 + $0x128] sm:$0xf]  ;;  %v9681_v11 = vld [vmem:[#allocation18 + $0x130] sm:$0xf0] }
 0xa60   : > { %3651 = vmatpush.bf16.msrb.mxu0 %v8124_v49  ;;  %3665 = vmatpush.bf16.msra.mxu1 %v8220_v5 }
 0xa64   : > { %3652 = vmatpush.bf16.msrb.mxu0 %v8112_v10  ;;  %3666 = vmatpush.bf16.msra.mxu1 %v8208_v62  ;;  %v8079_v10 = vld [vmem:[#allocation18 + $0x170] sm:$0xf] }
 0xa65   : > { %v8080_v35 = vor.u32 %v9690_v4, %v8079_v10 }
 0xa68   : > { %3653 = vmatpush.bf16.msrb.mxu0 %v8100_v8  ;;  %3667 = vmatpush.bf16.msra.mxu1 %v8196_v31 }
 0xa7d   : > { %v2772_v20 = vpop.f32.mrf.mxu0  ;;  %v11360_v22 = vpop.f32.mrf.mxu1 }
 0xa7e   : > { %v2787_v40 = vadd.f32 %v11360_v22, %v2248_v39  ;;  %v9657_v22 = vld [vmem:[#allocation18 + $0x70] sm:$0xf0] }
 0xa82   : > { %v2744_v51 = vpop.f32.mrf.mxu2  ;;  %v2758_v28 = vpop.f32.mrf.mxu3 }
 0xa83   : > { %v2745_v38 = vadd.f32 %v2744_v51, %v2247_v32  ;;  %v9715_v51 = vld [vmem:[#allocation18 + $0x244] sm:$0xf] }
 0xa85   : > { %v2774_v46 = vpop.f32.mrf.mxu0  ;;  %v2788_v58 = vpop.f32.mrf.mxu1  ;;  %v2759_v3 = vadd.f32 %v2758_v28, %v2745_v38  ;;  %v8181_v28 = vld [vmem:[#allocation18 + $0x24c] sm:$0xf0] }
 0xa86   : > { %v8184_v21 = vor.u32 %v9715_v51, %v8181_v28  ;;  %v2789_v38 = vadd.f32 %v2788_v58, %v2248_v39  ;;  %v2249_v58 = vperm.slane %v11365_v6, 2 }
 0xa87   : > { %v2773_v7 = vadd.f32 %v2772_v20, %v2759_v3  ;;  %v8088_v20 = vor.u32 %v9691_v17, %v8085_v18  ;;  %v9651_v17 = vld [vmem:[#allocation18 + $0x40] sm:$0xf0] }
 0xa88   : > { %3668 = vmatpush.bf16.msra.mxu1 %v8184_v21  ;;  %v7924_v6 = vor.u32 %v9651_v17, %v7923_v14  ;;  %v7899_v21 = vld [vmem:[#allocation18 + $0x8] sm:$0xf] }
 0xa89   : > { %v2903_v15 = vmax.f32 %v2773_v7, 0.0  ;;  %3654 = vmatpush.bf16.msrb.mxu0 %v8088_v20  ;;  %v8067_v7 = vld [vmem:[#allocation18 + $0x158] sm:$0xf] }
 0xa8a   : > { %v2746_v56 = vpop.f32.mrf.mxu2  ;;  %v2760_v43 = vpop.f32.mrf.mxu3 }
 0xa8b   : > { %v2747_v36 = vadd.f32 %v2746_v56, %v2247_v32  ;;  %v7948_v56 = vor.u32 %v9657_v22, %v7947_v0 }
 0xa8d   : > { %v2761_v9 = vadd.f32 %v2760_v43, %v2747_v36  ;;  %v11368_v63 = vpop.f32.mrf.mxu0  ;;  %v11371_v1 = vpop.f32.mrf.mxu1  ;;  %v7935_v36 = vld [vmem:[#allocation18 + $0x50] sm:$0xf] }
 0xa8e   : > { %v7936_v62 = vor.u32 %v9654_v33, %v7935_v36  ;;  %v2829_v18 = vadd.f32 %v11368_v63, %v2249_v58  ;;  %v9711_v33 = vld [vmem:[#allocation18 + $0x220] sm:$0xf0] }
 0xa8f   : > { %v2775_v12 = vadd.f32 %v2774_v46, %v2761_v9  ;;  %v9687_v9 = vld [vmem:[#allocation18 + $0x160] sm:$0xf0] }
 0xa90   : > { %v8068_v19 = vor.u32 %v9687_v9, %v8067_v7  ;;  %v8019_v7 = vld [vmem:[#allocation18 + $0xf8] sm:$0xf]  ;;  %v9675_v9 = vld [vmem:[#allocation18 + $0x100] sm:$0xf0] }
 0xa91   : > { %v2907_v61 = vmax.f32 %v2775_v12, 0.0  ;;  %v8020_v17 = vor.u32 %v9675_v9, %v8019_v7 }
 0xa92   : > { %v2800_v24 = vpop.f32.mrf.mxu2  ;;  %v2814_v25 = vpop.f32.mrf.mxu3 }
 0xa93   : > { %v11373_v32 = vpack.c.bf16 %v2907_v61, %v2903_v15  ;;  %v2801_v53 = vadd.f32 %v2800_v24, %v2787_v40  ;;  %v8055_v15 = vld [vmem:[#allocation18 + $0x140] sm:$0xf]  ;;  %v9684_v61 = vld [vmem:[#allocation18 + $0x148] sm:$0xf0] }
 0xa94   : > { %v7911_v24 = vld [vmem:[#allocation18 + $0x20] sm:$0xf]  ;;  %v8056_v31 = vor.u32 %v9684_v61, %v8055_v15  ;;  %v9672_v61 = vld [vmem:[#allocation18 + $0xe8] sm:$0xf0] }
 0xa95   : > { %3571 = vmatmul.bf16.vlgmr.msra.gmra.mxu2 %v11373_v32  ;;  %v2830_v37 = vpop.f32.mrf.mxu0  ;;  %v2815_v55 = vadd.f32 %v2814_v25, %v2801_v53  ;;  %v2844_v59 = vpop.f32.mrf.mxu1  ;;  %v9648_v25 = vld [vmem:[#allocation18 + $0x28] sm:$0xf0]  ;;  %v8007_v15 = vld [vmem:[#allocation18 + $0xe0] sm:$0xf] }
 0xa96   : > { %3675 = vmatpush.bf16.msra.mxu2 %v7984_v29  ;;  %v2831_v20 = vadd.f32 %v2830_v37, %v2249_v58  ;;  %v2843_v29 = vadd.f32 %v11371_v1, %v2829_v18  ;;  %v7912_v40 = vor.u32 %v9648_v25, %v7911_v24  ;;  %v8271_v58 = vld [vmem:[#allocation18 + $0x2f0] sm:$0xf]  ;;  %v9708_v18 = vld [vmem:[#allocation18 + $0x208] sm:$0xf0]  ;;  %v8008_v24 = vor.u32 %v9672_v61, %v8007_v15  ;;  %v9705_v25 = vld [vmem:[#allocation18 + $0x1f0] sm:$0xf0] }
 0xa97   : > { %v2904_v43 = vmax.f32 %v2815_v55, 0.0  ;;  %v8031_v55 = vld [vmem:[#allocation18 + $0x110] sm:$0xf]  ;;  %v3043_v61 = vld [vmem:[#allocation19] sm:$0x7] }
 0xa98   : > { %v2845_v63 = vadd.f32 %v2844_v59, %v2831_v20 }
 0xa9a   : > { %v2802_v46 = vpop.f32.mrf.mxu2  ;;  %v2816_v49 = vpop.f32.mrf.mxu3  ;;  %3676 = vmatpush.bf16.msra.mxu2 %v7972_v34  ;;  %v9645_v34 = vld [vmem:[#allocation18 + $0x10] sm:$0xf0] }
 0xa9b   : > { %v2803_v42 = vadd.f32 %v2802_v46, %v2789_v38  ;;  %v8044_v38 = vor.u32 %v9681_v11, %v8043_v50  ;;  %v8175_v46 = vld [vmem:[#allocation18 + $0x230] sm:$0xf]  ;;  %v7995_v50 = vld [vmem:[#allocation18 + $0xc8] sm:$0xf]  ;;  %v9669_v11 = vld [vmem:[#allocation18 + $0xd0] sm:$0xf0] }
 0xa9d   : > { %v2817_v3 = vadd.f32 %v2816_v49, %v2803_v42  ;;  %v9714_v49 = vld [vmem:[#allocation18 + $0x238] sm:$0xf0] }
 0xa9e   : > { %3677 = vmatpush.bf16.msra.mxu2 %v7960_v52  ;;  %v7900_v52 = vor.u32 %v9645_v34, %v7899_v21  ;;  %v9678_v42 = vld [vmem:[#allocation18 + $0x118] sm:$0xf0]  ;;  %v8176_v4 = vor.u32 %v9714_v49, %v8175_v46  ;;  %v8235_v21 = vld [vmem:[#allocation18 + $0x2a8] sm:$0xf]  ;;  %v9729_v34 = vld [vmem:[#allocation18 + $0x2b0] sm:$0xf0] }
 0xa9f   : > { %v2908_v5 = vmax.f32 %v2817_v3, 0.0  ;;  %v2884_v8 = vpop.f32.mrf.mxu0  ;;  %v2898_v39 = vpop.f32.mrf.mxu1  ;;  %v8032_v36 = vor.u32 %v9678_v42, %v8031_v55  ;;  %v9726_v46 = vld [vmem:[#allocation18 + $0x298] sm:$0xf0]  ;;  %v9696_v55 = vld [vmem:[#allocation18 + $0x1a8] sm:$0xf0] }
 0xaa0   : > { %v8211_v42 = vld [vmem:[#allocation18 + $0x278] sm:$0xf] }
 0xaa1   : > { %v11378_v60 = vpack.c.bf16 %v2908_v5, %v2904_v43 }
 0xaa2   : > { %3678 = vmatpush.bf16.msra.mxu2 %v7948_v56  ;;  %v8163_v56 = vld [vmem:[#allocation18 + $0x218] sm:$0xf] }
 0xaa3   : > { %v2856_v12 = vpop.f32.mrf.mxu2  ;;  %v2870_v13 = vpop.f32.mrf.mxu3  ;;  %3585 = vmatmul.bf16.vlgmr.msra.gmra.mxu3 %v11378_v60 }
 0xaa4   : > { %3689 = vmatpush.bf16.msra.mxu3 %v8080_v35  ;;  %v2871_v2 = vadd.f32 %v2870_v13, %v2250_v16  ;;  %v2857_v51 = vadd.f32 %v2856_v12, %v2843_v29  ;;  %v9738_v35 = vld [vmem:[#allocation18 + $0x2f8] sm:$0xf0]  ;;  %v8151_v13 = vld [vmem:[#allocation18 + $0x200] sm:$0xf] }
 0xaa5   : > { %3627 = vmatmul.bf16.vlgmr.msrb.gmra.mxu2 %v11373_v32  ;;  %v8272_v12 = vor.u32 %v9738_v35, %v8271_v58  ;;  %v8152_v20 = vor.u32 %v9708_v18, %v8151_v13  ;;  %v8247_v29 = vld [vmem:[#allocation18 + $0x2c0] sm:$0xf]  ;;  %v9717_v58 = vld [vmem:[#allocation18 + $0x250] sm:$0xf0] }
 0xaa6   : > { %3679 = vmatpush.bf16.msra.mxu2 %v7936_v62  ;;  %v2885_v28 = vadd.f32 %v2884_v8, %v2871_v2  ;;  %v2905_v0 = vmax.f32 %v2857_v51, 0.0  ;;  %v8164_v62 = vor.u32 %v9711_v33, %v8163_v56  ;;  %v8127_v51 = vld [vmem:[#allocation18 + $0x1d0] sm:$0xf]  ;;  %v9720_v56 = vld [vmem:[#allocation18 + $0x268] sm:$0xf0] }
 0xaa7   : > { %v2886_v1 = vpop.f32.mrf.mxu0  ;;  %v2900_v10 = vpop.f32.mrf.mxu1  ;;  %v8187_v33 = vld [vmem:[#allocation18 + $0x248] sm:$0xf] }
 0xaa8   : > { %3690 = vmatpush.bf16.msra.mxu3 %v8068_v19  ;;  %v2899_v59 = vadd.f32 %v2898_v39, %v2885_v28  ;;  %v8259_v19 = vld [vmem:[#allocation18 + $0x2d8] sm:$0xf]  ;;  %v9735_v39 = vld [vmem:[#allocation18 + $0x2e0] sm:$0xf0]  ;;  %v7996_v28 = vor.u32 %v9669_v11, %v7995_v50 }
 0xaa9   : > { %v8260_v2 = vor.u32 %v9735_v39, %v8259_v19 }
 0xaaa   : > { %3680 = vmatpush.bf16.msra.mxu2 %v7924_v6  ;;  %v2906_v8 = vmax.f32 %v2899_v59, 0.0  ;;  %v8139_v6 = vld [vmem:[#allocation18 + $0x1e8] sm:$0xf] }
 0xaab   : > { %v2858_v53 = vpop.f32.mrf.mxu2  ;;  %v2872_v41 = vpop.f32.mrf.mxu3 }
 0xaac   : > { %v2859_v23 = vadd.f32 %v2858_v53, %v2845_v63  ;;  %v2873_v37 = vadd.f32 %v2872_v41, %v2250_v16  ;;  %3691 = vmatpush.bf16.msra.mxu3 %v8056_v31  ;;  %v9732_v31 = vld [vmem:[#allocation18 + $0x2c8] sm:$0xf0]  ;;  %v8140_v63 = vor.u32 %v9705_v25, %v8139_v6  ;;  %v8236_v41 = vor.u32 %v9729_v34, %v8235_v21 }
 0xaae   : > { %v2909_v22 = vmax.f32 %v2859_v23, 0.0  ;;  %v2887_v3 = vadd.f32 %v2886_v1, %v2873_v37  ;;  %3681 = vmatpush.bf16.msra.mxu2 %v7912_v40  ;;  %v9702_v40 = vld [vmem:[#allocation18 + $0x1d8] sm:$0xf0]  ;;  %v8115_v23 = vld [vmem:[#allocation18 + $0x1b8] sm:$0xf] }
 0xaaf   : > { %v8128_v53 = vor.u32 %v9702_v40, %v8127_v51  ;;  %v9699_v37 = vld [vmem:[#allocation18 + $0x1c0] sm:$0xf0] }
 0xab0   : > { %v11385_v43 = vpack.c.bf16 %v2909_v22, %v2905_v0  ;;  %v2901_v5 = vadd.f32 %v2900_v10, %v2887_v3  ;;  %3692 = vmatpush.bf16.msra.mxu3 %v8044_v38  ;;  %v8223_v38 = vld [vmem:[#allocation18 + $0x290] sm:$0xf]  ;;  %v8116_v49 = vor.u32 %v9699_v37, %v8115_v23  ;;  %v9723_v0 = vld [vmem:[#allocation18 + $0x280] sm:$0xf0]  ;;  %v8091_v3 = vld [vmem:[#allocation18 + $0x188] sm:$0xf] }
 0xab1   : > { %v8224_v1 = vor.u32 %v9726_v46, %v8223_v38  ;;  %v8212_v22 = vor.u32 %v9723_v0, %v8211_v42  ;;  %v9693_v10 = vld [vmem:[#allocation18 + $0x190] sm:$0xf0] }
 0xab2   : > { %v2910_v16 = vmax.f32 %v2901_v5, 0.0  ;;  %3599 = vmatmul.bf16.vlgmr.msra.gmra.mxu0 %v11385_v43  ;;  %3682 = vmatpush.bf16.msra.mxu2 %v7900_v52  ;;  %v8103_v52 = vld [vmem:[#allocation18 + $0x1a0] sm:$0xf]  ;;  %v8092_v5 = vor.u32 %v9693_v10, %v8091_v3 }
 0xab3   : > { %3703 = vmatpush.bf16.msra.mxu0 %v8176_v4  ;;  %3641 = vmatmul.bf16.vlgmr.msrb.gmra.mxu3 %v11378_v60  ;;  %v8104_v59 = vor.u32 %v9696_v55, %v8103_v52  ;;  %v8199_v4 = vld [vmem:[#allocation18 + $0x260] sm:$0xf] }
 0xab4   : > { %3693 = vmatpush.bf16.msra.mxu3 %v8032_v36  ;;  %v11389_v14 = vpack.c.bf16 %v2910_v16, %v2906_v8  ;;  %v8200_v36 = vor.u32 %v9720_v56, %v8199_v4 }
 0xab5   : > { %3683 = vmatmul.bf16.vlgmr.msra.gmra.mxu2 %v11373_v32  ;;  %v8248_v32 = vor.u32 %v9732_v31, %v8247_v29  ;;  %v3047_v31 = vperm.slane %v3043_v61, 2 }
 0xab6   : > { %3613 = vmatmul.bf16.vlgmr.msrb.gmra.mxu1 %v11389_v14 }
 0xab7   : > { %3704 = vmatpush.bf16.msra.mxu0 %v8164_v62  ;;  %3717 = vmatpush.bf16.msrb.mxu1 %v8272_v12 }
 0xab8   : > { %3694 = vmatpush.bf16.msra.mxu3 %v8020_v17 }
 0xabb   : > { %3705 = vmatpush.bf16.msra.mxu0 %v8152_v20  ;;  %3718 = vmatpush.bf16.msrb.mxu1 %v8260_v2  ;;  %v3046_v2 = vperm.slane %v3043_v61, 1 }
 0xabc   : > { %3695 = vmatpush.bf16.msra.mxu3 %v8008_v24 }
 0xabf   : > { %3706 = vmatpush.bf16.msra.mxu0 %v8140_v63  ;;  %3719 = vmatpush.bf16.msrb.mxu1 %v8248_v32 }
 0xac0   : > { %3696 = vmatpush.bf16.msra.mxu3 %v7996_v28 }
 0xac2   : > { %3655 = vmatmul.bf16.vlgmr.msrb.gmra.mxu0 %v11385_v43 }
 0xac3   : > { %3707 = vmatpush.bf16.msra.mxu0 %v8128_v53  ;;  %3720 = vmatpush.bf16.msrb.mxu1 %v8236_v41 }
 0xac4   : > { %3697 = vmatmul.bf16.vlgmr.msra.gmra.mxu3 %v11378_v60  ;;  %v8188_v60 = vor.u32 %v9717_v58, %v8187_v33 }
 0xac6   : > { %3669 = vmatmul.bf16.vlgmr.msra.gmra.mxu1 %v11389_v14 }
 0xac7   : > { %3708 = vmatpush.bf16.msra.mxu0 %v8116_v49  ;;  %3721 = vmatpush.bf16.msrb.mxu1 %v8224_v1 }
 0xacb   : > { %3709 = vmatpush.bf16.msra.mxu0 %v8104_v59  ;;  %3722 = vmatpush.bf16.msrb.mxu1 %v8212_v22 }
 0xacf   : > { %3710 = vmatpush.bf16.msra.mxu0 %v8092_v5  ;;  %3723 = vmatpush.bf16.msrb.mxu1 %v8200_v36 }
 0xad2   : > { %3711 = vmatmul.bf16.vlgmr.msra.gmra.mxu0 %v11385_v43  ;;  %v3045_v43 = vperm.slane %v3043_v61, 0 }
 0xad3   : > { %3724 = vmatpush.bf16.msrb.mxu1 %v8188_v60 }
 0xad6   : > { %3725 = vmatmul.bf16.vlgmr.msrb.gmra.mxu1 %v11389_v14 }
 0xb18   : > { %v3572_v35 = vpop.f32.mrf.mxu2 }
 0xb19   : > { %v3573_v25 = vadd.f32 %v3572_v35, %v3045_v43 }
 0xb20   : > { %v3574_v9 = vpop.f32.mrf.mxu2 }
 0xb21   : > { %v3575_v23 = vadd.f32 %v3574_v9, %v3045_v43  ;;  %v8361_v43 = vld [vmem:[#allocation10 + $0x2f4] sm:$0xf0] }
 0xb26   : > { %v3586_v7 = vpop.f32.mrf.mxu3 }
 0xb27   : > { %v3587_v63 = vadd.f32 %v3586_v7, %v3573_v25 }
 0xb28   : > { %v3628_v12 = vpop.f32.mrf.mxu2 }
 0xb29   : > { %v3629_v24 = vadd.f32 %v3628_v12, %v3046_v2 }
 0xb2e   : > { %v3588_v8 = vpop.f32.mrf.mxu3 }
 0xb2f   : > { %v3600_v16 = vpop.f32.mrf.mxu0  ;;  %v3589_v49 = vadd.f32 %v3588_v8, %v3575_v23 }
 0xb30   : > { %v3630_v19 = vpop.f32.mrf.mxu2  ;;  %v3601_v51 = vadd.f32 %v3600_v16, %v3587_v63  ;;  %v8359_v16 = vld [vmem:[#allocation10 + $0x2e8] sm:$0xf] }
 0xb31   : > { %v3631_v34 = vadd.f32 %v3630_v19, %v3046_v2  ;;  %v9785_v19 = vld [vmem:[#allocation10 + $0x3b0] sm:$0xf0]  ;;  %v9760_v2 = vld [vmem:[#allocation10 + $0x2ec] sm:$0xf] }
 0xb33   : > { %v3614_v62 = vpop.f32.mrf.mxu1 }
 0xb34   : > { %v3615_v53 = vadd.f32 %v3614_v62, %v3601_v51  ;;  %v9761_v62 = vld [vmem:[#allocation10 + $0x2f0] sm:$0xf0]  ;;  %v8323_v51 = vld [vmem:[#allocation10 + $0x2a0] sm:$0xf] }
 0xb35   : > { %v8360_v12 = vor.u32 %v9761_v62, %v8359_v16  ;;  %v9803_v62 = vld [vmem:[#allocation10 + $0x440] sm:$0xf0] }
 0xb36   : > { %v3642_v17 = vpop.f32.mrf.mxu3  ;;  %v11402_v55 = vadd.f32 %v3615_v53, %v11324_v44  ;;  %v9749_v53 = vld [vmem:[#allocation10 + $0x290] sm:$0xf0] }
 0xb37   : > { %v3602_v13 = vpop.f32.mrf.mxu0  ;;  %v3643_v29 = vadd.f32 %v3642_v17, %v3629_v24  ;;  %v8335_v17 = vld [vmem:[#allocation10 + $0x2b8] sm:$0xf]  ;;  %4315 = vmatpush.bf16.msrb.mxu2 %v8360_v12  ;;  %v8443_v24 = vld [vmem:[#allocation10 + $0x390] sm:$0xf]  ;;  %v8337_v12 = vld [vmem:[#allocation10 + $0x2c4] sm:$0xf0] }
 0xb38   : > { %v3684_v14 = vpop.f32.mrf.mxu2  ;;  %v3603_v59 = vadd.f32 %v3602_v13, %v3589_v49  ;;  %v9758_v13 = vld [vmem:[#allocation10 + $0x2d8] sm:$0xf0] }
 0xb39   : > { %v3685_v28 = vadd.f32 %v3684_v14, %v3047_v31  ;;  %v9782_v14 = vld [vmem:[#allocation10 + $0x398] sm:$0xf0] }
 0xb3a   : > { %v8444_v25 = vor.u32 %v9782_v14, %v8443_v24  ;;  %v8275_v14 = vld [vmem:[#allocation10 + $0x240] sm:$0xf] }
 0xb3b   : > { %v3616_v18 = vpop.f32.mrf.mxu1 }
 0xb3c   : > { %v3617_v5 = vadd.f32 %v3616_v18, %v3603_v59  ;;  %v8455_v18 = vld [vmem:[#allocation10 + $0x3a8] sm:$0xf] }
 0xb3d   : > { %v8456_v61 = vor.u32 %v9785_v19, %v8455_v18  ;;  %v8287_v18 = vld [vmem:[#allocation10 + $0x258] sm:$0xf] }
 0xb3e   : > { %v3644_v15 = vpop.f32.mrf.mxu3  ;;  %v11414_v35 = vadd.f32 %v3617_v5, %v11328_v54 }
 0xb3f   : > { %v3656_v39 = vpop.f32.mrf.mxu0  ;;  %v3645_v37 = vadd.f32 %v3644_v15, %v3631_v34  ;;  %v9809_v15 = vld [vmem:[#allocation10 + $0x470] sm:$0xf0]  ;;  %4329 = vmatpush.bf16.msrb.mxu3 %v8456_v61  ;;  %v8311_v34 = vld [vmem:[#allocation10 + $0x288] sm:$0xf] }
 0xb40   : > { %v3657_v32 = vadd.f32 %v3656_v39, %v3643_v29  ;;  %v3686_v1 = vpop.f32.mrf.mxu2  ;;  %v8551_v39 = vld [vmem:[#allocation10 + $0x468] sm:$0xf]  ;;  %v8539_v29 = vld [vmem:[#allocation10 + $0x450] sm:$0xf] }
 0xb41   : > { %v3687_v3 = vadd.f32 %v3686_v1, %v3047_v31  ;;  %v9806_v31 = vld [vmem:[#allocation10 + $0x458] sm:$0xf0] }
 0xb42   : > { %v8540_v63 = vor.u32 %v9806_v31, %v8539_v29  ;;  %v8407_v31 = vld [vmem:[#allocation10 + $0x348] sm:$0xf] }
 0xb43   : > { %v3670_v20 = vpop.f32.mrf.mxu1  ;;  %4330 = vmatpush.bf16.msrb.mxu3 %v8444_v25  ;;  %v9740_v25 = vld [vmem:[#allocation10 + $0x248] sm:$0xf0] }
 0xb44   : > { %v3671_v40 = vadd.f32 %v3670_v20, %v3657_v32  ;;  %v8552_v20 = vor.u32 %v9809_v15, %v8551_v39  ;;  %v8349_v32 = vld [vmem:[#allocation10 + $0x2dc] sm:$0xf0]  ;;  %v9776_v15 = vld [vmem:[#allocation10 + $0x368] sm:$0xf0]  ;;  %v8276_v29 = vor.u32 %v9740_v25, %v8275_v14 }
 0xb45   : > { %v8419_v39 = vld [vmem:[#allocation10 + $0x360] sm:$0xf] }
 0xb46   : > { %v11399_v38 = vadd.f32 %v3671_v40, %v11326_v45  ;;  %4343 = vmatpush.bf16.msrb.mxu0 %v8552_v20  ;;  %v8420_v61 = vor.u32 %v9776_v15, %v8419_v39  ;;  %v9800_v20 = vld [vmem:[#allocation10 + $0x428] sm:$0xf0] }
 0xb47   : > { %v3658_v6 = vpop.f32.mrf.mxu0  ;;  %v3698_v50 = vpop.f32.mrf.mxu3 }
 0xb48   : > { %v3699_v41 = vadd.f32 %v3698_v50, %v3685_v28  ;;  %v3659_v42 = vadd.f32 %v3658_v6, %v3645_v37  ;;  %v3739_v45 = vadd.f32 %v11399_v38, %v11402_v55  ;;  %v8364_v6 = vor.u32 %v9760_v2, %v8361_v43  ;;  %v9757_v50 = vld [vmem:[#allocation10 + $0x2d4] sm:$0xf]  ;;  %v9752_v28 = vld [vmem:[#allocation10 + $0x2a8] sm:$0xf0]  ;;  %v9751_v2 = vld [vmem:[#allocation10 + $0x2a4] sm:$0xf] }
 0xb49   : > { %v8352_v40 = vor.u32 %v9757_v50, %v8349_v32  ;;  %v8312_v37 = vor.u32 %v9749_v53, %v8311_v34  ;;  %v8325_v43 = vld [vmem:[#allocation10 + $0x2ac] sm:$0xf0]  ;;  %v9773_v50 = vld [vmem:[#allocation10 + $0x350] sm:$0xf0]  ;;  %v9784_v34 = vld [vmem:[#allocation10 + $0x3ac] sm:$0xf] }
 0xb4a   : > { %4357 = vmatpush.bf16.msra.mxu1 %v8364_v6  ;;  %4344 = vmatpush.bf16.msrb.mxu0 %v8540_v63  ;;  %v8328_v24 = vor.u32 %v9751_v2, %v8325_v43  ;;  %v8408_v63 = vor.u32 %v9773_v50, %v8407_v31  ;;  %v9797_v32 = vld [vmem:[#allocation10 + $0x410] sm:$0xf0]  ;;  %v8457_v53 = vld [vmem:[#allocation10 + $0x3b4] sm:$0xf0]  ;;  %v9786_v31 = vld [vmem:[#allocation10 + $0x3b8] sm:$0xf0] }
 0xb4b   : > { %v3672_v11 = vpop.f32.mrf.mxu1  ;;  %v8553_v43 = vld [vmem:[#allocation10 + $0x474] sm:$0xf0]  ;;  %v9772_v50 = vld [vmem:[#allocation10 + $0x34c] sm:$0xf] }
 0xb4c   : > { %v3673_v10 = vadd.f32 %v3672_v11, %v3659_v42 }
 0xb4e   : > { %v11411_v44 = vadd.f32 %v3673_v10, %v11330_v26  ;;  %v8347_v26 = vld [vmem:[#allocation10 + $0x2d0] sm:$0xf]  ;;  %4358 = vmatpush.bf16.msra.mxu1 %v8352_v40 }
 0xb4f   : > { %v3712_v21 = vpop.f32.mrf.mxu0  ;;  %v3700_v22 = vpop.f32.mrf.mxu3  ;;  %v8348_v54 = vor.u32 %v9758_v13, %v8347_v26  ;;  %v9754_v26 = vld [vmem:[#allocation10 + $0x2bc] sm:$0xf] }
 0xb50   : > { %v3713_v46 = vadd.f32 %v3712_v21, %v3699_v41  ;;  %v3701_v36 = vadd.f32 %v3700_v22, %v3687_v3  ;;  %v3743_v9 = vadd.f32 %v11411_v44, %v11414_v35  ;;  %v8324_v21 = vor.u32 %v9752_v28, %v8323_v51  ;;  %v9748_v51 = vld [vmem:[#allocation10 + $0x28c] sm:$0xf]  ;;  %v8313_v28 = vld [vmem:[#allocation10 + $0x294] sm:$0xf0] }
 0xb51   : > { %4316 = vmatpush.bf16.msrb.mxu2 %v8348_v54  ;;  %v9743_v54 = vld [vmem:[#allocation10 + $0x260] sm:$0xf0] }
 0xb52   : > { %v8288_v19 = vor.u32 %v9743_v54, %v8287_v18  ;;  %v9788_v18 = vld [vmem:[#allocation10 + $0x3c8] sm:$0xf0]  ;;  %v9739_v54 = vld [vmem:[#allocation10 + $0x244] sm:$0xf] }
 0xb53   : > { %v3726_v52 = vpop.f32.mrf.mxu1 }
 0xb54   : > { %v3727_v0 = vadd.f32 %v3726_v52, %v3713_v46 }
 0xb56   : > { %v11405_v4 = vadd.f32 %v3727_v0, %v11332_v27 }
 0xb57   : > { %v3714_v56 = vpop.f32.mrf.mxu0 }
 0xb58   : > { %v3740_v33 = vadd.f32 %v3739_v45, %v11405_v4  ;;  %v3715_v58 = vadd.f32 %v3714_v56, %v3701_v36 }
 0xb5a   : > { %3741 = vadd.xlane.f32.xlu1 %v3740_v33 }
 0xb5b   : > { %v3728_v60 = vpop.f32.mrf.mxu1 }
 0xb5c   : > { %v3729_v7 = vadd.f32 %v3728_v60, %v3715_v58 }
 0xb5e   : > { %v11417_v27 = vadd.f32 %v3729_v7, %v11334_v30  ;;  %v9755_v30 = vld [vmem:[#allocation10 + $0x2c0] sm:$0xf0] }
 0xb5f   : > { %v8336_v11 = vor.u32 %v9755_v30, %v8335_v17  ;;  %v8340_v17 = vor.u32 %v9754_v26, %v8337_v12  ;;  %v8515_v30 = vld [vmem:[#allocation10 + $0x420] sm:$0xf]  ;;  %v9764_v12 = vld [vmem:[#allocation10 + $0x308] sm:$0xf0] }
 0xb60   : > { %v3744_v8 = vadd.f32 %v3743_v9, %v11417_v27  ;;  %v9779_v9 = vld [vmem:[#allocation10 + $0x380] sm:$0xf0]  ;;  %v8516_v6 = vor.u32 %v9800_v20, %v8515_v30  ;;  %v8371_v26 = vld [vmem:[#allocation10 + $0x300] sm:$0xf]  ;;  %v9808_v20 = vld [vmem:[#allocation10 + $0x46c] sm:$0xf] }
 0xb61   : > { %4317 = vmatpush.bf16.msrb.mxu2 %v8336_v11  ;;  %4359 = vmatpush.bf16.msra.mxu1 %v8340_v17  ;;  %v8503_v11 = vld [vmem:[#allocation10 + $0x408] sm:$0xf]  ;;  %v8372_v17 = vor.u32 %v9764_v12, %v8371_v26  ;;  %v9775_v30 = vld [vmem:[#allocation10 + $0x364] sm:$0xf]  ;;  %v8556_v14 = vor.u32 %v9808_v20, %v8553_v43  ;;  %v9753_v26 = vld [vmem:[#allocation10 + $0x2b0] sm:$0xf0] }
 0xb62   : > { %3745 = vadd.xlane.f32.xlu0 %v3744_v8  ;;  %v8527_v8 = vld [vmem:[#allocation10 + $0x438] sm:$0xf]  ;;  %v8504_v40 = vor.u32 %v9797_v32, %v8503_v11  ;;  %v9805_v32 = vld [vmem:[#allocation10 + $0x454] sm:$0xf]  ;;  %v8427_v12 = vld [vmem:[#allocation10 + $0x368] sm:$0xf] }
 0xb63   : > { %v8528_v13 = vor.u32 %v9803_v62, %v8527_v8  ;;  %v9778_v8 = vld [vmem:[#allocation10 + $0x37c] sm:$0xf]  ;;  %v8415_v43 = vld [vmem:[#allocation10 + $0x350] sm:$0xf] }
 0xb65   : > { %4318 = vmatpush.bf16.msrb.mxu2 %v8324_v21  ;;  %4345 = vmatpush.bf16.msrb.mxu0 %v8528_v13  ;;  %v8316_v21 = vor.u32 %v9748_v51, %v8313_v28  ;;  %v8467_v13 = vld [vmem:[#allocation10 + $0x3c0] sm:$0xf] }
 0xb66   : > { %4360 = vmatpush.bf16.msra.mxu1 %v8328_v24  ;;  %v8468_v39 = vor.u32 %v9788_v18, %v8467_v13  ;;  %v9762_v24 = vld [vmem:[#allocation10 + $0x2f8] sm:$0xf0]  ;;  %v8541_v51 = vld [vmem:[#allocation10 + $0x45c] sm:$0xf0] }
 0xb69   : > { %4319 = vmatpush.bf16.msrb.mxu2 %v8312_v37  ;;  %4346 = vmatpush.bf16.msrb.mxu0 %v8516_v6  ;;  %v9770_v37 = vld [vmem:[#allocation10 + $0x338] sm:$0xf0]  ;;  %v8367_v6 = vld [vmem:[#allocation10 + $0x2f0] sm:$0xf] }
 0xb6a   : > { %4361 = vmatpush.bf16.msra.mxu1 %v8316_v21  ;;  %v8368_v25 = vor.u32 %v9762_v24, %v8367_v6  ;;  %v8355_v21 = vld [vmem:[#allocation10 + $0x2d8] sm:$0xf]  ;;  %v9774_v6 = vld [vmem:[#allocation10 + $0x358] sm:$0xf0] }
 0xb6d   : > { %4347 = vmatpush.bf16.msrb.mxu0 %v8504_v40  ;;  %v8544_v40 = vor.u32 %v9805_v32, %v8541_v51  ;;  %v8403_v32 = vld [vmem:[#allocation10 + $0x338] sm:$0xf] }
 0xbcd   : > { %v3742_v41 = vpop.xlane.xlu1 %3741 }
 0xbce   : > { %v3747_v23 = vmul.f32 0.0033333334, %v3742_v41  ;;  %v8460_v41 = vor.u32 %v9784_v34, %v8457_v53  ;;  %v9759_v34 = vld [vmem:[#allocation10 + $0x2e0] sm:$0xf0]  ;;  %v8451_v53 = vld [vmem:[#allocation10 + $0x398] sm:$0xf] }
 0xbd0   : > { %v11423_v46 = vsub.f32 %v11402_v55, %v3747_v23  ;;  %v11426_v49 = vsub.f32 %v11399_v38, %v3747_v23  ;;  %v3751_v1 = vsub.f32 %v11405_v4, %v3747_v23  ;;  %v8395_v23 = vld [vmem:[#allocation10 + $0x330] sm:$0xf] }
 0xbd2   : > { %v11430_v52 = vmul.f32 %v11083_v48, %v3751_v1  ;;  %v3761_v42 = vmul.f32 %v11423_v46, %v11423_v46  ;;  %v3762_v0 = vmul.f32 %v11426_v49, %v11426_v49  ;;  %v8491_v1 = vld [vmem:[#allocation10 + $0x3f0] sm:$0xf] }
 0xbd4   : > { %v3763_v59 = vmul.f32 %v11430_v52, %v11430_v52  ;;  %v3767_v55 = vadd.f32 %v3762_v0, %v3761_v42  ;;  %v8396_v42 = vor.u32 %v9770_v37, %v8395_v23  ;;  %v9794_v0 = vld [vmem:[#allocation10 + $0x3f8] sm:$0xf0]  ;;  %v9783_v23 = vld [vmem:[#allocation10 + $0x3a0] sm:$0xf0] }
 0xbd5   : > { %v3746_v22 = vpop.xlane.xlu0 %3745  ;;  %v8452_v37 = vor.u32 %v9783_v23, %v8451_v53  ;;  %v9790_v23 = vld [vmem:[#allocation10 + $0x3dc] sm:$0xf] }
 0xbd6   : > { %v3748_v3 = vmul.f32 0.0033333334, %v3746_v22  ;;  %v3768_v38 = vadd.f32 %v3767_v55, %v3763_v59  ;;  %v9745_v59 = vld [vmem:[#allocation10 + $0x274] sm:$0xf]  ;;  %v8301_v55 = vld [vmem:[#allocation10 + $0x27c] sm:$0xf0]  ;;  %v8492_v22 = vor.u32 %v9794_v0, %v8491_v1 }
 0xbd7   : > { %v9769_v1 = vld [vmem:[#allocation10 + $0x334] sm:$0xf] }
 0xbd8   : > { %v11439_v10 = vsub.f32 %v11414_v35, %v3748_v3  ;;  %v11442_v4 = vsub.f32 %v11411_v44, %v3748_v3  ;;  %v3754_v45 = vsub.f32 %v11417_v27, %v3748_v3  ;;  %3769 = vadd.xlane.f32.xlu2 %v3768_v38  ;;  %v8299_v44 = vld [vmem:[#allocation10 + $0x270] sm:$0xf]  ;;  %v9746_v35 = vld [vmem:[#allocation10 + $0x278] sm:$0xf0]  ;;  %v8431_v27 = vld [vmem:[#allocation10 + $0x378] sm:$0xf]  ;;  %v8304_v3 = vor.u32 %v9745_v59, %v8301_v55 }
 0xbd9   : > { %v8300_v7 = vor.u32 %v9746_v35, %v8299_v44  ;;  %v8432_v16 = vor.u32 %v9779_v9, %v8431_v27  ;;  %v9781_v38 = vld [vmem:[#allocation10 + $0x394] sm:$0xf]  ;;  %4348 = vmatpush.bf16.msrb.mxu0 %v8492_v22  ;;  %v9791_v44 = vld [vmem:[#allocation10 + $0x3e0] sm:$0xf0]  ;;  %v9742_v35 = vld [vmem:[#allocation10 + $0x25c] sm:$0xf] }
 0xbda   : > { %v11446_v56 = vmul.f32 %v11083_v48, %v3754_v45  ;;  %v3764_v5 = vmul.f32 %v11439_v10, %v11439_v10  ;;  %v3765_v36 = vmul.f32 %v11442_v4, %v11442_v4  ;;  %v8445_v45 = vld [vmem:[#allocation10 + $0x39c] sm:$0xf0]  ;;  %4362 = vmatpush.bf16.msra.mxu1 %v8304_v3  ;;  %v9802_v59 = vld [vmem:[#allocation10 + $0x43c] sm:$0xf]  ;;  %v8529_v55 = vld [vmem:[#allocation10 + $0x444] sm:$0xf0] }
 0xbdb   : > { %4320 = vmatpush.bf16.msrb.mxu2 %v8300_v7  ;;  %4331 = vmatpush.bf16.msrb.mxu3 %v8432_v16  ;;  %v8289_v7 = vld [vmem:[#allocation10 + $0x264] sm:$0xf0]  ;;  %v8343_v22 = vld [vmem:[#allocation10 + $0x2c0] sm:$0xf]  ;;  %v8532_v3 = vor.u32 %v9802_v59, %v8529_v55 }
 0xbdc   : > { %v3766_v33 = vmul.f32 %v11446_v56, %v11446_v56  ;;  %v3771_v58 = vadd.f32 %v3765_v36, %v3764_v5  ;;  %v8448_v5 = vor.u32 %v9781_v38, %v8445_v45  ;;  %v8383_v36 = vld [vmem:[#allocation10 + $0x318] sm:$0xf]  ;;  %v8292_v9 = vor.u32 %v9742_v35, %v8289_v7  ;;  %v8433_v16 = vld [vmem:[#allocation10 + $0x384] sm:$0xf0]  ;;  %v9756_v38 = vld [vmem:[#allocation10 + $0x2c8] sm:$0xf0] }
 0xbdd   : > { %v8436_v62 = vor.u32 %v9778_v8, %v8433_v16  ;;  %v8439_v45 = vld [vmem:[#allocation10 + $0x380] sm:$0xf]  ;;  %v8385_v35 = vld [vmem:[#allocation10 + $0x324] sm:$0xf0] }
 0xbde   : > { %v3772_v60 = vadd.f32 %v3771_v58, %v3766_v33  ;;  %v9767_v33 = vld [vmem:[#allocation10 + $0x320] sm:$0xf0]  ;;  %v8479_v58 = vld [vmem:[#allocation10 + $0x3d8] sm:$0xf]  ;;  %4363 = vmatpush.bf16.msra.mxu1 %v8292_v9  ;;  %v8517_v9 = vld [vmem:[#allocation10 + $0x42c] sm:$0xf0] }
 0xbdf   : > { %4321 = vmatpush.bf16.msrb.mxu2 %v8288_v19  ;;  %4332 = vmatpush.bf16.msrb.mxu3 %v8420_v61  ;;  %v8480_v27 = vor.u32 %v9791_v44, %v8479_v58  ;;  %v8277_v19 = vld [vmem:[#allocation10 + $0x24c] sm:$0xf0]  ;;  %v9766_v44 = vld [vmem:[#allocation10 + $0x31c] sm:$0xf]  ;;  %v8331_v8 = vld [vmem:[#allocation10 + $0x2a8] sm:$0xf] }
 0xbe0   : > { %3773 = vadd.xlane.f32.xlu1 %v3772_v60  ;;  %v8384_v60 = vor.u32 %v9767_v33, %v8383_v36  ;;  %v8280_v15 = vor.u32 %v9739_v54, %v8277_v19  ;;  %v8421_v61 = vld [vmem:[#allocation10 + $0x36c] sm:$0xf0]  ;;  %v8344_v33 = vor.u32 %v9756_v38, %v8343_v22  ;;  %v8388_v7 = vor.u32 %v9766_v44, %v8385_v35  ;;  %v9763_v54 = vld [vmem:[#allocation10 + $0x304] sm:$0xf]  ;;  %v8391_v59 = vld [vmem:[#allocation10 + $0x320] sm:$0xf] }
 0xbe1   : > { %4349 = vmatpush.bf16.msrb.mxu0 %v8480_v27  ;;  %v8424_v2 = vor.u32 %v9775_v30, %v8421_v61  ;;  %v9799_v27 = vld [vmem:[#allocation10 + $0x424] sm:$0xf]  ;;  %v8332_v13 = vor.u32 %v9753_v26, %v8331_v8  ;;  %v8373_v19 = vld [vmem:[#allocation10 + $0x30c] sm:$0xf0]  ;;  %v8505_v30 = vld [vmem:[#allocation10 + $0x414] sm:$0xf0] }
 0xbe2   : > { %4364 = vmatpush.bf16.msra.mxu1 %v8280_v15  ;;  %v9796_v15 = vld [vmem:[#allocation10 + $0x40c] sm:$0xf]  ;;  %v8319_v61 = vld [vmem:[#allocation10 + $0x290] sm:$0xf]  ;;  %v8379_v44 = vld [vmem:[#allocation10 + $0x308] sm:$0xf] }
 0xbe3   : > { %4322 = vmatpush.bf16.msrb.mxu2 %v8276_v29  ;;  %4333 = vmatpush.bf16.msrb.mxu3 %v8408_v63  ;;  %v8463_v29 = vld [vmem:[#allocation10 + $0x3b0] sm:$0xf]  ;;  %v8409_v63 = vld [vmem:[#allocation10 + $0x354] sm:$0xf0]  ;;  %v8508_v20 = vor.u32 %v9796_v15, %v8505_v30 }
 0xbe4   : > { %v8464_v11 = vor.u32 %v9786_v31, %v8463_v29  ;;  %v8412_v28 = vor.u32 %v9772_v50, %v8409_v63  ;;  %v9793_v31 = vld [vmem:[#allocation10 + $0x3f4] sm:$0xf]  ;;  %v8493_v50 = vld [vmem:[#allocation10 + $0x3fc] sm:$0xf0]  ;;  %v9747_v63 = vld [vmem:[#allocation10 + $0x280] sm:$0xf0] }
 0xbe5   : > { %4350 = vmatpush.bf16.msrb.mxu0 %v8468_v39  ;;  %v8376_v39 = vor.u32 %v9763_v54, %v8373_v19 }
 0xbe6   : > { %4413 = vmatpush.bf16.msrb.mxu1 %v8464_v11  ;;  %v8307_v11 = vld [vmem:[#allocation10 + $0x278] sm:$0xf] }
 0xbe7   : > { %4371 = vmatpush.bf16.msra.mxu2 %v8460_v41  ;;  %4334 = vmatpush.bf16.msrb.mxu3 %v8396_v42  ;;  %v8356_v41 = vor.u32 %v9759_v34, %v8355_v21  ;;  %v8397_v42 = vld [vmem:[#allocation10 + $0x33c] sm:$0xf0]  ;;  %v8308_v21 = vor.u32 %v9747_v63, %v8307_v11  ;;  %v9771_v34 = vld [vmem:[#allocation10 + $0x340] sm:$0xf0] }
 0xbe8   : > { %v8400_v0 = vor.u32 %v9769_v1, %v8397_v42  ;;  %v8295_v42 = vld [vmem:[#allocation10 + $0x260] sm:$0xf] }
 0xbe9   : > { %4399 = vmatpush.bf16.msra.mxu0 %v8368_v25  ;;  %v8416_v25 = vor.u32 %v9774_v6, %v8415_v43 }
 0xbea   : > { %4414 = vmatpush.bf16.msrb.mxu1 %v8452_v37  ;;  %v8481_v37 = vld [vmem:[#allocation10 + $0x3e4] sm:$0xf0] }
 0xbeb   : > { %4372 = vmatpush.bf16.msra.mxu2 %v8448_v5  ;;  %4335 = vmatpush.bf16.msrb.mxu3 %v8384_v60  ;;  %v9780_v5 = vld [vmem:[#allocation10 + $0x388] sm:$0xf0]  ;;  %v8484_v55 = vor.u32 %v9790_v23, %v8481_v37  ;;  %v8547_v37 = vld [vmem:[#allocation10 + $0x458] sm:$0xf] }
 0xbec   : > { %v8440_v58 = vor.u32 %v9780_v5, %v8439_v45  ;;  %v9787_v5 = vld [vmem:[#allocation10 + $0x3c4] sm:$0xf] }
 0xbed   : > { %4400 = vmatpush.bf16.msra.mxu0 %v8356_v41  ;;  %v8404_v41 = vor.u32 %v9771_v34, %v8403_v32 }
 0xbee   : > { %4415 = vmatpush.bf16.msrb.mxu1 %v8440_v58 }
 0xbef   : > { %4373 = vmatpush.bf16.msra.mxu2 %v8436_v62  ;;  %4336 = vmatpush.bf16.msrb.mxu3 %v8372_v17  ;;  %v8520_v62 = vor.u32 %v9799_v27, %v8517_v9  ;;  %v9777_v17 = vld [vmem:[#allocation10 + $0x370] sm:$0xf0] }
 0xbf0   : > { %v8428_v18 = vor.u32 %v9777_v17, %v8427_v12  ;;  %v9765_v9 = vld [vmem:[#allocation10 + $0x310] sm:$0xf0] }
 0xbf1   : > { %4401 = vmatpush.bf16.msra.mxu0 %v8344_v33  ;;  %v8283_v33 = vld [vmem:[#allocation10 + $0x248] sm:$0xf]  ;;  %v8380_v26 = vor.u32 %v9765_v9, %v8379_v44  ;;  %v3737_v12 = vld [vmem:[#allocation21] sm:$0x7]  ;;  %v8487_v44 = vld [vmem:[#allocation10 + $0x3e0] sm:$0xf] }
 0xbf2   : > { %4416 = vmatpush.bf16.msrb.mxu1 %v8428_v18  ;;  %v3806_v54 = vperm.slane %v3737_v12, 0  ;;  %v3807_v19 = vperm.slane %v3737_v12, 1  ;;  %v9789_v9 = vld [vmem:[#allocation10 + $0x3d0] sm:$0xf0] }
 0xbf3   : > { %4374 = vmatpush.bf16.msra.mxu2 %v8424_v2  ;;  %4385 = vmatpush.bf16.msra.mxu3 %v8556_v14  ;;  %v9750_v2 = vld [vmem:[#allocation10 + $0x298] sm:$0xf0] }
 0xbf4   : > { %v8320_v14 = vor.u32 %v9750_v2, %v8319_v61  ;;  %v3738_v61 = vld [vmem:[#allocation22] sm:$0x7] }
 0xbf5   : > { %4402 = vmatpush.bf16.msra.mxu0 %v8332_v13  ;;  %v3819_v43 = vperm.slane %v3738_v61, 0  ;;  %v3820_v6 = vperm.slane %v3738_v61, 1 }
 0xbf6   : > { %4417 = vmatpush.bf16.msrb.mxu1 %v8416_v25 }
 0xbf7   : > { %4375 = vmatpush.bf16.msra.mxu2 %v8412_v28  ;;  %4386 = vmatpush.bf16.msra.mxu3 %v8544_v40  ;;  %v8496_v40 = vor.u32 %v9793_v31, %v8493_v50 }
 0xbf9   : > { %4403 = vmatpush.bf16.msra.mxu0 %v8320_v14 }
 0xbfa   : > { %4418 = vmatpush.bf16.msrb.mxu1 %v8404_v41 }
 0xbfb   : > { %4376 = vmatpush.bf16.msra.mxu2 %v8400_v0  ;;  %4387 = vmatpush.bf16.msra.mxu3 %v8532_v3  ;;  %v9744_v0 = vld [vmem:[#allocation10 + $0x268] sm:$0xf0] }
 0xbfc   : > { %v8296_v22 = vor.u32 %v9744_v0, %v8295_v42  ;;  %v9768_v3 = vld [vmem:[#allocation10 + $0x328] sm:$0xf0]  ;;  %v8535_v0 = vld [vmem:[#allocation10 + $0x440] sm:$0xf] }
 0xbfd   : > { %4404 = vmatpush.bf16.msra.mxu0 %v8308_v21  ;;  %v8392_v45 = vor.u32 %v9768_v3, %v8391_v59  ;;  %v9804_v59 = vld [vmem:[#allocation10 + $0x448] sm:$0xf0]  ;;  %v9801_v3 = vld [vmem:[#allocation10 + $0x430] sm:$0xf0] }
 0xbff   : > { %4377 = vmatpush.bf16.msra.mxu2 %v8388_v7  ;;  %4388 = vmatpush.bf16.msra.mxu3 %v8520_v62 }
 0xc00   : > { %4419 = vmatpush.bf16.msrb.mxu1 %v8392_v45  ;;  %v8511_v45 = vld [vmem:[#allocation10 + $0x410] sm:$0xf] }
 0xc01   : > { %4405 = vmatpush.bf16.msra.mxu0 %v8296_v22  ;;  %v8523_v22 = vld [vmem:[#allocation10 + $0x428] sm:$0xf] }
 0xc03   : > { %4378 = vmatpush.bf16.msra.mxu2 %v8376_v39  ;;  %4389 = vmatpush.bf16.msra.mxu3 %v8508_v20  ;;  %v3808_v20 = vperm.slane %v3737_v12, 2 }
 0xc04   : > { %4420 = vmatpush.bf16.msrb.mxu1 %v8380_v26 }
 0xc07   : > { %4390 = vmatpush.bf16.msra.mxu3 %v8496_v40  ;;  %v9810_v40 = vld [vmem:[#allocation10 + $0x478] sm:$0xf0] }
 0xc0b   : > { %4391 = vmatpush.bf16.msra.mxu3 %v8484_v55  ;;  %v8536_v55 = vor.u32 %v9804_v59, %v8535_v0 }
 0xc4b   : > { %v3770_v36 = vpop.xlane.xlu2 %3769 }
 0xc4c   : > { %v3775_v60 = vmul.f32 0.0033333334, %v3770_v36  ;;  %v8469_v36 = vld [vmem:[#allocation10 + $0x3cc] sm:$0xf0] }
 0xc4d   : > { %v8472_v7 = vor.u32 %v9787_v5, %v8469_v36  ;;  %v9798_v5 = vld [vmem:[#allocation10 + $0x418] sm:$0xf0] }
 0xc4e   : > { %v11454_v16 = vadd.f32 1e-06, %v3775_v60  ;;  %v9741_v60 = vld [vmem:[#allocation10 + $0x250] sm:$0xf0]  ;;  %v8512_v36 = vor.u32 %v9798_v5, %v8511_v45 }
 0xc4f   : > { %v8284_v27 = vor.u32 %v9741_v60, %v8283_v33  ;;  %4392 = vmatpush.bf16.msra.mxu3 %v8472_v7  ;;  %v8499_v33 = vld [vmem:[#allocation10 + $0x3f8] sm:$0xf] }
 0xc50   : > { %10243 = vrsqrt.f32 %v11454_v16  ;;  %vm3785_vm4 = vweird.f32 %v11454_v16 }
 0xc51   : > { %4406 = vmatpush.bf16.msra.mxu0 %v8284_v27  ;;  %v8475_v27 = vld [vmem:[#allocation10 + $0x3c8] sm:$0xf] }
 0xc53   : > { %v3774_v24 = vpop.xlane.xlu1 %3773 }
 0xc54   : > { %v3776_v29 = vmul.f32 0.0033333334, %v3774_v24 }
 0xc56   : > { %v10244_v51 = vpop.eup %10243  ;;  %v3778_v28 = vadd.f32 1e-06, %v3776_v29  ;;  %v3821_v29 = vperm.slane %v3738_v61, 2 }
 0xc57   : > { %v3780_v53 = vmul.f32 %v10244_v51, %v11454_v16  ;;  %vm3786_vm3 = vweird.f32 %v10244_v51 }
 0xc58   : > { %10245 = vrsqrt.f32 %v3778_v28  ;;  %vm3787_vm5 = vmor %vm3785_vm4, %vm3786_vm3  ;;  %vm3795_vm10 = vweird.f32 %v3778_v28 }
 0xc59   : > { %v3781_v1 = vmul.f32 %v10244_v51, %v3780_v53 }
 0xc5b   : > { %v3782_v38 = vmul.f32 0.5, %v3781_v1  ;;  %v9807_v1 = vld [vmem:[#allocation10 + $0x460] sm:$0xf0] }
 0xc5c   : > { %v8548_v42 = vor.u32 %v9807_v1, %v8547_v37 }
 0xc5d   : > { %v3783_v58 = vsub.f32 1.5, %v3782_v38  ;;  %v8524_v38 = vor.u32 %v9801_v3, %v8523_v22 }
 0xc5e   : > { %v10246_v35 = vpop.eup %10245 }
 0xc5f   : > { %v3784_v8 = vmul.f32 %v10244_v51, %v3783_v58  ;;  %v3790_v62 = vmul.f32 %v10246_v35, %v3778_v28  ;;  %vm3796_vm6 = vweird.f32 %v10246_v35  ;;  %v8559_v28 = vld [vmem:[#allocation10 + $0x470] sm:$0xf]  ;;  %v9795_v58 = vld [vmem:[#allocation10 + $0x400] sm:$0xf0] }
 0xc60   : > { %vm3797_vm11 = vmor %vm3795_vm10, %vm3796_vm6  ;;  %v8560_v23 = vor.u32 %v9810_v40, %v8559_v28  ;;  %v8500_v60 = vor.u32 %v9795_v58, %v8499_v33  ;;  %v8587_v33 = vld [vmem:[#allocation12 + $0x110] sm:$0xf]  ;;  %v9822_v58 = vld [vmem:[#allocation12 + $0x118] sm:$0xf0] }
 0xc61   : > { %v3791_v13 = vmul.f32 %v10246_v35, %v3790_v62  ;;  %v3788_v17 = vsel %vm3787_vm5, %v10244_v51, %v3784_v8  ;;  %v8476_v8 = vor.u32 %v9789_v9, %v8475_v27 }
 0xc62   : > { %v3799_v39 = vmul.f32 %v3788_v17, %v11423_v46  ;;  %v3800_v15 = vmul.f32 %v3788_v17, %v11426_v49  ;;  %v3801_v16 = vmul.f32 %v3788_v17, %v11430_v52 }
 0xc63   : > { %v3792_v18 = vmul.f32 0.5, %v3791_v13 }
 0xc64   : > { %v3812_v24 = vmul.f32 %v3806_v54, %v3799_v39  ;;  %v3813_v14 = vmul.f32 %v3807_v19, %v3800_v15  ;;  %v3814_v31 = vmul.f32 %v3808_v20, %v3801_v16 }
 0xc65   : > { %v3793_v30 = vsub.f32 1.5, %v3792_v18 }
 0xc66   : > { %v11465_v52 = vadd.f32 %v3819_v43, %v3812_v24  ;;  %v11467_v51 = vadd.f32 %v3820_v6, %v3813_v14  ;;  %v11473_v53 = vadd.f32 %v3821_v29, %v3814_v31 }
 0xc67   : > { %v3794_v2 = vmul.f32 %v10246_v35, %v3793_v30 }
 0xc69   : > { %v3798_v25 = vsel %vm3797_vm11, %v10246_v35, %v3794_v2  ;;  %v9792_v35 = vld [vmem:[#allocation10 + $0x3e8] sm:$0xf0] }
 0xc6a   : > { %v3802_v46 = vmul.f32 %v3798_v25, %v11439_v10  ;;  %v3803_v49 = vmul.f32 %v3798_v25, %v11442_v4  ;;  %v3804_v50 = vmul.f32 %v3798_v25, %v11446_v56  ;;  %v8488_v7 = vor.u32 %v9792_v35, %v8487_v44  ;;  %v8575_v44 = vld [vmem:[#allocation12 + $0xf8] sm:$0xf]  ;;  %v9819_v35 = vld [vmem:[#allocation12 + $0x100] sm:$0xf0] }
 0xc6c   : > { %v3815_v11 = vmul.f32 %v3806_v54, %v3802_v46  ;;  %v3816_v63 = vmul.f32 %v3807_v19, %v3803_v49  ;;  %v3817_v32 = vmul.f32 %v3808_v20, %v3804_v50 }
 0xc6e   : > { %v11469_v21 = vadd.f32 %v3819_v43, %v3815_v11  ;;  %v11471_v34 = vadd.f32 %v3820_v6, %v3816_v63  ;;  %v11475_v10 = vadd.f32 %v3821_v29, %v3817_v32 }
 0xc70   : > { %v3831_v4 = vpack.c.bf16 %v11469_v21, %v11465_v52  ;;  %v3832_v56 = vpack.c.bf16 %v11471_v34, %v11467_v51  ;;  %v3833_v41 = vpack.c.bf16 %v11475_v10, %v11473_v53 }
 0xc72   : > { %4323 = vmatmul.bf16.vlgmr.msrb.gmra.mxu2 %v3831_v4  ;;  %4337 = vmatmul.bf16.vlgmr.msrb.gmra.mxu3 %v3832_v56 }
 0xc73   : > { %4351 = vmatmul.bf16.vlgmr.msrb.gmra.mxu0 %v3833_v41  ;;  %4365 = vmatmul.bf16.vlgmr.msra.gmra.mxu1 %v3831_v4 }
 0xc74   : > { %4427 = vmatpush.bf16.msrb.mxu2 %v8560_v23 }
 0xc78   : > { %4428 = vmatpush.bf16.msrb.mxu2 %v8548_v42 }
 0xc7c   : > { %4429 = vmatpush.bf16.msrb.mxu2 %v8536_v55 }
 0xc80   : > { %4430 = vmatpush.bf16.msrb.mxu2 %v8524_v38 }
 0xc82   : > { %4379 = vmatmul.bf16.vlgmr.msra.gmra.mxu2 %v3832_v56  ;;  %4393 = vmatmul.bf16.vlgmr.msra.gmra.mxu3 %v3833_v41 }
 0xc83   : > { %4407 = vmatmul.bf16.vlgmr.msra.gmra.mxu0 %v3831_v4  ;;  %4421 = vmatmul.bf16.vlgmr.msrb.gmra.mxu1 %v3832_v56 }
 0xc84   : > { %4431 = vmatpush.bf16.msrb.mxu2 %v8512_v36 }
 0xc88   : > { %4432 = vmatpush.bf16.msrb.mxu2 %v8500_v60  ;;  %v8588_v60 = vor.u32 %v9822_v58, %v8587_v33 }
 0xc8c   : > { %4433 = vmatpush.bf16.msrb.mxu2 %v8488_v7  ;;  %v8576_v7 = vor.u32 %v9819_v35, %v8575_v44  ;;  %v8579_v35 = vld [vmem:[#allocation12 + $0x108] sm:$0xf] }
 0xc90   : > { %4434 = vmatpush.bf16.msrb.mxu2 %v8476_v8 }
 0xc93   : > { %4435 = vmatmul.bf16.vlgmr.msrb.gmra.mxu2 %v3833_v41 }
 0xc94   : > { %4667 = vmatpush.bf16.msra.mxu2 %v8588_v60 }
 0xc98   : > { %4668 = vmatpush.bf16.msra.mxu2 %v8576_v7  ;;  %v9821_v7 = vld [vmem:[#allocation12 + $0x110] sm:$0xf0] }
 0xcf0   : > { %v4352_v62 = vpop.f32.mrf.mxu0  ;;  %v4366_v13 = vpop.f32.mrf.mxu1 }
 0xcf5   : > { %v4324_v26 = vpop.f32.mrf.mxu2  ;;  %v4338_v12 = vpop.f32.mrf.mxu3 }
 0xcf6   : > { %v4339_v17 = vadd.f32 %v4338_v12, %v4324_v26 }
 0xcf8   : > { %v4354_v39 = vpop.f32.mrf.mxu0  ;;  %v4353_v15 = vadd.f32 %v4352_v62, %v4339_v17  ;;  %v4368_v2 = vpop.f32.mrf.mxu1 }
 0xcfd   : > { %v4326_v18 = vpop.f32.mrf.mxu2  ;;  %v4340_v54 = vpop.f32.mrf.mxu3 }
 0xcfe   : > { %v4341_v19 = vadd.f32 %v4340_v54, %v4326_v18 }
 0xd00   : > { %v4355_v30 = vadd.f32 %v4354_v39, %v4341_v19  ;;  %v4408_v25 = vpop.f32.mrf.mxu0  ;;  %v4422_v29 = vpop.f32.mrf.mxu1 }
 0xd01   : > { %v4423_v28 = vadd.f32 %v4422_v29, %v4408_v25 }
 0xd02   : > { %v11483_v61 = vpack.c.bf16 %v4355_v30, %v4353_v15 }
 0xd04   : > { %4517 = vrot.lane.b32.xlu1 %v11483_v61, %s10774_s10 }
 0xd05   : > { %v4380_v20 = vpop.f32.mrf.mxu2  ;;  %v4394_v16 = vpop.f32.mrf.mxu3 }
 0xd06   : > { %v4381_v43 = vadd.f32 %v4380_v20, %v4366_v13 }
 0xd08   : > { %v4395_v31 = vadd.f32 %v4394_v16, %v4381_v43  ;;  %v4410_v63 = vpop.f32.mrf.mxu0  ;;  %v4424_v32 = vpop.f32.mrf.mxu1 }
 0xd09   : > { %v4425_v40 = vadd.f32 %v4424_v32, %v4410_v63  ;;  %v8606_v32 = vld [vmem:[#allocation12 + $0xd8] sm:$0xf] }
 0xd0d   : > { %v4382_v6 = vpop.f32.mrf.mxu2  ;;  %v4396_v14 = vpop.f32.mrf.mxu3 }
 0xd0e   : > { %v4383_v24 = vadd.f32 %v4382_v6, %v4368_v2 }
 0xd10   : > { %v4397_v46 = vadd.f32 %v4396_v14, %v4383_v24 }
 0xd12   : > { %v11487_v49 = vpack.c.bf16 %v4397_v46, %v4395_v31 }
 0xd14   : > { %4520 = vrot.lane.b32.xlu2 %v11487_v49, %s10774_s10  ;;  %v4448_v50 = vsel %vm1413_vm7, %v11487_v49, 0 }
 0xd15   : > { %4457 = vmatpush.bf16.xpose.msrb.mxu3 %v4448_v50 }
 0xd16   : > { %v4436_v11 = vpop.f32.mrf.mxu2 }
 0xd17   : > { %v4437_v56 = vadd.f32 %v4436_v11, %v4423_v28  ;;  %v9815_v28 = vld [vmem:[#allocation12 + $0xe0] sm:$0xf0] }
 0xd1c   : > { %8561 = vmatmul.msk.bf16.vlgmr.msrb.gmra.mxu3 %vm1413_vm7, %v11483_v61 }
 0xd1e   : > { %v4438_v4 = vpop.f32.mrf.mxu2 }
 0xd1f   : > { %v4439_v41 = vadd.f32 %v4438_v4, %v4425_v40  ;;  %v8594_v40 = vld [vmem:[#allocation12 + $0xc0] sm:$0xf]  ;;  %v8607_v4 = vor.u32 %v9815_v28, %v8606_v32 }
 0xd21   : > { %v11495_v23 = vpack.c.bf16 %v4439_v41, %v4437_v56  ;;  %v9812_v56 = vld [vmem:[#allocation12 + $0xc8] sm:$0xf0] }
 0xd22   : > { %v8595_v41 = vor.u32 %v9812_v56, %v8594_v40 }
 0xd23   : > { %4499 = vmatpush.bf16.msrb.mxu0 %v11495_v23 }
 0xd6e   : > { %v4521_v37 = vpop.permute.xlu2 %4520 }
 0xd6f   : > { %v4526_v1 = vsel %vm1413_vm7, %v4521_v37, 0 }
 0xd70   : > { %4535 = vmatpush.bf16.xpose.msra.mxu1 %v4526_v1 }
 0xd76   : > { %v4518_v42 = vpop.permute.xlu1 %4517 }
 0xd77   : > { %8563 = vmatmul.msk.bf16.vlgmr.msra.gmra.mxu1 %vm1413_vm7, %v4518_v42 }
 0xd9f   : > { %v4459_v45 = vpop.f32.mrf.mxu3 }
 0xda0   : > { %v4464_v5 = vsel %vm11165_vm8, %v4459_v45, -10000000.0 }
 0xda1   : > { %v4466_v36 = vsel %vm1436_vm9, %v4464_v5, -inf }
 0xda7   : > { %v4461_v43 = vpop.f32.mrf.mxu3 }
 0xda8   : > { %v4465_v6 = vsel %vm11174_vm12, %v4461_v43, -10000000.0  ;;  %v9814_v43 = vld [vmem:[#allocation12 + $0xdc] sm:$0xf] }
 0xda9   : > { %v4469_v24 = vsel %vm1436_vm9, %v4465_v6, -inf }
 0xdf4   : > { %v4537_v0 = vpop.f32.mrf.mxu1 }
 0xdf5   : > { %v4542_v59 = vsel %vm11165_vm8, %v4537_v0, -10000000.0 }
 0xdf6   : > { %v4544_v55 = vsel %vm1436_vm9, %v4542_v59, -inf }
 0xdf7   : > { %4545 = vmax.xlane.f32.xlu2 %v4544_v55 }
 0xdfc   : > { %v4539_v22 = vpop.f32.mrf.mxu1 }
 0xdfd   : > { %v4543_v3 = vsel %vm11174_vm12, %v4539_v22, -10000000.0 }
 0xdfe   : > { %v4547_v38 = vsel %vm1436_vm9, %v4543_v3, -inf }
 0xdff   : > { %4548 = vmax.xlane.f32.xlu1 %v4547_v38  ;;  %v8581_v38 = vld [vmem:[#allocation12 + $0x114] sm:$0xf0] }
 0xe07   : > { %4467 = vmax.xlane.f32.xlu1 %v4466_v36  ;;  %v8569_v36 = vld [vmem:[#allocation12 + $0xfc] sm:$0xf0] }
 0xe0f   : > { %4754 = vrot.lane.b32.xlu2 %v11487_v49, %s10775_s15 }
 0xe6a   : > { %v4546_v27 = vpop.xlane.xlu2 %4545 }
 0xe6b   : > { %v4550_v9 = vsub.f32 %v4542_v59, %v4546_v27  ;;  %v8567_v27 = vld [vmem:[#allocation12 + $0xf0] sm:$0xf] }
 0xe6d   : > { %v4552_v8 = vmul.f32 1.442695, %v4550_v9  ;;  %v8580_v9 = vor.u32 %v9821_v7, %v8579_v35 }
 0xe6f   : > { %10247 = vpow2.f32 %v4552_v8  ;;  %v9818_v8 = vld [vmem:[#allocation12 + $0xf8] sm:$0xf0]  ;;  %4639 = vmatpush.bf16.msra.mxu0 %v8580_v9  ;;  %v8635_v9 = vld [vmem:[#allocation12 + $0x138] sm:$0xf] }
 0xe72   : > { %v4755_v62 = vpop.permute.xlu2 %4754  ;;  %v4549_v26 = vpop.xlane.xlu1 %4548 }
 0xe73   : > { %v4760_v12 = vsel %vm1413_vm7, %v4755_v62, 0  ;;  %v4551_v13 = vsub.f32 %v4543_v3, %v4549_v26  ;;  %v9820_v3 = vld [vmem:[#allocation12 + $0x10c] sm:$0xf]  ;;  %v8568_v62 = vor.u32 %v9818_v8, %v8567_v27  ;;  %v9826_v8 = vld [vmem:[#allocation12 + $0x13c] sm:$0xf] }
 0xe74   : > { %4769 = vmatpush.bf16.xpose.msrb.mxu2 %v4760_v12  ;;  %v8584_v45 = vor.u32 %v9820_v3, %v8581_v38 }
 0xe75   : > { %v10248_v17 = vpop.eup %10247  ;;  %v4554_v18 = vmul.f32 1.442695, %v4551_v13  ;;  %4640 = vmatpush.bf16.msra.mxu0 %v8568_v62 }
 0xe76   : > { %v4556_v54 = vsel %vm1436_vm9, %v10248_v17, 0.0  ;;  %4653 = vmatpush.bf16.msrb.mxu1 %v8584_v45 }
 0xe77   : > { %10249 = vpow2.f32 %v4554_v18  ;;  %4557 = vadd.xlane.f32.xlu0 %v4556_v54 }
 0xe7a   : > { %v4468_v19 = vpop.xlane.xlu1 %4467 }
 0xe7b   : > { %v4472_v39 = vsub.f32 %v4464_v5, %v4468_v19  ;;  %v9817_v5 = vld [vmem:[#allocation12 + $0xf4] sm:$0xf] }
 0xe7c   : > { %v8572_v33 = vor.u32 %v9817_v5, %v8569_v36 }
 0xe7d   : > { %v10250_v15 = vpop.eup %10249  ;;  %v4474_v30 = vmul.f32 1.442695, %v4472_v39 }
 0xe7e   : > { %v4559_v20 = vsel %vm1436_vm9, %v10250_v15, 0.0  ;;  %4654 = vmatpush.bf16.msrb.mxu1 %v8572_v33 }
 0xe7f   : > { %10251 = vpow2.f32 %v4474_v30  ;;  %4560 = vadd.xlane.f32.xlu0 %v4559_v20  ;;  %v9816_v30 = vld [vmem:[#allocation12 + $0xe8] sm:$0xf0] }
 0xe85   : > { %v11514_v16 = vpop.eup %10251 }
 0xe86   : > { %v4478_v2 = vsel %vm1436_vm9, %v11514_v16, 0.0 }
 0xe87   : > { %4479 = vadd.xlane.f32.xlu1 %v4478_v2 }
 0xe93   : > { %4568 = vrot.lane.b32.xlu0 %v11495_v23, %s10774_s10 }
 0xe9b   : > { %4752 = vrot.lane.b32.xlu0 %v11483_v61, %s10775_s15 }
 0xec5   : > { %4470 = vmax.xlane.f32.xlu0 %v4469_v24 }
 0xed9   : > { %4801 = vrot.lane.b32.xlu0 %v11495_v23, %s10775_s15 }
 0xeea   : > { %v4558_v14 = vpop.xlane.xlu0 %4557 }
 0xef2   : > { %v4561_v25 = vpop.xlane.xlu0 %4560 }
 0xef3   : > { %10253 = vrcp.f32 %v4561_v25  ;;  %v8602_v25 = vld [vmem:[#allocation12 + $0xc8] sm:$0xf] }
 0xef4   : > { %10255 = vrcp.f32 %v4558_v14  ;;  %v9811_v14 = vld [vmem:[#allocation12 + $0xc4] sm:$0xf] }
 0xef9   : > { %v10254_v29 = vpop.eup %10253 }
 0xefa   : > { %v10256_v31 = vpop.eup %10255  ;;  %v4565_v46 = vmul.f32 %v10254_v29, %v10250_v15  ;;  %v4480_v26 = vpop.xlane.xlu1 %4479  ;;  %v8614_v15 = vld [vmem:[#allocation12 + $0xe0] sm:$0xf] }
 0xefb   : > { %v4564_v50 = vmul.f32 %v10256_v31, %v10248_v17  ;;  %v8615_v2 = vor.u32 %v9816_v30, %v8614_v15  ;;  %v9813_v31 = vld [vmem:[#allocation12 + $0xd0] sm:$0xf0]  ;;  %v9823_v15 = vld [vmem:[#allocation12 + $0x124] sm:$0xf] }
 0xefd   : > { %v4566_v63 = vpack.c.bf16 %v4565_v46, %v4564_v50  ;;  %4744 = vmatpush.bf16.msra.mxu1 %v8615_v2  ;;  %v8603_v46 = vor.u32 %v9813_v31, %v8602_v25  ;;  %v8625_v2 = vld [vmem:[#allocation12 + $0x12c] sm:$0xf0] }
 0xf01   : > { %4745 = vmatpush.bf16.msra.mxu1 %v8603_v46 }
 0xf05   : > { %v4569_v11 = vpop.permute.xlu0 %4568 }
 0xf06   : > { %4581 = vmatpush.bf16.msra.mxu3 %v4569_v11 }
 0xf09   : > { %8564 = vmatmul.msk.bf16.vlgmr.msra.gmra.mxu3 %vm1436_vm9, %v4566_v63 }
 0xf0a   : > { %4716 = vmatpush.bf16.msrb.mxu3 %v8607_v4 }
 0xf0d   : > { %v4753_v37 = vpop.permute.xlu0 %4752 }
 0xf0e   : > { %4717 = vmatpush.bf16.msrb.mxu3 %v8595_v41 }
 0xf38   : > { %v4471_v1 = vpop.xlane.xlu0 %4470 }
 0xf39   : > { %v4473_v42 = vsub.f32 %v4465_v6, %v4471_v1  ;;  %v8608_v6 = vld [vmem:[#allocation12 + $0xe4] sm:$0xf0] }
 0xf3a   : > { %v8611_v24 = vor.u32 %v9814_v43, %v8608_v6  ;;  %v8631_v43 = vld [vmem:[#allocation12 + $0x128] sm:$0xf]  ;;  %v9825_v6 = vld [vmem:[#allocation12 + $0x130] sm:$0xf0] }
 0xf3b   : > { %v4476_v0 = vmul.f32 1.442695, %v4473_v42 }
 0xf3d   : > { %10257 = vpow2.f32 %v4476_v0 }
 0xf3e   : > { %10259 = vrcp.f32 %v4480_v26  ;;  %v8637_v26 = vld [vmem:[#allocation12 + $0x144] sm:$0xf0] }
 0xf43   : > { %v10258_v59 = vpop.eup %10257 }
 0xf44   : > { %v4481_v55 = vsel %vm1436_vm9, %v10258_v59, 0.0  ;;  %v10260_v13 = vpop.eup %10259 }
 0xf45   : > { %4482 = vadd.xlane.f32.xlu1 %v4481_v55  ;;  %v4486_v18 = vmul.f32 %v10260_v13, %v11514_v16  ;;  %v8596_v16 = vld [vmem:[#allocation12 + $0xcc] sm:$0xf0]  ;;  %v9828_v13 = vld [vmem:[#allocation12 + $0x148] sm:$0xf0] }
 0xf46   : > { %v8599_v29 = vor.u32 %v9811_v14, %v8596_v16  ;;  %v8632_v14 = vor.u32 %v9825_v6, %v8631_v43  ;;  %v9831_v43 = vld [vmem:[#allocation12 + $0x160] sm:$0xf0] }
 0xf4b   : > { %v4802_v22 = vpop.permute.xlu0 %4801 }
 0xf4c   : > { %4814 = vmatpush.bf16.msra.mxu3 %v4802_v22 }
 0xf8c   : > { %v4583_v58 = vpop.f32.mrf.mxu3 }
 0xf94   : > { %v4585_v60 = vpop.f32.mrf.mxu3 }
 0xf95   : > { %v4588_v44 = vpack.c.bf16 %v4585_v60, %v4583_v58 }
 0xf97   : > { %8590 = vmatmul.msk.bf16.vlgmr.msrb.gmra.mxu1 %vm1413_vm7, %v4588_v44  ;;  %8591 = vmatmul.msk.bf16.vlgmr.msra.gmra.mxu2 %vm1413_vm7, %v4588_v44 }
 0xfa7   : > { %8619 = vmatmul.msk.bf16.vlgmr.msrb.gmra.mxu2 %vm1413_vm7, %v4753_v37 }
 0xfb8   : > { %v4483_v12 = vpop.xlane.xlu1 %4482 }
 0xfb9   : > { %10261 = vrcp.f32 %v4483_v12  ;;  %v8643_v12 = vld [vmem:[#allocation12 + $0x140] sm:$0xf] }
 0xfbf   : > { %v10262_v17 = vpop.eup %10261 }
 0xfc0   : > { %v4487_v54 = vmul.f32 %v10262_v17, %v10258_v59  ;;  %v8640_v17 = vor.u32 %v9826_v8, %v8637_v26  ;;  %v8672_v26 = vld [vmem:[#allocation12 + $0x170] sm:$0xf] }
 0xfc2   : > { %v4488_v19 = vpack.c.bf16 %v4487_v54, %v4486_v18  ;;  %v8644_v18 = vor.u32 %v9828_v13, %v8643_v12  ;;  %4886 = vmatpush.bf16.msrb.mxu1 %v8640_v17  ;;  %v8623_v54 = vld [vmem:[#allocation12 + $0x120] sm:$0xf]  ;;  %v9834_v12 = vld [vmem:[#allocation12 + $0x178] sm:$0xf0] }
 0xfc3   : > { %v8673_v17 = vor.u32 %v9834_v12, %v8672_v26  ;;  %v9897_v12 = vld [vmem:[#allocation16 + $0x4ec] sm:$0xf0] }
 0xfc4   : > { %8562 = vmatmul.msk.bf16.vlgmr.msrb.gmra.mxu0 %vm1436_vm9, %v4488_v19  ;;  %4900 = vmatpush.bf16.msra.mxu2 %v8644_v18  ;;  %v9824_v19 = vld [vmem:[#allocation12 + $0x128] sm:$0xf0]  ;;  %v8652_v18 = vld [vmem:[#allocation12 + $0x150] sm:$0xf] }
 0xfc5   : > { %4730 = vmatpush.bf16.msrb.mxu0 %v8611_v24  ;;  %v8624_v30 = vor.u32 %v9824_v19, %v8623_v54  ;;  %v8628_v24 = vor.u32 %v9823_v15, %v8625_v2  ;;  %v9830_v54 = vld [vmem:[#allocation12 + $0x158] sm:$0xf0]  ;;  %v9829_v19 = vld [vmem:[#allocation12 + $0x154] sm:$0xf]  ;;  %v8660_v2 = vld [vmem:[#allocation12 + $0x158] sm:$0xf] }
 0xfc6   : > { %v8653_v15 = vor.u32 %v9830_v54, %v8652_v18  ;;  %v8794_v54 = vld [vmem:[#allocation16 + $0x3f0] sm:$0xf0] }
 0xfc7   : > { %4887 = vmatpush.bf16.msrb.mxu1 %v8628_v24  ;;  %v8661_v24 = vor.u32 %v9831_v43, %v8660_v2  ;;  %v9893_v2 = vld [vmem:[#allocation16 + $0x4cc] sm:$0xf0] }
 0xfc8   : > { %4901 = vmatpush.bf16.msra.mxu2 %v8632_v14 }
 0xfc9   : > { %4731 = vmatpush.bf16.msrb.mxu0 %v8599_v29 }
 0xfd4   : > { %8589 = vmatmul.msk.bf16.vlgmr.msra.gmra.mxu0 %vm1413_vm7, %v4588_v44 }
0x101a   : > { %v11535_v39 = vpop.f32.mrf.mxu2 }
0x1022   : > { %v11537_v20 = vpop.f32.mrf.mxu2 }
0x102a   : > { %v4771_v50 = vpop.f32.mrf.mxu2 }
0x102b   : > { %v4776_v11 = vsel %vm11165_vm8, %v4771_v50, -10000000.0 }
0x102c   : > { %v4778_v63 = vsel %vm1436_vm9, %v4776_v11, -inf }
0x102d   : > { %4779 = vmax.xlane.f32.xlu2 %v4778_v63 }
0x1032   : > { %v4773_v32 = vpop.f32.mrf.mxu2 }
0x1033   : > { %v4777_v28 = vsel %vm11174_vm12, %v4773_v32, -10000000.0 }
0x1034   : > { %v4781_v40 = vsel %vm1436_vm9, %v4777_v28, -inf }
0x1035   : > { %4782 = vmax.xlane.f32.xlu1 %v4781_v40 }
0x1041   : > { %v4501_v4 = vpop.f32.mrf.mxu0 }
0x1045   : > { %4914 = vrot.lane.b32.xlu2 %v11483_v61, %s10776_s6 }
0x1049   : > { %v4503_v56 = vpop.f32.mrf.mxu0 }
0x104a   : > { %v4506_v41 = vpack.c.bf16 %v4503_v56, %v4501_v4 }
0x104c   : > { %8616 = vmatmul.msk.bf16.vlgmr.msrb.gmra.mxu3 %vm1413_vm7, %v4506_v41  ;;  %8617 = vmatmul.msk.bf16.vlgmr.msrb.gmra.mxu0 %vm1413_vm7, %v4506_v41 }
0x104d   : > { %8618 = vmatmul.msk.bf16.vlgmr.msra.gmra.mxu1 %vm1413_vm7, %v4506_v41 }
0x1051   : > { %v4642_v4 = vpop.f32.mrf.mxu0 }
0x1059   : > { %v11570_v56 = vpop.f32.mrf.mxu0 }
0x10a0   : > { %v4780_v37 = vpop.xlane.xlu2 %4779 }
0x10a1   : > { %v4784_v1 = vsub.f32 %v4776_v11, %v4780_v37 }
0x10a3   : > { %v4786_v42 = vmul.f32 1.442695, %v4784_v1 }
0x10a5   : > { %10263 = vpow2.f32 %v4786_v42 }
0x10a8   : > { %v4783_v0 = vpop.xlane.xlu1 %4782  ;;  %v4915_v27 = vpop.permute.xlu2 %4914 }
0x10a9   : > { %v4785_v59 = vsub.f32 %v4777_v28, %v4783_v0 }
0x10ab   : > { %v10264_v55 = vpop.eup %10263  ;;  %v4788_v22 = vmul.f32 1.442695, %v4785_v59 }
0x10ac   : > { %v4790_v3 = vsel %vm1436_vm9, %v10264_v55, 0.0 }
0x10ad   : > { %10265 = vpow2.f32 %v4788_v22  ;;  %4791 = vadd.xlane.f32.xlu1 %v4790_v3 }
0x10b3   : > { %v10266_v61 = vpop.eup %10265 }
0x10b4   : > { %v4793_v38 = vsel %vm1436_vm9, %v10266_v61, 0.0 }
0x10b5   : > { %4794 = vadd.xlane.f32.xlu1 %v4793_v38 }
0x10c9   : > { %v11572_v41 = vpop.f32.mrf.mxu0 }
0x10ce   : > { %4916 = vrot.lane.b32.xlu1 %v11487_v49, %s10776_s6  ;;  %v9827_v49 = vld [vmem:[#allocation12 + $0x140] sm:$0xf0] }
0x10cf   : > { %v8636_v62 = vor.u32 %v9827_v49, %v8635_v9  ;;  %v4719_v16 = vpop.f32.mrf.mxu3  ;;  %v9833_v9 = vld [vmem:[#allocation12 + $0x170] sm:$0xf0]  ;;  %v9832_v49 = vld [vmem:[#allocation12 + $0x16c] sm:$0xf] }
0x10d0   : > { %v4720_v37 = vadd.f32 %v4719_v16, %v4642_v4 }
0x10d1   : > { %4872 = vmatpush.bf16.msra.mxu0 %v8636_v62  ;;  %v11574_v47 = vpop.f32.mrf.mxu0  ;;  %v8666_v62 = vld [vmem:[#allocation12 + $0x174] sm:$0xf0] }
0x10d2   : > { %v8669_v13 = vor.u32 %v9832_v49, %v8666_v62  ;;  %v8792_v49 = vld [vmem:[#allocation16 + $0x3e0] sm:$0xf] }
0x10d3   : > { %v8920_v62 = vld [vmem:[#allocation16 + $0x4e0] sm:$0xf] }
0x10d4   : > { %5048 = vmatpush.bf16.msrb.mxu2 %v8669_v13  ;;  %v9048_v13 = vld [vmem:[#allocation16 + $0x5e0] sm:$0xf] }
0x10d5   : > { %4873 = vmatpush.bf16.msra.mxu0 %v8624_v30  ;;  %v8654_v30 = vld [vmem:[#allocation12 + $0x15c] sm:$0xf0] }
0x10d6   : > { %v8657_v6 = vor.u32 %v9829_v19, %v8654_v30  ;;  %v8776_v19 = vld [vmem:[#allocation16 + $0x3c0] sm:$0xf] }
0x10d7   : > { %v11557_v25 = vpop.f32.mrf.mxu3  ;;  %v8904_v30 = vld [vmem:[#allocation16 + $0x4c0] sm:$0xf] }
0x10d8   : > { %5049 = vmatpush.bf16.msrb.mxu2 %v8657_v6  ;;  %v8905_v6 = vor.u32 %v9893_v2, %v8904_v30 }
0x1120   : > { %v4792_v45 = vpop.xlane.xlu1 %4791 }
0x1121   : > { %10267 = vrcp.f32 %v4792_v45 }
0x1127   : > { %v10268_v36 = vpop.eup %10267 }
0x1128   : > { %v4795_v5 = vpop.xlane.xlu1 %4794  ;;  %v4798_v58 = vmul.f32 %v10268_v36, %v10264_v55 }
0x1129   : > { %10269 = vrcp.f32 %v4795_v5 }
0x112f   : > { %v10270_v33 = vpop.eup %10269 }
0x1130   : > { %v4799_v60 = vmul.f32 %v10270_v33, %v10266_v61 }
0x1132   : > { %v4800_v44 = vpack.c.bf16 %v4799_v60, %v4798_v58 }
0x1134   : > { %8620 = vmatmul.msk.bf16.vlgmr.msra.gmra.mxu3 %vm1436_vm9, %v4800_v44 }
0x1140   : > { %v4917_v35 = vpop.permute.xlu1 %4916 }
0x1141   : > { %v4922_v7 = vsel %vm1413_vm7, %v4917_v35, 0 }
0x1142   : > { %4931 = vmatpush.bf16.xpose.msrb.mxu3 %v4922_v7 }
0x1149   : > { %8648 = vmatmul.msk.bf16.vlgmr.msrb.gmra.mxu3 %vm1413_vm7, %v4915_v27  ;;  %v8664_v27 = vld [vmem:[#allocation12 + $0x168] sm:$0xf] }
0x114a   : > { %v8665_v8 = vor.u32 %v9833_v9, %v8664_v27  ;;  %5062 = vmatpush.bf16.msra.mxu3 %v8673_v17  ;;  %v8921_v17 = vor.u32 %v9897_v12, %v8920_v62 }
0x114c   : > { %5034 = vmatpush.bf16.msra.mxu1 %v8665_v8  ;;  %v9865_v8 = vld [vmem:[#allocation16 + $0x3ec] sm:$0xf0] }
0x114d   : > { %v8793_v26 = vor.u32 %v9865_v8, %v8792_v49  ;;  %v8730_v49 = vld [vmem:[#allocation16 + $0x370] sm:$0xf0] }
0x114e   : > { %5063 = vmatpush.bf16.msra.mxu3 %v8661_v24  ;;  %v9032_v24 = vld [vmem:[#allocation16 + $0x5c0] sm:$0xf] }
0x1150   : > { %5035 = vmatpush.bf16.msra.mxu1 %v8653_v15  ;;  %v9861_v15 = vld [vmem:[#allocation16 + $0x3cc] sm:$0xf0] }
0x1151   : > { %v8777_v43 = vor.u32 %v9861_v15, %v8776_v19 }
0x11b7   : > { %v4816_v29 = vpop.f32.mrf.mxu3 }
0x11bf   : > { %v4818_v31 = vpop.f32.mrf.mxu3 }
0x11c0   : > { %v4821_v46 = vpack.c.bf16 %v4818_v31, %v4816_v29 }
0x11c2   : > { %8645 = vmatmul.msk.bf16.vlgmr.msra.gmra.mxu0 %vm1413_vm7, %v4821_v46  ;;  %8646 = vmatmul.msk.bf16.vlgmr.msrb.gmra.mxu1 %vm1413_vm7, %v4821_v46 }
0x11c3   : > { %8647 = vmatmul.msk.bf16.vlgmr.msra.gmra.mxu2 %vm1413_vm7, %v4821_v46  ;;  %v4656_v46 = vpop.f32.mrf.mxu1  ;;  %5783 = vmatpush.bf16.msrb.mxu1 %v8921_v17 }
0x11c7   : > { %5784 = vmatpush.bf16.msrb.mxu1 %v8905_v6 }
0x11cc   : > { %v4933_v50 = vpop.f32.mrf.mxu3 }
0x11cd   : > { %v4938_v11 = vsel %vm11165_vm8, %v4933_v50, -10000000.0  ;;  %v4658_v50 = vpop.f32.mrf.mxu1 }
0x11ce   : > { %v4940_v63 = vsel %vm1436_vm9, %v4938_v11, -inf }
0x11cf   : > { %4941 = vmax.xlane.f32.xlu0 %v4940_v63 }
0x11d4   : > { %v4935_v32 = vpop.f32.mrf.mxu3 }
0x11d5   : > { %v4939_v28 = vsel %vm11174_vm12, %v4935_v32, -10000000.0 }
0x11d6   : > { %v4943_v40 = vsel %vm1436_vm9, %v4939_v28, -inf }
0x11d7   : > { %4944 = vmax.xlane.f32.xlu1 %v4943_v40 }
0x11f0   : > { %4963 = vrot.lane.b32.xlu1 %v11495_v23, %s10776_s6 }
0x123f   : > { %v4875_v1 = vpop.f32.mrf.mxu0 }
0x1240   : > { %v11576_v42 = vadd.f32 %v4875_v1, %v4720_v37  ;;  %v4734_v1 = vadd.f32 %v11572_v41, %v4656_v46  ;;  %v8760_v46 = vld [vmem:[#allocation16 + $0x3a0] sm:$0xf] }
0x1242   : > { %v4942_v0 = vpop.xlane.xlu0 %4941 }
0x1243   : > { %v4946_v57 = vsub.f32 %v4938_v11, %v4942_v0  ;;  %v4747_v11 = vpop.f32.mrf.mxu1 }
0x1244   : > { %v4748_v0 = vadd.f32 %v4747_v11, %v11535_v39  ;;  %v4736_v39 = vadd.f32 %v11574_v47, %v4658_v50  ;;  %v9857_v50 = vld [vmem:[#allocation16 + $0x3ac] sm:$0xf0] }
0x1245   : > { %v4948_v59 = vmul.f32 1.442695, %v4946_v57 }
0x1247   : > { %10271 = vpow2.f32 %v4948_v59  ;;  %v4877_v14 = vpop.f32.mrf.mxu0 }
0x124a   : > { %v4945_v55 = vpop.xlane.xlu1 %4944 }
0x124b   : > { %v4947_v22 = vsub.f32 %v4939_v28, %v4945_v55  ;;  %v4749_v63 = vpop.f32.mrf.mxu1  ;;  %v4903_v28 = vpop.f32.mrf.mxu2 }
0x124c   : > { %v4910_v55 = vadd.f32 %v4903_v28, %v4748_v0  ;;  %v9016_v28 = vld [vmem:[#allocation16 + $0x5a0] sm:$0xf] }
0x124d   : > { %v10272_v3 = vpop.eup %10271  ;;  %v4950_v61 = vmul.f32 1.442695, %v4947_v22 }
0x124e   : > { %v4952_v23 = vsel %vm1436_vm9, %v10272_v3, 0.0 }
0x124f   : > { %10273 = vpow2.f32 %v4950_v61  ;;  %4953 = vadd.xlane.f32.xlu2 %v4952_v23 }
0x1253   : > { %v4889_v32 = vpop.f32.mrf.mxu1  ;;  %v4905_v4 = vpop.f32.mrf.mxu2 }
0x1254   : > { %v4909_v57 = vadd.f32 %v4889_v32, %v4734_v1  ;;  %v9889_v32 = vld [vmem:[#allocation16 + $0x4ac] sm:$0xf0]  ;;  %v8762_v1 = vld [vmem:[#allocation16 + $0x3b0] sm:$0xf0] }
0x1255   : > { %v10274_v38 = vpop.eup %10273 }
0x1256   : > { %v4955_v45 = vsel %vm1436_vm9, %v10274_v38, 0.0 }
0x1257   : > { %4956 = vadd.xlane.f32.xlu0 %v4955_v45 }
0x125b   : > { %v4891_v40 = vpop.f32.mrf.mxu1 }
0x1262   : > { %v4964_v5 = vpop.permute.xlu1 %4963 }
0x1263   : > { %4976 = vmatpush.bf16.msrb.mxu0 %v4964_v5 }
0x1267   : > { %5769 = vmatpush.bf16.msra.mxu0 %v8793_v26 }
0x126b   : > { %5770 = vmatpush.bf16.msra.mxu0 %v8777_v43 }
0x12c2   : > { %v4954_v36 = vpop.xlane.xlu2 %4953 }
0x12c3   : > { %10275 = vrcp.f32 %v4954_v36 }
0x12c9   : > { %v10276_v58 = vpop.eup %10275 }
0x12ca   : > { %v4957_v33 = vpop.xlane.xlu0 %4956  ;;  %v4960_v44 = vmul.f32 %v10276_v58, %v10272_v3  ;;  %v4750_v58 = vadd.f32 %v4749_v63, %v11537_v20  ;;  %v8888_v63 = vld [vmem:[#allocation16 + $0x4a0] sm:$0xf] }
0x12cb   : > { %10277 = vrcp.f32 %v4957_v33  ;;  %v8889_v0 = vor.u32 %v9889_v32, %v8888_v63 }
0x12cd   : > { %5785 = vmatpush.bf16.msrb.mxu1 %v8889_v0  ;;  %v8824_v0 = vld [vmem:[#allocation16 + $0x420] sm:$0xf] }
0x12d1   : > { %v10278_v60 = vpop.eup %10277 }
0x12d2   : > { %v4961_v35 = vmul.f32 %v10278_v60, %v10274_v38  ;;  %v4722_v38 = vadd.f32 %v11557_v25, %v11570_v56  ;;  %v4912_v60 = vadd.f32 %v4891_v40, %v4736_v39  ;;  %v4913_v56 = vadd.f32 %v4905_v4, %v4750_v58  ;;  %v9921_v4 = vld [vmem:[#allocation16 + $0x5ac] sm:$0xf0]  ;;  %v8746_v39 = vld [vmem:[#allocation16 + $0x390] sm:$0xf0] }
0x12d3   : > { %v8761_v40 = vor.u32 %v9857_v50, %v8760_v46  ;;  %v9849_v58 = vld [vmem:[#allocation16 + $0x36c] sm:$0xf0]  ;;  %v8968_v50 = vld [vmem:[#allocation16 + $0x540] sm:$0xf] }
0x12d4   : > { %v4962_v7 = vpack.c.bf16 %v4961_v35, %v4960_v44  ;;  %v4911_v36 = vadd.f32 %v4877_v14, %v4722_v38  ;;  %v9925_v14 = vld [vmem:[#allocation16 + $0x5cc] sm:$0xf0] }
0x12d5   : > { %v9917_v38 = vld [vmem:[#allocation16 + $0x58c] sm:$0xf0]  ;;  %5771 = vmatpush.bf16.msra.mxu0 %v8761_v40  ;;  %v8714_v40 = vld [vmem:[#allocation16 + $0x350] sm:$0xf0] }
0x12d6   : > { %8649 = vmatmul.msk.bf16.vlgmr.msrb.gmra.mxu0 %vm1436_vm9, %v4962_v7  ;;  %v9877_v46 = vld [vmem:[#allocation16 + $0x44c] sm:$0xf0] }
0x1353   : > { %v4978_v16 = vpop.f32.mrf.mxu0 }
0x135b   : > { %v4980_v29 = vpop.f32.mrf.mxu0 }
0x135c   : > { %v4983_v31 = vpack.c.bf16 %v4980_v29, %v4978_v16  ;;  %v9859_v16 = vld [vmem:[#allocation16 + $0x3c4] sm:$0xf]  ;;  %v9033_v29 = vor.u32 %v9925_v14, %v9032_v24 }
0x135e   : > { %8674 = vmatmul.msk.bf16.vlgmr.msra.gmra.mxu1 %vm1413_vm7, %v4983_v31  ;;  %8675 = vmatmul.msk.bf16.vlgmr.msrb.gmra.mxu2 %vm1413_vm7, %v4983_v31 }
0x135f   : > { %8676 = vmatmul.msk.bf16.vlgmr.msra.gmra.mxu3 %vm1413_vm7, %v4983_v31  ;;  %v8778_v31 = vld [vmem:[#allocation16 + $0x3d0] sm:$0xf0] }
0x1360   : > { %v8781_v11 = vor.u32 %v9859_v16, %v8778_v31  ;;  %v8840_v31 = vld [vmem:[#allocation16 + $0x440] sm:$0xf] }
0x1361   : > { %v8841_v63 = vor.u32 %v9877_v46, %v8840_v31  ;;  %v8890_v46 = vld [vmem:[#allocation16 + $0x4b0] sm:$0xf0] }
0x13db   : > { %v5037_v37 = vpop.f32.mrf.mxu1 }
0x13dc   : > { %v5070_v59 = vadd.f32 %v5037_v37, %v11576_v42  ;;  %v9855_v37 = vld [vmem:[#allocation16 + $0x3a4] sm:$0xf] }
0x13de   : > { %v11590_v45 = vadd.f32 %v5070_v59, %v11465_v52  ;;  %v8744_v59 = vld [vmem:[#allocation16 + $0x380] sm:$0xf] }
0x13e1   : > { %v5051_v22 = vpop.f32.mrf.mxu2 }
0x13e2   : > { %v5071_v3 = vadd.f32 %v5051_v22, %v4909_v57  ;;  %v5065_v61 = vpop.f32.mrf.mxu3  ;;  %v9017_v57 = vor.u32 %v9921_v4, %v9016_v28  ;;  %v8872_v22 = vld [vmem:[#allocation16 + $0x480] sm:$0xf]  ;;  %v9843_v28 = vld [vmem:[#allocation16 + $0x344] sm:$0xf] }
0x13e3   : > { %v5072_v23 = vadd.f32 %v5065_v61, %v4910_v55  ;;  %v5039_v41 = vpop.f32.mrf.mxu1  ;;  %v9853_v55 = vld [vmem:[#allocation16 + $0x38c] sm:$0xf0]  ;;  %v8717_v4 = vor.u32 %v9843_v28, %v8714_v40  ;;  %v9858_v28 = vld [vmem:[#allocation16 + $0x3b4] sm:$0xf0] }
0x13e4   : > { %v11593_v5 = vadd.f32 %v5071_v3, %v11467_v51  ;;  %v5073_v25 = vadd.f32 %v5039_v41, %v4911_v36  ;;  %v8765_v3 = vor.u32 %v9855_v37, %v8762_v1  ;;  %v9885_v61 = vld [vmem:[#allocation16 + $0x48c] sm:$0xf0]  ;;  %v9851_v41 = vld [vmem:[#allocation16 + $0x384] sm:$0xf]  ;;  %v8745_v36 = vor.u32 %v9853_v55, %v8744_v59  ;;  %v8696_v37 = vld [vmem:[#allocation16 + $0x320] sm:$0xf] }
0x13e5   : > { %v11597_v42 = vadd.f32 %v5072_v23, %v11473_v53  ;;  %v9000_v23 = vld [vmem:[#allocation16 + $0x580] sm:$0xf]  ;;  %v9841_v1 = vld [vmem:[#allocation16 + $0x32c] sm:$0xf0] }
0x13e6   : > { %v5086_v33 = vadd.f32 %v11593_v5, %v11590_v45  ;;  %v11604_v47 = vadd.f32 %v5073_v25, %v11469_v21  ;;  %v9929_v21 = vld [vmem:[#allocation16 + $0x5ec] sm:$0xf0]  ;;  %v8873_v25 = vor.u32 %v9885_v61, %v8872_v22  ;;  %5772 = vmatpush.bf16.msra.mxu0 %v8745_v36  ;;  %v8952_v55 = vld [vmem:[#allocation16 + $0x520] sm:$0xf] }
0x13e7   : > { %v9049_v18 = vor.u32 %v9929_v21, %v9048_v13  ;;  %v9873_v59 = vld [vmem:[#allocation16 + $0x42c] sm:$0xf0] }
0x13e8   : > { %v5087_v52 = vadd.f32 %v5086_v33, %v11597_v42  ;;  %v8728_v33 = vld [vmem:[#allocation16 + $0x360] sm:$0xf]  ;;  %5786 = vmatpush.bf16.msrb.mxu1 %v8873_v25  ;;  %v9905_v22 = vld [vmem:[#allocation16 + $0x52c] sm:$0xf0] }
0x13e9   : > { %v5053_v44 = vpop.f32.mrf.mxu2  ;;  %5797 = vmatpush.bf16.msra.mxu2 %v9049_v18  ;;  %v8729_v8 = vor.u32 %v9849_v58, %v8728_v33  ;;  %v8953_v61 = vor.u32 %v9905_v22, %v8952_v55  ;;  %v9837_v36 = vld [vmem:[#allocation16 + $0x30c] sm:$0xf0]  ;;  %v8808_v33 = vld [vmem:[#allocation16 + $0x400] sm:$0xf]  ;;  %v9915_v55 = vld [vmem:[#allocation16 + $0x584] sm:$0xf] }
0x13ea   : > { %v5074_v51 = vadd.f32 %v5053_v44, %v4912_v60  ;;  %v5067_v35 = vpop.f32.mrf.mxu3  ;;  %5088 = vadd.xlane.f32.xlu0 %v5087_v52  ;;  %v8856_v60 = vld [vmem:[#allocation16 + $0x460] sm:$0xf]  ;;  %v9001_v52 = vor.u32 %v9917_v38, %v9000_v23  ;;  %v9839_v23 = vld [vmem:[#allocation16 + $0x324] sm:$0xf]  ;;  %v8698_v38 = vld [vmem:[#allocation16 + $0x330] sm:$0xf0] }
0x13eb   : > { %v5075_v7 = vadd.f32 %v5067_v35, %v4913_v56  ;;  %v9881_v56 = vld [vmem:[#allocation16 + $0x46c] sm:$0xf0]  ;;  %v8984_v44 = vld [vmem:[#allocation16 + $0x560] sm:$0xf]  ;;  %5773 = vmatpush.bf16.msra.mxu0 %v8729_v8  ;;  %v9050_v8 = vld [vmem:[#allocation16 + $0x5f0] sm:$0xf0] }
0x13ec   : > { %v11607_v53 = vadd.f32 %v5074_v51, %v11471_v34  ;;  %v9863_v34 = vld [vmem:[#allocation16 + $0x3e4] sm:$0xf]  ;;  %v9913_v51 = vld [vmem:[#allocation16 + $0x56c] sm:$0xf0]  ;;  %v8857_v62 = vor.u32 %v9881_v56, %v8856_v60  ;;  %v8936_v25 = vld [vmem:[#allocation16 + $0x500] sm:$0xf] }
0x13ed   : > { %v11610_v27 = vadd.f32 %v5075_v7, %v11475_v10  ;;  %v8797_v10 = vor.u32 %v9863_v34, %v8794_v54  ;;  %5798 = vmatpush.bf16.msra.mxu2 %v9033_v29  ;;  %v8749_v7 = vor.u32 %v9851_v41, %v8746_v39  ;;  %v8985_v26 = vor.u32 %v9913_v51, %v8984_v44  ;;  %v9845_v29 = vld [vmem:[#allocation16 + $0x34c] sm:$0xf0]  ;;  %v8680_v39 = vld [vmem:[#allocation16 + $0x300] sm:$0xf]  ;;  %v9835_v51 = vld [vmem:[#allocation16 + $0x304] sm:$0xf] }
0x13ee   : > { %v5090_v20 = vadd.f32 %v11607_v53, %v11604_v47  ;;  %5787 = vmatpush.bf16.msrb.mxu1 %v8857_v62  ;;  %v8701_v41 = vor.u32 %v9839_v23, %v8698_v38  ;;  %v8681_v58 = vor.u32 %v9837_v36, %v8680_v39  ;;  %v9869_v60 = vld [vmem:[#allocation16 + $0x40c] sm:$0xf0]  ;;  %v9854_v23 = vld [vmem:[#allocation16 + $0x394] sm:$0xf0]  ;;  %v8880_v39 = vld [vmem:[#allocation16 + $0x488] sm:$0xf] }
0x13ef   : > { %5811 = vmatpush.bf16.msrb.mxu3 %v8797_v10  ;;  %v8809_v56 = vor.u32 %v9869_v60, %v8808_v33  ;;  %v9886_v36 = vld [vmem:[#allocation16 + $0x494] sm:$0xf0]  ;;  %v8858_v60 = vld [vmem:[#allocation16 + $0x470] sm:$0xf0] }
0x13f0   : > { %v5091_v9 = vadd.f32 %v5090_v20, %v11610_v27  ;;  %v8881_v33 = vor.u32 %v9886_v36, %v8880_v39 }
0x13f1   : > { %5799 = vmatpush.bf16.msra.mxu2 %v9017_v57  ;;  %v8697_v57 = vor.u32 %v9841_v1, %v8696_v37  ;;  %v8896_v37 = vld [vmem:[#allocation16 + $0x4a8] sm:$0xf]  ;;  %v9890_v1 = vld [vmem:[#allocation16 + $0x4b4] sm:$0xf0] }
0x13f2   : > { %5092 = vadd.xlane.f32.xlu2 %v5091_v9  ;;  %v9847_v9 = vld [vmem:[#allocation16 + $0x364] sm:$0xf]  ;;  %5788 = vmatpush.bf16.msrb.mxu1 %v8841_v63  ;;  %v9018_v63 = vld [vmem:[#allocation16 + $0x5b0] sm:$0xf0] }
0x13f3   : > { %5812 = vmatpush.bf16.msrb.mxu3 %v8781_v11  ;;  %v8733_v17 = vor.u32 %v9847_v9, %v8730_v49  ;;  %v9909_v11 = vld [vmem:[#allocation16 + $0x54c] sm:$0xf0]  ;;  %v8922_v9 = vld [vmem:[#allocation16 + $0x4f0] sm:$0xf0]  ;;  %v9927_v49 = vld [vmem:[#allocation16 + $0x5e4] sm:$0xf] }
0x13f4   : > { %v8969_v32 = vor.u32 %v9909_v11, %v8968_v50  ;;  %v9919_v50 = vld [vmem:[#allocation16 + $0x5a4] sm:$0xf] }
0x13f5   : > { %5800 = vmatpush.bf16.msra.mxu2 %v9001_v52  ;;  %v9901_v52 = vld [vmem:[#allocation16 + $0x50c] sm:$0xf0]  ;;  %v9021_v40 = vor.u32 %v9919_v50, %v9018_v63  ;;  %v8832_v50 = vld [vmem:[#allocation16 + $0x428] sm:$0xf]  ;;  %v9874_v63 = vld [vmem:[#allocation16 + $0x434] sm:$0xf0] }
0x13f6   : > { %v8937_v44 = vor.u32 %v9901_v52, %v8936_v25  ;;  %v9911_v25 = vld [vmem:[#allocation16 + $0x564] sm:$0xf] }
0x13f7   : > { %5813 = vmatpush.bf16.msrb.mxu3 %v8765_v3  ;;  %v8825_v3 = vor.u32 %v9873_v59, %v8824_v0  ;;  %v8897_v0 = vor.u32 %v9890_v1, %v8896_v37  ;;  %v8874_v59 = vld [vmem:[#allocation16 + $0x490] sm:$0xf0] }
0x13f8   : > { %v8938_v1 = vld [vmem:[#allocation16 + $0x510] sm:$0xf0] }
0x13f9   : > { %5801 = vmatpush.bf16.msra.mxu2 %v8985_v26  ;;  %5789 = vmatpush.bf16.msrb.mxu1 %v8825_v3  ;;  %v9053_v26 = vor.u32 %v9927_v49, %v9050_v8  ;;  %v9002_v3 = vld [vmem:[#allocation16 + $0x590] sm:$0xf0]  ;;  %v9875_v8 = vld [vmem:[#allocation16 + $0x444] sm:$0xf] }
0x13fa   : > { %v9005_v38 = vor.u32 %v9915_v55, %v9002_v3  ;;  %v9870_v3 = vld [vmem:[#allocation16 + $0x414] sm:$0xf0] }
0x13fb   : > { %5814 = vmatpush.bf16.msrb.mxu3 %v8749_v7  ;;  %v9895_v7 = vld [vmem:[#allocation16 + $0x4e4] sm:$0xf] }
0x13fc   : > { %v8925_v62 = vor.u32 %v9895_v7, %v8922_v9  ;;  %v9882_v9 = vld [vmem:[#allocation16 + $0x474] sm:$0xf0] }
0x13fd   : > { %5802 = vmatpush.bf16.msra.mxu2 %v8969_v32  ;;  %5790 = vmatpush.bf16.msrb.mxu1 %v8809_v56  ;;  %v8768_v32 = vld [vmem:[#allocation16 + $0x3a8] sm:$0xf]  ;;  %v8986_v56 = vld [vmem:[#allocation16 + $0x570] sm:$0xf0] }
0x13ff   : > { %5815 = vmatpush.bf16.msrb.mxu3 %v8733_v17  ;;  %v9866_v17 = vld [vmem:[#allocation16 + $0x3f4] sm:$0xf0] }
0x1401   : > { %5803 = vmatpush.bf16.msra.mxu2 %v8953_v61  ;;  %5839 = vmatpush.bf16.msra.mxu1 %v9053_v26  ;;  %v8752_v61 = vld [vmem:[#allocation16 + $0x388] sm:$0xf]  ;;  %v9907_v26 = vld [vmem:[#allocation16 + $0x544] sm:$0xf] }
0x1403   : > { %5816 = vmatpush.bf16.msrb.mxu3 %v8717_v4  ;;  %v8769_v4 = vor.u32 %v9858_v28, %v8768_v32  ;;  %v8833_v32 = vor.u32 %v9874_v63, %v8832_v50  ;;  %v9867_v28 = vld [vmem:[#allocation16 + $0x404] sm:$0xf]  ;;  %v9928_v63 = vld [vmem:[#allocation16 + $0x5ec] sm:$0xf] }
0x1405   : > { %5804 = vmatpush.bf16.msra.mxu2 %v8937_v44  ;;  %v8736_v44 = vld [vmem:[#allocation16 + $0x368] sm:$0xf] }
0x1407   : > { %5817 = vmatpush.bf16.msrb.mxu3 %v8701_v41  ;;  %v8753_v41 = vor.u32 %v9854_v23, %v8752_v61 }
0x145d   : > { %v5089_v35 = vpop.xlane.xlu0 %5088 }
0x145e   : > { %v5094_v20 = vmul.f32 0.0033333334, %v5089_v35  ;;  %v8682_v35 = vld [vmem:[#allocation16 + $0x310] sm:$0xf0] }
0x1460   : > { %v11616_v12 = vsub.f32 %v11590_v45, %v5094_v20  ;;  %v11619_v13 = vsub.f32 %v11593_v5, %v5094_v20  ;;  %v5098_v21 = vsub.f32 %v11597_v42, %v5094_v20  ;;  %v8685_v20 = vor.u32 %v9835_v51, %v8682_v35  ;;  %v9850_v51 = vld [vmem:[#allocation16 + $0x374] sm:$0xf0] }
0x1461   : > { %v8989_v35 = vor.u32 %v9911_v25, %v8986_v56  ;;  %v8737_v7 = vor.u32 %v9850_v51, %v8736_v44  ;;  %v5083_v44 = vld [vmem:[#allocation13 + $0x3] sm:$0x7] }
0x1462   : > { %v11623_v18 = vmul.f32 %v11083_v48, %v5098_v21  ;;  %v5108_v34 = vmul.f32 %v11616_v12, %v11616_v12  ;;  %v5109_v54 = vmul.f32 %v11619_v13, %v11619_v13  ;;  %v8800_v21 = vld [vmem:[#allocation16 + $0x3e8] sm:$0xf]  ;;  %5818 = vmatpush.bf16.msrb.mxu3 %v8685_v20 }
0x1463   : > { %v8864_v20 = vld [vmem:[#allocation16 + $0x468] sm:$0xf] }
0x1464   : > { %v5110_v45 = vmul.f32 %v11623_v18, %v11623_v18  ;;  %v5114_v5 = vadd.f32 %v5109_v54, %v5108_v34  ;;  %v8928_v34 = vld [vmem:[#allocation16 + $0x4e8] sm:$0xf]  ;;  %v8801_v54 = vor.u32 %v9866_v17, %v8800_v21  ;;  %v8865_v49 = vor.u32 %v9882_v9, %v8864_v20  ;;  %v8970_v17 = vld [vmem:[#allocation16 + $0x550] sm:$0xf0] }
0x1465   : > { %v5093_v42 = vpop.xlane.xlu2 %5092  ;;  %v5153_v20 = vperm.slane %v5083_v44, 0  ;;  %v5154_v9 = vperm.slane %v5083_v44, 1 }
0x1466   : > { %v5095_v19 = vmul.f32 0.0033333334, %v5093_v42  ;;  %v5115_v10 = vadd.f32 %v5114_v5, %v5110_v45  ;;  %v9898_v45 = vld [vmem:[#allocation16 + $0x4f4] sm:$0xf0]  ;;  %v9891_v5 = vld [vmem:[#allocation16 + $0x4c4] sm:$0xf]  ;;  %5853 = vmatpush.bf16.msrb.mxu2 %v8801_v54 }
0x1467   : > { %v8906_v42 = vld [vmem:[#allocation16 + $0x4d0] sm:$0xf0]  ;;  %v9846_v54 = vld [vmem:[#allocation16 + $0x354] sm:$0xf0] }
0x1468   : > { %v11632_v15 = vsub.f32 %v11604_v47, %v5095_v19  ;;  %v11635_v30 = vsub.f32 %v11607_v53, %v5095_v19  ;;  %v5101_v2 = vsub.f32 %v11610_v27, %v5095_v19  ;;  %5116 = vadd.xlane.f32.xlu0 %v5115_v10  ;;  %v8712_v53 = vld [vmem:[#allocation16 + $0x340] sm:$0xf]  ;;  %v8929_v19 = vor.u32 %v9898_v45, %v8928_v34  ;;  %v8720_v34 = vld [vmem:[#allocation16 + $0x348] sm:$0xf] }
0x1469   : > { %v8713_v27 = vor.u32 %v9845_v29, %v8712_v53  ;;  %v8909_v10 = vor.u32 %v9891_v5, %v8906_v42  ;;  %v9894_v53 = vld [vmem:[#allocation16 + $0x4d4] sm:$0xf0]  ;;  %v8973_v45 = vor.u32 %v9907_v26, %v8970_v17  ;;  %v8721_v5 = vor.u32 %v9846_v54, %v8720_v34  ;;  %v8848_v42 = vld [vmem:[#allocation16 + $0x448] sm:$0xf]  ;;  %v5085_v26 = vld [vmem:[#allocation15 + $0x3] sm:$0x7] }
0x146a   : > { %v11639_v43 = vmul.f32 %v11083_v48, %v5101_v2  ;;  %v5111_v6 = vmul.f32 %v11632_v15, %v11632_v15  ;;  %v5112_v24 = vmul.f32 %v11635_v30, %v11635_v30  ;;  %v9923_v2 = vld [vmem:[#allocation16 + $0x5c4] sm:$0xf]  ;;  %5867 = vmatpush.bf16.msra.mxu3 %v8929_v19  ;;  %v9878_v19 = vld [vmem:[#allocation16 + $0x454] sm:$0xf0]  ;;  %v5166_v54 = vperm.slane %v5085_v26, 0 }
0x146b   : > { %5774 = vmatpush.bf16.msra.mxu0 %v8713_v27  ;;  %v9887_v27 = vld [vmem:[#allocation16 + $0x4a4] sm:$0xf] }
0x146c   : > { %v5113_v14 = vmul.f32 %v11639_v43, %v11639_v43  ;;  %v5118_v47 = vadd.f32 %v5112_v24, %v5111_v6  ;;  %v9034_v6 = vld [vmem:[#allocation16 + $0x5d0] sm:$0xf0]  ;;  %v8784_v24 = vld [vmem:[#allocation16 + $0x3c8] sm:$0xf]  ;;  %v8893_v11 = vor.u32 %v9887_v27, %v8890_v46  ;;  %v9842_v46 = vld [vmem:[#allocation16 + $0x334] sm:$0xf0] }
0x146e   : > { %v5119_v16 = vadd.f32 %v5118_v47, %v5113_v14  ;;  %v9037_v14 = vor.u32 %v9923_v2, %v9034_v6  ;;  %v9862_v47 = vld [vmem:[#allocation16 + $0x3d4] sm:$0xf0]  ;;  %v8849_v2 = vor.u32 %v9878_v19, %v8848_v42 }
0x146f   : > { %5775 = vmatpush.bf16.msra.mxu0 %v8697_v57  ;;  %v8785_v29 = vor.u32 %v9862_v47, %v8784_v24  ;;  %v9883_v57 = vld [vmem:[#allocation16 + $0x484] sm:$0xf] }
0x1470   : > { %5120 = vadd.xlane.f32.xlu2 %v5119_v16  ;;  %v8912_v16 = vld [vmem:[#allocation16 + $0x4c8] sm:$0xf]  ;;  %5840 = vmatpush.bf16.msra.mxu1 %v9037_v14  ;;  %v8877_v22 = vor.u32 %v9883_v57, %v8874_v59  ;;  %v9871_v24 = vld [vmem:[#allocation16 + $0x424] sm:$0xf]  ;;  %v8826_v14 = vld [vmem:[#allocation16 + $0x430] sm:$0xf0] }
0x1471   : > { %v8913_v31 = vor.u32 %v9894_v53, %v8912_v16  ;;  %5854 = vmatpush.bf16.msrb.mxu2 %v8785_v29  ;;  %v8829_v47 = vor.u32 %v9871_v24, %v8826_v14  ;;  %v9903_v16 = vld [vmem:[#allocation16 + $0x524] sm:$0xf]  ;;  %v8954_v53 = vld [vmem:[#allocation16 + $0x530] sm:$0xf0]  ;;  %v8704_v29 = vld [vmem:[#allocation16 + $0x328] sm:$0xf] }
0x1472   : > { %v8957_v27 = vor.u32 %v9903_v16, %v8954_v53  ;;  %v9838_v57 = vld [vmem:[#allocation16 + $0x314] sm:$0xf0] }
0x1473   : > { %5776 = vmatpush.bf16.msra.mxu0 %v8681_v58  ;;  %5868 = vmatpush.bf16.msra.mxu3 %v8913_v31  ;;  %v9879_v58 = vld [vmem:[#allocation16 + $0x464] sm:$0xf]  ;;  %v9930_v16 = vld [vmem:[#allocation16 + $0x5f4] sm:$0xf0] }
0x1474   : > { %5841 = vmatpush.bf16.msra.mxu1 %v9021_v40  ;;  %v8861_v52 = vor.u32 %v9879_v58, %v8858_v60  ;;  %v8810_v40 = vld [vmem:[#allocation16 + $0x410] sm:$0xf0] }
0x1475   : > { %5855 = vmatpush.bf16.msrb.mxu2 %v8769_v4  ;;  %v9899_v4 = vld [vmem:[#allocation16 + $0x504] sm:$0xf]  ;;  %v8813_v37 = vor.u32 %v9867_v28, %v8810_v40 }
0x1476   : > { %v8941_v59 = vor.u32 %v9899_v4, %v8938_v1 }
0x1477   : > { %5825 = vmatpush.bf16.msrb.mxu0 %v8925_v62  ;;  %5869 = vmatpush.bf16.msra.mxu3 %v8897_v0  ;;  %v8842_v62 = vld [vmem:[#allocation16 + $0x450] sm:$0xf0]  ;;  %v8688_v0 = vld [vmem:[#allocation16 + $0x308] sm:$0xf] }
0x1478   : > { %5842 = vmatpush.bf16.msra.mxu1 %v9005_v38  ;;  %v8845_v21 = vor.u32 %v9875_v8, %v8842_v62  ;;  %v8689_v55 = vor.u32 %v9838_v57, %v8688_v0  ;;  %v9040_v0 = vld [vmem:[#allocation16 + $0x5c8] sm:$0xf]  ;;  %v9926_v57 = vld [vmem:[#allocation16 + $0x5d4] sm:$0xf0] }
0x1479   : > { %5856 = vmatpush.bf16.msrb.mxu2 %v8753_v41 }
0x147b   : > { %5826 = vmatpush.bf16.msrb.mxu0 %v8909_v10  ;;  %5870 = vmatpush.bf16.msra.mxu3 %v8881_v33 }
0x147c   : > { %5843 = vmatpush.bf16.msra.mxu1 %v8989_v35 }
0x147d   : > { %5857 = vmatpush.bf16.msrb.mxu2 %v8737_v7 }
0x147f   : > { %5827 = vmatpush.bf16.msrb.mxu0 %v8893_v11  ;;  %5871 = vmatpush.bf16.msra.mxu3 %v8865_v49  ;;  %v8705_v11 = vor.u32 %v9842_v46, %v8704_v29  ;;  %v9896_v46 = vld [vmem:[#allocation16 + $0x4ec] sm:$0xf] }
0x1480   : > { %5844 = vmatpush.bf16.msra.mxu1 %v8973_v45  ;;  %v5167_v45 = vperm.slane %v5085_v26, 1 }
0x1481   : > { %5858 = vmatpush.bf16.msrb.mxu2 %v8721_v5 }
0x1483   : > { %5828 = vmatpush.bf16.msrb.mxu0 %v8877_v22  ;;  %5872 = vmatpush.bf16.msra.mxu3 %v8849_v2  ;;  %v8816_v22 = vld [vmem:[#allocation16 + $0x408] sm:$0xf] }
0x1484   : > { %5845 = vmatpush.bf16.msra.mxu1 %v8957_v27  ;;  %v8817_v23 = vor.u32 %v9870_v3, %v8816_v22  ;;  %v8802_v27 = vld [vmem:[#allocation16 + $0x3f8] sm:$0xf0]  ;;  %v9860_v22 = vld [vmem:[#allocation16 + $0x3cc] sm:$0xf] }
0x1485   : > { %5859 = vmatpush.bf16.msrb.mxu2 %v8705_v11  ;;  %v8786_v3 = vld [vmem:[#allocation16 + $0x3d8] sm:$0xf0] }
0x1487   : > { %5829 = vmatpush.bf16.msrb.mxu0 %v8861_v52  ;;  %5873 = vmatpush.bf16.msra.mxu3 %v8833_v32  ;;  %v9058_v32 = vld [vmem:[#allocation16 + $0x5f8] sm:$0xf0] }
0x1488   : > { %5846 = vmatpush.bf16.msra.mxu1 %v8941_v59 }
0x1489   : > { %5860 = vmatpush.bf16.msrb.mxu2 %v8689_v55  ;;  %v9061_v55 = vor.u32 %v9928_v63, %v9058_v32 }
0x148b   : > { %5830 = vmatpush.bf16.msrb.mxu0 %v8845_v21  ;;  %5874 = vmatpush.bf16.msra.mxu3 %v8817_v23  ;;  %v5155_v21 = vperm.slane %v5083_v44, 2  ;;  %v8914_v23 = vld [vmem:[#allocation16 + $0x4d8] sm:$0xf0]  ;;  %v9888_v44 = vld [vmem:[#allocation16 + $0x4ac] sm:$0xf] }
0x148f   : > { %5831 = vmatpush.bf16.msrb.mxu0 %v8829_v47 }
0x1493   : > { %5832 = vmatpush.bf16.msrb.mxu0 %v8813_v37 }
0x14db   : > { %v5117_v10 = vpop.xlane.xlu0 %5116 }
0x14dc   : > { %v5122_v6 = vmul.f32 0.0033333334, %v5117_v10  ;;  %v5168_v10 = vperm.slane %v5085_v26, 2 }
0x14de   : > { %v5124_v31 = vadd.f32 1e-06, %v5122_v6 }
0x14e0   : > { %10279 = vrsqrt.f32 %v5124_v31  ;;  %vm5132_vm8 = vweird.f32 %v5124_v31 }
0x14e3   : > { %v5121_v61 = vpop.xlane.xlu2 %5120 }
0x14e4   : > { %v5123_v38 = vmul.f32 0.0033333334, %v5121_v61  ;;  %v9892_v61 = vld [vmem:[#allocation16 + $0x4cc] sm:$0xf] }
0x14e6   : > { %v10280_v41 = vpop.eup %10279  ;;  %v5125_v39 = vadd.f32 1e-06, %v5123_v38  ;;  %v9924_v38 = vld [vmem:[#allocation16 + $0x5cc] sm:$0xf] }
0x14e7   : > { %v5127_v36 = vmul.f32 %v10280_v41, %v5124_v31  ;;  %vm5133_vm7 = vweird.f32 %v10280_v41  ;;  %v9864_v31 = vld [vmem:[#allocation16 + $0x3ec] sm:$0xf] }
0x14e8   : > { %10281 = vrsqrt.f32 %v5125_v39  ;;  %vm5134_vm9 = vmor %vm5132_vm8, %vm5133_vm7  ;;  %vm5142_vm13 = vweird.f32 %v5125_v39  ;;  %v8805_v1 = vor.u32 %v9864_v31, %v8802_v27 }
0x14e9   : > { %v5128_v33 = vmul.f32 %v10280_v41, %v5127_v36  ;;  %v8789_v36 = vor.u32 %v9860_v22, %v8786_v3 }
0x14eb   : > { %v5129_v58 = vmul.f32 0.5, %v5128_v33  ;;  %v9024_v33 = vld [vmem:[#allocation16 + $0x5a8] sm:$0xf] }
0x14ed   : > { %v5130_v60 = vsub.f32 1.5, %v5129_v58  ;;  %v9922_v58 = vld [vmem:[#allocation16 + $0x5b4] sm:$0xf0] }
0x14ee   : > { %v10282_v25 = vpop.eup %10281 }
0x14ef   : > { %v5131_v52 = vmul.f32 %v10280_v41, %v5130_v60  ;;  %v5137_v56 = vmul.f32 %v10282_v25, %v5125_v39  ;;  %vm5143_vm12 = vweird.f32 %v10282_v25  ;;  %v9041_v39 = vor.u32 %v9926_v57, %v9040_v0  ;;  %v9876_v0 = vld [vmem:[#allocation16 + $0x44c] sm:$0xf]  ;;  %v8850_v57 = vld [vmem:[#allocation16 + $0x458] sm:$0xf0] }
0x14f0   : > { %vm5144_vm14 = vmor %vm5142_vm13, %vm5143_vm12  ;;  %v8917_v60 = vor.u32 %v9892_v61, %v8914_v23  ;;  %v8960_v61 = vld [vmem:[#allocation16 + $0x528] sm:$0xf]  ;;  %v9906_v23 = vld [vmem:[#allocation16 + $0x534] sm:$0xf0] }
0x14f1   : > { %v5138_v51 = vmul.f32 %v10282_v25, %v5137_v56  ;;  %v5135_v35 = vsel %vm5134_vm9, %v10280_v41, %v5131_v52  ;;  %v9042_v41 = vld [vmem:[#allocation16 + $0x5d8] sm:$0xf0]  ;;  %v9856_v52 = vld [vmem:[#allocation16 + $0x3ac] sm:$0xf] }
0x14f2   : > { %v5146_v49 = vmul.f32 %v5135_v35, %v11616_v12  ;;  %v5147_v8 = vmul.f32 %v5135_v35, %v11619_v13  ;;  %v5148_v17 = vmul.f32 %v5135_v35, %v11623_v18  ;;  %v9056_v18 = vld [vmem:[#allocation16 + $0x5e8] sm:$0xf]  ;;  %v8770_v56 = vld [vmem:[#allocation16 + $0x3b8] sm:$0xf0]  ;;  %v9920_v35 = vld [vmem:[#allocation16 + $0x5ac] sm:$0xf] }
0x14f3   : > { %v5139_v7 = vmul.f32 0.5, %v5138_v51  ;;  %v9057_v28 = vor.u32 %v9930_v16, %v9056_v18  ;;  %v8898_v51 = vld [vmem:[#allocation16 + $0x4b8] sm:$0xf0]  ;;  %v9912_v18 = vld [vmem:[#allocation16 + $0x56c] sm:$0xf] }
0x14f4   : > { %v5159_v5 = vmul.f32 %v5153_v20, %v5146_v49  ;;  %v5160_v42 = vmul.f32 %v5154_v9, %v5147_v8  ;;  %v5161_v2 = vmul.f32 %v5155_v21, %v5148_v17  ;;  %v9008_v49 = vld [vmem:[#allocation16 + $0x588] sm:$0xf]  ;;  %v9918_v8 = vld [vmem:[#allocation16 + $0x594] sm:$0xf0]  ;;  %v8754_v17 = vld [vmem:[#allocation16 + $0x398] sm:$0xf0] }
0x14f5   : > { %v5140_v62 = vsub.f32 1.5, %v5139_v7  ;;  %v9026_v7 = vld [vmem:[#allocation16 + $0x5b8] sm:$0xf0] }
0x14f6   : > { %v11653_v53 = vadd.f32 %v5166_v54, %v5159_v5  ;;  %v11655_v29 = vadd.f32 %v5167_v45, %v5160_v42  ;;  %v9029_v26 = vor.u32 %v9920_v35, %v9026_v7  ;;  %v9010_v5 = vld [vmem:[#allocation16 + $0x598] sm:$0xf0]  ;;  %v9009_v42 = vor.u32 %v9918_v8, %v9008_v49  ;;  %v9836_v35 = vld [vmem:[#allocation16 + $0x30c] sm:$0xf] }
0x14f7   : > { %v5141_v34 = vmul.f32 %v10282_v25, %v5140_v62  ;;  %v8901_v62 = vor.u32 %v9888_v44, %v8898_v51  ;;  %v8994_v16 = vld [vmem:[#allocation16 + $0x578] sm:$0xf0]  ;;  %v8944_v44 = vld [vmem:[#allocation16 + $0x508] sm:$0xf]  ;;  %v9902_v51 = vld [vmem:[#allocation16 + $0x514] sm:$0xf0] }
0x14f8   : > { %v8997_v32 = vor.u32 %v9912_v18, %v8994_v16  ;;  %v9868_v49 = vld [vmem:[#allocation16 + $0x40c] sm:$0xf]  ;;  %v8818_v8 = vld [vmem:[#allocation16 + $0x418] sm:$0xf0]  ;;  %v9124_v18 = vld [vmem:[#allocation18 + $0x378] sm:$0xf] }
0x14f9   : > { %v5145_v19 = vsel %vm5144_vm14, %v10282_v25, %v5141_v34  ;;  %v9045_v25 = vor.u32 %v9924_v38, %v9042_v41  ;;  %v9884_v34 = vld [vmem:[#allocation16 + $0x48c] sm:$0xf]  ;;  %v8853_v38 = vor.u32 %v9876_v0, %v8850_v57  ;;  %v10025_v0 = vld [vmem:[#allocation18 + $0x5f0] sm:$0xf0] }
0x14fa   : > { %v5149_v12 = vmul.f32 %v5145_v19, %v11632_v15  ;;  %v5150_v13 = vmul.f32 %v5145_v19, %v11635_v30  ;;  %v5151_v6 = vmul.f32 %v5145_v19, %v11639_v43  ;;  %v11661_v15 = vadd.f32 %v5168_v10, %v5161_v2  ;;  %v8930_v43 = vld [vmem:[#allocation16 + $0x4f8] sm:$0xf0]  ;;  %v9914_v2 = vld [vmem:[#allocation16 + $0x574] sm:$0xf0] }
0x14fb   : > { %v8933_v59 = vor.u32 %v9896_v46, %v8930_v43  ;;  %v8976_v46 = vld [vmem:[#allocation16 + $0x548] sm:$0xf]  ;;  %v9910_v43 = vld [vmem:[#allocation16 + $0x554] sm:$0xf0] }
0x14fc   : > { %v5162_v24 = vmul.f32 %v5153_v20, %v5149_v12  ;;  %v5163_v14 = vmul.f32 %v5154_v9, %v5150_v13  ;;  %v5164_v47 = vmul.f32 %v5155_v21, %v5151_v6  ;;  %v9025_v20 = vor.u32 %v9922_v58, %v9024_v33  ;;  %v9852_v21 = vld [vmem:[#allocation16 + $0x38c] sm:$0xf]  ;;  %v8834_v58 = vld [vmem:[#allocation16 + $0x438] sm:$0xf0] }
0x14fd   : > { %v8773_v9 = vor.u32 %v9856_v52, %v8770_v56  ;;  %v8757_v19 = vor.u32 %v9852_v21, %v8754_v17  ;;  %v9848_v6 = vld [vmem:[#allocation16 + $0x36c] sm:$0xf]  ;;  %v8977_v22 = vor.u32 %v9910_v43, %v8976_v46  ;;  %v8961_v52 = vor.u32 %v9906_v23, %v8960_v61  ;;  %v9148_v21 = vld [vmem:[#allocation18 + $0x3a8] sm:$0xf]  ;;  %v9953_v17 = vld [vmem:[#allocation18 + $0x3b0] sm:$0xf0] }
0x14fe   : > { %v11657_v50 = vadd.f32 %v5166_v54, %v5162_v24  ;;  %v11659_v11 = vadd.f32 %v5167_v45, %v5163_v14  ;;  %v11663_v30 = vadd.f32 %v5168_v10, %v5164_v47  ;;  %v8882_v54 = vld [vmem:[#allocation16 + $0x498] sm:$0xf0]  ;;  %v9916_v45 = vld [vmem:[#allocation16 + $0x58c] sm:$0xf]  ;;  %v8992_v10 = vld [vmem:[#allocation16 + $0x568] sm:$0xf] }
0x14ff   : > { %v8885_v12 = vor.u32 %v9884_v34, %v8882_v54  ;;  %v9013_v13 = vor.u32 %v9916_v45, %v9010_v5  ;;  %v8738_v24 = vld [vmem:[#allocation16 + $0x378] sm:$0xf0]  ;;  %v9880_v14 = vld [vmem:[#allocation16 + $0x46c] sm:$0xf]  ;;  %v8993_v31 = vor.u32 %v9914_v2, %v8992_v10  ;;  %v9244_v34 = vld [vmem:[#allocation18 + $0x468] sm:$0xf]  ;;  %v8945_v45 = vor.u32 %v9902_v51, %v8944_v44 }
0x1500   : > { %v11667_v40 = vpack.c.bf16 %v11657_v50, %v11653_v53  ;;  %v11671_v4 = vpack.c.bf16 %v11659_v11, %v11655_v29  ;;  %v11675_v37 = vpack.c.bf16 %v11663_v30, %v11661_v15  ;;  %v8866_v47 = vld [vmem:[#allocation16 + $0x478] sm:$0xf0]  ;;  %v8741_v27 = vor.u32 %v9848_v6, %v8738_v24  ;;  %v9872_v33 = vld [vmem:[#allocation16 + $0x42c] sm:$0xf]  ;;  %v9977_v54 = vld [vmem:[#allocation18 + $0x470] sm:$0xf0] }
0x1501   : > { %v8869_v63 = vor.u32 %v9880_v14, %v8866_v47  ;;  %v8837_v7 = vor.u32 %v9872_v33, %v8834_v58  ;;  %v9149_v10 = vor.u32 %v9953_v17, %v9148_v21  ;;  %v9136_v2 = vld [vmem:[#allocation18 + $0x390] sm:$0xf]  ;;  %v10001_v6 = vld [vmem:[#allocation18 + $0x530] sm:$0xf0]  ;;  %v9950_v24 = vld [vmem:[#allocation18 + $0x398] sm:$0xf0] }
0x1502   : > { %5777 = vmatmul.bf16.vlgmr.msra.gmra.mxu0 %v11667_v40  ;;  %5791 = vmatmul.bf16.vlgmr.msrb.gmra.mxu1 %v11671_v4  ;;  %v9232_v14 = vld [vmem:[#allocation18 + $0x450] sm:$0xf]  ;;  %v9974_v47 = vld [vmem:[#allocation18 + $0x458] sm:$0xf0]  ;;  %v9316_v61 = vld [vmem:[#allocation18 + $0x4f8] sm:$0xf] }
0x1503   : > { %5805 = vmatmul.bf16.vlgmr.msra.gmra.mxu2 %v11675_v37  ;;  %5819 = vmatmul.bf16.vlgmr.msrb.gmra.mxu3 %v11667_v40  ;;  %v9233_v46 = vor.u32 %v9974_v47, %v9232_v14  ;;  %v9328_v43 = vld [vmem:[#allocation18 + $0x510] sm:$0xf]  ;;  %v9995_v23 = vld [vmem:[#allocation18 + $0x500] sm:$0xf0]  ;;  %v9941_v33 = vld [vmem:[#allocation18 + $0x350] sm:$0xf0] }
0x1504   : > { %5881 = vmatpush.bf16.msra.mxu0 %v9057_v28  ;;  %5895 = vmatpush.bf16.msrb.mxu1 %v8805_v1  ;;  %v9844_v28 = vld [vmem:[#allocation16 + $0x34c] sm:$0xf]  ;;  %v8722_v1 = vld [vmem:[#allocation16 + $0x358] sm:$0xf0]  ;;  %v9196_v58 = vld [vmem:[#allocation18 + $0x408] sm:$0xf] }
0x1505   : > { %5909 = vmatpush.bf16.msra.mxu2 %v8933_v59  ;;  %5923 = vmatpush.bf16.msrb.mxu3 %v9061_v55  ;;  %v9908_v59 = vld [vmem:[#allocation16 + $0x54c] sm:$0xf]  ;;  %v8978_v55 = vld [vmem:[#allocation16 + $0x558] sm:$0xf0]  ;;  %v8725_v3 = vor.u32 %v9844_v28, %v8722_v1  ;;  %v9971_v28 = vld [vmem:[#allocation18 + $0x440] sm:$0xf0] }
0x1506   : > { %v8981_v41 = vor.u32 %v9908_v59, %v8978_v55  ;;  %v9436_v1 = vld [vmem:[#allocation18 + $0x5e8] sm:$0xf]  ;;  %v9938_v44 = vld [vmem:[#allocation18 + $0x338] sm:$0xf0]  ;;  %v9184_v51 = vld [vmem:[#allocation18 + $0x3f0] sm:$0xf] }
0x1507   : > { %v9437_v59 = vor.u32 %v10025_v0, %v9436_v1  ;;  %v9952_v21 = vld [vmem:[#allocation18 + $0x3ac] sm:$0xf]  ;;  %v9150_v17 = vld [vmem:[#allocation18 + $0x3b4] sm:$0xf0]  ;;  %v9424_v47 = vld [vmem:[#allocation18 + $0x5d0] sm:$0xf] }
0x1508   : > { %5882 = vmatpush.bf16.msra.mxu0 %v9041_v39  ;;  %5896 = vmatpush.bf16.msrb.mxu1 %v8789_v36  ;;  %v9840_v39 = vld [vmem:[#allocation16 + $0x32c] sm:$0xf]  ;;  %v8706_v36 = vld [vmem:[#allocation16 + $0x338] sm:$0xf0]  ;;  %v9246_v1 = vld [vmem:[#allocation18 + $0x474] sm:$0xf0] }
0x1509   : > { %5910 = vmatpush.bf16.msra.mxu2 %v8917_v60  ;;  %5924 = vmatpush.bf16.msrb.mxu3 %v9045_v25  ;;  %v9904_v60 = vld [vmem:[#allocation16 + $0x52c] sm:$0xf]  ;;  %v8962_v25 = vld [vmem:[#allocation16 + $0x538] sm:$0xf0]  ;;  %v8709_v56 = vor.u32 %v9840_v39, %v8706_v36  ;;  %v9317_v39 = vor.u32 %v9995_v23, %v9316_v61  ;;  %v10019_v61 = vld [vmem:[#allocation18 + $0x5c0] sm:$0xf0] }
0x150a   : > { %v9992_v14 = vld [vmem:[#allocation18 + $0x4e8] sm:$0xf0] }
0x150c   : > { %5883 = vmatpush.bf16.msra.mxu0 %v9025_v20  ;;  %5897 = vmatpush.bf16.msrb.mxu1 %v8773_v9  ;;  %v8965_v20 = vor.u32 %v9904_v60, %v8962_v25  ;;  %v8690_v9 = vld [vmem:[#allocation16 + $0x318] sm:$0xf0]  ;;  %v9965_v60 = vld [vmem:[#allocation18 + $0x410] sm:$0xf0] }
0x150d   : > { %5911 = vmatpush.bf16.msra.mxu2 %v8901_v62  ;;  %5925 = vmatpush.bf16.msrb.mxu3 %v9029_v26  ;;  %v9900_v62 = vld [vmem:[#allocation16 + $0x50c] sm:$0xf]  ;;  %v8946_v26 = vld [vmem:[#allocation16 + $0x518] sm:$0xf0]  ;;  %v8693_v5 = vor.u32 %v9836_v35, %v8690_v9  ;;  %v9076_v9 = vld [vmem:[#allocation18 + $0x318] sm:$0xf] }
0x150e   : > { %v9962_v35 = vld [vmem:[#allocation18 + $0x3f8] sm:$0xf0] }
0x1510   : > { %5884 = vmatpush.bf16.msra.mxu0 %v9009_v42  ;;  %5898 = vmatpush.bf16.msrb.mxu1 %v8757_v19  ;;  %v8821_v42 = vor.u32 %v9868_v49, %v8818_v8  ;;  %v8949_v19 = vor.u32 %v9900_v62, %v8946_v26  ;;  %v9935_v49 = vld [vmem:[#allocation18 + $0x320] sm:$0xf0]  ;;  %v9064_v62 = vld [vmem:[#allocation18 + $0x300] sm:$0xf]  ;;  %v9932_v26 = vld [vmem:[#allocation18 + $0x308] sm:$0xf0] }
0x1511   : > { %5912 = vmatpush.bf16.msra.mxu2 %v8885_v12  ;;  %5926 = vmatpush.bf16.msrb.mxu3 %v9013_v13  ;;  %v9245_v12 = vor.u32 %v9977_v54, %v9244_v34  ;;  %v9340_v13 = vld [vmem:[#allocation18 + $0x528] sm:$0xf]  ;;  %v9077_v8 = vor.u32 %v9935_v49, %v9076_v9  ;;  %v9065_v34 = vor.u32 %v9932_v26, %v9064_v62  ;;  %v9268_v9 = vld [vmem:[#allocation18 + $0x498] sm:$0xf]  ;;  %v9983_v49 = vld [vmem:[#allocation18 + $0x4a0] sm:$0xf0] }
0x1512   : > { %5833 = vmatmul.bf16.vlgmr.msrb.gmra.mxu0 %v11671_v4  ;;  %5847 = vmatmul.bf16.vlgmr.msra.gmra.mxu1 %v11675_v37  ;;  %v9341_v16 = vor.u32 %v10001_v6, %v9340_v13  ;;  %v9153_v54 = vor.u32 %v9952_v21, %v9150_v17  ;;  %v9126_v13 = vld [vmem:[#allocation18 + $0x384] sm:$0xf0]  ;;  %v9269_v62 = vor.u32 %v9983_v49, %v9268_v9  ;;  %v10013_v26 = vld [vmem:[#allocation18 + $0x590] sm:$0xf0]  ;;  %v9934_v17 = vld [vmem:[#allocation18 + $0x31c] sm:$0xf] }
0x1513   : > { %5861 = vmatmul.bf16.vlgmr.msrb.gmra.mxu2 %v11667_v40  ;;  %5875 = vmatmul.bf16.vlgmr.msra.gmra.mxu3 %v11671_v4  ;;  %v9162_v9 = vld [vmem:[#allocation18 + $0x3cc] sm:$0xf0]  ;;  %v11692_v49 = vld [vmem:[%s11810_s16 + $0x4] sm:$0xf] }
0x1514   : > { %5885 = vmatpush.bf16.msra.mxu0 %v8993_v31  ;;  %5899 = vmatpush.bf16.msrb.mxu1 %v8741_v27  ;;  %v9137_v31 = vor.u32 %v9950_v24, %v9136_v2  ;;  %v9947_v27 = vld [vmem:[#allocation18 + $0x380] sm:$0xf0]  ;;  %v9304_v24 = vld [vmem:[#allocation18 + $0x4e0] sm:$0xf] }
0x1515   : > { %5913 = vmatpush.bf16.msra.mxu2 %v8869_v63  ;;  %5927 = vmatpush.bf16.msrb.mxu3 %v8997_v32  ;;  %v9998_v63 = vld [vmem:[#allocation18 + $0x518] sm:$0xf0]  ;;  %v9220_v32 = vld [vmem:[#allocation18 + $0x438] sm:$0xf]  ;;  %v9125_v55 = vor.u32 %v9947_v27, %v9124_v18  ;;  %v9305_v18 = vor.u32 %v9992_v14, %v9304_v24  ;;  %v9160_v27 = vld [vmem:[#allocation18 + $0x3c0] sm:$0xf] }
0x1516   : > { %v9329_v57 = vor.u32 %v9998_v63, %v9328_v43  ;;  %v9943_v43 = vld [vmem:[#allocation18 + $0x364] sm:$0xf]  ;;  %v9342_v14 = vld [vmem:[#allocation18 + $0x534] sm:$0xf0] }
0x1518   : > { %5886 = vmatpush.bf16.msra.mxu0 %v8977_v22  ;;  %5900 = vmatpush.bf16.msrb.mxu1 %v8725_v3  ;;  %v9112_v22 = vld [vmem:[#allocation18 + $0x360] sm:$0xf]  ;;  %v9221_v3 = vor.u32 %v9971_v28, %v9220_v32  ;;  %v9114_v32 = vld [vmem:[#allocation18 + $0x36c] sm:$0xf0]  ;;  %v9976_v28 = vld [vmem:[#allocation18 + $0x46c] sm:$0xf] }
0x1519   : > { %5914 = vmatpush.bf16.msra.mxu2 %v8853_v38  ;;  %5928 = vmatpush.bf16.msrb.mxu3 %v8981_v41  ;;  %v9944_v38 = vld [vmem:[#allocation18 + $0x368] sm:$0xf0]  ;;  %v9117_v0 = vor.u32 %v9943_v43, %v9114_v32  ;;  %v9364_v43 = vld [vmem:[#allocation18 + $0x558] sm:$0xf] }
0x151a   : > { %v9968_v41 = vld [vmem:[#allocation18 + $0x428] sm:$0xf0] }
0x151c   : > { %5887 = vmatpush.bf16.msra.mxu0 %v8961_v52  ;;  %5901 = vmatpush.bf16.msrb.mxu1 %v8709_v56  ;;  %v9088_v52 = vld [vmem:[#allocation18 + $0x330] sm:$0xf]  ;;  %v9197_v56 = vor.u32 %v9965_v60, %v9196_v58  ;;  %v9400_v60 = vld [vmem:[#allocation18 + $0x5a0] sm:$0xf] }
0x151d   : > { %5915 = vmatpush.bf16.msra.mxu2 %v8837_v7  ;;  %5929 = vmatpush.bf16.msrb.mxu3 %v8965_v20  ;;  %v9089_v7 = vor.u32 %v9938_v44, %v9088_v52  ;;  %v9185_v20 = vor.u32 %v9962_v35, %v9184_v51  ;;  %v9090_v44 = vld [vmem:[#allocation18 + $0x33c] sm:$0xf0]  ;;  %v9970_v51 = vld [vmem:[#allocation18 + $0x43c] sm:$0xf] }
0x1520   : > { %5888 = vmatpush.bf16.msra.mxu0 %v8945_v45  ;;  %5902 = vmatpush.bf16.msrb.mxu1 %v8693_v5  ;;  %v9949_v45 = vld [vmem:[#allocation18 + $0x394] sm:$0xf]  ;;  %v9138_v5 = vld [vmem:[#allocation18 + $0x39c] sm:$0xf0] }
0x1521   : > { %5916 = vmatpush.bf16.msra.mxu2 %v8821_v42  ;;  %5930 = vmatpush.bf16.msrb.mxu3 %v8949_v19  ;;  %v9141_v42 = vor.u32 %v9949_v45, %v9138_v5  ;;  %v9172_v19 = vld [vmem:[#allocation18 + $0x3d8] sm:$0xf]  ;;  %v9210_v5 = vld [vmem:[#allocation18 + $0x42c] sm:$0xf0] }
0x1523   : > { %5889 = vmatmul.bf16.vlgmr.msra.gmra.mxu0 %v11675_v37  ;;  %5903 = vmatmul.bf16.vlgmr.msrb.gmra.mxu1 %v11667_v40  ;;  %v9208_v40 = vld [vmem:[#allocation18 + $0x420] sm:$0xf] }
0x1524   : > { %6599 = vmatpush.bf16.msrb.mxu0 %v9149_v10  ;;  %6613 = vmatpush.bf16.msra.mxu1 %v9245_v12  ;;  %v9209_v36 = vor.u32 %v9968_v41, %v9208_v40  ;;  %v9959_v10 = vld [vmem:[#allocation18 + $0x3e0] sm:$0xf0]  ;;  %v9946_v12 = vld [vmem:[#allocation18 + $0x37c] sm:$0xf]  ;;  %v9102_v40 = vld [vmem:[#allocation18 + $0x354] sm:$0xf0] }
0x1525   : > { %5917 = vmatmul.bf16.vlgmr.msra.gmra.mxu2 %v11671_v4  ;;  %5931 = vmatmul.bf16.vlgmr.msrb.gmra.mxu3 %v11675_v37  ;;  %v9113_v4 = vor.u32 %v9944_v38, %v9112_v22  ;;  %v9100_v37 = vld [vmem:[#allocation18 + $0x348] sm:$0xf]  ;;  %v9173_v2 = vor.u32 %v9959_v10, %v9172_v19  ;;  %v9129_v6 = vor.u32 %v9946_v12, %v9126_v13  ;;  %v9412_v22 = vld [vmem:[#allocation18 + $0x5b8] sm:$0xf]  ;;  %v9940_v38 = vld [vmem:[#allocation18 + $0x34c] sm:$0xf] }
0x1526   : > { %6627 = vmatpush.bf16.msrb.mxu2 %v9341_v16  ;;  %6641 = vmatpush.bf16.msra.mxu3 %v9437_v59  ;;  %v9101_v25 = vor.u32 %v9941_v33, %v9100_v37  ;;  %v10022_v16 = vld [vmem:[#allocation18 + $0x5d8] sm:$0xf0]  ;;  %v9292_v59 = vld [vmem:[#allocation18 + $0x4c8] sm:$0xf]  ;;  %v9413_v23 = vor.u32 %v10019_v61, %v9412_v22  ;;  %v9973_v41 = vld [vmem:[#allocation18 + $0x454] sm:$0xf] }
0x1527   : > { %v9280_v37 = vld [vmem:[#allocation18 + $0x4b0] sm:$0xf]  ;;  %v9980_v19 = vld [vmem:[#allocation18 + $0x488] sm:$0xf0]  ;;  %v10010_v13 = vld [vmem:[#allocation18 + $0x578] sm:$0xf0] }
0x1528   : > { %6600 = vmatpush.bf16.msrb.mxu0 %v9137_v31  ;;  %6614 = vmatpush.bf16.msra.mxu1 %v9233_v46  ;;  %v9425_v31 = vor.u32 %v10022_v16, %v9424_v47  ;;  %v9956_v46 = vld [vmem:[#allocation18 + $0x3c8] sm:$0xf0]  ;;  %v9376_v12 = vld [vmem:[#allocation18 + $0x570] sm:$0xf] }
0x1529   : > { %v9161_v63 = vor.u32 %v9956_v46, %v9160_v27  ;;  %v9377_v24 = vor.u32 %v10010_v13, %v9376_v12  ;;  %v9066_v16 = vld [vmem:[#allocation18 + $0x30c] sm:$0xf0]  ;;  %v9198_v46 = vld [vmem:[#allocation18 + $0x414] sm:$0xf0]  ;;  %v10004_v61 = vld [vmem:[#allocation18 + $0x548] sm:$0xf0] }
0x152a   : > { %6628 = vmatpush.bf16.msrb.mxu2 %v9329_v57  ;;  %6642 = vmatpush.bf16.msra.mxu3 %v9425_v31  ;;  %v9249_v57 = vor.u32 %v9976_v28, %v9246_v1  ;;  %v9964_v31 = vld [vmem:[#allocation18 + $0x40c] sm:$0xf]  ;;  %v9997_v1 = vld [vmem:[#allocation18 + $0x514] sm:$0xf]  ;;  %v10015_v12 = vld [vmem:[#allocation18 + $0x5a4] sm:$0xf] }
0x152b   : > { %v9201_v32 = vor.u32 %v9964_v31, %v9198_v46  ;;  %v9402_v13 = vld [vmem:[#allocation18 + $0x5ac] sm:$0xf0]  ;;  %v9270_v31 = vld [vmem:[#allocation18 + $0x4a4] sm:$0xf0]  ;;  %v9390_v46 = vld [vmem:[#allocation18 + $0x594] sm:$0xf0] }
0x152c   : > { %6601 = vmatpush.bf16.msrb.mxu0 %v9125_v55  ;;  %6615 = vmatpush.bf16.msra.mxu1 %v9221_v3  ;;  %v9989_v55 = vld [vmem:[#allocation18 + $0x4d0] sm:$0xf0] }
0x152d   : > { %v9293_v3 = vor.u32 %v9989_v55, %v9292_v59  ;;  %v9961_v59 = vld [vmem:[#allocation18 + $0x3f4] sm:$0xf]  ;;  %v9186_v55 = vld [vmem:[#allocation18 + $0x3fc] sm:$0xf0] }
0x152e   : > { %6629 = vmatpush.bf16.msrb.mxu2 %v9317_v39  ;;  %6643 = vmatpush.bf16.msra.mxu3 %v9413_v23  ;;  %v9105_v39 = vor.u32 %v9940_v38, %v9102_v40  ;;  %v9189_v22 = vor.u32 %v9961_v59, %v9186_v55  ;;  %v9994_v38 = vld [vmem:[#allocation18 + $0x4fc] sm:$0xf]  ;;  %v9318_v40 = vld [vmem:[#allocation18 + $0x504] sm:$0xf0]  ;;  %v5282_v59 = vperm.slane %v11692_v49, 1 }
0x1530   : > { %6602 = vmatpush.bf16.msrb.mxu0 %v9113_v4  ;;  %6616 = vmatpush.bf16.msra.mxu1 %v9209_v36  ;;  %v9234_v4 = vld [vmem:[#allocation18 + $0x45c] sm:$0xf0]  ;;  %v9986_v36 = vld [vmem:[#allocation18 + $0x4b8] sm:$0xf0] }
0x1531   : > { %v9237_v33 = vor.u32 %v9973_v41, %v9234_v4  ;;  %v9281_v58 = vor.u32 %v9986_v36, %v9280_v37  ;;  %v9321_v41 = vor.u32 %v9994_v38, %v9318_v40  ;;  %v9438_v4 = vld [vmem:[#allocation18 + $0x5f4] sm:$0xf0]  ;;  %v9958_v36 = vld [vmem:[#allocation18 + $0x3dc] sm:$0xf] }
0x1532   : > { %6630 = vmatpush.bf16.msrb.mxu2 %v9305_v18  ;;  %v9931_v18 = vld [vmem:[#allocation18 + $0x304] sm:$0xf] }
0x1533   : > { %v9069_v27 = vor.u32 %v9931_v18, %v9066_v16  ;;  %v9982_v16 = vld [vmem:[#allocation18 + $0x49c] sm:$0xf] }
0x1534   : > { %6603 = vmatpush.bf16.msrb.mxu0 %v9101_v25  ;;  %6617 = vmatpush.bf16.msra.mxu1 %v9197_v56  ;;  %v10016_v25 = vld [vmem:[#allocation18 + $0x5a8] sm:$0xf0]  ;;  %v9937_v56 = vld [vmem:[#allocation18 + $0x334] sm:$0xf] }
0x1535   : > { %v9401_v52 = vor.u32 %v10016_v25, %v9400_v60  ;;  %v9093_v35 = vor.u32 %v9937_v56, %v9090_v44  ;;  %v9991_v60 = vld [vmem:[#allocation18 + $0x4e4] sm:$0xf]  ;;  %v9306_v25 = vld [vmem:[#allocation18 + $0x4ec] sm:$0xf0]  ;;  %v9426_v44 = vld [vmem:[#allocation18 + $0x5dc] sm:$0xf0] }
0x1536   : > { %6631 = vmatpush.bf16.msrb.mxu2 %v9293_v3  ;;  %v9352_v3 = vld [vmem:[#allocation18 + $0x540] sm:$0xf]  ;;  %v9309_v56 = vor.u32 %v9991_v60, %v9306_v25 }
0x1537   : > { %6644 = vmatpush.bf16.msra.mxu3 %v9401_v52  ;;  %v9353_v23 = vor.u32 %v10004_v61, %v9352_v3  ;;  %v10021_v52 = vld [vmem:[#allocation18 + $0x5d4] sm:$0xf] }
0x1538   : > { %6604 = vmatpush.bf16.msrb.mxu0 %v9089_v7  ;;  %6618 = vmatpush.bf16.msra.mxu1 %v9185_v20  ;;  %v9222_v7 = vld [vmem:[#allocation18 + $0x444] sm:$0xf0]  ;;  %v10009_v61 = vld [vmem:[#allocation18 + $0x574] sm:$0xf] }
0x1539   : > { %v9225_v20 = vor.u32 %v9970_v51, %v9222_v7  ;;  %v9429_v7 = vor.u32 %v10021_v52, %v9426_v44  ;;  %v9366_v52 = vld [vmem:[#allocation18 + $0x564] sm:$0xf0]  ;;  %v9144_v44 = vld [vmem:[#allocation18 + $0x398] sm:$0xf] }
0x153a   : > { %6632 = vmatpush.bf16.msrb.mxu2 %v9281_v58 }
0x153c   : > { %6605 = vmatpush.bf16.msrb.mxu0 %v9077_v8  ;;  %6619 = vmatpush.bf16.msra.mxu1 %v9173_v2  ;;  %v9388_v8 = vld [vmem:[#allocation18 + $0x588] sm:$0xf] }
0x153d   : > { %v9389_v21 = vor.u32 %v10013_v26, %v9388_v8  ;;  %v9294_v26 = vld [vmem:[#allocation18 + $0x4d4] sm:$0xf0] }
0x153e   : > { %6633 = vmatpush.bf16.msrb.mxu2 %v9269_v62  ;;  %v9988_v62 = vld [vmem:[#allocation18 + $0x4cc] sm:$0xf] }
0x153f   : > { %6645 = vmatpush.bf16.msra.mxu3 %v9389_v21  ;;  %v10018_v21 = vld [vmem:[#allocation18 + $0x5bc] sm:$0xf] }
0x1540   : > { %6606 = vmatpush.bf16.msrb.mxu0 %v9065_v34  ;;  %6620 = vmatpush.bf16.msra.mxu1 %v9161_v63  ;;  %v9078_v34 = vld [vmem:[#allocation18 + $0x324] sm:$0xf0]  ;;  %v10007_v63 = vld [vmem:[#allocation18 + $0x560] sm:$0xf0] }
0x1541   : > { %v9081_v45 = vor.u32 %v9934_v17, %v9078_v34  ;;  %v9365_v28 = vor.u32 %v10007_v63, %v9364_v43  ;;  %v9414_v17 = vld [vmem:[#allocation18 + $0x5c4] sm:$0xf0]  ;;  %v5281_v34 = vperm.slane %v11692_v49, 0  ;;  %v9273_v63 = vor.u32 %v9982_v16, %v9270_v31 }
0x1543   : > { %6646 = vmatpush.bf16.msra.mxu3 %v9377_v24 }
0x1544   : > { %6655 = vmatpush.bf16.msra.mxu0 %v9153_v54  ;;  %6669 = vmatpush.bf16.msrb.mxu1 %v9249_v57  ;;  %v9967_v54 = vld [vmem:[#allocation18 + $0x424] sm:$0xf] }
0x1545   : > { %v9213_v10 = vor.u32 %v9967_v54, %v9210_v5  ;;  %v9297_v54 = vor.u32 %v9988_v62, %v9294_v26  ;;  %v9985_v5 = vld [vmem:[#allocation18 + $0x4b4] sm:$0xf] }
0x1547   : > { %6647 = vmatpush.bf16.msra.mxu3 %v9365_v28 }
0x1548   : > { %6656 = vmatpush.bf16.msra.mxu0 %v9141_v42  ;;  %6670 = vmatpush.bf16.msrb.mxu1 %v9237_v33  ;;  %v9256_v42 = vld [vmem:[#allocation18 + $0x480] sm:$0xf]  ;;  %v9174_v33 = vld [vmem:[#allocation18 + $0x3e4] sm:$0xf0] }
0x1549   : > { %v9257_v2 = vor.u32 %v9980_v19, %v9256_v42  ;;  %v9177_v58 = vor.u32 %v9958_v36, %v9174_v33  ;;  %v9282_v42 = vld [vmem:[#allocation18 + $0x4bc] sm:$0xf0] }
0x154b   : > { %6634 = vmatpush.bf16.msrb.mxu2 %v9257_v2  ;;  %6648 = vmatpush.bf16.msra.mxu3 %v9353_v23  ;;  %v9285_v2 = vor.u32 %v9985_v5, %v9282_v42  ;;  %v9378_v23 = vld [vmem:[#allocation18 + $0x57c] sm:$0xf0]  ;;  %v9948_v5 = vld [vmem:[#allocation18 + $0x388] sm:$0xf0] }
0x154c   : > { %6657 = vmatpush.bf16.msra.mxu0 %v9129_v6  ;;  %6671 = vmatpush.bf16.msrb.mxu1 %v9225_v20  ;;  %v10000_v6 = vld [vmem:[#allocation18 + $0x52c] sm:$0xf]  ;;  %v9955_v20 = vld [vmem:[#allocation18 + $0x3c4] sm:$0xf] }
0x154d   : > { %v9345_v47 = vor.u32 %v10000_v6, %v9342_v14  ;;  %v9165_v8 = vor.u32 %v9955_v20, %v9162_v9  ;;  %v10003_v20 = vld [vmem:[#allocation18 + $0x544] sm:$0xf]  ;;  %v9354_v9 = vld [vmem:[#allocation18 + $0x54c] sm:$0xf0] }
0x154f   : > { %6683 = vmatpush.bf16.msra.mxu2 %v9345_v47  ;;  %v9405_v47 = vor.u32 %v10015_v12, %v9402_v13  ;;  %v9252_v12 = vld [vmem:[#allocation18 + $0x470] sm:$0xf]  ;;  %v9978_v13 = vld [vmem:[#allocation18 + $0x478] sm:$0xf0] }
0x1550   : > { %6658 = vmatpush.bf16.msra.mxu0 %v9117_v0  ;;  %6672 = vmatpush.bf16.msrb.mxu1 %v9213_v10  ;;  %v9330_v0 = vld [vmem:[#allocation18 + $0x51c] sm:$0xf0]  ;;  %v9253_v16 = vor.u32 %v9978_v13, %v9252_v12  ;;  %v9336_v12 = vld [vmem:[#allocation18 + $0x518] sm:$0xf]  ;;  %v9999_v13 = vld [vmem:[#allocation18 + $0x520] sm:$0xf0] }
0x1551   : > { %v9333_v57 = vor.u32 %v9997_v1, %v9330_v0  ;;  %v9979_v0 = vld [vmem:[#allocation18 + $0x484] sm:$0xf] }
0x1553   : > { %6684 = vmatpush.bf16.msra.mxu2 %v9333_v57  ;;  %v9258_v57 = vld [vmem:[#allocation18 + $0x48c] sm:$0xf0] }
0x1554   : > { %6659 = vmatpush.bf16.msra.mxu0 %v9105_v39  ;;  %6673 = vmatpush.bf16.msrb.mxu1 %v9201_v32  ;;  %v10024_v39 = vld [vmem:[#allocation18 + $0x5ec] sm:$0xf]  ;;  %v9261_v3 = vor.u32 %v9979_v0, %v9258_v57 }
0x1555   : > { %v9441_v37 = vor.u32 %v10024_v39, %v9438_v4  ;;  %v9156_v39 = vld [vmem:[#allocation18 + $0x3b0] sm:$0xf]  ;;  %v9954_v4 = vld [vmem:[#allocation18 + $0x3b8] sm:$0xf0] }
0x1556   : > { %v9157_v25 = vor.u32 %v9954_v4, %v9156_v39  ;;  %v5284_v4 = vperm.slane %v11692_v49, 3 }
0x1557   : > { %6685 = vmatpush.bf16.msra.mxu2 %v9321_v41  ;;  %6697 = vmatpush.bf16.msrb.mxu3 %v9441_v37  ;;  %v9381_v37 = vor.u32 %v10009_v61, %v9378_v23  ;;  %v9972_v61 = vld [vmem:[#allocation18 + $0x448] sm:$0xf0] }
0x1558   : > { %6660 = vmatpush.bf16.msra.mxu0 %v9093_v35  ;;  %6674 = vmatpush.bf16.msrb.mxu1 %v9189_v22 }
0x155b   : > { %6686 = vmatpush.bf16.msra.mxu2 %v9309_v56  ;;  %6698 = vmatpush.bf16.msrb.mxu3 %v9429_v7 }
0x155c   : > { %6661 = vmatpush.bf16.msra.mxu0 %v9081_v45  ;;  %6675 = vmatpush.bf16.msrb.mxu1 %v9177_v58  ;;  %v9417_v45 = vor.u32 %v10018_v21, %v9414_v17  ;;  %v10006_v58 = vld [vmem:[#allocation18 + $0x55c] sm:$0xf]  ;;  %v9357_v17 = vor.u32 %v10003_v20, %v9354_v9  ;;  %v9348_v9 = vld [vmem:[#allocation18 + $0x530] sm:$0xf] }
0x155f   : > { %6687 = vmatpush.bf16.msra.mxu2 %v9297_v54  ;;  %6699 = vmatpush.bf16.msrb.mxu3 %v9417_v45  ;;  %v9132_v45 = vld [vmem:[#allocation18 + $0x380] sm:$0xf] }
0x1560   : > { %6662 = vmatpush.bf16.msra.mxu0 %v9069_v27  ;;  %6676 = vmatpush.bf16.msrb.mxu1 %v9165_v8  ;;  %v10012_v27 = vld [vmem:[#allocation18 + $0x58c] sm:$0xf] }
0x1561   : > { %v9393_v32 = vor.u32 %v10012_v27, %v9390_v46 }
0x1563   : > { %6688 = vmatpush.bf16.msra.mxu2 %v9285_v2  ;;  %6700 = vmatpush.bf16.msrb.mxu3 %v9405_v47  ;;  %v9133_v2 = vor.u32 %v9948_v5, %v9132_v45  ;;  %v9072_v45 = vld [vmem:[#allocation18 + $0x308] sm:$0xf]  ;;  %v9933_v5 = vld [vmem:[#allocation18 + $0x310] sm:$0xf0] }
0x1567   : > { %6689 = vmatpush.bf16.msra.mxu2 %v9273_v63  ;;  %6701 = vmatpush.bf16.msrb.mxu3 %v9393_v32  ;;  %v9240_v63 = vld [vmem:[#allocation18 + $0x458] sm:$0xf]  ;;  %v9975_v32 = vld [vmem:[#allocation18 + $0x460] sm:$0xf0] }
0x156b   : > { %6690 = vmatpush.bf16.msra.mxu2 %v9261_v3  ;;  %6702 = vmatpush.bf16.msrb.mxu3 %v9381_v37  ;;  %v9228_v3 = vld [vmem:[#allocation18 + $0x440] sm:$0xf] }
0x156c   : > { %v9229_v39 = vor.u32 %v9972_v61, %v9228_v3 }
0x157f   : > { %v5778_v51 = vpop.f32.mrf.mxu0  ;;  %v5792_v35 = vpop.f32.mrf.mxu1 }
0x1580   : > { %v5779_v6 = vadd.f32 %v5778_v51, %v5281_v34  ;;  %v9951_v51 = vld [vmem:[#allocation18 + $0x3a0] sm:$0xf0] }
0x1581   : > { %v9145_v21 = vor.u32 %v9951_v51, %v9144_v44  ;;  %v9084_v44 = vld [vmem:[#allocation18 + $0x320] sm:$0xf]  ;;  %v9936_v51 = vld [vmem:[#allocation18 + $0x328] sm:$0xf0] }
0x1582   : > { %v5793_v43 = vadd.f32 %v5792_v35, %v5779_v6  ;;  %v9369_v35 = vor.u32 %v10006_v58, %v9366_v52  ;;  %v9120_v6 = vld [vmem:[#allocation18 + $0x368] sm:$0xf] }
0x1584   : > { %6703 = vmatpush.bf16.msrb.mxu3 %v9369_v35 }
0x1586   : > { %v5806_v19 = vpop.f32.mrf.mxu2  ;;  %v5820_v10 = vpop.f32.mrf.mxu3 }
0x1587   : > { %v5780_v24 = vpop.f32.mrf.mxu0  ;;  %v5794_v14 = vpop.f32.mrf.mxu1  ;;  %v5807_v28 = vadd.f32 %v5806_v19, %v5793_v43  ;;  %v5821_v60 = vadd.f32 %v5820_v10, %v5282_v59 }
0x1588   : > { %v5781_v18 = vadd.f32 %v5780_v24, %v5281_v34  ;;  %6704 = vmatpush.bf16.msrb.mxu3 %v9357_v17  ;;  %v9945_v24 = vld [vmem:[#allocation18 + $0x370] sm:$0xf0] }
0x1589   : > { %v5937_v36 = vmax.f32 %v5807_v28, 0.0  ;;  %v9121_v43 = vor.u32 %v9945_v24, %v9120_v6  ;;  %v9108_v28 = vld [vmem:[#allocation18 + $0x350] sm:$0xf]  ;;  %v9073_v24 = vor.u32 %v9933_v5, %v9072_v45 }
0x158a   : > { %v5795_v1 = vadd.f32 %v5794_v14, %v5781_v18  ;;  %v5283_v18 = vperm.slane %v11692_v49, 2  ;;  %v9204_v49 = vld [vmem:[#allocation18 + $0x410] sm:$0xf] }
0x158e   : > { %v5808_v55 = vpop.f32.mrf.mxu2  ;;  %v5822_v22 = vpop.f32.mrf.mxu3 }
0x158f   : > { %v5809_v38 = vadd.f32 %v5808_v55, %v5795_v1  ;;  %v5834_v40 = vpop.f32.mrf.mxu0  ;;  %v5848_v41 = vpop.f32.mrf.mxu1  ;;  %v5823_v8 = vadd.f32 %v5822_v22, %v5282_v59  ;;  %v9942_v1 = vld [vmem:[#allocation18 + $0x358] sm:$0xf0]  ;;  %v9241_v55 = vor.u32 %v9975_v32, %v9240_v63  ;;  %v9324_v32 = vld [vmem:[#allocation18 + $0x500] sm:$0xf] }
0x1590   : > { %v5835_v7 = vadd.f32 %v5834_v40, %v5821_v60  ;;  %v9109_v22 = vor.u32 %v9942_v1, %v9108_v28  ;;  %v9939_v40 = vld [vmem:[#allocation18 + $0x340] sm:$0xf0]  ;;  %v9996_v28 = vld [vmem:[#allocation18 + $0x508] sm:$0xf0]  ;;  %v9444_v1 = vld [vmem:[#allocation18 + $0x5f0] sm:$0xf] }
0x1591   : > { %v5941_v33 = vmax.f32 %v5809_v38, 0.0  ;;  %v9096_v38 = vld [vmem:[#allocation18 + $0x338] sm:$0xf]  ;;  %v9325_v61 = vor.u32 %v9996_v28, %v9324_v32 }
0x1592   : > { %v5849_v42 = vadd.f32 %v5848_v41, %v5835_v7  ;;  %v9097_v37 = vor.u32 %v9939_v40, %v9096_v38  ;;  %v9312_v40 = vld [vmem:[#allocation18 + $0x4e8] sm:$0xf] }
0x1593   : > { %v11696_v56 = vpack.c.bf16 %v5941_v33, %v5937_v36  ;;  %v9216_v36 = vld [vmem:[#allocation18 + $0x428] sm:$0xf]  ;;  %v9969_v33 = vld [vmem:[#allocation18 + $0x430] sm:$0xf0] }
0x1594   : > { %v5938_v14 = vmax.f32 %v5849_v42, 0.0  ;;  %v9217_v20 = vor.u32 %v9969_v33, %v9216_v36  ;;  %v9168_v36 = vld [vmem:[#allocation18 + $0x3c8] sm:$0xf]  ;;  %v9957_v33 = vld [vmem:[#allocation18 + $0x3d0] sm:$0xf0] }
0x1595   : > { %6607 = vmatmul.bf16.vlgmr.msrb.gmra.mxu0 %v11696_v56 }
0x1596   : > { %v5862_v62 = vpop.f32.mrf.mxu2  ;;  %v5876_v26 = vpop.f32.mrf.mxu3  ;;  %6711 = vmatpush.bf16.msrb.mxu0 %v9157_v25 }
0x1597   : > { %v5836_v34 = vpop.f32.mrf.mxu0  ;;  %v5850_v54 = vpop.f32.mrf.mxu1  ;;  %v5863_v57 = vadd.f32 %v5862_v62, %v5283_v18 }
0x1598   : > { %v5837_v19 = vadd.f32 %v5836_v34, %v5823_v8  ;;  %v10002_v8 = vld [vmem:[#allocation18 + $0x538] sm:$0xf0] }
0x1599   : > { %v5877_v41 = vadd.f32 %v5876_v26, %v5863_v57  ;;  %v9085_v26 = vor.u32 %v9936_v51, %v9084_v44  ;;  %v10026_v57 = vld [vmem:[#allocation18 + $0x5f8] sm:$0xf0]  ;;  %v10020_v51 = vld [vmem:[#allocation18 + $0x5c8] sm:$0xf0] }
0x159a   : > { %v5851_v10 = vadd.f32 %v5850_v54, %v5837_v19  ;;  %6712 = vmatpush.bf16.msrb.mxu0 %v9145_v21  ;;  %v9966_v21 = vld [vmem:[#allocation18 + $0x418] sm:$0xf0]  ;;  %v9349_v19 = vor.u32 %v10002_v8, %v9348_v9  ;;  %v9987_v9 = vld [vmem:[#allocation18 + $0x4c0] sm:$0xf0]  ;;  %v9408_v8 = vld [vmem:[#allocation18 + $0x5a8] sm:$0xf] }
0x159b   : > { %v9990_v44 = vld [vmem:[#allocation18 + $0x4d8] sm:$0xf0] }
0x159c   : > { %v5942_v47 = vmax.f32 %v5851_v10, 0.0 }
0x159e   : > { %v11700_v31 = vpack.c.bf16 %v5942_v47, %v5938_v14  ;;  %v5864_v27 = vpop.f32.mrf.mxu2  ;;  %v5878_v46 = vpop.f32.mrf.mxu3  ;;  %6713 = vmatpush.bf16.msrb.mxu0 %v9133_v2  ;;  %v9205_v2 = vor.u32 %v9966_v21, %v9204_v49  ;;  %v9192_v14 = vld [vmem:[#allocation18 + $0x3f8] sm:$0xf]  ;;  %v9963_v47 = vld [vmem:[#allocation18 + $0x400] sm:$0xf0]  ;;  %v9276_v21 = vld [vmem:[#allocation18 + $0x4a0] sm:$0xf] }
0x159f   : > { %v5865_v23 = vadd.f32 %v5864_v27, %v5283_v18  ;;  %v9193_v63 = vor.u32 %v9963_v47, %v9192_v14  ;;  %v9360_v47 = vld [vmem:[#allocation18 + $0x548] sm:$0xf] }
0x15a0   : > { %v5890_v0 = vpop.f32.mrf.mxu0  ;;  %6621 = vmatmul.bf16.vlgmr.msra.gmra.mxu1 %v11700_v31  ;;  %v5904_v59 = vpop.f32.mrf.mxu1 }
0x15a1   : > { %6725 = vmatpush.bf16.msra.mxu1 %v9253_v16  ;;  %v5879_v58 = vadd.f32 %v5878_v46, %v5865_v23  ;;  %v5891_v60 = vadd.f32 %v5890_v0, %v5877_v41  ;;  %v5905_v62 = vadd.f32 %v5904_v59, %v5284_v4  ;;  %v9337_v46 = vor.u32 %v9999_v13, %v9336_v12  ;;  %v9180_v59 = vld [vmem:[#allocation18 + $0x3e0] sm:$0xf]  ;;  %v9993_v41 = vld [vmem:[#allocation18 + $0x4f0] sm:$0xf0]  ;;  %v10011_v12 = vld [vmem:[#allocation18 + $0x580] sm:$0xf0] }
0x15a2   : > { %6714 = vmatpush.bf16.msrb.mxu0 %v9121_v43  ;;  %v9445_v23 = vor.u32 %v10026_v57, %v9444_v1 }
0x15a3   : > { %v5939_v17 = vmax.f32 %v5891_v60, 0.0 }
0x15a5   : > { %6663 = vmatmul.bf16.vlgmr.msra.gmra.mxu0 %v11696_v56  ;;  %6726 = vmatpush.bf16.msra.mxu1 %v9241_v55  ;;  %v9960_v55 = vld [vmem:[#allocation18 + $0x3e8] sm:$0xf0] }
0x15a6   : > { %6715 = vmatpush.bf16.msrb.mxu0 %v9109_v22  ;;  %v9181_v38 = vor.u32 %v9960_v55, %v9180_v59 }
0x15a8   : > { %v5918_v25 = vpop.f32.mrf.mxu2  ;;  %v5932_v52 = vpop.f32.mrf.mxu3 }
0x15a9   : > { %v5892_v35 = vpop.f32.mrf.mxu0  ;;  %6727 = vmatpush.bf16.msra.mxu1 %v9229_v39  ;;  %v5906_v54 = vpop.f32.mrf.mxu1  ;;  %v5919_v42 = vadd.f32 %v5918_v25, %v5905_v62  ;;  %v9432_v39 = vld [vmem:[#allocation18 + $0x5d8] sm:$0xf]  ;;  %v9169_v25 = vor.u32 %v9957_v33, %v9168_v36  ;;  %v10017_v62 = vld [vmem:[#allocation18 + $0x5b0] sm:$0xf0] }
0x15aa   : > { %v5893_v7 = vadd.f32 %v5892_v35, %v5879_v58  ;;  %6716 = vmatpush.bf16.msrb.mxu0 %v9097_v37  ;;  %v5907_v6 = vadd.f32 %v5906_v54, %v5284_v4  ;;  %v10023_v37 = vld [vmem:[#allocation18 + $0x5e0] sm:$0xf0]  ;;  %v9313_v58 = vor.u32 %v9993_v41, %v9312_v40  ;;  %v9409_v49 = vor.u32 %v10017_v62, %v9408_v8  ;;  %v10014_v54 = vld [vmem:[#allocation18 + $0x598] sm:$0xf0] }
0x15ab   : > { %v5933_v16 = vadd.f32 %v5932_v52, %v5919_v42  ;;  %v9433_v60 = vor.u32 %v10023_v37, %v9432_v39  ;;  %v9300_v52 = vld [vmem:[#allocation18 + $0x4d0] sm:$0xf]  ;;  %v9264_v42 = vld [vmem:[#allocation18 + $0x488] sm:$0xf] }
0x15ac   : > { %v5943_v34 = vmax.f32 %v5893_v7, 0.0  ;;  %v9301_v35 = vor.u32 %v9990_v44, %v9300_v52 }
0x15ad   : > { %6728 = vmatpush.bf16.msra.mxu1 %v9217_v20  ;;  %v5940_v22 = vmax.f32 %v5933_v16, 0.0  ;;  %v9288_v20 = vld [vmem:[#allocation18 + $0x4b8] sm:$0xf] }
0x15ae   : > { %v11705_v10 = vpack.c.bf16 %v5943_v34, %v5939_v17  ;;  %6717 = vmatpush.bf16.msrb.mxu0 %v9085_v26  ;;  %v9289_v26 = vor.u32 %v9987_v9, %v9288_v20  ;;  %v9984_v17 = vld [vmem:[#allocation18 + $0x4a8] sm:$0xf0]  ;;  %v9396_v34 = vld [vmem:[#allocation18 + $0x590] sm:$0xf] }
0x15af   : > { %v9277_v45 = vor.u32 %v9984_v17, %v9276_v21  ;;  %v9397_v5 = vor.u32 %v10014_v54, %v9396_v34 }
0x15b0   : > { %v5920_v18 = vpop.f32.mrf.mxu2  ;;  %6635 = vmatmul.bf16.vlgmr.msrb.gmra.mxu2 %v11705_v10  ;;  %6677 = vmatmul.bf16.vlgmr.msrb.gmra.mxu1 %v11700_v31  ;;  %v5934_v43 = vpop.f32.mrf.mxu3 }
0x15b1   : > { %v5921_v27 = vadd.f32 %v5920_v18, %v5907_v6  ;;  %6739 = vmatpush.bf16.msrb.mxu2 %v9349_v19  ;;  %6729 = vmatpush.bf16.msra.mxu1 %v9205_v2  ;;  %v9981_v19 = vld [vmem:[#allocation18 + $0x490] sm:$0xf0]  ;;  %v9384_v2 = vld [vmem:[#allocation18 + $0x578] sm:$0xf]  ;;  %v9372_v6 = vld [vmem:[#allocation18 + $0x560] sm:$0xf] }
0x15b2   : > { %6718 = vmatpush.bf16.msrb.mxu0 %v9073_v24  ;;  %v9265_v13 = vor.u32 %v9981_v19, %v9264_v42  ;;  %v10008_v24 = vld [vmem:[#allocation18 + $0x568] sm:$0xf0]  ;;  %v10005_v18 = vld [vmem:[#allocation18 + $0x550] sm:$0xf0] }
0x15b3   : > { %v5935_v0 = vadd.f32 %v5934_v43, %v5921_v27  ;;  %v9373_v14 = vor.u32 %v10008_v24, %v9372_v6  ;;  %v9361_v16 = vor.u32 %v10005_v18, %v9360_v47 }
0x15b5   : > { %v5944_v3 = vmax.f32 %v5935_v0, 0.0  ;;  %6740 = vmatpush.bf16.msrb.mxu2 %v9337_v46  ;;  %6719 = vmatmul.bf16.vlgmr.msrb.gmra.mxu0 %v11696_v56  ;;  %v9420_v56 = vld [vmem:[#allocation18 + $0x5c0] sm:$0xf] }
0x15b6   : > { %6730 = vmatpush.bf16.msra.mxu1 %v9193_v63  ;;  %v9421_v7 = vor.u32 %v10020_v51, %v9420_v56 }
0x15b7   : > { %v5948_v4 = vpack.c.bf16 %v5944_v3, %v5940_v22 }
0x15b9   : > { %6649 = vmatmul.bf16.vlgmr.msra.gmra.mxu3 %v5948_v4  ;;  %6741 = vmatpush.bf16.msrb.mxu2 %v9325_v61  ;;  %v6079_v61 = vld [vmem:[#allocation19 + $0x3] sm:$0x7] }
0x15ba   : > { %6753 = vmatpush.bf16.msra.mxu3 %v9445_v23  ;;  %6731 = vmatpush.bf16.msra.mxu1 %v9181_v38  ;;  %v6082_v38 = vperm.slane %v6079_v61, 1  ;;  %v6081_v40 = vperm.slane %v6079_v61, 0  ;;  %v6083_v36 = vperm.slane %v6079_v61, 2 }
0x15bd   : > { %6742 = vmatpush.bf16.msrb.mxu2 %v9313_v58 }
0x15be   : > { %6754 = vmatpush.bf16.msra.mxu3 %v9433_v60  ;;  %6732 = vmatpush.bf16.msra.mxu1 %v9169_v25 }
0x15c0   : > { %6691 = vmatmul.bf16.vlgmr.msra.gmra.mxu2 %v11705_v10 }
0x15c1   : > { %6743 = vmatpush.bf16.msrb.mxu2 %v9301_v35  ;;  %6733 = vmatmul.bf16.vlgmr.msra.gmra.mxu1 %v11700_v31  ;;  %v9385_v31 = vor.u32 %v10011_v12, %v9384_v2 }
0x15c2   : > { %6755 = vmatpush.bf16.msra.mxu3 %v9421_v7 }
0x15c5   : > { %6744 = vmatpush.bf16.msrb.mxu2 %v9289_v26 }
0x15c6   : > { %6756 = vmatpush.bf16.msra.mxu3 %v9409_v49 }
0x15c9   : > { %6705 = vmatmul.bf16.vlgmr.msrb.gmra.mxu3 %v5948_v4  ;;  %6745 = vmatpush.bf16.msrb.mxu2 %v9277_v45 }
0x15ca   : > { %6757 = vmatpush.bf16.msra.mxu3 %v9397_v5 }
0x15cd   : > { %6746 = vmatpush.bf16.msrb.mxu2 %v9265_v13 }
0x15ce   : > { %6758 = vmatpush.bf16.msra.mxu3 %v9385_v31 }
0x15d0   : > { %6747 = vmatmul.bf16.vlgmr.msrb.gmra.mxu2 %v11705_v10 }
0x15d2   : > { %6759 = vmatpush.bf16.msra.mxu3 %v9373_v14 }
0x15d6   : > { %6760 = vmatpush.bf16.msra.mxu3 %v9361_v16 }
0x15d9   : > { %6761 = vmatmul.bf16.vlgmr.msra.gmra.mxu3 %v5948_v4 }
0x1612   : > { %v6608_v27 = vpop.f32.mrf.mxu0 }
0x1613   : > { %v6609_v4 = vadd.f32 %v6608_v27, %v6081_v40 }
0x161a   : > { %v6610_v63 = vpop.f32.mrf.mxu0 }
0x161b   : > { %v6611_v9 = vadd.f32 %v6610_v63, %v6081_v40 }
0x161d   : > { %v6622_v46 = vpop.f32.mrf.mxu1 }
0x161e   : > { %v6623_v60 = vadd.f32 %v6622_v46, %v6609_v4 }
0x1622   : > { %v6664_v0 = vpop.f32.mrf.mxu0 }
0x1623   : > { %v6665_v41 = vadd.f32 %v6664_v0, %v6082_v38 }
0x1625   : > { %v6624_v32 = vpop.f32.mrf.mxu1 }
0x1626   : > { %v6625_v49 = vadd.f32 %v6624_v32, %v6611_v9 }
0x162a   : > { %v6666_v22 = vpop.f32.mrf.mxu0 }
0x162b   : > { %v6667_v35 = vadd.f32 %v6666_v22, %v6082_v38 }
0x162d   : > { %v6678_v57 = vpop.f32.mrf.mxu1 }
0x162e   : > { %v6679_v37 = vadd.f32 %v6678_v57, %v6665_v41 }
0x1632   : > { %v6720_v39 = vpop.f32.mrf.mxu0 }
0x1633   : > { %v6636_v43 = vpop.f32.mrf.mxu2  ;;  %v6721_v56 = vadd.f32 %v6720_v39, %v6083_v36 }
0x1634   : > { %v6637_v44 = vadd.f32 %v6636_v43, %v6623_v60 }
0x1635   : > { %v6680_v3 = vpop.f32.mrf.mxu1 }
0x1636   : > { %v6681_v8 = vadd.f32 %v6680_v3, %v6667_v35  ;;  %v6774_v35 = vld [vmem:[#allocation21 + $0x3] sm:$0x7] }
0x163a   : > { %v6722_v21 = vpop.f32.mrf.mxu0 }
0x163b   : > { %v6638_v28 = vpop.f32.mrf.mxu2  ;;  %v6723_v19 = vadd.f32 %v6722_v21, %v6083_v36 }
0x163c   : > { %v6650_v1 = vpop.f32.mrf.mxu3  ;;  %v6639_v5 = vadd.f32 %v6638_v28, %v6625_v49  ;;  %v6846_v49 = vperm.slane %v6774_v35, 2 }
0x163d   : > { %v6651_v7 = vadd.f32 %v6650_v1, %v6637_v44 }
0x163e   : > { %v6734_v33 = vpop.f32.mrf.mxu1 }
0x163f   : > { %v6735_v20 = vadd.f32 %v6734_v33, %v6721_v56  ;;  %v6767_v34 = vadd.f32 %v6651_v7, %v11653_v53 }
0x1643   : > { %v6692_v59 = vpop.f32.mrf.mxu2 }
0x1644   : > { %v6652_v55 = vpop.f32.mrf.mxu3  ;;  %v6693_v25 = vadd.f32 %v6692_v59, %v6679_v37 }
0x1645   : > { %v6653_v6 = vadd.f32 %v6652_v55, %v6639_v5 }
0x1646   : > { %v6736_v42 = vpop.f32.mrf.mxu1 }
0x1647   : > { %v6737_v24 = vadd.f32 %v6736_v42, %v6723_v19  ;;  %v6770_v53 = vadd.f32 %v6653_v6, %v11657_v50 }
0x164b   : > { %v6694_v23 = vpop.f32.mrf.mxu2 }
0x164c   : > { %v6706_v10 = vpop.f32.mrf.mxu3  ;;  %v6695_v54 = vadd.f32 %v6694_v23, %v6681_v8 }
0x164d   : > { %v6707_v51 = vadd.f32 %v6706_v10, %v6693_v25 }
0x164f   : > { %v6768_v62 = vadd.f32 %v6707_v51, %v11655_v29 }
0x1651   : > { %v6777_v13 = vadd.f32 %v6768_v62, %v6767_v34 }
0x1653   : > { %v6748_v52 = vpop.f32.mrf.mxu2 }
0x1654   : > { %v6708_v58 = vpop.f32.mrf.mxu3  ;;  %v6749_v26 = vadd.f32 %v6748_v52, %v6735_v20  ;;  %v6776_v20 = vld [vmem:[#allocation22 + $0x3] sm:$0x7] }
0x1655   : > { %v6709_v2 = vadd.f32 %v6708_v58, %v6695_v54  ;;  %v6857_v21 = vperm.slane %v6776_v20, 0 }
0x1657   : > { %v6771_v29 = vadd.f32 %v6709_v2, %v11659_v11 }
0x1659   : > { %v6781_v46 = vadd.f32 %v6771_v29, %v6770_v53 }
0x165b   : > { %v6750_v31 = vpop.f32.mrf.mxu2 }
0x165c   : > { %v6762_v17 = vpop.f32.mrf.mxu3  ;;  %v6751_v47 = vadd.f32 %v6750_v31, %v6737_v24 }
0x165d   : > { %v6763_v45 = vadd.f32 %v6762_v17, %v6749_v26  ;;  %v6845_v26 = vperm.slane %v6774_v35, 1  ;;  %v6858_v17 = vperm.slane %v6776_v20, 1 }
0x165f   : > { %v6769_v12 = vadd.f32 %v6763_v45, %v11661_v15  ;;  %v6859_v45 = vperm.slane %v6776_v20, 2 }
0x1661   : > { %v6778_v14 = vadd.f32 %v6777_v13, %v6769_v12 }
0x1663   : > { %6779 = vadd.xlane.f32.xlu0 %v6778_v14 }
0x1664   : > { %v6764_v18 = vpop.f32.mrf.mxu3 }
0x1665   : > { %v6765_v16 = vadd.f32 %v6764_v18, %v6751_v47 }
0x1667   : > { %v6772_v27 = vadd.f32 %v6765_v16, %v11663_v30 }
0x1669   : > { %v6782_v43 = vadd.f32 %v6781_v46, %v6772_v27 }
0x166b   : > { %6783 = vadd.xlane.f32.xlu1 %v6782_v43 }
0x16d6   : > { %v6780_v63 = vpop.xlane.xlu0 %6779 }
0x16d7   : > { %v6785_v15 = vmul.f32 0.0033333334, %v6780_v63 }
0x16d9   : > { %v6787_v32 = vsub.f32 %v6767_v34, %v6785_v15  ;;  %v6788_v28 = vsub.f32 %v6768_v62, %v6785_v15  ;;  %v6789_v1 = vsub.f32 %v6769_v12, %v6785_v15  ;;  %v6844_v62 = vperm.slane %v6774_v35, 0 }
0x16db   : > { %v6795_v0 = vmul.f32 %v11083_v48, %v6789_v1  ;;  %v6799_v57 = vmul.f32 %v6787_v32, %v6787_v32  ;;  %v6800_v11 = vmul.f32 %v6788_v28, %v6788_v28 }
0x16dd   : > { %v6801_v59 = vmul.f32 %v6795_v0, %v6795_v0  ;;  %v6805_v55 = vadd.f32 %v6800_v11, %v6799_v57 }
0x16de   : > { %v6784_v22 = vpop.xlane.xlu1 %6783 }
0x16df   : > { %v6786_v3 = vmul.f32 0.0033333334, %v6784_v22  ;;  %v6806_v50 = vadd.f32 %v6805_v55, %v6801_v59 }
0x16e1   : > { %v6790_v61 = vsub.f32 %v6770_v53, %v6786_v3  ;;  %v6791_v23 = vsub.f32 %v6771_v29, %v6786_v3  ;;  %v6792_v30 = vsub.f32 %v6772_v27, %v6786_v3  ;;  %6807 = vadd.xlane.f32.xlu2 %v6806_v50 }
0x16e3   : > { %v6798_v10 = vmul.f32 %v11083_v48, %v6792_v30  ;;  %v6802_v38 = vmul.f32 %v6790_v61, %v6790_v61  ;;  %v6803_v40 = vmul.f32 %v6791_v23, %v6791_v23 }
0x16e5   : > { %v6804_v41 = vmul.f32 %v6798_v10, %v6798_v10  ;;  %v6809_v39 = vadd.f32 %v6803_v40, %v6802_v38 }
0x16e7   : > { %v6810_v4 = vadd.f32 %v6809_v39, %v6804_v41 }
0x16e9   : > { %6811 = vadd.xlane.f32.xlu0 %v6810_v4 }
0x1754   : > { %v6808_v37 = vpop.xlane.xlu2 %6807 }
0x1755   : > { %v6813_v36 = vmul.f32 0.0033333334, %v6808_v37 }
0x1757   : > { %v6815_v33 = vadd.f32 1e-06, %v6813_v36 }
0x1759   : > { %10283 = vrsqrt.f32 %v6815_v33  ;;  %vm6823_vm0 = vweird.f32 %v6815_v33 }
0x175c   : > { %v6812_v58 = vpop.xlane.xlu0 %6811 }
0x175d   : > { %v6814_v60 = vmul.f32 0.0033333334, %v6812_v58 }
0x175f   : > { %v10284_v25 = vpop.eup %10283  ;;  %v6816_v52 = vadd.f32 1e-06, %v6814_v60 }
0x1760   : > { %v6818_v44 = vmul.f32 %v10284_v25, %v6815_v33  ;;  %vm6824_vm15 = vweird.f32 %v10284_v25 }
0x1761   : > { %10285 = vrsqrt.f32 %v6816_v52  ;;  %vm6825_vm1 = vmor %vm6823_vm0, %vm6824_vm15  ;;  %vm6833_vm3 = vweird.f32 %v6816_v52 }
0x1762   : > { %v6819_v56 = vmul.f32 %v10284_v25, %v6818_v44 }
0x1764   : > { %v6820_v51 = vmul.f32 0.5, %v6819_v56 }
0x1766   : > { %v6821_v48 = vsub.f32 1.5, %v6820_v51 }
0x1767   : > { %v10286_v7 = vpop.eup %10285 }
0x1768   : > { %v6822_v9 = vmul.f32 %v10284_v25, %v6821_v48  ;;  %v6828_v8 = vmul.f32 %v10286_v7, %v6816_v52  ;;  %vm6834_vm2 = vweird.f32 %v10286_v7 }
0x1769   : > { %vm6835_vm4 = vmor %vm6833_vm3, %vm6834_vm2 }
0x176a   : > { %v6826_v34 = vsel %vm6825_vm1, %v10284_v25, %v6822_v9  ;;  %v6829_v54 = vmul.f32 %v10286_v7, %v6828_v8 }
0x176b   : > { %v6837_v5 = vmul.f32 %v6826_v34, %v6787_v32  ;;  %v6838_v42 = vmul.f32 %v6826_v34, %v6788_v28  ;;  %v6839_v19 = vmul.f32 %v6826_v34, %v6795_v0 }
0x176c   : > { %v6830_v2 = vmul.f32 0.5, %v6829_v54 }
0x176d   : > { %v6850_v12 = vmul.f32 %v6844_v62, %v6837_v5  ;;  %v6851_v13 = vmul.f32 %v6845_v26, %v6838_v42  ;;  %v6852_v31 = vmul.f32 %v6846_v49, %v6839_v19 }
0x176e   : > { %v6831_v6 = vsub.f32 1.5, %v6830_v2 }
0x176f   : > { %v6863_v24 = vadd.f32 %v6857_v21, %v6850_v12  ;;  %v6864_v14 = vadd.f32 %v6858_v17, %v6851_v13  ;;  %v6865_v29 = vadd.f32 %v6859_v45, %v6852_v31 }
0x1770   : > { %v6832_v47 = vmul.f32 %v10286_v7, %v6831_v6 }
0x1771   : > { %6869 = vst [vmem:[%s648_s5] sm:$0xff] %v6863_v24 }
0x1772   : > { %6870 = vst [vmem:[%s648_s5 + $0x8] sm:$0xff] %v6864_v14  ;;  %v6836_v18 = vsel %vm6835_vm4, %v10286_v7, %v6832_v47 }
0x1773   : > { %6871 = vst [vmem:[%s648_s5 + $0x10] sm:$0xff] %v6865_v29  ;;  %v6840_v53 = vmul.f32 %v6836_v18, %v6790_v61  ;;  %v6841_v16 = vmul.f32 %v6836_v18, %v6791_v23  ;;  %v6842_v27 = vmul.f32 %v6836_v18, %v6798_v10 }
0x1775   : > { %v6853_v46 = vmul.f32 %v6844_v62, %v6840_v53  ;;  %v6854_v43 = vmul.f32 %v6845_v26, %v6841_v16  ;;  %v6855_v63 = vmul.f32 %v6846_v49, %v6842_v27 }
0x1777   : > { %v6866_v15 = vadd.f32 %v6857_v21, %v6853_v46  ;;  %v6867_v32 = vadd.f32 %v6858_v17, %v6854_v43  ;;  %v6868_v28 = vadd.f32 %v6859_v45, %v6855_v63 }
0x1779   : > { %6872 = vst [vmem:[%s648_s5 + $0x18] sm:$0xff] %v6866_v15 }
0x177a   : > { %6873 = vst [vmem:[%s648_s5 + $0x20] sm:$0xff] %v6867_v32 }
0x177b   : > { %6874 = vst [vmem:[%s648_s5 + $0x28] sm:$0xff] %v6868_v28 }
0x177c   : > { %10686 = shalt.err (!%p10683_p9)
}
0x177d   : > { %s10777_s7 = smov 384   ;;  %s10778_s29 = smov 24  }
0x177e   : > { %10077 = dma.vmem_to_hbm [thread:$0]  (%p10997_p0), %s6890_s23, 768, %s6892_s27, %s6876_s3, %s10777_s7, %s10777_s7, %s10778_s29  }
0x177f PF: > { %s6906_s26 = sand.u32 1, %s10739_s17   ;;  %p11812_p10 = scmp.ge.s32.totalorder %s10751_s19, 2 }
0x1780   : > { %s6907_s5 = scalar_lea.sflag [#allocation6], %s6906_s26 }
0x1781   : > { %p10118_p11 = pnand %p11812_p10, %p11003_p6 }
0x1783   : > { %p10119_p12 = pneg %p10118_p11 }
0x1785   : > { %10734 = dma.done.wait (%p10119_p12), %s6907_s5, 768  }
0x1786   : > { %10736 = vsyncadd (%p10119_p12), %s6907_s5, 4294966528  ;;  %p41_p2 = scmp.ge.s32.totalorder %s10977_s20, 4   ;;  %s11813_s17 = smov %s10743_s18 }
0x1787   : > { %s11814_s18 = smov %s10747_s0  ;;  %s11815_s0 = smov %s10989_s14 }
0x1788   : > { %s11816_s19 = smov %s10977_s20  ;;  %43 = sbr.rel (!%p41_p2) target bundleno = 26 (0x1a), region = 177 }
0x178d   :  { %6913 = vsyncpa [#allocation5], 1 }
0x178e   :  { %6915 = vsyncpa [#allocation5 + $0x1], 1 }
0x178f   :  { %6916 = vsyncpa [#allocation8], 1 }
0x1790   :  { %6917 = vsyncpa [#allocation11], 1 }
0x1791   :  { %6918 = vsyncpa [#allocation14], 1 }
0x1792   :  { %6919 = vsyncpa [#allocation17], 1 }
0x1793   :  { %6920 = vsyncpa [#allocation20], 1 }
0x1794   :  { %6921 = vsyncpa [#allocation23], 1 }
0x1795   :  { %6922 = vsyncpa [#allocation6], 1 }
0x1796   :  { %6924 = vsyncpa [#allocation6 + $0x1], 1 }

</bundles_post_ra>
